<compile_context>
chip_gen: v7x
topology: tpu7x:2x2x1
jax: 0.10.0
libtpu: 0.0.40
codegen_flags: <defaults>
</compile_context>

<pallas_src>
import jax
import jax.numpy as jnp
from jax.experimental import pallas as pl
from jax.experimental.pallas import tpu as pltpu


def _stage_compute(src_ref, w_ref, b_ref, n, hi, wi, cin, cout):
    """One encoder stage: 3x3 conv (stride 2, pad 1) + bias + ReLU.

    src_ref : (n*(hi+2), wi+2, cin) bf16, zero-padded 1px border per image.
    w_ref   : (9*cin, cout) bf16, rows ordered (kh, kw, cin).
    b_ref   : (1, cout) f32.
    returns : (n*ho*wo, cout) f32, rows ordered (n, i, j).
    """
    ho, wo = hi // 2, wi // 2
    hp, wp = hi + 2, wi + 2
    wq = wp // 2                      # = wo + 1

    v = src_ref[...]                  # one whole-block load, (n*hp, wp, cin)

    # --- W decimation: split padded columns into even/odd slabs using only
    #     unit slices + one concat per parity (wq <= 9 at these sizes).
    #     even[q] = padded col 2q, odd[q] = padded col 2q+1.
    even = jnp.concatenate([v[:, 2 * q:2 * q + 1, :] for q in range(wq)], axis=1)
    odd = jnp.concatenate([v[:, 2 * q + 1:2 * q + 2, :] for q in range(wq)], axis=1)

    # --- H decimation: pure leading-dim reshape (last two dims untouched).
    even = even.reshape(n, ho + 1, 2, wq, cin)
    odd = odd.reshape(n, ho + 1, 2, wq, cin)

    # --- 9 im2col taps, each (n, ho, wo, cin), from unit slices only.
    #     output (i, j) reads padded row 2i+kh and padded col 2j+kw.
    taps = []
    for kh in range(3):
        dh, rh = divmod(kh, 2)               # kh: 0->(0,0), 1->(0,1), 2->(1,0)
        e_h = even[:, dh:dh + ho, rh]        # (n, ho, wq, cin)
        o_h = odd[:, dh:dh + ho, rh]
        taps.append(e_h[:, :, 0:wo, :])      # kw=0: padded col 2j
        taps.append(o_h[:, :, 0:wo, :])      # kw=1: padded col 2j+1
        taps.append(e_h[:, :, 1:wo + 1, :])  # kw=2: padded col 2j+2
    im = jnp.concatenate(taps, axis=-1)      # (n, ho, wo, 9*cin)

    # --- Flatten M = n*ho*wo via leading-dim reshape + sublane concat
    #     (avoids unsupported "merge leading dim into sublanes" value reshape).
    im = im.reshape(n * ho, wo, 9 * cin)
    im2 = jnp.concatenate([im[r] for r in range(n * ho)], axis=0)  # (M, 9cin)

    # --- ONE MXU matmul per stage, f32 accumulation; bias + ReLU in f32.
    acc = jnp.dot(im2, w_ref[...], preferred_element_type=jnp.float32)
    return jnp.maximum(acc + b_ref[...], 0.0)


def _store_padded(y, dst_ref, n, ho, wo, cout):
    """Write y ((n*ho*wo, cout) f32, rows (n, i, j)) as the zero-padded bf16
    input of the next stage.  dst_ref: (n*(ho+2), wo+2, cout) bf16 scratch."""
    dst_ref[...] = jnp.zeros(dst_ref.shape, dst_ref.dtype)
    yb = y.astype(dst_ref.dtype)
    for nn in range(n):
        for i in range(ho):
            r = nn * ho + i
            row = nn * (ho + 2) + i + 1
            dst_ref[row:row + 1, 1:wo + 1, :] = yb[r * wo:(r + 1) * wo, :][None]


@jax.jit
def _encoder_forward(x_nchw, weights, biases):
    n, cin, h, w = x_nchw.shape
    div = 2 ** len(weights)
    assert h % div == 0 and w % div == 0
    # TODO(synk): odd spatial sizes (ho = floor((H-1)/2)+1) are not supported.

    # NHWC, zero-pad 1px border, fold batch into the padded-H axis, bf16.
    xp = jnp.transpose(x_nchw, (0, 2, 3, 1))
    xp = jnp.pad(xp, ((0, 0), (1, 1), (1, 1), (0, 0)))
    xp = xp.reshape(n * (h + 2), w + 2, cin).astype(jnp.bfloat16)

    # Static per-stage geometry: (hi, wi, cin, cout).
    geom = []
    ci, hi, wi = cin, h, w
    for wt in weights:
        co = wt.shape[-1]
        geom.append((hi, wi, ci, co))
        hi, wi, ci = hi // 2, wi // 2, co
    ns = len(geom)

    # Kernel inputs: padded image + per-stage packed weights / biases.
    args = [xp]
    in_specs = [pl.BlockSpec(xp.shape, lambda i: (0, 0, 0))]
    for (sh, sw, sci, sco), wt, bs in zip(geom, weights, biases):
        wr = wt.reshape(9 * sci, sco).astype(jnp.bfloat16)   # rows = (kh,kw,cin)
        br = bs.reshape(1, sco).astype(jnp.float32)
        args += [wr, br]
        in_specs += [pl.BlockSpec(wr.shape, lambda i: (0, 0)),
                     pl.BlockSpec(br.shape, lambda i: (0, 0))]

    out_shapes, out_specs, scratch_shapes = [], [], []
    flops, bytes_acc = 0, xp.size * 2
    for s, (sh, sw, sci, sco) in enumerate(geom):
        ho, wo = sh // 2, sw // 2
        out_shapes.append(jax.ShapeDtypeStruct((n * ho * wo, sco), jnp.float32))
        out_specs.append(pl.BlockSpec((n * ho * wo, sco), lambda i: (0, 0)))
        if s + 1 < ns:   # VMEM scratch holding the next stage's padded input
            scratch_shapes.append(
                pltpu.VMEM((n * (ho + 2), wo + 2, sco), jnp.bfloat16))
        flops += 2 * (n * ho * wo) * (9 * sci) * sco
        bytes_acc += (9 * sci * sco) * 2 + sco * 4 + (n * ho * wo * sco) * 4

    def kernel(*refs):
        x_ref = refs[0]
        w_refs = [refs[1 + 2 * s] for s in range(ns)]
        b_refs = [refs[2 + 2 * s] for s in range(ns)]
        o_refs = [refs[1 + 2 * ns + s] for s in range(ns)]
        s_refs = [refs[1 + 3 * ns + s] for s in range(ns - 1)]

        src = x_ref
        for s, (sh, sw, sci, sco) in enumerate(geom):
            ho, wo = sh // 2, sw // 2
            y = _stage_compute(src, w_refs[s], b_refs[s], n, sh, sw, sci, sco)
            o_refs[s][...] = y                       # dense (M, cout) f32 slab
            if s + 1 < ns:                           # next input stays in VMEM
                _store_padded(y, s_refs[s], n, ho, wo, sco)
                src = s_refs[s]

    outs = pl.pallas_call(
        kernel,
        out_shape=out_shapes,
        grid=(1,),            # single step: whole batch folded into matmul M
        in_specs=in_specs,
        out_specs=out_specs,
        scratch_shapes=scratch_shapes,
        compiler_params=pltpu.CompilerParams(
            dimension_semantics=("arbitrary",),
            vmem_limit_bytes=32 * 1024 * 1024),
        cost_estimate=pl.CostEstimate(
            flops=int(flops), transcendentals=0,
            bytes_accessed=int(bytes_acc)),
    )(*args)

    # Un-flatten + NCHW (PyTorch convention) only for the returned levels.
    # TODO(synk): if the downstream FPN consumes NHWC, drop these transposes.
    results = []
    for (sh, sw, sci, sco), o in zip(geom, outs):
        ho, wo = sh // 2, sw // 2
        results.append(jnp.transpose(o.reshape(n, ho, wo, sco), (0, 3, 1, 2)))
    return tuple(results)


class RetinaNetEncoder:
    """Concrete 4-level pyramid encoder realizing the RetinaNetEncoder contract."""

    STAGE_CHANNELS = (8, 16, 32, 64)

    def __init__(self, in_channels=4, key=None):
        if key is None:
            key = jax.random.PRNGKey(0)
        self.fpn_sizes = []
        self.weights = []
        self.biases = []
        cin = in_channels
        for cout in self.STAGE_CHANNELS:
            key, wk = jax.random.split(key)
            fan_in = 3 * 3 * cin
            wmat = jax.random.normal(wk, (3, 3, cin, cout), jnp.float32)
            self.weights.append(wmat * jnp.sqrt(2.0 / fan_in))   # Kaiming-style
            self.biases.append(jnp.zeros((cout,), jnp.float32))
            self.fpn_sizes.append(cout)
            cin = cout

    def __call__(self, x_nchw):
        """x_nchw: (N, C, H, W) f32 -> (x1, x2, x3, x4), each NCHW f32."""
        return _encoder_forward(x_nchw, self.weights, self.biases)


def _reference_forward(x_nchw, weights, biases):
    """Pure-JAX (XLA conv) reference, f32 end to end."""
    x = jnp.transpose(x_nchw, (0, 2, 3, 1))
    outs = []
    for wt, b in zip(weights, biases):
        x = jax.lax.conv_general_dilated(
            x, wt, window_strides=(2, 2), padding=((1, 1), (1, 1)),
            dimension_numbers=('NHWC', 'HWIO', 'NHWC'))
        x = jnp.maximum(x + b, 0.0)
        outs.append(jnp.transpose(x, (0, 3, 1, 2)))
    return tuple(outs)


if __name__ == "__main__":
    key = jax.random.PRNGKey(0)
    x = jax.random.normal(key, (2, 4, 16, 16), jnp.float32)

    enc = RetinaNetEncoder(in_channels=4, key=jax.random.PRNGKey(0))
    outs = enc(x)
    jax.block_until_ready(outs)

    x1, x2, x3, x4 = outs
    assert x1.shape == (2, 8, 8, 8)
    assert x2.shape == (2, 16, 4, 4)
    assert x3.shape == (2, 32, 2, 2)
    assert x4.shape == (2, 64, 1, 1)
    assert enc.fpn_sizes == [8, 16, 32, 64]

    # Check vs. an f32 XLA reference (kernel uses bf16 matmul operands).
    refs = _reference_forward(x, enc.weights, enc.biases)
    for got, ref in zip(outs, refs):
        assert jnp.allclose(got, ref, rtol=5e-2, atol=5e-2), float(
            jnp.max(jnp.abs(got - ref)))

    print("KERNEL_OK")
</pallas_src>

<mosaic_0001>
module attributes {stable_mosaic.version = 11 : i64} {
  func.func @kernel(%arg0: i32, %arg1: memref<36x18x4xbf16, #tpu.memory_space<vmem>>, %arg2: memref<36x8xbf16, #tpu.memory_space<vmem>>, %arg3: memref<1x8xf32, #tpu.memory_space<vmem>>, %arg4: memref<72x16xbf16, #tpu.memory_space<vmem>>, %arg5: memref<1x16xf32, #tpu.memory_space<vmem>>, %arg6: memref<144x32xbf16, #tpu.memory_space<vmem>>, %arg7: memref<1x32xf32, #tpu.memory_space<vmem>>, %arg8: memref<288x64xbf16, #tpu.memory_space<vmem>>, %arg9: memref<1x64xf32, #tpu.memory_space<vmem>>, %arg10: memref<128x8xf32, #tpu.memory_space<vmem>>, %arg11: memref<32x16xf32, #tpu.memory_space<vmem>>, %arg12: memref<8x32xf32, #tpu.memory_space<vmem>>, %arg13: memref<2x64xf32, #tpu.memory_space<vmem>>, %arg14: memref<20x10x8xbf16, #tpu.memory_space<vmem>>, %arg15: memref<12x6x16xbf16, #tpu.memory_space<vmem>>, %arg16: memref<8x4x32xbf16, #tpu.memory_space<vmem>>) attributes {dimension_semantics = [#tpu.dimension_semantics<arbitrary>], iteration_bounds = array<i64: 1>, scalar_prefetch = 0 : i64, scratch_operands = 3 : i64, tpu.core_type = #tpu.core_type<tc>, window_params = [{pipeline_mode = #tpu.pipeline_mode<synchronous>, transform_indices = @transform_0, window_bounds = array<i64: 36, 18, 4>}, {pipeline_mode = #tpu.pipeline_mode<synchronous>, transform_indices = @transform_1, window_bounds = array<i64: 36, 8>}, {pipeline_mode = #tpu.pipeline_mode<synchronous>, transform_indices = @transform_2, window_bounds = array<i64: 1, 8>}, {pipeline_mode = #tpu.pipeline_mode<synchronous>, transform_indices = @transform_3, window_bounds = array<i64: 72, 16>}, {pipeline_mode = #tpu.pipeline_mode<synchronous>, transform_indices = @transform_4, window_bounds = array<i64: 1, 16>}, {pipeline_mode = #tpu.pipeline_mode<synchronous>, transform_indices = @transform_5, window_bounds = array<i64: 144, 32>}, {pipeline_mode = #tpu.pipeline_mode<synchronous>, transform_indices = @transform_6, window_bounds = array<i64: 1, 32>}, {pipeline_mode = #tpu.pipeline_mode<synchronous>, transform_indices = @transform_7, window_bounds = array<i64: 288, 64>}, {pipeline_mode = #tpu.pipeline_mode<synchronous>, transform_indices = @transform_8, window_bounds = array<i64: 1, 64>}, {pipeline_mode = #tpu.pipeline_mode<synchronous>, transform_indices = @transform_9, window_bounds = array<i64: 128, 8>}, {pipeline_mode = #tpu.pipeline_mode<synchronous>, transform_indices = @transform_10, window_bounds = array<i64: 32, 16>}, {pipeline_mode = #tpu.pipeline_mode<synchronous>, transform_indices = @transform_11, window_bounds = array<i64: 8, 32>}, {pipeline_mode = #tpu.pipeline_mode<synchronous>, transform_indices = @transform_12, window_bounds = array<i64: 2, 64>}]} {
    %c0 = arith.constant 0 : index
    %c0_0 = arith.constant 0 : index
    %c0_1 = arith.constant 0 : index
    %0 = vector.load %arg1[%c0, %c0_0, %c0_1] : memref<36x18x4xbf16, #tpu.memory_space<vmem>>, vector<36x18x4xbf16>
    %1 = vector.extract_strided_slice %0 {offsets = [0, 0, 0], sizes = [36, 1, 4], strides = [1, 1, 1]} : vector<36x18x4xbf16> to vector<36x1x4xbf16>
    %2 = vector.extract_strided_slice %0 {offsets = [0, 2, 0], sizes = [36, 1, 4], strides = [1, 1, 1]} : vector<36x18x4xbf16> to vector<36x1x4xbf16>
    %3 = vector.extract_strided_slice %0 {offsets = [0, 4, 0], sizes = [36, 1, 4], strides = [1, 1, 1]} : vector<36x18x4xbf16> to vector<36x1x4xbf16>
    %4 = vector.extract_strided_slice %0 {offsets = [0, 6, 0], sizes = [36, 1, 4], strides = [1, 1, 1]} : vector<36x18x4xbf16> to vector<36x1x4xbf16>
    %5 = vector.extract_strided_slice %0 {offsets = [0, 8, 0], sizes = [36, 1, 4], strides = [1, 1, 1]} : vector<36x18x4xbf16> to vector<36x1x4xbf16>
    %6 = vector.extract_strided_slice %0 {offsets = [0, 10, 0], sizes = [36, 1, 4], strides = [1, 1, 1]} : vector<36x18x4xbf16> to vector<36x1x4xbf16>
    %7 = vector.extract_strided_slice %0 {offsets = [0, 12, 0], sizes = [36, 1, 4], strides = [1, 1, 1]} : vector<36x18x4xbf16> to vector<36x1x4xbf16>
    %8 = vector.extract_strided_slice %0 {offsets = [0, 14, 0], sizes = [36, 1, 4], strides = [1, 1, 1]} : vector<36x18x4xbf16> to vector<36x1x4xbf16>
    %9 = vector.extract_strided_slice %0 {offsets = [0, 16, 0], sizes = [36, 1, 4], strides = [1, 1, 1]} : vector<36x18x4xbf16> to vector<36x1x4xbf16>
    %10 = tpu.concatenate %1, %2, %3, %4, %5, %6, %7, %8, %9 in 1 : vector<36x1x4xbf16>, vector<36x1x4xbf16>, vector<36x1x4xbf16>, vector<36x1x4xbf16>, vector<36x1x4xbf16>, vector<36x1x4xbf16>, vector<36x1x4xbf16>, vector<36x1x4xbf16>, vector<36x1x4xbf16> -> vector<36x9x4xbf16>
    %11 = vector.extract_strided_slice %0 {offsets = [0, 1, 0], sizes = [36, 1, 4], strides = [1, 1, 1]} : vector<36x18x4xbf16> to vector<36x1x4xbf16>
    %12 = vector.extract_strided_slice %0 {offsets = [0, 3, 0], sizes = [36, 1, 4], strides = [1, 1, 1]} : vector<36x18x4xbf16> to vector<36x1x4xbf16>
    %13 = vector.extract_strided_slice %0 {offsets = [0, 5, 0], sizes = [36, 1, 4], strides = [1, 1, 1]} : vector<36x18x4xbf16> to vector<36x1x4xbf16>
    %14 = vector.extract_strided_slice %0 {offsets = [0, 7, 0], sizes = [36, 1, 4], strides = [1, 1, 1]} : vector<36x18x4xbf16> to vector<36x1x4xbf16>
    %15 = vector.extract_strided_slice %0 {offsets = [0, 9, 0], sizes = [36, 1, 4], strides = [1, 1, 1]} : vector<36x18x4xbf16> to vector<36x1x4xbf16>
    %16 = vector.extract_strided_slice %0 {offsets = [0, 11, 0], sizes = [36, 1, 4], strides = [1, 1, 1]} : vector<36x18x4xbf16> to vector<36x1x4xbf16>
    %17 = vector.extract_strided_slice %0 {offsets = [0, 13, 0], sizes = [36, 1, 4], strides = [1, 1, 1]} : vector<36x18x4xbf16> to vector<36x1x4xbf16>
    %18 = vector.extract_strided_slice %0 {offsets = [0, 15, 0], sizes = [36, 1, 4], strides = [1, 1, 1]} : vector<36x18x4xbf16> to vector<36x1x4xbf16>
    %19 = vector.extract_strided_slice %0 {offsets = [0, 17, 0], sizes = [36, 1, 4], strides = [1, 1, 1]} : vector<36x18x4xbf16> to vector<36x1x4xbf16>
    %20 = tpu.concatenate %11, %12, %13, %14, %15, %16, %17, %18, %19 in 1 : vector<36x1x4xbf16>, vector<36x1x4xbf16>, vector<36x1x4xbf16>, vector<36x1x4xbf16>, vector<36x1x4xbf16>, vector<36x1x4xbf16>, vector<36x1x4xbf16>, vector<36x1x4xbf16>, vector<36x1x4xbf16> -> vector<36x9x4xbf16>
    %21 = vector.shape_cast %10 : vector<36x9x4xbf16> to vector<2x9x2x9x4xbf16>
    %22 = vector.shape_cast %20 : vector<36x9x4xbf16> to vector<2x9x2x9x4xbf16>
    %23 = vector.extract_strided_slice %21 {offsets = [0, 0, 0, 0, 0], sizes = [2, 8, 1, 9, 4], strides = [1, 1, 1, 1, 1]} : vector<2x9x2x9x4xbf16> to vector<2x8x1x9x4xbf16>
    %24 = vector.shape_cast %23 : vector<2x8x1x9x4xbf16> to vector<2x8x9x4xbf16>
    %25 = vector.extract_strided_slice %22 {offsets = [0, 0, 0, 0, 0], sizes = [2, 8, 1, 9, 4], strides = [1, 1, 1, 1, 1]} : vector<2x9x2x9x4xbf16> to vector<2x8x1x9x4xbf16>
    %26 = vector.shape_cast %25 : vector<2x8x1x9x4xbf16> to vector<2x8x9x4xbf16>
    %27 = vector.extract_strided_slice %24 {offsets = [0, 0, 0, 0], sizes = [2, 8, 8, 4], strides = [1, 1, 1, 1]} : vector<2x8x9x4xbf16> to vector<2x8x8x4xbf16>
    %28 = vector.extract_strided_slice %26 {offsets = [0, 0, 0, 0], sizes = [2, 8, 8, 4], strides = [1, 1, 1, 1]} : vector<2x8x9x4xbf16> to vector<2x8x8x4xbf16>
    %29 = vector.extract_strided_slice %24 {offsets = [0, 0, 1, 0], sizes = [2, 8, 8, 4], strides = [1, 1, 1, 1]} : vector<2x8x9x4xbf16> to vector<2x8x8x4xbf16>
    %30 = vector.extract_strided_slice %21 {offsets = [0, 0, 1, 0, 0], sizes = [2, 8, 1, 9, 4], strides = [1, 1, 1, 1, 1]} : vector<2x9x2x9x4xbf16> to vector<2x8x1x9x4xbf16>
    %31 = vector.shape_cast %30 : vector<2x8x1x9x4xbf16> to vector<2x8x9x4xbf16>
    %32 = vector.extract_strided_slice %22 {offsets = [0, 0, 1, 0, 0], sizes = [2, 8, 1, 9, 4], strides = [1, 1, 1, 1, 1]} : vector<2x9x2x9x4xbf16> to vector<2x8x1x9x4xbf16>
    %33 = vector.shape_cast %32 : vector<2x8x1x9x4xbf16> to vector<2x8x9x4xbf16>
    %34 = vector.extract_strided_slice %31 {offsets = [0, 0, 0, 0], sizes = [2, 8, 8, 4], strides = [1, 1, 1, 1]} : vector<2x8x9x4xbf16> to vector<2x8x8x4xbf16>
    %35 = vector.extract_strided_slice %33 {offsets = [0, 0, 0, 0], sizes = [2, 8, 8, 4], strides = [1, 1, 1, 1]} : vector<2x8x9x4xbf16> to vector<2x8x8x4xbf16>
    %36 = vector.extract_strided_slice %31 {offsets = [0, 0, 1, 0], sizes = [2, 8, 8, 4], strides = [1, 1, 1, 1]} : vector<2x8x9x4xbf16> to vector<2x8x8x4xbf16>
    %37 = vector.extract_strided_slice %21 {offsets = [0, 1, 0, 0, 0], sizes = [2, 8, 1, 9, 4], strides = [1, 1, 1, 1, 1]} : vector<2x9x2x9x4xbf16> to vector<2x8x1x9x4xbf16>
    %38 = vector.shape_cast %37 : vector<2x8x1x9x4xbf16> to vector<2x8x9x4xbf16>
    %39 = vector.extract_strided_slice %22 {offsets = [0, 1, 0, 0, 0], sizes = [2, 8, 1, 9, 4], strides = [1, 1, 1, 1, 1]} : vector<2x9x2x9x4xbf16> to vector<2x8x1x9x4xbf16>
    %40 = vector.shape_cast %39 : vector<2x8x1x9x4xbf16> to vector<2x8x9x4xbf16>
    %41 = vector.extract_strided_slice %38 {offsets = [0, 0, 0, 0], sizes = [2, 8, 8, 4], strides = [1, 1, 1, 1]} : vector<2x8x9x4xbf16> to vector<2x8x8x4xbf16>
    %42 = vector.extract_strided_slice %40 {offsets = [0, 0, 0, 0], sizes = [2, 8, 8, 4], strides = [1, 1, 1, 1]} : vector<2x8x9x4xbf16> to vector<2x8x8x4xbf16>
    %43 = vector.extract_strided_slice %38 {offsets = [0, 0, 1, 0], sizes = [2, 8, 8, 4], strides = [1, 1, 1, 1]} : vector<2x8x9x4xbf16> to vector<2x8x8x4xbf16>
    %44 = tpu.concatenate %27, %28, %29, %34, %35, %36, %41, %42, %43 in 3 : vector<2x8x8x4xbf16>, vector<2x8x8x4xbf16>, vector<2x8x8x4xbf16>, vector<2x8x8x4xbf16>, vector<2x8x8x4xbf16>, vector<2x8x8x4xbf16>, vector<2x8x8x4xbf16>, vector<2x8x8x4xbf16>, vector<2x8x8x4xbf16> -> vector<2x8x8x36xbf16>
    %45 = vector.shape_cast %44 : vector<2x8x8x36xbf16> to vector<16x8x36xbf16>
    %46 = vector.extract_strided_slice %45 {offsets = [0, 0, 0], sizes = [1, 8, 36], strides = [1, 1, 1]} : vector<16x8x36xbf16> to vector<1x8x36xbf16>
    %47 = vector.shape_cast %46 : vector<1x8x36xbf16> to vector<8x36xbf16>
    %48 = vector.extract_strided_slice %45 {offsets = [1, 0, 0], sizes = [1, 8, 36], strides = [1, 1, 1]} : vector<16x8x36xbf16> to vector<1x8x36xbf16>
    %49 = vector.shape_cast %48 : vector<1x8x36xbf16> to vector<8x36xbf16>
    %50 = vector.extract_strided_slice %45 {offsets = [2, 0, 0], sizes = [1, 8, 36], strides = [1, 1, 1]} : vector<16x8x36xbf16> to vector<1x8x36xbf16>
    %51 = vector.shape_cast %50 : vector<1x8x36xbf16> to vector<8x36xbf16>
    %52 = vector.extract_strided_slice %45 {offsets = [3, 0, 0], sizes = [1, 8, 36], strides = [1, 1, 1]} : vector<16x8x36xbf16> to vector<1x8x36xbf16>
    %53 = vector.shape_cast %52 : vector<1x8x36xbf16> to vector<8x36xbf16>
    %54 = vector.extract_strided_slice %45 {offsets = [4, 0, 0], sizes = [1, 8, 36], strides = [1, 1, 1]} : vector<16x8x36xbf16> to vector<1x8x36xbf16>
    %55 = vector.shape_cast %54 : vector<1x8x36xbf16> to vector<8x36xbf16>
    %56 = vector.extract_strided_slice %45 {offsets = [5, 0, 0], sizes = [1, 8, 36], strides = [1, 1, 1]} : vector<16x8x36xbf16> to vector<1x8x36xbf16>
    %57 = vector.shape_cast %56 : vector<1x8x36xbf16> to vector<8x36xbf16>
    %58 = vector.extract_strided_slice %45 {offsets = [6, 0, 0], sizes = [1, 8, 36], strides = [1, 1, 1]} : vector<16x8x36xbf16> to vector<1x8x36xbf16>
    %59 = vector.shape_cast %58 : vector<1x8x36xbf16> to vector<8x36xbf16>
    %60 = vector.extract_strided_slice %45 {offsets = [7, 0, 0], sizes = [1, 8, 36], strides = [1, 1, 1]} : vector<16x8x36xbf16> to vector<1x8x36xbf16>
    %61 = vector.shape_cast %60 : vector<1x8x36xbf16> to vector<8x36xbf16>
    %62 = vector.extract_strided_slice %45 {offsets = [8, 0, 0], sizes = [1, 8, 36], strides = [1, 1, 1]} : vector<16x8x36xbf16> to vector<1x8x36xbf16>
    %63 = vector.shape_cast %62 : vector<1x8x36xbf16> to vector<8x36xbf16>
    %64 = vector.extract_strided_slice %45 {offsets = [9, 0, 0], sizes = [1, 8, 36], strides = [1, 1, 1]} : vector<16x8x36xbf16> to vector<1x8x36xbf16>
    %65 = vector.shape_cast %64 : vector<1x8x36xbf16> to vector<8x36xbf16>
    %66 = vector.extract_strided_slice %45 {offsets = [10, 0, 0], sizes = [1, 8, 36], strides = [1, 1, 1]} : vector<16x8x36xbf16> to vector<1x8x36xbf16>
    %67 = vector.shape_cast %66 : vector<1x8x36xbf16> to vector<8x36xbf16>
    %68 = vector.extract_strided_slice %45 {offsets = [11, 0, 0], sizes = [1, 8, 36], strides = [1, 1, 1]} : vector<16x8x36xbf16> to vector<1x8x36xbf16>
    %69 = vector.shape_cast %68 : vector<1x8x36xbf16> to vector<8x36xbf16>
    %70 = vector.extract_strided_slice %45 {offsets = [12, 0, 0], sizes = [1, 8, 36], strides = [1, 1, 1]} : vector<16x8x36xbf16> to vector<1x8x36xbf16>
    %71 = vector.shape_cast %70 : vector<1x8x36xbf16> to vector<8x36xbf16>
    %72 = vector.extract_strided_slice %45 {offsets = [13, 0, 0], sizes = [1, 8, 36], strides = [1, 1, 1]} : vector<16x8x36xbf16> to vector<1x8x36xbf16>
    %73 = vector.shape_cast %72 : vector<1x8x36xbf16> to vector<8x36xbf16>
    %74 = vector.extract_strided_slice %45 {offsets = [14, 0, 0], sizes = [1, 8, 36], strides = [1, 1, 1]} : vector<16x8x36xbf16> to vector<1x8x36xbf16>
    %75 = vector.shape_cast %74 : vector<1x8x36xbf16> to vector<8x36xbf16>
    %76 = vector.extract_strided_slice %45 {offsets = [15, 0, 0], sizes = [1, 8, 36], strides = [1, 1, 1]} : vector<16x8x36xbf16> to vector<1x8x36xbf16>
    %77 = vector.shape_cast %76 : vector<1x8x36xbf16> to vector<8x36xbf16>
    %78 = tpu.concatenate %47, %49, %51, %53, %55, %57, %59, %61, %63, %65, %67, %69, %71, %73, %75, %77 in 0 : vector<8x36xbf16>, vector<8x36xbf16>, vector<8x36xbf16>, vector<8x36xbf16>, vector<8x36xbf16>, vector<8x36xbf16>, vector<8x36xbf16>, vector<8x36xbf16>, vector<8x36xbf16>, vector<8x36xbf16>, vector<8x36xbf16>, vector<8x36xbf16>, vector<8x36xbf16>, vector<8x36xbf16>, vector<8x36xbf16>, vector<8x36xbf16> -> vector<128x36xbf16>
    %c0_2 = arith.constant 0 : index
    %c0_3 = arith.constant 0 : index
    %79 = vector.load %arg2[%c0_2, %c0_3] : memref<36x8xbf16, #tpu.memory_space<vmem>>, vector<36x8xbf16>
    %cst = arith.constant dense<0.000000e+00> : vector<128x8xf32>
    %80 = tpu.matmul %78, %79, %cst {dimension_numbers = #tpu.dot_dimension_numbers<[1], [0], [0], [1], [0, 0, 1, 1], [], []>} : vector<128x36xbf16>, vector<36x8xbf16>, vector<128x8xf32> -> vector<128x8xf32>
    %c0_4 = arith.constant 0 : index
    %c0_5 = arith.constant 0 : index
    %81 = vector.load %arg3[%c0_4, %c0_5] : memref<1x8xf32, #tpu.memory_space<vmem>>, vector<1x8xf32>
    %82 = vector.broadcast %81 : vector<1x8xf32> to vector<128x8xf32>
    %83 = arith.addf %80, %82 : vector<128x8xf32>
    %cst_6 = arith.constant 0.000000e+00 : f32
    %84 = vector.broadcast %cst_6 : f32 to vector<128x8xf32>
    %85 = arith.maximumf %83, %84 : vector<128x8xf32>
    %c0_7 = arith.constant 0 : index
    %c0_8 = arith.constant 0 : index
    %86 = vector.load %arg10[%c0_7, %c0_8] : memref<128x8xf32, #tpu.memory_space<vmem>>, vector<128x8xf32>
    tpu.vector_store %arg10[%c0_7, %c0_8], %85 {strides = array<i32>} : memref<128x8xf32, #tpu.memory_space<vmem>>, vector<128x8xf32>,
    %cst_9 = arith.constant 0.000000e+00 : bf16
    %87 = vector.broadcast %cst_9 : bf16 to vector<20x10x8xbf16>
    %c0_10 = arith.constant 0 : index
    %c0_11 = arith.constant 0 : index
    %c0_12 = arith.constant 0 : index
    %88 = vector.load %arg14[%c0_10, %c0_11, %c0_12] : memref<20x10x8xbf16, #tpu.memory_space<vmem>>, vector<20x10x8xbf16>
    tpu.vector_store %arg14[%c0_10, %c0_11, %c0_12], %87 {strides = array<i32>} : memref<20x10x8xbf16, #tpu.memory_space<vmem>>, vector<20x10x8xbf16>,
    %89 = arith.truncf %85 : vector<128x8xf32> to vector<128x8xbf16>
    %90 = vector.extract_strided_slice %89 {offsets = [0, 0], sizes = [8, 8], strides = [1, 1]} : vector<128x8xbf16> to vector<8x8xbf16>
    %91 = vector.shape_cast %90 : vector<8x8xbf16> to vector<1x8x8xbf16>
    %c1 = arith.constant 1 : index
    %c1_13 = arith.constant 1 : index
    %c0_14 = arith.constant 0 : index
    %92 = vector.load %arg14[%c1, %c1_13, %c0_14] : memref<20x10x8xbf16, #tpu.memory_space<vmem>>, vector<1x8x8xbf16>
    tpu.vector_store %arg14[%c1, %c1_13, %c0_14], %91 {strides = array<i32>} : memref<20x10x8xbf16, #tpu.memory_space<vmem>>, vector<1x8x8xbf16>,
    %93 = vector.extract_strided_slice %89 {offsets = [8, 0], sizes = [8, 8], strides = [1, 1]} : vector<128x8xbf16> to vector<8x8xbf16>
    %94 = vector.shape_cast %93 : vector<8x8xbf16> to vector<1x8x8xbf16>
    %c2 = arith.constant 2 : index
    %c1_15 = arith.constant 1 : index
    %c0_16 = arith.constant 0 : index
    %95 = vector.load %arg14[%c2, %c1_15, %c0_16] : memref<20x10x8xbf16, #tpu.memory_space<vmem>>, vector<1x8x8xbf16>
    tpu.vector_store %arg14[%c2, %c1_15, %c0_16], %94 {strides = array<i32>} : memref<20x10x8xbf16, #tpu.memory_space<vmem>>, vector<1x8x8xbf16>,
    %96 = vector.extract_strided_slice %89 {offsets = [16, 0], sizes = [8, 8], strides = [1, 1]} : vector<128x8xbf16> to vector<8x8xbf16>
    %97 = vector.shape_cast %96 : vector<8x8xbf16> to vector<1x8x8xbf16>
    %c3 = arith.constant 3 : index
    %c1_17 = arith.constant 1 : index
    %c0_18 = arith.constant 0 : index
    %98 = vector.load %arg14[%c3, %c1_17, %c0_18] : memref<20x10x8xbf16, #tpu.memory_space<vmem>>, vector<1x8x8xbf16>
    tpu.vector_store %arg14[%c3, %c1_17, %c0_18], %97 {strides = array<i32>} : memref<20x10x8xbf16, #tpu.memory_space<vmem>>, vector<1x8x8xbf16>,
    %99 = vector.extract_strided_slice %89 {offsets = [24, 0], sizes = [8, 8], strides = [1, 1]} : vector<128x8xbf16> to vector<8x8xbf16>
    %100 = vector.shape_cast %99 : vector<8x8xbf16> to vector<1x8x8xbf16>
    %c4 = arith.constant 4 : index
    %c1_19 = arith.constant 1 : index
    %c0_20 = arith.constant 0 : index
    %101 = vector.load %arg14[%c4, %c1_19, %c0_20] : memref<20x10x8xbf16, #tpu.memory_space<vmem>>, vector<1x8x8xbf16>
    tpu.vector_store %arg14[%c4, %c1_19, %c0_20], %100 {strides = array<i32>} : memref<20x10x8xbf16, #tpu.memory_space<vmem>>, vector<1x8x8xbf16>,
    %102 = vector.extract_strided_slice %89 {offsets = [32, 0], sizes = [8, 8], strides = [1, 1]} : vector<128x8xbf16> to vector<8x8xbf16>
    %103 = vector.shape_cast %102 : vector<8x8xbf16> to vector<1x8x8xbf16>
    %c5 = arith.constant 5 : index
    %c1_21 = arith.constant 1 : index
    %c0_22 = arith.constant 0 : index
    %104 = vector.load %arg14[%c5, %c1_21, %c0_22] : memref<20x10x8xbf16, #tpu.memory_space<vmem>>, vector<1x8x8xbf16>
    tpu.vector_store %arg14[%c5, %c1_21, %c0_22], %103 {strides = array<i32>} : memref<20x10x8xbf16, #tpu.memory_space<vmem>>, vector<1x8x8xbf16>,
    %105 = vector.extract_strided_slice %89 {offsets = [40, 0], sizes = [8, 8], strides = [1, 1]} : vector<128x8xbf16> to vector<8x8xbf16>
    %106 = vector.shape_cast %105 : vector<8x8xbf16> to vector<1x8x8xbf16>
    %c6 = arith.constant 6 : index
    %c1_23 = arith.constant 1 : index
    %c0_24 = arith.constant 0 : index
    %107 = vector.load %arg14[%c6, %c1_23, %c0_24] : memref<20x10x8xbf16, #tpu.memory_space<vmem>>, vector<1x8x8xbf16>
    tpu.vector_store %arg14[%c6, %c1_23, %c0_24], %106 {strides = array<i32>} : memref<20x10x8xbf16, #tpu.memory_space<vmem>>, vector<1x8x8xbf16>,
    %108 = vector.extract_strided_slice %89 {offsets = [48, 0], sizes = [8, 8], strides = [1, 1]} : vector<128x8xbf16> to vector<8x8xbf16>
    %109 = vector.shape_cast %108 : vector<8x8xbf16> to vector<1x8x8xbf16>
    %c7 = arith.constant 7 : index
    %c1_25 = arith.constant 1 : index
    %c0_26 = arith.constant 0 : index
    %110 = vector.load %arg14[%c7, %c1_25, %c0_26] : memref<20x10x8xbf16, #tpu.memory_space<vmem>>, vector<1x8x8xbf16>
    tpu.vector_store %arg14[%c7, %c1_25, %c0_26], %109 {strides = array<i32>} : memref<20x10x8xbf16, #tpu.memory_space<vmem>>, vector<1x8x8xbf16>,
    %111 = vector.extract_strided_slice %89 {offsets = [56, 0], sizes = [8, 8], strides = [1, 1]} : vector<128x8xbf16> to vector<8x8xbf16>
    %112 = vector.shape_cast %111 : vector<8x8xbf16> to vector<1x8x8xbf16>
    %c8 = arith.constant 8 : index
    %c1_27 = arith.constant 1 : index
    %c0_28 = arith.constant 0 : index
    %113 = vector.load %arg14[%c8, %c1_27, %c0_28] : memref<20x10x8xbf16, #tpu.memory_space<vmem>>, vector<1x8x8xbf16>
    tpu.vector_store %arg14[%c8, %c1_27, %c0_28], %112 {strides = array<i32>} : memref<20x10x8xbf16, #tpu.memory_space<vmem>>, vector<1x8x8xbf16>,
    %114 = vector.extract_strided_slice %89 {offsets = [64, 0], sizes = [8, 8], strides = [1, 1]} : vector<128x8xbf16> to vector<8x8xbf16>
    %115 = vector.shape_cast %114 : vector<8x8xbf16> to vector<1x8x8xbf16>
    %c11 = arith.constant 11 : index
    %c1_29 = arith.constant 1 : index
    %c0_30 = arith.constant 0 : index
    %116 = vector.load %arg14[%c11, %c1_29, %c0_30] : memref<20x10x8xbf16, #tpu.memory_space<vmem>>, vector<1x8x8xbf16>
    tpu.vector_store %arg14[%c11, %c1_29, %c0_30], %115 {strides = array<i32>} : memref<20x10x8xbf16, #tpu.memory_space<vmem>>, vector<1x8x8xbf16>,
    %117 = vector.extract_strided_slice %89 {offsets = [72, 0], sizes = [8, 8], strides = [1, 1]} : vector<128x8xbf16> to vector<8x8xbf16>
    %118 = vector.shape_cast %117 : vector<8x8xbf16> to vector<1x8x8xbf16>
    %c12 = arith.constant 12 : index
    %c1_31 = arith.constant 1 : index
    %c0_32 = arith.constant 0 : index
    %119 = vector.load %arg14[%c12, %c1_31, %c0_32] : memref<20x10x8xbf16, #tpu.memory_space<vmem>>, vector<1x8x8xbf16>
    tpu.vector_store %arg14[%c12, %c1_31, %c0_32], %118 {strides = array<i32>} : memref<20x10x8xbf16, #tpu.memory_space<vmem>>, vector<1x8x8xbf16>,
    %120 = vector.extract_strided_slice %89 {offsets = [80, 0], sizes = [8, 8], strides = [1, 1]} : vector<128x8xbf16> to vector<8x8xbf16>
    %121 = vector.shape_cast %120 : vector<8x8xbf16> to vector<1x8x8xbf16>
    %c13 = arith.constant 13 : index
    %c1_33 = arith.constant 1 : index
    %c0_34 = arith.constant 0 : index
    %122 = vector.load %arg14[%c13, %c1_33, %c0_34] : memref<20x10x8xbf16, #tpu.memory_space<vmem>>, vector<1x8x8xbf16>
    tpu.vector_store %arg14[%c13, %c1_33, %c0_34], %121 {strides = array<i32>} : memref<20x10x8xbf16, #tpu.memory_space<vmem>>, vector<1x8x8xbf16>,
    %123 = vector.extract_strided_slice %89 {offsets = [88, 0], sizes = [8, 8], strides = [1, 1]} : vector<128x8xbf16> to vector<8x8xbf16>
    %124 = vector.shape_cast %123 : vector<8x8xbf16> to vector<1x8x8xbf16>
    %c14 = arith.constant 14 : index
    %c1_35 = arith.constant 1 : index
    %c0_36 = arith.constant 0 : index
    %125 = vector.load %arg14[%c14, %c1_35, %c0_36] : memref<20x10x8xbf16, #tpu.memory_space<vmem>>, vector<1x8x8xbf16>
    tpu.vector_store %arg14[%c14, %c1_35, %c0_36], %124 {strides = array<i32>} : memref<20x10x8xbf16, #tpu.memory_space<vmem>>, vector<1x8x8xbf16>,
    %126 = vector.extract_strided_slice %89 {offsets = [96, 0], sizes = [8, 8], strides = [1, 1]} : vector<128x8xbf16> to vector<8x8xbf16>
    %127 = vector.shape_cast %126 : vector<8x8xbf16> to vector<1x8x8xbf16>
    %c15 = arith.constant 15 : index
    %c1_37 = arith.constant 1 : index
    %c0_38 = arith.constant 0 : index
    %128 = vector.load %arg14[%c15, %c1_37, %c0_38] : memref<20x10x8xbf16, #tpu.memory_space<vmem>>, vector<1x8x8xbf16>
    tpu.vector_store %arg14[%c15, %c1_37, %c0_38], %127 {strides = array<i32>} : memref<20x10x8xbf16, #tpu.memory_space<vmem>>, vector<1x8x8xbf16>,
    %129 = vector.extract_strided_slice %89 {offsets = [104, 0], sizes = [8, 8], strides = [1, 1]} : vector<128x8xbf16> to vector<8x8xbf16>
    %130 = vector.shape_cast %129 : vector<8x8xbf16> to vector<1x8x8xbf16>
    %c16 = arith.constant 16 : index
    %c1_39 = arith.constant 1 : index
    %c0_40 = arith.constant 0 : index
    %131 = vector.load %arg14[%c16, %c1_39, %c0_40] : memref<20x10x8xbf16, #tpu.memory_space<vmem>>, vector<1x8x8xbf16>
    tpu.vector_store %arg14[%c16, %c1_39, %c0_40], %130 {strides = array<i32>} : memref<20x10x8xbf16, #tpu.memory_space<vmem>>, vector<1x8x8xbf16>,
    %132 = vector.extract_strided_slice %89 {offsets = [112, 0], sizes = [8, 8], strides = [1, 1]} : vector<128x8xbf16> to vector<8x8xbf16>
    %133 = vector.shape_cast %132 : vector<8x8xbf16> to vector<1x8x8xbf16>
    %c17 = arith.constant 17 : index
    %c1_41 = arith.constant 1 : index
    %c0_42 = arith.constant 0 : index
    %134 = vector.load %arg14[%c17, %c1_41, %c0_42] : memref<20x10x8xbf16, #tpu.memory_space<vmem>>, vector<1x8x8xbf16>
    tpu.vector_store %arg14[%c17, %c1_41, %c0_42], %133 {strides = array<i32>} : memref<20x10x8xbf16, #tpu.memory_space<vmem>>, vector<1x8x8xbf16>,
    %135 = vector.extract_strided_slice %89 {offsets = [120, 0], sizes = [8, 8], strides = [1, 1]} : vector<128x8xbf16> to vector<8x8xbf16>
    %136 = vector.shape_cast %135 : vector<8x8xbf16> to vector<1x8x8xbf16>
    %c18 = arith.constant 18 : index
    %c1_43 = arith.constant 1 : index
    %c0_44 = arith.constant 0 : index
    %137 = vector.load %arg14[%c18, %c1_43, %c0_44] : memref<20x10x8xbf16, #tpu.memory_space<vmem>>, vector<1x8x8xbf16>
    tpu.vector_store %arg14[%c18, %c1_43, %c0_44], %136 {strides = array<i32>} : memref<20x10x8xbf16, #tpu.memory_space<vmem>>, vector<1x8x8xbf16>,
    %c0_45 = arith.constant 0 : index
    %c0_46 = arith.constant 0 : index
    %c0_47 = arith.constant 0 : index
    %138 = vector.load %arg14[%c0_45, %c0_46, %c0_47] : memref<20x10x8xbf16, #tpu.memory_space<vmem>>, vector<20x10x8xbf16>
    %139 = vector.extract_strided_slice %138 {offsets = [0, 0, 0], sizes = [20, 1, 8], strides = [1, 1, 1]} : vector<20x10x8xbf16> to vector<20x1x8xbf16>
    %140 = vector.extract_strided_slice %138 {offsets = [0, 2, 0], sizes = [20, 1, 8], strides = [1, 1, 1]} : vector<20x10x8xbf16> to vector<20x1x8xbf16>
    %141 = vector.extract_strided_slice %138 {offsets = [0, 4, 0], sizes = [20, 1, 8], strides = [1, 1, 1]} : vector<20x10x8xbf16> to vector<20x1x8xbf16>
    %142 = vector.extract_strided_slice %138 {offsets = [0, 6, 0], sizes = [20, 1, 8], strides = [1, 1, 1]} : vector<20x10x8xbf16> to vector<20x1x8xbf16>
    %143 = vector.extract_strided_slice %138 {offsets = [0, 8, 0], sizes = [20, 1, 8], strides = [1, 1, 1]} : vector<20x10x8xbf16> to vector<20x1x8xbf16>
    %144 = tpu.concatenate %139, %140, %141, %142, %143 in 1 : vector<20x1x8xbf16>, vector<20x1x8xbf16>, vector<20x1x8xbf16>, vector<20x1x8xbf16>, vector<20x1x8xbf16> -> vector<20x5x8xbf16>
    %145 = vector.extract_strided_slice %138 {offsets = [0, 1, 0], sizes = [20, 1, 8], strides = [1, 1, 1]} : vector<20x10x8xbf16> to vector<20x1x8xbf16>
    %146 = vector.extract_strided_slice %138 {offsets = [0, 3, 0], sizes = [20, 1, 8], strides = [1, 1, 1]} : vector<20x10x8xbf16> to vector<20x1x8xbf16>
    %147 = vector.extract_strided_slice %138 {offsets = [0, 5, 0], sizes = [20, 1, 8], strides = [1, 1, 1]} : vector<20x10x8xbf16> to vector<20x1x8xbf16>
    %148 = vector.extract_strided_slice %138 {offsets = [0, 7, 0], sizes = [20, 1, 8], strides = [1, 1, 1]} : vector<20x10x8xbf16> to vector<20x1x8xbf16>
    %149 = vector.extract_strided_slice %138 {offsets = [0, 9, 0], sizes = [20, 1, 8], strides = [1, 1, 1]} : vector<20x10x8xbf16> to vector<20x1x8xbf16>
    %150 = tpu.concatenate %145, %146, %147, %148, %149 in 1 : vector<20x1x8xbf16>, vector<20x1x8xbf16>, vector<20x1x8xbf16>, vector<20x1x8xbf16>, vector<20x1x8xbf16> -> vector<20x5x8xbf16>
    %151 = vector.shape_cast %144 : vector<20x5x8xbf16> to vector<2x5x2x5x8xbf16>
    %152 = vector.shape_cast %150 : vector<20x5x8xbf16> to vector<2x5x2x5x8xbf16>
    %153 = vector.extract_strided_slice %151 {offsets = [0, 0, 0, 0, 0], sizes = [2, 4, 1, 5, 8], strides = [1, 1, 1, 1, 1]} : vector<2x5x2x5x8xbf16> to vector<2x4x1x5x8xbf16>
    %154 = vector.shape_cast %153 : vector<2x4x1x5x8xbf16> to vector<2x4x5x8xbf16>
    %155 = vector.extract_strided_slice %152 {offsets = [0, 0, 0, 0, 0], sizes = [2, 4, 1, 5, 8], strides = [1, 1, 1, 1, 1]} : vector<2x5x2x5x8xbf16> to vector<2x4x1x5x8xbf16>
    %156 = vector.shape_cast %155 : vector<2x4x1x5x8xbf16> to vector<2x4x5x8xbf16>
    %157 = vector.extract_strided_slice %154 {offsets = [0, 0, 0, 0], sizes = [2, 4, 4, 8], strides = [1, 1, 1, 1]} : vector<2x4x5x8xbf16> to vector<2x4x4x8xbf16>
    %158 = vector.extract_strided_slice %156 {offsets = [0, 0, 0, 0], sizes = [2, 4, 4, 8], strides = [1, 1, 1, 1]} : vector<2x4x5x8xbf16> to vector<2x4x4x8xbf16>
    %159 = vector.extract_strided_slice %154 {offsets = [0, 0, 1, 0], sizes = [2, 4, 4, 8], strides = [1, 1, 1, 1]} : vector<2x4x5x8xbf16> to vector<2x4x4x8xbf16>
    %160 = vector.extract_strided_slice %151 {offsets = [0, 0, 1, 0, 0], sizes = [2, 4, 1, 5, 8], strides = [1, 1, 1, 1, 1]} : vector<2x5x2x5x8xbf16> to vector<2x4x1x5x8xbf16>
    %161 = vector.shape_cast %160 : vector<2x4x1x5x8xbf16> to vector<2x4x5x8xbf16>
    %162 = vector.extract_strided_slice %152 {offsets = [0, 0, 1, 0, 0], sizes = [2, 4, 1, 5, 8], strides = [1, 1, 1, 1, 1]} : vector<2x5x2x5x8xbf16> to vector<2x4x1x5x8xbf16>
    %163 = vector.shape_cast %162 : vector<2x4x1x5x8xbf16> to vector<2x4x5x8xbf16>
    %164 = vector.extract_strided_slice %161 {offsets = [0, 0, 0, 0], sizes = [2, 4, 4, 8], strides = [1, 1, 1, 1]} : vector<2x4x5x8xbf16> to vector<2x4x4x8xbf16>
    %165 = vector.extract_strided_slice %163 {offsets = [0, 0, 0, 0], sizes = [2, 4, 4, 8], strides = [1, 1, 1, 1]} : vector<2x4x5x8xbf16> to vector<2x4x4x8xbf16>
    %166 = vector.extract_strided_slice %161 {offsets = [0, 0, 1, 0], sizes = [2, 4, 4, 8], strides = [1, 1, 1, 1]} : vector<2x4x5x8xbf16> to vector<2x4x4x8xbf16>
    %167 = vector.extract_strided_slice %151 {offsets = [0, 1, 0, 0, 0], sizes = [2, 4, 1, 5, 8], strides = [1, 1, 1, 1, 1]} : vector<2x5x2x5x8xbf16> to vector<2x4x1x5x8xbf16>
    %168 = vector.shape_cast %167 : vector<2x4x1x5x8xbf16> to vector<2x4x5x8xbf16>
    %169 = vector.extract_strided_slice %152 {offsets = [0, 1, 0, 0, 0], sizes = [2, 4, 1, 5, 8], strides = [1, 1, 1, 1, 1]} : vector<2x5x2x5x8xbf16> to vector<2x4x1x5x8xbf16>
    %170 = vector.shape_cast %169 : vector<2x4x1x5x8xbf16> to vector<2x4x5x8xbf16>
    %171 = vector.extract_strided_slice %168 {offsets = [0, 0, 0, 0], sizes = [2, 4, 4, 8], strides = [1, 1, 1, 1]} : vector<2x4x5x8xbf16> to vector<2x4x4x8xbf16>
    %172 = vector.extract_strided_slice %170 {offsets = [0, 0, 0, 0], sizes = [2, 4, 4, 8], strides = [1, 1, 1, 1]} : vector<2x4x5x8xbf16> to vector<2x4x4x8xbf16>
    %173 = vector.extract_strided_slice %168 {offsets = [0, 0, 1, 0], sizes = [2, 4, 4, 8], strides = [1, 1, 1, 1]} : vector<2x4x5x8xbf16> to vector<2x4x4x8xbf16>
    %174 = tpu.concatenate %157, %158, %159, %164, %165, %166, %171, %172, %173 in 3 : vector<2x4x4x8xbf16>, vector<2x4x4x8xbf16>, vector<2x4x4x8xbf16>, vector<2x4x4x8xbf16>, vector<2x4x4x8xbf16>, vector<2x4x4x8xbf16>, vector<2x4x4x8xbf16>, vector<2x4x4x8xbf16>, vector<2x4x4x8xbf16> -> vector<2x4x4x72xbf16>
    %175 = vector.shape_cast %174 : vector<2x4x4x72xbf16> to vector<8x4x72xbf16>
    %176 = vector.extract_strided_slice %175 {offsets = [0, 0, 0], sizes = [1, 4, 72], strides = [1, 1, 1]} : vector<8x4x72xbf16> to vector<1x4x72xbf16>
    %177 = vector.shape_cast %176 : vector<1x4x72xbf16> to vector<4x72xbf16>
    %178 = vector.extract_strided_slice %175 {offsets = [1, 0, 0], sizes = [1, 4, 72], strides = [1, 1, 1]} : vector<8x4x72xbf16> to vector<1x4x72xbf16>
    %179 = vector.shape_cast %178 : vector<1x4x72xbf16> to vector<4x72xbf16>
    %180 = vector.extract_strided_slice %175 {offsets = [2, 0, 0], sizes = [1, 4, 72], strides = [1, 1, 1]} : vector<8x4x72xbf16> to vector<1x4x72xbf16>
    %181 = vector.shape_cast %180 : vector<1x4x72xbf16> to vector<4x72xbf16>
    %182 = vector.extract_strided_slice %175 {offsets = [3, 0, 0], sizes = [1, 4, 72], strides = [1, 1, 1]} : vector<8x4x72xbf16> to vector<1x4x72xbf16>
    %183 = vector.shape_cast %182 : vector<1x4x72xbf16> to vector<4x72xbf16>
    %184 = vector.extract_strided_slice %175 {offsets = [4, 0, 0], sizes = [1, 4, 72], strides = [1, 1, 1]} : vector<8x4x72xbf16> to vector<1x4x72xbf16>
    %185 = vector.shape_cast %184 : vector<1x4x72xbf16> to vector<4x72xbf16>
    %186 = vector.extract_strided_slice %175 {offsets = [5, 0, 0], sizes = [1, 4, 72], strides = [1, 1, 1]} : vector<8x4x72xbf16> to vector<1x4x72xbf16>
    %187 = vector.shape_cast %186 : vector<1x4x72xbf16> to vector<4x72xbf16>
    %188 = vector.extract_strided_slice %175 {offsets = [6, 0, 0], sizes = [1, 4, 72], strides = [1, 1, 1]} : vector<8x4x72xbf16> to vector<1x4x72xbf16>
    %189 = vector.shape_cast %188 : vector<1x4x72xbf16> to vector<4x72xbf16>
    %190 = vector.extract_strided_slice %175 {offsets = [7, 0, 0], sizes = [1, 4, 72], strides = [1, 1, 1]} : vector<8x4x72xbf16> to vector<1x4x72xbf16>
    %191 = vector.shape_cast %190 : vector<1x4x72xbf16> to vector<4x72xbf16>
    %192 = tpu.concatenate %177, %179, %181, %183, %185, %187, %189, %191 in 0 : vector<4x72xbf16>, vector<4x72xbf16>, vector<4x72xbf16>, vector<4x72xbf16>, vector<4x72xbf16>, vector<4x72xbf16>, vector<4x72xbf16>, vector<4x72xbf16> -> vector<32x72xbf16>
    %c0_48 = arith.constant 0 : index
    %c0_49 = arith.constant 0 : index
    %193 = vector.load %arg4[%c0_48, %c0_49] : memref<72x16xbf16, #tpu.memory_space<vmem>>, vector<72x16xbf16>
    %cst_50 = arith.constant dense<0.000000e+00> : vector<32x16xf32>
    %194 = tpu.matmul %192, %193, %cst_50 {dimension_numbers = #tpu.dot_dimension_numbers<[1], [0], [0], [1], [0, 0, 1, 1], [], []>} : vector<32x72xbf16>, vector<72x16xbf16>, vector<32x16xf32> -> vector<32x16xf32>
    %c0_51 = arith.constant 0 : index
    %c0_52 = arith.constant 0 : index
    %195 = vector.load %arg5[%c0_51, %c0_52] : memref<1x16xf32, #tpu.memory_space<vmem>>, vector<1x16xf32>
    %196 = vector.broadcast %195 : vector<1x16xf32> to vector<32x16xf32>
    %197 = arith.addf %194, %196 : vector<32x16xf32>
    %cst_53 = arith.constant 0.000000e+00 : f32
    %198 = vector.broadcast %cst_53 : f32 to vector<32x16xf32>
    %199 = arith.maximumf %197, %198 : vector<32x16xf32>
    %c0_54 = arith.constant 0 : index
    %c0_55 = arith.constant 0 : index
    %200 = vector.load %arg11[%c0_54, %c0_55] : memref<32x16xf32, #tpu.memory_space<vmem>>, vector<32x16xf32>
    tpu.vector_store %arg11[%c0_54, %c0_55], %199 {strides = array<i32>} : memref<32x16xf32, #tpu.memory_space<vmem>>, vector<32x16xf32>,
    %cst_56 = arith.constant 0.000000e+00 : bf16
    %201 = vector.broadcast %cst_56 : bf16 to vector<12x6x16xbf16>
    %c0_57 = arith.constant 0 : index
    %c0_58 = arith.constant 0 : index
    %c0_59 = arith.constant 0 : index
    %202 = vector.load %arg15[%c0_57, %c0_58, %c0_59] : memref<12x6x16xbf16, #tpu.memory_space<vmem>>, vector<12x6x16xbf16>
    tpu.vector_store %arg15[%c0_57, %c0_58, %c0_59], %201 {strides = array<i32>} : memref<12x6x16xbf16, #tpu.memory_space<vmem>>, vector<12x6x16xbf16>,
    %203 = arith.truncf %199 : vector<32x16xf32> to vector<32x16xbf16>
    %204 = vector.extract_strided_slice %203 {offsets = [0, 0], sizes = [4, 16], strides = [1, 1]} : vector<32x16xbf16> to vector<4x16xbf16>
    %205 = vector.shape_cast %204 : vector<4x16xbf16> to vector<1x4x16xbf16>
    %c1_60 = arith.constant 1 : index
    %c1_61 = arith.constant 1 : index
    %c0_62 = arith.constant 0 : index
    %206 = vector.load %arg15[%c1_60, %c1_61, %c0_62] : memref<12x6x16xbf16, #tpu.memory_space<vmem>>, vector<1x4x16xbf16>
    tpu.vector_store %arg15[%c1_60, %c1_61, %c0_62], %205 {strides = array<i32>} : memref<12x6x16xbf16, #tpu.memory_space<vmem>>, vector<1x4x16xbf16>,
    %207 = vector.extract_strided_slice %203 {offsets = [4, 0], sizes = [4, 16], strides = [1, 1]} : vector<32x16xbf16> to vector<4x16xbf16>
    %208 = vector.shape_cast %207 : vector<4x16xbf16> to vector<1x4x16xbf16>
    %c2_63 = arith.constant 2 : index
    %c1_64 = arith.constant 1 : index
    %c0_65 = arith.constant 0 : index
    %209 = vector.load %arg15[%c2_63, %c1_64, %c0_65] : memref<12x6x16xbf16, #tpu.memory_space<vmem>>, vector<1x4x16xbf16>
    tpu.vector_store %arg15[%c2_63, %c1_64, %c0_65], %208 {strides = array<i32>} : memref<12x6x16xbf16, #tpu.memory_space<vmem>>, vector<1x4x16xbf16>,
    %210 = vector.extract_strided_slice %203 {offsets = [8, 0], sizes = [4, 16], strides = [1, 1]} : vector<32x16xbf16> to vector<4x16xbf16>
    %211 = vector.shape_cast %210 : vector<4x16xbf16> to vector<1x4x16xbf16>
    %c3_66 = arith.constant 3 : index
    %c1_67 = arith.constant 1 : index
    %c0_68 = arith.constant 0 : index
    %212 = vector.load %arg15[%c3_66, %c1_67, %c0_68] : memref<12x6x16xbf16, #tpu.memory_space<vmem>>, vector<1x4x16xbf16>
    tpu.vector_store %arg15[%c3_66, %c1_67, %c0_68], %211 {strides = array<i32>} : memref<12x6x16xbf16, #tpu.memory_space<vmem>>, vector<1x4x16xbf16>,
    %213 = vector.extract_strided_slice %203 {offsets = [12, 0], sizes = [4, 16], strides = [1, 1]} : vector<32x16xbf16> to vector<4x16xbf16>
    %214 = vector.shape_cast %213 : vector<4x16xbf16> to vector<1x4x16xbf16>
    %c4_69 = arith.constant 4 : index
    %c1_70 = arith.constant 1 : index
    %c0_71 = arith.constant 0 : index
    %215 = vector.load %arg15[%c4_69, %c1_70, %c0_71] : memref<12x6x16xbf16, #tpu.memory_space<vmem>>, vector<1x4x16xbf16>
    tpu.vector_store %arg15[%c4_69, %c1_70, %c0_71], %214 {strides = array<i32>} : memref<12x6x16xbf16, #tpu.memory_space<vmem>>, vector<1x4x16xbf16>,
    %216 = vector.extract_strided_slice %203 {offsets = [16, 0], sizes = [4, 16], strides = [1, 1]} : vector<32x16xbf16> to vector<4x16xbf16>
    %217 = vector.shape_cast %216 : vector<4x16xbf16> to vector<1x4x16xbf16>
    %c7_72 = arith.constant 7 : index
    %c1_73 = arith.constant 1 : index
    %c0_74 = arith.constant 0 : index
    %218 = vector.load %arg15[%c7_72, %c1_73, %c0_74] : memref<12x6x16xbf16, #tpu.memory_space<vmem>>, vector<1x4x16xbf16>
    tpu.vector_store %arg15[%c7_72, %c1_73, %c0_74], %217 {strides = array<i32>} : memref<12x6x16xbf16, #tpu.memory_space<vmem>>, vector<1x4x16xbf16>,
    %219 = vector.extract_strided_slice %203 {offsets = [20, 0], sizes = [4, 16], strides = [1, 1]} : vector<32x16xbf16> to vector<4x16xbf16>
    %220 = vector.shape_cast %219 : vector<4x16xbf16> to vector<1x4x16xbf16>
    %c8_75 = arith.constant 8 : index
    %c1_76 = arith.constant 1 : index
    %c0_77 = arith.constant 0 : index
    %221 = vector.load %arg15[%c8_75, %c1_76, %c0_77] : memref<12x6x16xbf16, #tpu.memory_space<vmem>>, vector<1x4x16xbf16>
    tpu.vector_store %arg15[%c8_75, %c1_76, %c0_77], %220 {strides = array<i32>} : memref<12x6x16xbf16, #tpu.memory_space<vmem>>, vector<1x4x16xbf16>,
    %222 = vector.extract_strided_slice %203 {offsets = [24, 0], sizes = [4, 16], strides = [1, 1]} : vector<32x16xbf16> to vector<4x16xbf16>
    %223 = vector.shape_cast %222 : vector<4x16xbf16> to vector<1x4x16xbf16>
    %c9 = arith.constant 9 : index
    %c1_78 = arith.constant 1 : index
    %c0_79 = arith.constant 0 : index
    %224 = vector.load %arg15[%c9, %c1_78, %c0_79] : memref<12x6x16xbf16, #tpu.memory_space<vmem>>, vector<1x4x16xbf16>
    tpu.vector_store %arg15[%c9, %c1_78, %c0_79], %223 {strides = array<i32>} : memref<12x6x16xbf16, #tpu.memory_space<vmem>>, vector<1x4x16xbf16>,
    %225 = vector.extract_strided_slice %203 {offsets = [28, 0], sizes = [4, 16], strides = [1, 1]} : vector<32x16xbf16> to vector<4x16xbf16>
    %226 = vector.shape_cast %225 : vector<4x16xbf16> to vector<1x4x16xbf16>
    %c10 = arith.constant 10 : index
    %c1_80 = arith.constant 1 : index
    %c0_81 = arith.constant 0 : index
    %227 = vector.load %arg15[%c10, %c1_80, %c0_81] : memref<12x6x16xbf16, #tpu.memory_space<vmem>>, vector<1x4x16xbf16>
    tpu.vector_store %arg15[%c10, %c1_80, %c0_81], %226 {strides = array<i32>} : memref<12x6x16xbf16, #tpu.memory_space<vmem>>, vector<1x4x16xbf16>,
    %c0_82 = arith.constant 0 : index
    %c0_83 = arith.constant 0 : index
    %c0_84 = arith.constant 0 : index
    %228 = vector.load %arg15[%c0_82, %c0_83, %c0_84] : memref<12x6x16xbf16, #tpu.memory_space<vmem>>, vector<12x6x16xbf16>
    %229 = vector.extract_strided_slice %228 {offsets = [0, 0, 0], sizes = [12, 1, 16], strides = [1, 1, 1]} : vector<12x6x16xbf16> to vector<12x1x16xbf16>
    %230 = vector.extract_strided_slice %228 {offsets = [0, 2, 0], sizes = [12, 1, 16], strides = [1, 1, 1]} : vector<12x6x16xbf16> to vector<12x1x16xbf16>
    %231 = vector.extract_strided_slice %228 {offsets = [0, 4, 0], sizes = [12, 1, 16], strides = [1, 1, 1]} : vector<12x6x16xbf16> to vector<12x1x16xbf16>
    %232 = tpu.concatenate %229, %230, %231 in 1 : vector<12x1x16xbf16>, vector<12x1x16xbf16>, vector<12x1x16xbf16> -> vector<12x3x16xbf16>
    %233 = vector.extract_strided_slice %228 {offsets = [0, 1, 0], sizes = [12, 1, 16], strides = [1, 1, 1]} : vector<12x6x16xbf16> to vector<12x1x16xbf16>
    %234 = vector.extract_strided_slice %228 {offsets = [0, 3, 0], sizes = [12, 1, 16], strides = [1, 1, 1]} : vector<12x6x16xbf16> to vector<12x1x16xbf16>
    %235 = vector.extract_strided_slice %228 {offsets = [0, 5, 0], sizes = [12, 1, 16], strides = [1, 1, 1]} : vector<12x6x16xbf16> to vector<12x1x16xbf16>
    %236 = tpu.concatenate %233, %234, %235 in 1 : vector<12x1x16xbf16>, vector<12x1x16xbf16>, vector<12x1x16xbf16> -> vector<12x3x16xbf16>
    %237 = vector.shape_cast %232 : vector<12x3x16xbf16> to vector<2x3x2x3x16xbf16>
    %238 = vector.shape_cast %236 : vector<12x3x16xbf16> to vector<2x3x2x3x16xbf16>
    %239 = vector.extract_strided_slice %237 {offsets = [0, 0, 0, 0, 0], sizes = [2, 2, 1, 3, 16], strides = [1, 1, 1, 1, 1]} : vector<2x3x2x3x16xbf16> to vector<2x2x1x3x16xbf16>
    %240 = vector.shape_cast %239 : vector<2x2x1x3x16xbf16> to vector<2x2x3x16xbf16>
    %241 = vector.extract_strided_slice %238 {offsets = [0, 0, 0, 0, 0], sizes = [2, 2, 1, 3, 16], strides = [1, 1, 1, 1, 1]} : vector<2x3x2x3x16xbf16> to vector<2x2x1x3x16xbf16>
    %242 = vector.shape_cast %241 : vector<2x2x1x3x16xbf16> to vector<2x2x3x16xbf16>
    %243 = vector.extract_strided_slice %240 {offsets = [0, 0, 0, 0], sizes = [2, 2, 2, 16], strides = [1, 1, 1, 1]} : vector<2x2x3x16xbf16> to vector<2x2x2x16xbf16>
    %244 = vector.extract_strided_slice %242 {offsets = [0, 0, 0, 0], sizes = [2, 2, 2, 16], strides = [1, 1, 1, 1]} : vector<2x2x3x16xbf16> to vector<2x2x2x16xbf16>
    %245 = vector.extract_strided_slice %240 {offsets = [0, 0, 1, 0], sizes = [2, 2, 2, 16], strides = [1, 1, 1, 1]} : vector<2x2x3x16xbf16> to vector<2x2x2x16xbf16>
    %246 = vector.extract_strided_slice %237 {offsets = [0, 0, 1, 0, 0], sizes = [2, 2, 1, 3, 16], strides = [1, 1, 1, 1, 1]} : vector<2x3x2x3x16xbf16> to vector<2x2x1x3x16xbf16>
    %247 = vector.shape_cast %246 : vector<2x2x1x3x16xbf16> to vector<2x2x3x16xbf16>
    %248 = vector.extract_strided_slice %238 {offsets = [0, 0, 1, 0, 0], sizes = [2, 2, 1, 3, 16], strides = [1, 1, 1, 1, 1]} : vector<2x3x2x3x16xbf16> to vector<2x2x1x3x16xbf16>
    %249 = vector.shape_cast %248 : vector<2x2x1x3x16xbf16> to vector<2x2x3x16xbf16>
    %250 = vector.extract_strided_slice %247 {offsets = [0, 0, 0, 0], sizes = [2, 2, 2, 16], strides = [1, 1, 1, 1]} : vector<2x2x3x16xbf16> to vector<2x2x2x16xbf16>
    %251 = vector.extract_strided_slice %249 {offsets = [0, 0, 0, 0], sizes = [2, 2, 2, 16], strides = [1, 1, 1, 1]} : vector<2x2x3x16xbf16> to vector<2x2x2x16xbf16>
    %252 = vector.extract_strided_slice %247 {offsets = [0, 0, 1, 0], sizes = [2, 2, 2, 16], strides = [1, 1, 1, 1]} : vector<2x2x3x16xbf16> to vector<2x2x2x16xbf16>
    %253 = vector.extract_strided_slice %237 {offsets = [0, 1, 0, 0, 0], sizes = [2, 2, 1, 3, 16], strides = [1, 1, 1, 1, 1]} : vector<2x3x2x3x16xbf16> to vector<2x2x1x3x16xbf16>
    %254 = vector.shape_cast %253 : vector<2x2x1x3x16xbf16> to vector<2x2x3x16xbf16>
    %255 = vector.extract_strided_slice %238 {offsets = [0, 1, 0, 0, 0], sizes = [2, 2, 1, 3, 16], strides = [1, 1, 1, 1, 1]} : vector<2x3x2x3x16xbf16> to vector<2x2x1x3x16xbf16>
    %256 = vector.shape_cast %255 : vector<2x2x1x3x16xbf16> to vector<2x2x3x16xbf16>
    %257 = vector.extract_strided_slice %254 {offsets = [0, 0, 0, 0], sizes = [2, 2, 2, 16], strides = [1, 1, 1, 1]} : vector<2x2x3x16xbf16> to vector<2x2x2x16xbf16>
    %258 = vector.extract_strided_slice %256 {offsets = [0, 0, 0, 0], sizes = [2, 2, 2, 16], strides = [1, 1, 1, 1]} : vector<2x2x3x16xbf16> to vector<2x2x2x16xbf16>
    %259 = vector.extract_strided_slice %254 {offsets = [0, 0, 1, 0], sizes = [2, 2, 2, 16], strides = [1, 1, 1, 1]} : vector<2x2x3x16xbf16> to vector<2x2x2x16xbf16>
    %260 = tpu.concatenate %243, %244, %245, %250, %251, %252, %257, %258, %259 in 3 : vector<2x2x2x16xbf16>, vector<2x2x2x16xbf16>, vector<2x2x2x16xbf16>, vector<2x2x2x16xbf16>, vector<2x2x2x16xbf16>, vector<2x2x2x16xbf16>, vector<2x2x2x16xbf16>, vector<2x2x2x16xbf16>, vector<2x2x2x16xbf16> -> vector<2x2x2x144xbf16>
    %261 = vector.shape_cast %260 : vector<2x2x2x144xbf16> to vector<4x2x144xbf16>
    %262 = vector.extract_strided_slice %261 {offsets = [0, 0, 0], sizes = [1, 2, 144], strides = [1, 1, 1]} : vector<4x2x144xbf16> to vector<1x2x144xbf16>
    %263 = vector.shape_cast %262 : vector<1x2x144xbf16> to vector<2x144xbf16>
    %264 = vector.extract_strided_slice %261 {offsets = [1, 0, 0], sizes = [1, 2, 144], strides = [1, 1, 1]} : vector<4x2x144xbf16> to vector<1x2x144xbf16>
    %265 = vector.shape_cast %264 : vector<1x2x144xbf16> to vector<2x144xbf16>
    %266 = vector.extract_strided_slice %261 {offsets = [2, 0, 0], sizes = [1, 2, 144], strides = [1, 1, 1]} : vector<4x2x144xbf16> to vector<1x2x144xbf16>
    %267 = vector.shape_cast %266 : vector<1x2x144xbf16> to vector<2x144xbf16>
    %268 = vector.extract_strided_slice %261 {offsets = [3, 0, 0], sizes = [1, 2, 144], strides = [1, 1, 1]} : vector<4x2x144xbf16> to vector<1x2x144xbf16>
    %269 = vector.shape_cast %268 : vector<1x2x144xbf16> to vector<2x144xbf16>
    %270 = tpu.concatenate %263, %265, %267, %269 in 0 : vector<2x144xbf16>, vector<2x144xbf16>, vector<2x144xbf16>, vector<2x144xbf16> -> vector<8x144xbf16>
    %c0_85 = arith.constant 0 : index
    %c0_86 = arith.constant 0 : index
    %271 = vector.load %arg6[%c0_85, %c0_86] : memref<144x32xbf16, #tpu.memory_space<vmem>>, vector<144x32xbf16>
    %cst_87 = arith.constant dense<0.000000e+00> : vector<8x32xf32>
    %272 = tpu.matmul %270, %271, %cst_87 {dimension_numbers = #tpu.dot_dimension_numbers<[1], [0], [0], [1], [0, 0, 1, 1], [], []>} : vector<8x144xbf16>, vector<144x32xbf16>, vector<8x32xf32> -> vector<8x32xf32>
    %c0_88 = arith.constant 0 : index
    %c0_89 = arith.constant 0 : index
    %273 = vector.load %arg7[%c0_88, %c0_89] : memref<1x32xf32, #tpu.memory_space<vmem>>, vector<1x32xf32>
    %274 = vector.broadcast %273 : vector<1x32xf32> to vector<8x32xf32>
    %275 = arith.addf %272, %274 : vector<8x32xf32>
    %cst_90 = arith.constant 0.000000e+00 : f32
    %276 = vector.broadcast %cst_90 : f32 to vector<8x32xf32>
    %277 = arith.maximumf %275, %276 : vector<8x32xf32>
    %c0_91 = arith.constant 0 : index
    %c0_92 = arith.constant 0 : index
    %278 = vector.load %arg12[%c0_91, %c0_92] : memref<8x32xf32, #tpu.memory_space<vmem>>, vector<8x32xf32>
    tpu.vector_store %arg12[%c0_91, %c0_92], %277 {strides = array<i32>} : memref<8x32xf32, #tpu.memory_space<vmem>>, vector<8x32xf32>,
    %cst_93 = arith.constant 0.000000e+00 : bf16
    %279 = vector.broadcast %cst_93 : bf16 to vector<8x4x32xbf16>
    %c0_94 = arith.constant 0 : index
    %c0_95 = arith.constant 0 : index
    %c0_96 = arith.constant 0 : index
    %280 = vector.load %arg16[%c0_94, %c0_95, %c0_96] : memref<8x4x32xbf16, #tpu.memory_space<vmem>>, vector<8x4x32xbf16>
    tpu.vector_store %arg16[%c0_94, %c0_95, %c0_96], %279 {strides = array<i32>} : memref<8x4x32xbf16, #tpu.memory_space<vmem>>, vector<8x4x32xbf16>,
    %281 = arith.truncf %277 : vector<8x32xf32> to vector<8x32xbf16>
    %282 = vector.extract_strided_slice %281 {offsets = [0, 0], sizes = [2, 32], strides = [1, 1]} : vector<8x32xbf16> to vector<2x32xbf16>
    %283 = vector.shape_cast %282 : vector<2x32xbf16> to vector<1x2x32xbf16>
    %c1_97 = arith.constant 1 : index
    %c1_98 = arith.constant 1 : index
    %c0_99 = arith.constant 0 : index
    %284 = vector.load %arg16[%c1_97, %c1_98, %c0_99] : memref<8x4x32xbf16, #tpu.memory_space<vmem>>, vector<1x2x32xbf16>
    tpu.vector_store %arg16[%c1_97, %c1_98, %c0_99], %283 {strides = array<i32>} : memref<8x4x32xbf16, #tpu.memory_space<vmem>>, vector<1x2x32xbf16>,
    %285 = vector.extract_strided_slice %281 {offsets = [2, 0], sizes = [2, 32], strides = [1, 1]} : vector<8x32xbf16> to vector<2x32xbf16>
    %286 = vector.shape_cast %285 : vector<2x32xbf16> to vector<1x2x32xbf16>
    %c2_100 = arith.constant 2 : index
    %c1_101 = arith.constant 1 : index
    %c0_102 = arith.constant 0 : index
    %287 = vector.load %arg16[%c2_100, %c1_101, %c0_102] : memref<8x4x32xbf16, #tpu.memory_space<vmem>>, vector<1x2x32xbf16>
    tpu.vector_store %arg16[%c2_100, %c1_101, %c0_102], %286 {strides = array<i32>} : memref<8x4x32xbf16, #tpu.memory_space<vmem>>, vector<1x2x32xbf16>,
    %288 = vector.extract_strided_slice %281 {offsets = [4, 0], sizes = [2, 32], strides = [1, 1]} : vector<8x32xbf16> to vector<2x32xbf16>
    %289 = vector.shape_cast %288 : vector<2x32xbf16> to vector<1x2x32xbf16>
    %c5_103 = arith.constant 5 : index
    %c1_104 = arith.constant 1 : index
    %c0_105 = arith.constant 0 : index
    %290 = vector.load %arg16[%c5_103, %c1_104, %c0_105] : memref<8x4x32xbf16, #tpu.memory_space<vmem>>, vector<1x2x32xbf16>
    tpu.vector_store %arg16[%c5_103, %c1_104, %c0_105], %289 {strides = array<i32>} : memref<8x4x32xbf16, #tpu.memory_space<vmem>>, vector<1x2x32xbf16>,
    %291 = vector.extract_strided_slice %281 {offsets = [6, 0], sizes = [2, 32], strides = [1, 1]} : vector<8x32xbf16> to vector<2x32xbf16>
    %292 = vector.shape_cast %291 : vector<2x32xbf16> to vector<1x2x32xbf16>
    %c6_106 = arith.constant 6 : index
    %c1_107 = arith.constant 1 : index
    %c0_108 = arith.constant 0 : index
    %293 = vector.load %arg16[%c6_106, %c1_107, %c0_108] : memref<8x4x32xbf16, #tpu.memory_space<vmem>>, vector<1x2x32xbf16>
    tpu.vector_store %arg16[%c6_106, %c1_107, %c0_108], %292 {strides = array<i32>} : memref<8x4x32xbf16, #tpu.memory_space<vmem>>, vector<1x2x32xbf16>,
    %c0_109 = arith.constant 0 : index
    %c0_110 = arith.constant 0 : index
    %c0_111 = arith.constant 0 : index
    %294 = vector.load %arg16[%c0_109, %c0_110, %c0_111] : memref<8x4x32xbf16, #tpu.memory_space<vmem>>, vector<8x4x32xbf16>
    %295 = vector.extract_strided_slice %294 {offsets = [0, 0, 0], sizes = [8, 1, 32], strides = [1, 1, 1]} : vector<8x4x32xbf16> to vector<8x1x32xbf16>
    %296 = vector.extract_strided_slice %294 {offsets = [0, 2, 0], sizes = [8, 1, 32], strides = [1, 1, 1]} : vector<8x4x32xbf16> to vector<8x1x32xbf16>
    %297 = tpu.concatenate %295, %296 in 1 : vector<8x1x32xbf16>, vector<8x1x32xbf16> -> vector<8x2x32xbf16>
    %298 = vector.extract_strided_slice %294 {offsets = [0, 1, 0], sizes = [8, 1, 32], strides = [1, 1, 1]} : vector<8x4x32xbf16> to vector<8x1x32xbf16>
    %299 = vector.extract_strided_slice %294 {offsets = [0, 3, 0], sizes = [8, 1, 32], strides = [1, 1, 1]} : vector<8x4x32xbf16> to vector<8x1x32xbf16>
    %300 = tpu.concatenate %298, %299 in 1 : vector<8x1x32xbf16>, vector<8x1x32xbf16> -> vector<8x2x32xbf16>
    %301 = vector.shape_cast %297 : vector<8x2x32xbf16> to vector<2x2x2x2x32xbf16>
    %302 = vector.shape_cast %300 : vector<8x2x32xbf16> to vector<2x2x2x2x32xbf16>
    %303 = vector.extract_strided_slice %301 {offsets = [0, 0, 0, 0, 0], sizes = [2, 1, 1, 2, 32], strides = [1, 1, 1, 1, 1]} : vector<2x2x2x2x32xbf16> to vector<2x1x1x2x32xbf16>
    %304 = vector.shape_cast %303 : vector<2x1x1x2x32xbf16> to vector<2x1x2x32xbf16>
    %305 = vector.extract_strided_slice %302 {offsets = [0, 0, 0, 0, 0], sizes = [2, 1, 1, 2, 32], strides = [1, 1, 1, 1, 1]} : vector<2x2x2x2x32xbf16> to vector<2x1x1x2x32xbf16>
    %306 = vector.shape_cast %305 : vector<2x1x1x2x32xbf16> to vector<2x1x2x32xbf16>
    %307 = vector.extract_strided_slice %304 {offsets = [0, 0, 0, 0], sizes = [2, 1, 1, 32], strides = [1, 1, 1, 1]} : vector<2x1x2x32xbf16> to vector<2x1x1x32xbf16>
    %308 = vector.extract_strided_slice %306 {offsets = [0, 0, 0, 0], sizes = [2, 1, 1, 32], strides = [1, 1, 1, 1]} : vector<2x1x2x32xbf16> to vector<2x1x1x32xbf16>
    %309 = vector.extract_strided_slice %304 {offsets = [0, 0, 1, 0], sizes = [2, 1, 1, 32], strides = [1, 1, 1, 1]} : vector<2x1x2x32xbf16> to vector<2x1x1x32xbf16>
    %310 = vector.extract_strided_slice %301 {offsets = [0, 0, 1, 0, 0], sizes = [2, 1, 1, 2, 32], strides = [1, 1, 1, 1, 1]} : vector<2x2x2x2x32xbf16> to vector<2x1x1x2x32xbf16>
    %311 = vector.shape_cast %310 : vector<2x1x1x2x32xbf16> to vector<2x1x2x32xbf16>
    %312 = vector.extract_strided_slice %302 {offsets = [0, 0, 1, 0, 0], sizes = [2, 1, 1, 2, 32], strides = [1, 1, 1, 1, 1]} : vector<2x2x2x2x32xbf16> to vector<2x1x1x2x32xbf16>
    %313 = vector.shape_cast %312 : vector<2x1x1x2x32xbf16> to vector<2x1x2x32xbf16>
    %314 = vector.extract_strided_slice %311 {offsets = [0, 0, 0, 0], sizes = [2, 1, 1, 32], strides = [1, 1, 1, 1]} : vector<2x1x2x32xbf16> to vector<2x1x1x32xbf16>
    %315 = vector.extract_strided_slice %313 {offsets = [0, 0, 0, 0], sizes = [2, 1, 1, 32], strides = [1, 1, 1, 1]} : vector<2x1x2x32xbf16> to vector<2x1x1x32xbf16>
    %316 = vector.extract_strided_slice %311 {offsets = [0, 0, 1, 0], sizes = [2, 1, 1, 32], strides = [1, 1, 1, 1]} : vector<2x1x2x32xbf16> to vector<2x1x1x32xbf16>
    %317 = vector.extract_strided_slice %301 {offsets = [0, 1, 0, 0, 0], sizes = [2, 1, 1, 2, 32], strides = [1, 1, 1, 1, 1]} : vector<2x2x2x2x32xbf16> to vector<2x1x1x2x32xbf16>
    %318 = vector.shape_cast %317 : vector<2x1x1x2x32xbf16> to vector<2x1x2x32xbf16>
    %319 = vector.extract_strided_slice %302 {offsets = [0, 1, 0, 0, 0], sizes = [2, 1, 1, 2, 32], strides = [1, 1, 1, 1, 1]} : vector<2x2x2x2x32xbf16> to vector<2x1x1x2x32xbf16>
    %320 = vector.shape_cast %319 : vector<2x1x1x2x32xbf16> to vector<2x1x2x32xbf16>
    %321 = vector.extract_strided_slice %318 {offsets = [0, 0, 0, 0], sizes = [2, 1, 1, 32], strides = [1, 1, 1, 1]} : vector<2x1x2x32xbf16> to vector<2x1x1x32xbf16>
    %322 = vector.extract_strided_slice %320 {offsets = [0, 0, 0, 0], sizes = [2, 1, 1, 32], strides = [1, 1, 1, 1]} : vector<2x1x2x32xbf16> to vector<2x1x1x32xbf16>
    %323 = vector.extract_strided_slice %318 {offsets = [0, 0, 1, 0], sizes = [2, 1, 1, 32], strides = [1, 1, 1, 1]} : vector<2x1x2x32xbf16> to vector<2x1x1x32xbf16>
    %324 = tpu.concatenate %307, %308, %309, %314, %315, %316, %321, %322, %323 in 3 : vector<2x1x1x32xbf16>, vector<2x1x1x32xbf16>, vector<2x1x1x32xbf16>, vector<2x1x1x32xbf16>, vector<2x1x1x32xbf16>, vector<2x1x1x32xbf16>, vector<2x1x1x32xbf16>, vector<2x1x1x32xbf16>, vector<2x1x1x32xbf16> -> vector<2x1x1x288xbf16>
    %325 = vector.shape_cast %324 : vector<2x1x1x288xbf16> to vector<2x1x288xbf16>
    %326 = vector.extract_strided_slice %325 {offsets = [0, 0, 0], sizes = [1, 1, 288], strides = [1, 1, 1]} : vector<2x1x288xbf16> to vector<1x1x288xbf16>
    %327 = vector.shape_cast %326 : vector<1x1x288xbf16> to vector<1x288xbf16>
    %328 = vector.extract_strided_slice %325 {offsets = [1, 0, 0], sizes = [1, 1, 288], strides = [1, 1, 1]} : vector<2x1x288xbf16> to vector<1x1x288xbf16>
    %329 = vector.shape_cast %328 : vector<1x1x288xbf16> to vector<1x288xbf16>
    %330 = tpu.concatenate %327, %329 in 0 : vector<1x288xbf16>, vector<1x288xbf16> -> vector<2x288xbf16>
    %c0_112 = arith.constant 0 : index
    %c0_113 = arith.constant 0 : index
    %331 = vector.load %arg8[%c0_112, %c0_113] : memref<288x64xbf16, #tpu.memory_space<vmem>>, vector<288x64xbf16>
    %cst_114 = arith.constant dense<0.000000e+00> : vector<2x64xf32>
    %332 = tpu.matmul %330, %331, %cst_114 {dimension_numbers = #tpu.dot_dimension_numbers<[1], [0], [0], [1], [0, 0, 1, 1], [], []>} : vector<2x288xbf16>, vector<288x64xbf16>, vector<2x64xf32> -> vector<2x64xf32>
    %c0_115 = arith.constant 0 : index
    %c0_116 = arith.constant 0 : index
    %333 = vector.load %arg9[%c0_115, %c0_116] : memref<1x64xf32, #tpu.memory_space<vmem>>, vector<1x64xf32>
    %334 = vector.broadcast %333 : vector<1x64xf32> to vector<2x64xf32>
    %335 = arith.addf %332, %334 : vector<2x64xf32>
    %cst_117 = arith.constant 0.000000e+00 : f32
    %336 = vector.broadcast %cst_117 : f32 to vector<2x64xf32>
    %337 = arith.maximumf %335, %336 : vector<2x64xf32>
    %c0_118 = arith.constant 0 : index
    %c0_119 = arith.constant 0 : index
    %338 = vector.load %arg13[%c0_118, %c0_119] : memref<2x64xf32, #tpu.memory_space<vmem>>, vector<2x64xf32>
    tpu.vector_store %arg13[%c0_118, %c0_119], %337 {strides = array<i32>} : memref<2x64xf32, #tpu.memory_space<vmem>>, vector<2x64xf32>,
    return
  }
  func.func @transform_0(%arg0: i32) -> (i32, i32, i32) {
    %c0_i32 = arith.constant 0 : i32
    %c0_i32_0 = arith.constant 0 : i32
    %c0_i32_1 = arith.constant 0 : i32
    %c0_i32_2 = arith.constant 0 : i32
    return %c0_i32, %c0_i32_0, %c0_i32_1 : i32, i32, i32
  }
  func.func @transform_1(%arg0: i32) -> (i32, i32) {
    %c0_i32 = arith.constant 0 : i32
    %c0_i32_0 = arith.constant 0 : i32
    %c0_i32_1 = arith.constant 0 : i32
    return %c0_i32, %c0_i32_0 : i32, i32
  }
  func.func @transform_2(%arg0: i32) -> (i32, i32) {
    %c0_i32 = arith.constant 0 : i32
    %c0_i32_0 = arith.constant 0 : i32
    %c0_i32_1 = arith.constant 0 : i32
    return %c0_i32, %c0_i32_0 : i32, i32
  }
  func.func @transform_3(%arg0: i32) -> (i32, i32) {
    %c0_i32 = arith.constant 0 : i32
    %c0_i32_0 = arith.constant 0 : i32
    %c0_i32_1 = arith.constant 0 : i32
    return %c0_i32, %c0_i32_0 : i32, i32
  }
  func.func @transform_4(%arg0: i32) -> (i32, i32) {
    %c0_i32 = arith.constant 0 : i32
    %c0_i32_0 = arith.constant 0 : i32
    %c0_i32_1 = arith.constant 0 : i32
    return %c0_i32, %c0_i32_0 : i32, i32
  }
  func.func @transform_5(%arg0: i32) -> (i32, i32) {
    %c0_i32 = arith.constant 0 : i32
    %c0_i32_0 = arith.constant 0 : i32
    %c0_i32_1 = arith.constant 0 : i32
    return %c0_i32, %c0_i32_0 : i32, i32
  }
  func.func @transform_6(%arg0: i32) -> (i32, i32) {
    %c0_i32 = arith.constant 0 : i32
    %c0_i32_0 = arith.constant 0 : i32
    %c0_i32_1 = arith.constant 0 : i32
    return %c0_i32, %c0_i32_0 : i32, i32
  }
  func.func @transform_7(%arg0: i32) -> (i32, i32) {
    %c0_i32 = arith.constant 0 : i32
    %c0_i32_0 = arith.constant 0 : i32
    %c0_i32_1 = arith.constant 0 : i32
    return %c0_i32, %c0_i32_0 : i32, i32
  }
  func.func @transform_8(%arg0: i32) -> (i32, i32) {
    %c0_i32 = arith.constant 0 : i32
    %c0_i32_0 = arith.constant 0 : i32
    %c0_i32_1 = arith.constant 0 : i32
    return %c0_i32, %c0_i32_0 : i32, i32
  }
  func.func @transform_9(%arg0: i32) -> (i32, i32) {
    %c0_i32 = arith.constant 0 : i32
    %c0_i32_0 = arith.constant 0 : i32
    %c0_i32_1 = arith.constant 0 : i32
    return %c0_i32, %c0_i32_0 : i32, i32
  }
  func.func @transform_10(%arg0: i32) -> (i32, i32) {
    %c0_i32 = arith.constant 0 : i32
    %c0_i32_0 = arith.constant 0 : i32
    %c0_i32_1 = arith.constant 0 : i32
    return %c0_i32, %c0_i32_0 : i32, i32
  }
  func.func @transform_11(%arg0: i32) -> (i32, i32) {
    %c0_i32 = arith.constant 0 : i32
    %c0_i32_0 = arith.constant 0 : i32
    %c0_i32_1 = arith.constant 0 : i32
    return %c0_i32, %c0_i32_0 : i32, i32
  }
  func.func @transform_12(%arg0: i32) -> (i32, i32) {
    %c0_i32 = arith.constant 0 : i32
    %c0_i32_0 = arith.constant 0 : i32
    %c0_i32_1 = arith.constant 0 : i32
    return %c0_i32, %c0_i32_0 : i32, i32
  }
}

</mosaic_0001>

<bundles_post_ra>
// kernel: _encoder_forward.1
= control target key start
LH: loop header
LB: loop body
LE: loop exit
PB: predicated region body
PF: predicated region fallthrough
CT: control target
= control target key end

     0   :  { %18 = vsyncpa [#allocation6], 0  ;;  %vm991_vm0 = vcmask 1040384   ;;  %vm11877_vm1 = vsmask.f32 256  ;;  %vm11891_vm2 = vcmask 1041408   ;;  %s11847_s0 = inlined_call_operand.vmem [shape: bf16[36,18,4], index: 0, kind: input, shape index: {}]   ;;  %s11848_s1 = inlined_call_operand.vmem [shape: bf16[36,8], index: 1, kind: input, shape index: {}]   ;;  %s11849_s2 = inlined_call_operand.vmem [shape: f32[1,8], index: 2, kind: input, shape index: {}]   ;;  %s11850_s3 = inlined_call_operand.vmem [shape: bf16[72,16], index: 3, kind: input, shape index: {}]   ;;  %s11851_s4 = inlined_call_operand.vmem [shape: f32[1,16], index: 4, kind: input, shape index: {}]   ;;  %s11852_s5 = inlined_call_operand.vmem [shape: bf16[144,32], index: 5, kind: input, shape index: {}]   ;;  %s11853_s6 = inlined_call_operand.vmem [shape: f32[1,32], index: 6, kind: input, shape index: {}]   ;;  %s11854_s7 = inlined_call_operand.vmem [shape: bf16[288,64], index: 7, kind: input, shape index: {}]   ;;  %s11855_s8 = inlined_call_operand.vmem [shape: f32[1,64], index: 8, kind: input, shape index: {}]   ;;  %s11856_s9 = inlined_call_operand.vmem [shape: f32[128,8], index: 9, kind: output, shape index: {0}]   ;;  %s11857_s10 = inlined_call_operand.hbm [shape: f32[32,16], index: 10, kind: output, shape index: {1}]   ;;  %s11858_s11 = inlined_call_operand.hbm [shape: f32[8,32], index: 11, kind: output, shape index: {2}]   ;;  %s11859_s12 = inlined_call_operand.hbm [shape: f32[2,64], index: 12, kind: output, shape index: {3}]  }
   0x1   :  { %v45_v0 = vld [vmem:[%s11847_s0 + $0x18] sm:$0xf]  ;;  %v7484_v1 = vld [vmem:[%s11847_s0 + $0x1c] sm:$0xf]  ;;  %vm1166_vm3 = vsmask.f32 1280  ;;  %vm7499_vm5 = vmand %vm991_vm0, %vm11877_vm1 }
   0x2   :  { %v6786_v2 = vcombine.low %v45_v0, %v45_v0  ;;  %v7488_v3 = vcombine.low %v7484_v1, %v7484_v1  ;;  %v7493_v4 = vld [vmem:[%s11847_s0 + $0x20] ss:$0 sps:$4 sm:$0x11]   ;;  %vm11890_vm4 = vcmask 1042432   ;;  %vm1340_vm6 = vsmask.f32 2304  ;;  %vm7517_vm9 = vmand %vm11891_vm2, %vm1166_vm3 }
   0x3   :  { %vm1513_vm7 = vcmask 1043456   ;;  %vm1514_vm8 = vsmask.f32 3328  ;;  %v2067_v13 = vshrl.u32 %v7493_v4, 16  ;;  %v7509_v15 = vld [vmem:[%s11847_s0] sm:$0xf]  ;;  %vm7534_vm10 = vmand %vm11890_vm4, %vm1340_vm6 }
   0x4   :  { %v415_v5 = vrot.slane %v6786_v2, 1  ;;  %v619_v6 = vrot.slane %v7488_v3, 6  ;;  %v660_v7 = vshll.u32 %v7488_v3, 16  ;;  %v823_v9 = vrot.slane %v7488_v3, 7  ;;  %v7526_v20 = vld [vmem:[%s11847_s0 + $0x4] sm:$0xf]  ;;  %vm7557_vm11 = vmand %vm1513_vm7, %vm1514_vm8 }
   0x5   :  { %v1657_v10 = vshrl.u32 %v6786_v2, 16  ;;  %v1825_v11 = vrot.slane %v6786_v2, 2  ;;  %v1897_v12 = vshrl.u32 %v7488_v3, 16  ;;  %v252_v14 = vshll.u32 %v6786_v2, 16  ;;  %v7568_v41 = vld [vmem:[%s11847_s0 + $0x48] sm:$0xf] }
   0x6   :  { %v7513_v16 = vrot.slane %v660_v7, 7  ;;  %v7530_v21 = vcombine.low %v7509_v15, %v7509_v15  ;;  %v2069_v24 = vrot.slane %v2067_v13, 4  ;;  %v7542_v30 = vcombine.low %v7526_v20, %v7526_v20  ;;  %v7547_v31 = vld [vmem:[%s11847_s0 + $0x8] ss:$0 sps:$4 sm:$0x11]   ;;  %s7390_s21 = smov 4  }
   0x7   :  { %v1791_v18 = vrot.slane %v1657_v10, 1  ;;  %v2165_v19 = vsel %vm7499_vm5, %v1657_v10, %v415_v5  ;;  %v1899_v22 = vrot.slane %v1897_v12, 6  ;;  %v2029_v23 = vrot.slane %v1897_v12, 7  ;;  %v7580_v46 = vld [vmem:[%s11847_s0 + $0x50] ss:$0 sps:$4 sm:$0x11]  }
   0x8   :  { %v254_v25 = vrot.slane %v252_v14, 1  ;;  %v449_v28 = vrot.slane %v252_v14, 2  ;;  %v413_v29 = vrot.slane %v7530_v21, 1  ;;  %v1653_v34 = vshrl.u32 %v7530_v21, 16  ;;  %v7594_v51 = vld [vmem:[%s11847_s0 + $0x4c] sm:$0xf] }
   0x9   :  { %v2207_v27 = vsel %vm991_vm0, %v2165_v19, %v1791_v18  ;;  %v1823_v35 = vrot.slane %v7530_v21, 2  ;;  %v11860_v40 = vshll.u32 %v7542_v30, 16  ;;  %v11861_v44 = vrot.slane %v7542_v30, 7  ;;  %v7633_v10 = vld [vmem:[%s11847_s0 + $0x28] sm:$0xf]  ;;  %s7391_s23 = smov 16  }
   0xa   :  { %v2335_v32 = vsel %vm7517_vm9, %v2207_v27, %v1825_v11  ;;  %v996_v33 = vsel %vm7499_vm5, %v45_v0, %v254_v25  ;;  %v1789_v45 = vrot.slane %v1653_v34, 1  ;;  %v1891_v50 = vshrl.u32 %v7542_v30, 16  ;;  %v7624_v0 = vld [vmem:[%s11847_s0 + $0x24] sm:$0xf]  ;;  %s7392_s26 = smov 12   ;;  %s7393_s13 = smov 8  }
   0xb   :  { %v2377_v37 = vsel %vm11891_vm2, %v2335_v32, %v1899_v22  ;;  %v1039_v38 = vsel %vm991_vm0, %v996_v33, %v415_v5  ;;  %v7588_v49 = vrot.slane %v11860_v40, 7  ;;  %v2061_v53 = vshrl.u32 %v7547_v31, 16  ;;  %v7667_v33 = vld [vmem:[%s11847_s0 + $0x30] sm:$0xf]  ;;  %s7394_s20 = smov 20   ;;  %s7395_s17 = smov 24  }
   0xc   :  { %v2505_v42 = vsel %vm7534_vm10, %v2377_v37, %v823_v9  ;;  %v1170_v43 = vsel %vm7517_vm9, %v1039_v38, %v449_v28  ;;  %v2163_v54 = vsel %vm7499_vm5, %v1653_v34, %v413_v29  ;;  %v7606_v55 = vcombine.low %v7568_v41, %v7568_v41  ;;  %s7396_s28 = smov 28   ;;  %s7397_s16 = smov 32  }
   0xd   :  { %v2547_v47 = vsel %vm11890_vm4, %v2505_v42, %v2029_v23  ;;  %v7584_v48 = vsel %vm11891_vm2, %v1170_v43, %v619_v6  ;;  %v1893_v57 = vrot.slane %v1891_v50, 6  ;;  %v2027_v58 = vrot.slane %v1891_v50, 7 }
   0xe   :  { %v2675_v52 = vsel %vm7557_vm11, %v2547_v47, %v7484_v1  ;;  %v2199_v59 = vsel %vm991_vm0, %v2163_v54, %v1789_v45  ;;  %v2063_v60 = vrot.slane %v2061_v53, 4  ;;  %v419_v62 = vrot.slane %v7606_v55, 1  ;;  %v7686_v53 = vld [vmem:[%s11847_s0 + $0x34] sm:$0xf] }
   0xf   :  { %v7609_v56 = vsel %vm1513_vm7, %v2675_v52, %v2069_v24  ;;  %v2333_v61 = vsel %vm7517_vm9, %v2199_v59, %v1823_v35  ;;  %v7619_v63 = vcombine.low %v7594_v51, %v7594_v51  ;;  %v1665_v2 = vshrl.u32 %v7606_v55, 16  ;;  %v7647_v24 = vld [vmem:[%s11847_s0 + $0x2c] ss:$0 sps:$4 sm:$0x11]  }
  0x10   :  { %2827 = vrot.lane.b32.xlu0 %v7609_v56, %s7390_s21  ;;  %v2369_v1 = vsel %vm11891_vm2, %v2333_v61, %v1893_v57  ;;  %v1829_v5 = vrot.slane %v7606_v55, 2  ;;  %v2079_v6 = vshrl.u32 %v7580_v46, 16  ;;  %v7662_v32 = vcombine.low %v7624_v0, %v7624_v0  ;;  %v7701_v61 = vld [vmem:[%s11847_s0 + $0x38] ss:$0 sps:$4 sm:$0x11]  }
  0x11   :  { %v2503_v11 = vsel %vm7534_vm10, %v2369_v1, %v11861_v44  ;;  %v623_v12 = vrot.slane %v7619_v63, 6  ;;  %v676_v13 = vshll.u32 %v7619_v63, 16  ;;  %v827_v14 = vrot.slane %v7619_v63, 7 }
  0x12   :  { %v2539_v18 = vsel %vm11890_vm4, %v2503_v11, %v2027_v58  ;;  %v1795_v19 = vrot.slane %v1665_v2, 1  ;;  %v1909_v22 = vshrl.u32 %v7619_v63, 16  ;;  %v2081_v23 = vrot.slane %v2079_v6, 4 }
  0x13   :  { %v2673_v25 = vsel %vm7557_vm11, %v2539_v18, %v7526_v20  ;;  %v7654_v27 = vrot.slane %v676_v13, 7  ;;  %v2169_v28 = vsel %vm7499_vm5, %v1665_v2, %v419_v62  ;;  %v416_v42 = vrot.slane %v7662_v32, 1 }
  0x14   :  { %v2709_v20 = vsel %vm1513_vm7, %v2673_v25, %v2063_v60  ;;  %v1911_v34 = vrot.slane %v1909_v22, 6  ;;  %v2033_v35 = vrot.slane %v1909_v22, 7  ;;  %v2223_v37 = vsel %vm991_vm0, %v2169_v28, %v1795_v19 }
  0x15   :  { %2825 = vrot.lane.b32.xlu1 %v2709_v20, %s7390_s21  ;;  %v2339_v38 = vsel %vm7517_vm9, %v2223_v37, %v1829_v5  ;;  %v7677_v43 = vcombine.low %v7633_v10, %v7633_v10  ;;  %v1659_v45 = vshrl.u32 %v7662_v32, 16  ;;  %v1826_v50 = vrot.slane %v7662_v32, 2 }
  0x16   :  { %v2393_v47 = vsel %vm11891_vm2, %v2339_v38, %v1911_v34  ;;  %v2070_v52 = vshrl.u32 %v7647_v24, 16  ;;  %v7690_v54 = vcombine.low %v7667_v33, %v7667_v33  ;;  %v7718_v20 = vcombine.low %v7686_v53, %v7686_v53 }
  0x17   :  { %v2509_v57 = vsel %vm7534_vm10, %v2393_v47, %v827_v14  ;;  %v824_v58 = vrot.slane %v7677_v43, 7  ;;  %v1792_v59 = vrot.slane %v1659_v45, 1  ;;  %v1900_v60 = vshrl.u32 %v7677_v43, 16 }
  0x18   :  { %v2563_v1 = vsel %vm11890_vm4, %v2509_v57, %v2033_v35  ;;  %v2072_v2 = vrot.slane %v2070_v52, 4  ;;  %v2166_v5 = vsel %vm7499_vm5, %v1659_v45, %v416_v42  ;;  %v417_v6 = vrot.slane %v7690_v54, 1 }
  0x19   :  { %v2679_v11 = vsel %vm7557_vm11, %v2563_v1, %v7594_v51  ;;  %v1902_v18 = vrot.slane %v1900_v60, 6  ;;  %v2030_v19 = vrot.slane %v1900_v60, 7  ;;  %v2211_v22 = vsel %vm991_vm0, %v2166_v5, %v1792_v59 }
  0x1a   :  { %v7712_v25 = vsel %vm1513_vm7, %v2679_v11, %v2081_v23  ;;  %v2336_v28 = vsel %vm7517_vm9, %v2211_v22, %v1826_v50  ;;  %v1661_v34 = vshrl.u32 %v7690_v54, 16  ;;  %v1827_v35 = vrot.slane %v7690_v54, 2 }
  0x1b   :  { %2831 = vrot.lane.b32.xlu0 %v7712_v25, %s7390_s21  ;;  %v2381_v51 = vsel %vm11891_vm2, %v2336_v28, %v1902_v18  ;;  %v2073_v37 = vshrl.u32 %v7701_v61, 16  ;;  %v256_v23 = vshll.u32 %v7662_v32, 16  ;;  %v621_v45 = vrot.slane %v7718_v20, 6  ;;  %v60_v32 = vld [vmem:[%s11847_s0 + $0x54] sm:$0xf] }
  0x1c   :  { %v2506_v38 = vsel %vm7534_vm10, %v2381_v51, %v824_v58  ;;  %v668_v47 = vshll.u32 %v7718_v20, 16  ;;  %v825_v50 = vrot.slane %v7718_v20, 7  ;;  %v1793_v57 = vrot.slane %v1661_v34, 1 }
  0x1d   :  { %v2551_v52 = vsel %vm11890_vm4, %v2506_v38, %v2030_v19  ;;  %v1903_v59 = vshrl.u32 %v7718_v20, 16  ;;  %v2075_v60 = vrot.slane %v2073_v37, 4  ;;  %v2167_v11 = vsel %vm7499_vm5, %v1661_v34, %v417_v6  ;;  %v7753_v19 = vld [vmem:[%s11847_s0 + $0x58] sm:$0xf]  ;;  %v42_v37 = vld [vmem:[%s11847_s0 + $0xc] sm:$0xf] }
  0x1e   :  { %v2676_v1 = vsel %vm7557_vm11, %v2551_v52, %v7633_v10  ;;  %v7744_v5 = vrot.slane %v668_v47, 7  ;;  %v258_v18 = vrot.slane %v256_v23, 1  ;;  %v2215_v10 = vsel %vm991_vm0, %v2167_v11, %v1793_v57 }
  0x1f   :  { %v2718_v22 = vsel %vm1513_vm7, %v2676_v1, %v2072_v2  ;;  %v1905_v28 = vrot.slane %v1903_v59, 6  ;;  %v2031_v51 = vrot.slane %v1903_v59, 7  ;;  %v2337_v34 = vsel %vm7517_vm9, %v2215_v10, %v1827_v35 }
  0x20   :  { %3051 = vrot.lane.b32.xlu1 %v2718_v22, %s7391_s23  ;;  %v450_v38 = vrot.slane %v256_v23, 2  ;;  %v620_v52 = vrot.slane %v7677_v43, 6  ;;  %v664_v40 = vshll.u32 %v7677_v43, 16  ;;  %v997_v57 = vsel %vm7499_vm5, %v7624_v0, %v258_v18 }
  0x21   :  { %v2385_v2 = vsel %vm11891_vm2, %v2337_v34, %v1905_v28  ;;  %v7769_v59 = vcombine.low %v60_v32, %v60_v32  ;;  %v7773_v1 = vcombine.low %v7753_v19, %v7753_v19  ;;  %v1043_v11 = vsel %vm991_vm0, %v997_v57, %v416_v42 }
  0x22   :  { %v2507_v35 = vsel %vm7534_vm10, %v2385_v2, %v825_v50  ;;  %v666_v23 = vrot.slane %v664_v40, 7  ;;  %v7780_v22 = vcombine.low %v42_v37, %v42_v37  ;;  %v1171_v0 = vsel %vm7517_vm9, %v1043_v11, %v450_v38 }
  0x23   :  { %v2555_v28 = vsel %vm11890_vm4, %v2507_v35, %v2031_v51  ;;  %v272_v18 = vshll.u32 %v7769_v59, 16  ;;  %v11862_v10 = vrot.slane %v7769_v59, 1  ;;  %v1217_v2 = vsel %vm11891_vm2, %v1171_v0, %v620_v52  ;;  %v7796_v51 = vld [vmem:[%s11847_s0 + $0x10] sm:$0xf] }
  0x24   :  { %v2677_v34 = vsel %vm7557_vm11, %v2555_v28, %v7686_v53  ;;  %v624_v44 = vrot.slane %v7773_v1, 6  ;;  %v680_v42 = vshll.u32 %v7773_v1, 16  ;;  %v1345_v57 = vsel %vm7534_vm10, %v1217_v2, %v666_v23 }
  0x25   :  { %v7799_v38 = vsel %vm1513_vm7, %v2677_v34, %v2075_v60  ;;  %v274_v35 = vrot.slane %v272_v18, 1  ;;  %v454_v11 = vrot.slane %v272_v18, 2  ;;  %v1391_v53 = vsel %vm11890_vm4, %v1345_v57, %v824_v58 }
  0x26   :  { %2829 = vrot.lane.b32.xlu0 %v7799_v38, %s7390_s21  ;;  %v682_v52 = vrot.slane %v680_v42, 7  ;;  %v11864_v28 = vrot.slane %v7773_v1, 7  ;;  %v248_v0 = vshll.u32 %v7780_v22, 16  ;;  %v1519_v60 = vsel %vm7557_vm11, %v1391_v53, %v664_v40 }
  0x27   :  { %v1001_v23 = vsel %vm7499_vm5, %v60_v32, %v274_v35  ;;  %v11863_v18 = vrot.slane %v7780_v22, 1  ;;  %v7817_v34 = vcombine.low %v7796_v51, %v7796_v51  ;;  %v7821_v43 = vsel %vm1513_vm7, %v1519_v60, %v7647_v24  ;;  %v7833_v35 = vld [vmem:[%s11847_s0 + $0x5c] ss:$0 sps:$4 sm:$0x11]  }
  0x28   :  { %v1059_v58 = vsel %vm991_vm0, %v1001_v23, %v11862_v10  ;;  %v250_v2 = vrot.slane %v248_v0, 1  ;;  %v448_v57 = vrot.slane %v248_v0, 2  ;;  %v3089_v32 = vshll.u32 %v7821_v43, 16  ;;  %3003 = vrot.lane.b32.xlu1 %v7821_v43, %s7392_s26 }
  0x29   :  { %v1175_v24 = vsel %vm7517_vm9, %v1059_v58, %v454_v11  ;;  %v618_v53 = vrot.slane %v7817_v34, 6  ;;  %v656_v60 = vshll.u32 %v7817_v34, 16  ;;  %v822_v23 = vrot.slane %v7817_v34, 7 }
  0x2a   :  { %v1233_v0 = vsel %vm11891_vm2, %v1175_v24, %v624_v44  ;;  %v995_v40 = vsel %vm7499_vm5, %v42_v37, %v250_v2  ;;  %v7843_v39 = vrot.slane %v3089_v32, 1  ;;  %v268_v58 = vshll.u32 %v7606_v55, 16  ;;  %v7857_v37 = vld [vmem:[%s11847_s0 + $0x14] ss:$0 sps:$4 sm:$0x11]  }
  0x2b   :  { %v1349_v10 = vsel %vm7534_vm10, %v1233_v0, %v682_v52  ;;  %v1035_v11 = vsel %vm991_vm0, %v995_v40, %v11863_v18  ;;  %v658_v24 = vrot.slane %v656_v60, 7  ;;  %v1344_v52 = vsel %vm7534_vm10, %v7584_v48, %v7513_v16 }
  0x2c   :  { %v1407_v44 = vsel %vm11890_vm4, %v1349_v10, %v11864_v28  ;;  %v1169_v2 = vsel %vm7517_vm9, %v1035_v11, %v448_v57  ;;  %v270_v10 = vrot.slane %v268_v58, 1  ;;  %v453_v0 = vrot.slane %v268_v58, 2 }
  0x2d   :  { %v1523_v40 = vsel %vm7557_vm11, %v1407_v44, %v680_v42  ;;  %v1209_v32 = vsel %vm11891_vm2, %v1169_v2, %v618_v53  ;;  %v1387_v57 = vsel %vm11890_vm4, %v1344_v52, %v823_v9  ;;  %v260_v16 = vshll.u32 %v7690_v54, 16 }
  0x2e   :  { %v7870_v18 = vsel %vm1513_vm7, %v1523_v40, %v7833_v35  ;;  %v1343_v28 = vsel %vm7534_vm10, %v1209_v32, %v658_v24  ;;  %v1000_v11 = vsel %vm7499_vm5, %v7568_v41, %v270_v10  ;;  %v1518_v44 = vsel %vm7557_vm11, %v1387_v57, %v660_v7 }
  0x2f   :  { %v3099_v48 = vshrl.u32 %v7870_v18, 16  ;;  %v3101_v42 = vshll.u32 %v7870_v18, 16  ;;  %3007 = vrot.lane.b32.xlu0 %v7870_v18, %s7392_s26  ;;  %v1383_v53 = vsel %vm11890_vm4, %v1343_v28, %v822_v23  ;;  %v1055_v58 = vsel %vm991_vm0, %v1000_v11, %v419_v62 }
  0x30   :  { %v1517_v9 = vsel %vm7557_vm11, %v1383_v53, %v656_v60  ;;  %v262_v24 = vrot.slane %v260_v16, 1  ;;  %v1174_v41 = vsel %vm7517_vm9, %v1055_v58, %v453_v0  ;;  %v7907_v55 = vsel %vm1513_vm7, %v1518_v44, %v7493_v4 }
  0x31   :  { %v7897_v2 = vrot.slane %v3101_v42, 1  ;;  %v7901_v28 = vsel %vm1513_vm7, %v1517_v9, %v7857_v37  ;;  %v1229_v7 = vsel %vm11891_vm2, %v1174_v41, %v623_v12  ;;  %v2863_v60 = vshrl.u32 %v7907_v55, 16 }
  0x32   :  { %v3081_v62 = vshrl.u32 %v7901_v28, 16  ;;  %v3083_v3 = vshll.u32 %v7901_v28, 16  ;;  %3001 = vrot.lane.b32.xlu1 %v7901_v28, %s7392_s26  ;;  %v1348_v52 = vsel %vm7534_vm10, %v1229_v7, %v7654_v27  ;;  %v2865_v4 = vshll.u32 %v7907_v55, 16 }
  0x33   :  { %v451_v40 = vrot.slane %v260_v16, 2  ;;  %v998_v32 = vsel %vm7499_vm5, %v7667_v33, %v262_v24  ;;  %v1403_v0 = vsel %vm11890_vm4, %v1348_v52, %v827_v14  ;;  %v244_v57 = vshll.u32 %v7530_v21, 16 }
  0x34   :  { %v7924_v10 = vrot.slane %v3083_v3, 1  ;;  %v1047_v12 = vsel %vm991_vm0, %v998_v32, %v417_v6  ;;  %v1522_v27 = vsel %vm7557_vm11, %v1403_v0, %v676_v13  ;;  %v2867_v16 = vrot.slane %v2865_v4, 1 }
  0x35   :  { %v1172_v33 = vsel %vm7517_vm9, %v1047_v12, %v451_v40  ;;  %v1667_v42 = vshrl.u32 %v7769_v59, 16  ;;  %v7942_v14 = vsel %vm1513_vm7, %v1522_v27, %v7580_v46  ;;  %v246_v6 = vrot.slane %v244_v57, 1 }
  0x36   :  { %v1221_v54 = vsel %vm11891_vm2, %v1172_v33, %v621_v45  ;;  %v447_v53 = vrot.slane %v244_v57, 2  ;;  %v2875_v63 = vshrl.u32 %v7942_v14, 16  ;;  %v2877_v13 = vshll.u32 %v7942_v14, 16 }
  0x37   :  { %v7949_v11 = vor.u32 %v2867_v16, %v2863_v60  ;;  %v1346_v9 = vsel %vm7534_vm10, %v1221_v54, %v7744_v5  ;;  %v994_v45 = vsel %vm7499_vm5, %v7509_v15, %v246_v6  ;;  %v1796_v58 = vrot.slane %v1667_v42, 1  ;;  %v54_v15 = vld [vmem:[%s11847_s0 + $0x3c] sm:$0xf] }
  0x38   :  { %v1395_v46 = vsel %vm11890_vm4, %v1346_v9, %v825_v50  ;;  %v1830_v44 = vrot.slane %v7769_v59, 2  ;;  %v2879_v24 = vrot.slane %v2877_v13, 1  ;;  %v1031_v50 = vsel %vm991_vm0, %v994_v45, %v413_v29  ;;  %v7988_v29 = vld [vmem:[%s11847_s0 + $0x40] sm:$0xf] }
  0x39   :  { %2955 = vrot.lane.b32.xlu1 %v7949_v11, %s7393_s13  ;;  %v1520_v5 = vsel %vm7557_vm11, %v1395_v46, %v668_v47  ;;  %v1912_v41 = vshrl.u32 %v7773_v1, 16  ;;  %v1168_v20 = vsel %vm7517_vm9, %v1031_v50, %v447_v53  ;;  %v2082_v7 = vshrl.u32 %v7833_v35, 16 }
  0x3a   :  { %v7976_v3 = vsel %vm1513_vm7, %v1520_v5, %v7701_v61  ;;  %v11900_v47 = vrot.slane %v7769_v59, 1  ;;  %v7990_v60 = vor.u32 %v2879_v24, %v2875_v63  ;;  %v11901_v4 = vrot.slane %v7542_v30, 6 }
  0x3b   :  { %v2869_v61 = vshrl.u32 %v7976_v3, 16  ;;  %v2871_v52 = vshll.u32 %v7976_v3, 16  ;;  %v1914_v40 = vrot.slane %v1912_v41, 6  ;;  %v2034_v32 = vrot.slane %v1912_v41, 7 }
  0x3c   :  { %v2170_v21 = vsel %vm7499_vm5, %v1667_v42, %v11900_v47  ;;  %v1205_v35 = vsel %vm11891_vm2, %v1168_v20, %v11901_v4  ;;  %v2084_v0 = vrot.slane %v2082_v7, 4  ;;  %2959 = vrot.lane.b32.xlu0 %v7990_v60, %s7393_s13  ;;  %v11902_v57 = vrot.slane %v7542_v30, 7 }
  0x3d   :  { %v1342_v59 = vsel %vm7534_vm10, %v1205_v35, %v7588_v49  ;;  %v2873_v12 = vrot.slane %v2871_v52, 1  ;;  %v2227_v16 = vsel %vm991_vm0, %v2170_v21, %v1796_v58  ;;  %v11903_v33 = vshrl.u32 %v7821_v43, 16 }
  0x3e   :  { %v1379_v27 = vsel %vm11890_vm4, %v1342_v59, %v11902_v57  ;;  %v11904_v54 = vshll.u32 %v7542_v30, 16  ;;  %v2340_v6 = vsel %vm7517_vm9, %v2227_v16, %v1830_v44  ;;  %v8015_v53 = vcombine.low %v54_v15, %v54_v15 }
  0x3f   :  { %v3092_v42 = vor.u32 %v7843_v39, %v11903_v33  ;;  %v8019_v63 = vcombine.low %v7988_v29, %v7988_v29  ;;  %v8021_v13 = vor.u32 %v2873_v12, %v2869_v61  ;;  %v2397_v30 = vsel %vm11891_vm2, %v2340_v6, %v1914_v40 }
  0x40   :  { %v1516_v49 = vsel %vm7557_vm11, %v1379_v27, %v11904_v54  ;;  %v1655_v39 = vshrl.u32 %v7780_v22, 16  ;;  %v11905_v45 = vrot.slane %v7773_v1, 7  ;;  %v264_v44 = vshll.u32 %v8015_v53, 16 }
  0x41   :  { %v8025_v43 = vsel %vm1513_vm7, %v1516_v49, %v7547_v31  ;;  %2957 = vrot.lane.b32.xlu0 %v8021_v13, %s7393_s13  ;;  %v418_v24 = vrot.slane %v8015_v53, 1  ;;  %v622_v5 = vrot.slane %v8019_v63, 6  ;;  %v672_v50 = vshll.u32 %v8019_v63, 16 }
  0x42   :  { %v2857_v9 = vshrl.u32 %v8025_v43, 16  ;;  %v2859_v46 = vshll.u32 %v8025_v43, 16  ;;  %v2510_v58 = vsel %vm7534_vm10, %v2397_v30, %v11905_v45  ;;  %v266_v20 = vrot.slane %v264_v44, 1 }
  0x43   :  { %v2567_v31 = vsel %vm11890_vm4, %v2510_v58, %v2034_v32  ;;  %v452_v7 = vrot.slane %v264_v44, 2  ;;  %v674_v21 = vrot.slane %v672_v50, 7  ;;  %v826_v61 = vrot.slane %v8019_v63, 7 }
  0x44   :  { %v2861_v41 = vrot.slane %v2859_v46, 1  ;;  %v2680_v1 = vsel %vm7557_vm11, %v2567_v31, %v7753_v19  ;;  %v1790_v52 = vrot.slane %v1655_v39, 1  ;;  %v999_v35 = vsel %vm7499_vm5, %v54_v15, %v266_v20  ;;  %v7158_v19 = vld [vmem:[%s11847_s0 + $0x44] ss:$0 sps:$4 sm:$0x11]  }
  0x45   :  { %v2730_v47 = vsel %vm1513_vm7, %v2680_v1, %v2084_v0  ;;  %v1824_v59 = vrot.slane %v7780_v22, 2  ;;  %v1894_v40 = vshrl.u32 %v7817_v34, 16  ;;  %v1051_v32 = vsel %vm991_vm0, %v999_v35, %v418_v24  ;;  %v8092_v34 = vld [vmem:[%s11847_s0 + $0x64] sm:$0xf]  ;;  %v8108_v1 = vld [vmem:[%s11847_s0 + $0x78] sm:$0xf] }
  0x46   :  { %v2862_v4 = vor.u32 %v2861_v41, %v2857_v9  ;;  %3055 = vrot.lane.b32.xlu0 %v2730_v47, %s7391_s23  ;;  %v2064_v0 = vshrl.u32 %v7857_v37, 16  ;;  %v11906_v12 = vrot.slane %v7780_v22, 1  ;;  %v3104_v15 = vor.u32 %v7897_v2, %v3099_v48  ;;  %v8103_v41 = vld [vmem:[%s11847_s0 + $0x68] ss:$0 sps:$4 sm:$0x11]  }
  0x47   :  { %v1173_v27 = vsel %vm7517_vm9, %v1051_v32, %v452_v7  ;;  %v1896_v16 = vrot.slane %v1894_v40, 6  ;;  %v2028_v33 = vrot.slane %v1894_v40, 7  ;;  %v1663_v6 = vshrl.u32 %v8015_v53, 16 }
  0x48   :  { %v2164_v57 = vsel %vm7499_vm5, %v1655_v39, %v11906_v12  ;;  %2953 = vrot.lane.b32.xlu1 %v2862_v4, %s7393_s13  ;;  %v1225_v37 = vsel %vm11891_vm2, %v1173_v27, %v622_v5  ;;  %v2066_v49 = vrot.slane %v2064_v0, 4  ;;  %v1828_v2 = vrot.slane %v8015_v53, 2 }
  0x49   :  { %v2203_v54 = vsel %vm991_vm0, %v2164_v57, %v1790_v52  ;;  %v1347_v18 = vsel %vm7534_vm10, %v1225_v37, %v674_v21  ;;  %v1906_v30 = vshrl.u32 %v8019_v63, 16  ;;  %v1794_v46 = vrot.slane %v1663_v6, 1  ;;  %v63_v63 = vld [vmem:[%s11847_s0 + $0x60] sm:$0xf] }
  0x4a   :  { %v2334_v22 = vsel %vm7517_vm9, %v2203_v54, %v1824_v59  ;;  %v1399_v39 = vsel %vm11890_vm4, %v1347_v18, %v826_v61  ;;  %v2076_v45 = vshrl.u32 %v7158_v19, 16  ;;  %v6792_v21 = vcombine.low %v63_v63, %v63_v63  ;;  %v8137_v54 = vld [vmem:[%s11847_s0 + $0x80] ss:$0 sps:$4 sm:$0x11]  }
  0x4b   :  { %v2373_v48 = vsel %vm11891_vm2, %v2334_v22, %v1896_v16  ;;  %v1521_v58 = vsel %vm7557_vm11, %v1399_v39, %v672_v50  ;;  %v1908_v53 = vrot.slane %v1906_v30, 6  ;;  %v2032_v31 = vrot.slane %v1906_v30, 7 }
  0x4c   :  { %v2504_v9 = vsel %vm7534_vm10, %v2373_v48, %v822_v23  ;;  %3179 = vrot.lane.b32.xlu1 %v3092_v42, %s7394_s20  ;;  %v1568_v23 = vsel %vm1513_vm7, %v1521_v58, %v7158_v19  ;;  %v2078_v5 = vrot.slane %v2076_v45, 4  ;;  %v2168_v50 = vsel %vm7499_vm5, %v1663_v6, %v418_v24 }
  0x4d   :  { %v2543_v44 = vsel %vm11890_vm4, %v2504_v9, %v2028_v33  ;;  %v3093_v20 = vshrl.u32 %v1568_v23, 16  ;;  %v3095_v7 = vshll.u32 %v1568_v23, 16  ;;  %3005 = vrot.lane.b32.xlu0 %v1568_v23, %s7392_s26  ;;  %v2219_v47 = vsel %vm991_vm0, %v2168_v50, %v1794_v46 }
  0x4e   :  { %v2674_v42 = vsel %vm7557_vm11, %v2543_v44, %v7796_v51  ;;  %v2338_v24 = vsel %vm7517_vm9, %v2219_v47, %v1828_v2  ;;  %v6826_v52 = vcombine.low %v8092_v34, %v8092_v34  ;;  %v3086_v59 = vor.u32 %v7924_v10, %v3081_v62  ;;  %v8180_v47 = vld [vmem:[%s11847_s0 + $0xb0] ss:$0 sps:$4 sm:$0x11]  }
  0x4f   :  { %v2712_v51 = vsel %vm1513_vm7, %v2674_v42, %v2066_v49  ;;  %v3097_v4 = vrot.slane %v3095_v7, 1  ;;  %v2389_v35 = vsel %vm11891_vm2, %v2338_v24, %v1908_v53  ;;  %v2085_v40 = vshrl.u32 %v8103_v41, 16 }
  0x50   :  { %3049 = vrot.lane.b32.xlu1 %v2712_v51, %s7391_s23  ;;  %v2508_v19 = vsel %vm7534_vm10, %v2389_v35, %v826_v61  ;;  %v276_v32 = vshll.u32 %v6792_v21, 16  ;;  %v421_v0 = vrot.slane %v6792_v21, 1  ;;  %v625_v12 = vrot.slane %v6826_v52, 6  ;;  %v8175_v51 = vld [vmem:[%s11847_s0 + $0xa8] sm:$0xf] }
  0x51   :  { %3183 = vrot.lane.b32.xlu0 %v3104_v15, %s7394_s20  ;;  %v2559_v57 = vsel %vm11890_vm4, %v2508_v19, %v2032_v31  ;;  %v684_v27 = vshll.u32 %v6826_v52, 16  ;;  %v829_v16 = vrot.slane %v6826_v52, 7  ;;  %v8129_v33 = vcombine.low %v8108_v1, %v8108_v1 }
  0x52   :  { %v2678_v28 = vsel %vm7557_vm11, %v2559_v57, %v7988_v29  ;;  %v278_v62 = vrot.slane %v276_v32, 1  ;;  %v455_v10 = vrot.slane %v276_v32, 2  ;;  %v1669_v61 = vshrl.u32 %v6792_v21, 16  ;;  %v8145_v29 = vld [vmem:[%s11847_s0 + $0x7c] sm:$0xf] }
  0x53   :  { %v2724_v15 = vsel %vm1513_vm7, %v2678_v28, %v2078_v5  ;;  %v3098_v37 = vor.u32 %v3097_v4, %v3093_v20  ;;  %v1831_v49 = vrot.slane %v6792_v21, 2  ;;  %v1915_v22 = vshrl.u32 %v6826_v52, 16 }
  0x54   :  { %3227 = vrot.lane.b32.xlu1 %v7976_v3, %s7395_s17  ;;  %v686_v6 = vrot.slane %v684_v27, 7  ;;  %v1002_v18 = vsel %vm7499_vm5, %v63_v63, %v278_v62  ;;  %v1797_v48 = vrot.slane %v1669_v61, 1  ;;  %v2171_v2 = vsel %vm7499_vm5, %v1669_v61, %v421_v0 }
  0x55   :  { %3053 = vrot.lane.b32.xlu0 %v2724_v15, %s7391_s23  ;;  %v1063_v30 = vsel %vm991_vm0, %v1002_v18, %v421_v0  ;;  %v1917_v39 = vrot.slane %v1915_v22, 6  ;;  %v2035_v9 = vrot.slane %v1915_v22, 7  ;;  %v2087_v46 = vrot.slane %v2085_v40, 4 }
  0x56   :  { %v1176_v45 = vsel %vm7517_vm9, %v1063_v30, %v455_v10  ;;  %v2231_v58 = vsel %vm991_vm0, %v2171_v2, %v1797_v48  ;;  %v8158_v44 = vcombine.low %v8145_v29, %v8145_v29  ;;  %v1673_v53 = vshrl.u32 %v8129_v33, 16 }
  0x57   :  { %v1237_v31 = vsel %vm11891_vm2, %v1176_v45, %v625_v12  ;;  %v2341_v63 = vsel %vm7517_vm9, %v2231_v58, %v1831_v49  ;;  %v423_v23 = vrot.slane %v8129_v33, 1  ;;  %v2091_v42 = vshrl.u32 %v8137_v54, 16 }
  0x58   :  { %3177 = vrot.lane.b32.xlu1 %v3086_v59, %s7394_s20  ;;  %v1350_v5 = vsel %vm7534_vm10, %v1237_v31, %v686_v6  ;;  %v2401_v50 = vsel %vm11891_vm2, %v2341_v63, %v1917_v39  ;;  %v692_v20 = vshll.u32 %v8158_v44, 16  ;;  %v1833_v7 = vrot.slane %v8129_v33, 2  ;;  %v8238_v39 = vld [vmem:[%s11847_s0 + $0x84] sm:$0xf] }
  0x59   :  { %v1411_v24 = vsel %vm11890_vm4, %v1350_v5, %v829_v16  ;;  %v2511_v21 = vsel %vm7534_vm10, %v2401_v50, %v829_v16  ;;  %v627_v52 = vrot.slane %v8158_v44, 6  ;;  %v1799_v4 = vrot.slane %v1673_v53, 1 }
  0x5a   :  { %v1524_v35 = vsel %vm7557_vm11, %v1411_v24, %v684_v27  ;;  %v2571_v59 = vsel %vm11890_vm4, %v2511_v21, %v2035_v9  ;;  %v831_v40 = vrot.slane %v8158_v44, 7  ;;  %v1921_v19 = vshrl.u32 %v8158_v44, 16  ;;  %v8208_v27 = vld [vmem:[%s11847_s0 + $0xac] sm:$0xf] }
  0x5b   :  { %v8193_v32 = vsel %vm1513_vm7, %v1524_v35, %v8103_v41  ;;  %v8199_v0 = vrot.slane %v692_v20, 7  ;;  %v2093_v12 = vrot.slane %v2091_v42, 4  ;;  %v2173_v57 = vsel %vm7499_vm5, %v1673_v53, %v423_v23  ;;  %v8266_v35 = vld [vmem:[%s11847_s0 + $0x88] sm:$0xf] }
  0x5c   :  { %3261 = vrot.lane.b32.xlu1 %v7799_v38, %s7396_s28  ;;  %3231 = vrot.lane.b32.xlu0 %v8193_v32, %s7395_s17  ;;  %v2681_v38 = vsel %vm7557_vm11, %v2571_v59, %v8092_v34  ;;  %v1923_v41 = vrot.slane %v1921_v19, 6  ;;  %v2037_v16 = vrot.slane %v1921_v19, 7  ;;  %v2239_v28 = vsel %vm991_vm0, %v2173_v57, %v1799_v4 }
  0x5d   :  { %v2343_v62 = vsel %vm7517_vm9, %v2239_v28, %v1833_v7  ;;  %v2881_v10 = vshrl.u32 %v8193_v32, 16  ;;  %v2883_v61 = vshll.u32 %v8193_v32, 16  ;;  %v6798_v15 = vcombine.low %v8175_v51, %v8175_v51 }
  0x5e   :  { %v2409_v49 = vsel %vm11891_vm2, %v2343_v62, %v1923_v41  ;;  %v8225_v22 = vcombine.low %v8208_v27, %v8208_v27  ;;  %v2103_v34 = vshrl.u32 %v8180_v47, 16  ;;  %v284_v6 = vshll.u32 %v8129_v33, 16 }
  0x5f   :  { %v2513_v18 = vsel %vm7534_vm10, %v2409_v49, %v831_v40  ;;  %v2885_v48 = vrot.slane %v2883_v61, 1  ;;  %v427_v2 = vrot.slane %v6798_v15, 1  ;;  %v1681_v30 = vshrl.u32 %v6798_v15, 16 }
  0x60   :  { %3225 = vrot.lane.b32.xlu1 %v7907_v55, %s7395_s17  ;;  %3181 = vrot.lane.b32.xlu0 %v3098_v37, %s7394_s20  ;;  %v2579_v9 = vsel %vm11890_vm4, %v2513_v18, %v2037_v16  ;;  %v631_v45 = vrot.slane %v8225_v22, 6  ;;  %v708_v58 = vshll.u32 %v8225_v22, 16  ;;  %v835_v53 = vrot.slane %v8225_v22, 7 }
  0x61   :  { %v8246_v31 = vsel %vm1513_vm7, %v2681_v38, %v2087_v46  ;;  %v2683_v63 = vsel %vm7557_vm11, %v2579_v9, %v8145_v29  ;;  %v1803_v42 = vrot.slane %v1681_v30, 1  ;;  %v1837_v5 = vrot.slane %v6798_v15, 2 }
  0x62   :  { %v8252_v50 = vsel %vm1513_vm7, %v2683_v63, %v2093_v12  ;;  %v8254_v37 = vor.u32 %v2885_v48, %v2881_v10  ;;  %v710_v7 = vrot.slane %v708_v58, 7  ;;  %v1933_v24 = vshrl.u32 %v8225_v22, 16 }
  0x63   :  { %v2177_v46 = vsel %vm7499_vm5, %v1681_v30, %v427_v2  ;;  %v286_v29 = vrot.slane %v284_v6, 1  ;;  %v457_v21 = vrot.slane %v284_v6, 2  ;;  %v300_v4 = vshll.u32 %v6798_v15, 16 }
  0x64   :  { %3305 = vrot.lane.b32.xlu1 %v8021_v13, %s7397_s16  ;;  %3265 = vrot.lane.b32.xlu0 %v8246_v31, %s7396_s28  ;;  %v1935_v59 = vrot.slane %v1933_v24, 6  ;;  %v2041_v19 = vrot.slane %v1933_v24, 7  ;;  %v2255_v12 = vsel %vm991_vm0, %v2177_v46, %v1803_v42  ;;  %v8273_v13 = vcombine.low %v8238_v39, %v8238_v39 }
  0x65   :  { %v2347_v57 = vsel %vm7517_vm9, %v2255_v12, %v1837_v5  ;;  %v1004_v38 = vsel %vm7499_vm5, %v8108_v1, %v286_v29  ;;  %v302_v41 = vrot.slane %v300_v4, 1  ;;  %v461_v16 = vrot.slane %v300_v4, 2 }
  0x66   :  { %v2105_v28 = vrot.slane %v2103_v34, 4  ;;  %v2425_v62 = vsel %vm11891_vm2, %v2347_v57, %v1935_v59  ;;  %v1071_v10 = vsel %vm991_vm0, %v1004_v38, %v423_v23  ;;  %v288_v61 = vshll.u32 %v8273_v13, 16  ;;  %v8301_v23 = vld [vmem:[%s11847_s0 + $0x90] sm:$0xf] }
  0x67   :  { %v2517_v15 = vsel %vm7534_vm10, %v2425_v62, %v835_v53  ;;  %v1178_v1 = vsel %vm7517_vm9, %v1071_v10, %v457_v21  ;;  %v1008_v49 = vsel %vm7499_vm5, %v8175_v51, %v302_v41  ;;  %v8296_v33 = vcombine.low %v8266_v35, %v8266_v35 }
  0x68   :  { %3229 = vrot.lane.b32.xlu1 %v7942_v14, %s7395_s17  ;;  %2835 = vrot.lane.b32.xlu0 %v8252_v50, %s7390_s21  ;;  %v2595_v34 = vsel %vm11890_vm4, %v2517_v15, %v2041_v19  ;;  %v1245_v6 = vsel %vm11891_vm2, %v1178_v1, %v627_v52  ;;  %v1087_v51 = vsel %vm991_vm0, %v1008_v49, %v427_v2  ;;  %v290_v18 = vrot.slane %v288_v61, 1  ;;  %v8322_v52 = vld [vmem:[%s11847_s0 + $0x94] sm:$0xf] }
  0x69   :  { %v2687_v48 = vsel %vm7557_vm11, %v2595_v34, %v8208_v27  ;;  %v1352_v30 = vsel %vm7534_vm10, %v1245_v6, %v8199_v0  ;;  %v1182_v9 = vsel %vm7517_vm9, %v1087_v51, %v461_v16  ;;  %v424_v63 = vrot.slane %v8273_v13, 1 }
  0x6a   :  { %v8325_v2 = vsel %vm1513_vm7, %v2687_v48, %v2105_v28  ;;  %v1419_v27 = vsel %vm11890_vm4, %v1352_v30, %v831_v40  ;;  %v1261_v42 = vsel %vm11891_vm2, %v1182_v9, %v631_v45  ;;  %v458_v0 = vrot.slane %v288_v61, 2 }
  0x6b   :  { %v1526_v5 = vsel %vm7557_vm11, %v1419_v27, %v692_v20  ;;  %v1356_v24 = vsel %vm7534_vm10, %v1261_v42, %v710_v7  ;;  %v628_v46 = vrot.slane %v8296_v33, 6  ;;  %v696_v29 = vshll.u32 %v8296_v33, 16 }
  0x6c   :  { %3309 = vrot.lane.b32.xlu1 %v8254_v37, %s7397_s16  ;;  %3259 = vrot.lane.b32.xlu0 %v7609_v56, %s7396_s28  ;;  %v8345_v40 = vsel %vm1513_vm7, %v1526_v5, %v8137_v54  ;;  %v1435_v45 = vsel %vm11890_vm4, %v1356_v24, %v835_v53  ;;  %v1005_v44 = vsel %vm7499_vm5, %v8238_v39, %v290_v18 }
  0x6d   :  { %v8353_v20 = vcombine.low %v8301_v23, %v8301_v23 }
  0x6e   :  { %19 = vsyncpa [#allocation8], 0  ;;  %v2887_v7 = vshrl.u32 %v8345_v40, 16  ;;  %v2889_v21 = vshll.u32 %v8345_v40, 16  ;;  %v1530_v56 = vsel %vm7557_vm11, %v1435_v45, %v708_v58  ;;  %v698_v54 = vrot.slane %v696_v29, 7  ;;  %s7400_s25 = smov 48  }
  0x6f   :  { %v8363_v53 = vsel %vm1513_vm7, %v1530_v56, %v8180_v47  ;;  %v832_v39 = vrot.slane %v8296_v33, 7  ;;  %v1075_v4 = vsel %vm991_vm0, %v1005_v44, %v424_v63  ;;  %v8371_v59 = vcombine.low %v8322_v52, %v8322_v52  ;;  %v8385_v41 = vld [vmem:[%s11847_s0 + $0x98] ss:$0 sps:$4 sm:$0x11]   ;;  %v84_v34 = vld [vmem:[%s11847_s0 + $0xb4] sm:$0xf] }
  0x70   :  { %v2891_v19 = vrot.slane %v2889_v21, 1  ;;  %v2901_v22 = vshll.u32 %v8363_v53, 16  ;;  %v1179_v58 = vsel %vm7517_vm9, %v1075_v4, %v458_v0  ;;  %2839 = vrot.lane.b32.xlu0 %v8325_v2, %s7390_s21  ;;  %v2899_v47 = vshrl.u32 %v8363_v53, 16  ;;  %v8392_v62 = vld [vmem:[%s11847_s0 + $0x8c] ss:$0 sps:$4 sm:$0x11]  }
  0x71   :  { %v1249_v12 = vsel %vm11891_vm2, %v1179_v58, %v628_v46  ;;  %v425_v57 = vrot.slane %v8353_v20, 1  ;;  %v700_v38 = vshll.u32 %v8371_v59, 16  ;;  %v1677_v61 = vshrl.u32 %v8353_v20, 16  ;;  %v8414_v30 = vld [vmem:[%s11847_s0 + $0xb8] sm:$0xf]  ;;  %s7401_s27 = smov 40  }
  0x72   :  { %v8387_v16 = vor.u32 %v2891_v19, %v2887_v7  ;;  %v2903_v28 = vrot.slane %v2901_v22, 1  ;;  %v1353_v10 = vsel %vm7534_vm10, %v1249_v12, %v698_v54  ;;  %v1835_v1 = vrot.slane %v8353_v20, 2  ;;  %s7402_s15 = smov 64   ;;  %v7279_v17 = vld [vmem:[%s11850_s3 + $0x18] sm:$0xff]   ;;  %s7403_s19 = smov 112  }
  0x73   :  { %v1423_v15 = vsel %vm11890_vm4, %v1353_v10, %v832_v39  ;;  %v1927_v49 = vshrl.u32 %v8371_v59, 16  ;;  %v629_v51 = vrot.slane %v8371_v59, 6  ;;  %v833_v18 = vrot.slane %v8371_v59, 7  ;;  %s7404_s29 = smov 96  }
  0x74   :  { %2963 = vrot.lane.b32.xlu1 %v8387_v16, %s7393_s13  ;;  %v1527_v6 = vsel %vm7557_vm11, %v1423_v15, %v696_v29  ;;  %v1801_v48 = vrot.slane %v1677_v61, 1  ;;  %3263 = vrot.lane.b32.xlu0 %v7712_v25, %s7396_s28  ;;  %v8420_v9 = vrot.slane %v700_v38, 7  ;;  %v2097_v42 = vshrl.u32 %v8385_v41, 16 }
  0x75   :  { %v1929_v27 = vrot.slane %v1927_v49, 6  ;;  %v2175_v0 = vsel %vm7499_vm5, %v1677_v61, %v425_v57  ;;  %v8427_v5 = vor.u32 %v2903_v28, %v2899_v47  ;;  %v8431_v24 = vsel %vm1513_vm7, %v1527_v6, %v8392_v62 }
  0x76   :  { %v2039_v46 = vrot.slane %v1927_v49, 7  ;;  %v2247_v25 = vsel %vm991_vm0, %v2175_v0, %v1801_v48  ;;  %v8436_v45 = vcombine.low %v84_v34, %v84_v34  ;;  %v8440_v44 = vcombine.low %v8414_v30, %v8414_v30 }
  0x77   :  { %v2345_v29 = vsel %vm7517_vm9, %v2247_v25, %v1835_v1  ;;  %v1675_v7 = vshrl.u32 %v8273_v13, 16  ;;  %v3111_v21 = vshrl.u32 %v8431_v24, 16  ;;  %v3113_v56 = vshll.u32 %v8431_v24, 16  ;;  %v8483_v25 = vld [vmem:[%s11847_s0 + $0x70] sm:$0xf] }
  0x78   :  { %3303 = vrot.lane.b32.xlu1 %v7949_v11, %s7397_s16  ;;  %v2417_v54 = vsel %vm11891_vm2, %v2345_v29, %v1929_v27  ;;  %v1924_v4 = vshrl.u32 %v8296_v33, 16  ;;  %2833 = vrot.lane.b32.xlu0 %v8246_v31, %s7390_s21  ;;  %v2099_v19 = vrot.slane %v2097_v42, 4  ;;  %v304_v58 = vshll.u32 %v8436_v45, 16  ;;  %v66_v31 = vld [vmem:[%s11847_s0 + $0x6c] sm:$0xf] }
  0x79   :  { %v2515_v22 = vsel %vm7534_vm10, %v2417_v54, %v833_v18  ;;  %v1834_v11 = vrot.slane %v8273_v13, 2  ;;  %v428_v12 = vrot.slane %v8436_v45, 1  ;;  %v712_v28 = vshll.u32 %v8440_v44, 16 }
  0x7a   :  { %v2587_v47 = vsel %vm11890_vm4, %v2515_v22, %v2039_v46  ;;  %v1800_v10 = vrot.slane %v1675_v7, 1  ;;  %v306_v15 = vrot.slane %v304_v58, 1  ;;  %v462_v1 = vrot.slane %v304_v58, 2 }
  0x7b   :  { %v2685_v61 = vsel %vm7557_vm11, %v2587_v47, %v8322_v52  ;;  %v632_v49 = vrot.slane %v8440_v44, 6  ;;  %v714_v6 = vrot.slane %v712_v28, 7  ;;  %v836_v48 = vrot.slane %v8440_v44, 7 }
  0x7c   :  { %2967 = vrot.lane.b32.xlu1 %v8427_v5, %s7393_s13  ;;  %v1926_v27 = vrot.slane %v1924_v4, 6  ;;  %v2094_v42 = vshrl.u32 %v8392_v62, 16  ;;  %3011 = vrot.lane.b32.xlu0 %v8431_v24, %s7392_s26  ;;  %v1009_v0 = vsel %vm7499_vm5, %v84_v34, %v306_v15  ;;  %v2174_v52 = vsel %vm7499_vm5, %v1675_v7, %v424_v63 }
  0x7d   :  { %v292_v46 = vshll.u32 %v8353_v20, 16  ;;  %v8485_v29 = vcombine.low %v66_v31, %v66_v31  ;;  %v8488_v62 = vsel %vm1513_vm7, %v2685_v61, %v2099_v19  ;;  %v1091_v34 = vsel %vm991_vm0, %v1009_v0, %v428_v12  ;;  %v7176_v19 = vld [vmem:[%s11847_s0 + $0xbc] ss:$0 sps:$4 sm:$0x11]  }
  0x7e   :  { %v2038_v13 = vrot.slane %v1924_v4, 7  ;;  %v2243_v54 = vsel %vm991_vm0, %v2174_v52, %v1800_v10  ;;  %v1183_v63 = vsel %vm7517_vm9, %v1091_v34, %v462_v1  ;;  %v8508_v61 = vcombine.low %v8483_v25, %v8483_v25 }
  0x7f   :  { %v2344_v7 = vsel %vm7517_vm9, %v2243_v54, %v1834_v11  ;;  %v294_v22 = vrot.slane %v292_v46, 1  ;;  %v459_v58 = vrot.slane %v292_v46, 2  ;;  %v1265_v47 = vsel %vm11891_vm2, %v1183_v63, %v632_v49 }
  0x80   :  { %3307 = vrot.lane.b32.xlu1 %v7990_v60, %s7397_s16  ;;  %v2413_v4 = vsel %vm11891_vm2, %v2344_v7, %v1926_v27  ;;  %v280_v10 = vshll.u32 %v8485_v29, 16  ;;  %2837 = vrot.lane.b32.xlu0 %v8488_v62, %s7390_s21  ;;  %v1357_v60 = vsel %vm7534_vm10, %v1265_v47, %v714_v6  ;;  %v2096_v11 = vrot.slane %v2094_v42, 4 }
  0x81   :  { %v2514_v15 = vsel %vm7534_vm10, %v2413_v4, %v832_v39  ;;  %v1006_v1 = vsel %vm7499_vm5, %v8301_v23, %v294_v22  ;;  %v1439_v49 = vsel %vm11890_vm4, %v1357_v60, %v836_v48  ;;  %v422_v0 = vrot.slane %v8485_v29, 1 }
  0x82   :  { %v2583_v27 = vsel %vm11890_vm4, %v2514_v15, %v2038_v13  ;;  %v1079_v6 = vsel %vm991_vm0, %v1006_v1, %v425_v57  ;;  %v282_v42 = vrot.slane %v280_v10, 1  ;;  %v1531_v33 = vsel %vm7557_vm11, %v1439_v49, %v712_v28 }
  0x83   :  { %v2684_v39 = vsel %vm7557_vm11, %v2583_v27, %v8266_v35  ;;  %v1180_v23 = vsel %vm7517_vm9, %v1079_v6, %v459_v58  ;;  %v8539_v20 = vsel %vm1513_vm7, %v1531_v33, %v7176_v19  ;;  %v456_v28 = vrot.slane %v280_v10, 2  ;;  %v78_v58 = vld [vmem:[%s11847_s0 + $0x9c] sm:$0xf]  ;;  %v7179_v10 = vld [vmem:[%s11847_s0 + $0x74] ss:$0 sps:$4 sm:$0x11]  }
  0x84   :  { %2961 = vrot.lane.b32.xlu1 %v8254_v37, %s7393_s13  ;;  %v1253_v57 = vsel %vm11891_vm2, %v1180_v23, %v629_v51  ;;  %v688_v52 = vshll.u32 %v8508_v61, 16  ;;  %v3115_v46 = vrot.slane %v3113_v56, 1  ;;  %3015 = vrot.lane.b32.xlu0 %v8539_v20, %s7392_s26  ;;  %v2742_v35 = vsel %vm1513_vm7, %v2684_v39, %v2096_v11  ;;  %v8594_v27 = vld [vmem:[%s11847_s0 + $0xa0] sm:$0xf] }
  0x85   :  { %v1354_v37 = vsel %vm7534_vm10, %v1253_v57, %v8420_v9  ;;  %v626_v34 = vrot.slane %v8508_v61, 6  ;;  %v1003_v54 = vsel %vm7499_vm5, %v66_v31, %v282_v42  ;;  %v1683_v56 = vshrl.u32 %v8436_v45, 16 }
  0x86   :  { %v1427_v13 = vsel %vm11890_vm4, %v1354_v37, %v833_v18  ;;  %v690_v51 = vrot.slane %v688_v52, 7  ;;  %v830_v7 = vrot.slane %v8508_v61, 7  ;;  %v1067_v9 = vsel %vm991_vm0, %v1003_v54, %v422_v0 }
  0x87   :  { %v1528_v63 = vsel %vm7557_vm11, %v1427_v13, %v700_v38  ;;  %v1838_v22 = vrot.slane %v8436_v45, 2  ;;  %v1177_v59 = vsel %vm7517_vm9, %v1067_v9, %v456_v28  ;;  %v1804_v31 = vrot.slane %v1683_v56, 1 }
  0x88   :  { %3059 = vrot.lane.b32.xlu1 %v2742_v35, %s7391_s23  ;;  %v8570_v18 = vsel %vm1513_vm7, %v1528_v63, %v8385_v41  ;;  %v1936_v38 = vshrl.u32 %v8440_v44, 16  ;;  %v1241_v41 = vsel %vm11891_vm2, %v1177_v59, %v626_v34  ;;  %v2106_v60 = vshrl.u32 %v7176_v19, 16  ;;  %v7213_v44 = vld [vmem:[%s11848_s1] sm:$0xff]  }
  0x89   :  { %11907 = vst [vmem:[#allocation12_spill] sm:$0xff] %v8570_v18  ;;  %v2893_v47 = vshrl.u32 %v8570_v18, 16  ;;  %v2895_v4 = vshll.u32 %v8570_v18, 16  ;;  %v3125_v11 = vshll.u32 %v8539_v20, 16  ;;  %v1351_v15 = vsel %vm7534_vm10, %v1241_v41, %v690_v51  ;;  %7066 = vmatprep.subr.bf16.mxu0 %v7213_v44 }
  0x8a   :  { %v1938_v1 = vrot.slane %v1936_v38, 6  ;;  %v2178_v49 = vsel %vm7499_vm5, %v1683_v56, %v428_v12  ;;  %v1415_v19 = vsel %vm11890_vm4, %v1351_v15, %v830_v7  ;;  %v2042_v42 = vrot.slane %v1936_v38, 7  ;;  %7067 = vmatpush3.bf16.msra.mxu0 %v7213_v44 }
  0x8b   :  { %v2897_v6 = vrot.slane %v2895_v4, 1  ;;  %v2259_v33 = vsel %vm991_vm0, %v2178_v49, %v1804_v31  ;;  %v1525_v39 = vsel %vm7557_vm11, %v1415_v19, %v688_v52  ;;  %v2108_v45 = vrot.slane %v2106_v60, 4 }
  0x8c   :  { %v2348_v12 = vsel %vm7517_vm9, %v2259_v33, %v1838_v22  ;;  %v8604_v23 = vcombine.low %v78_v58, %v78_v58  ;;  %v8609_v28 = vsel %vm1513_vm7, %v1525_v39, %v7179_v10  ;;  %v8614_v37 = vcombine.low %v8594_v27, %v8594_v27 }
  0x8d   :  { %v8606_v57 = vor.u32 %v2897_v6, %v2893_v47  ;;  %v2429_v35 = vsel %vm11891_vm2, %v2348_v12, %v1938_v1  ;;  %v3123_v34 = vshrl.u32 %v8539_v20, 16  ;;  %3009 = vrot.lane.b32.xlu1 %v8609_v28, %s7392_s26  ;;  %v3116_v13 = vor.u32 %v3115_v46, %v3111_v21  ;;  %v2826_v20 = vpop.permute.xlu1 %2825 }
  0x8e   :  { %v2518_v52 = vsel %vm7534_vm10, %v2429_v35, %v836_v48  ;;  %v296_v51 = vshll.u32 %v8604_v23, 16  ;;  %v8626_v54 = vrot.slane %v3125_v11, 1  ;;  %v426_v63 = vrot.slane %v8604_v23, 1 }
  0x8f   :  { %2965 = vrot.lane.b32.xlu0 %v8606_v57, %s7393_s13  ;;  %v2599_v56 = vsel %vm11890_vm4, %v2518_v52, %v2042_v42  ;;  %v704_v9 = vshll.u32 %v8614_v37, 16  ;;  %v3107_v24 = vshll.u32 %v8609_v28, 16  ;;  %v630_v59 = vrot.slane %v8614_v37, 6 }
  0x90   :  { %v2688_v21 = vsel %vm7557_vm11, %v2599_v56, %v8414_v30  ;;  %v298_v48 = vrot.slane %v296_v51, 1  ;;  %v460_v46 = vrot.slane %v296_v51, 2  ;;  %v1671_v38 = vshrl.u32 %v8485_v29, 16 }
  0x91   :  { %v2754_v22 = vsel %vm1513_vm7, %v2688_v21, %v2108_v45  ;;  %v706_v31 = vrot.slane %v704_v9, 7  ;;  %3187 = vrot.lane.b32.xlu1 %v3116_v13, %s7394_s20  ;;  %v1832_v4 = vrot.slane %v8485_v29, 2  ;;  %v1918_v41 = vshrl.u32 %v8508_v61, 16  ;;  %v8697_v61 = vld [vmem:[%s11847_s0 + $0xc4] sm:$0xf] }
  0x92   :  { %v1007_v47 = vsel %vm7499_vm5, %v78_v58, %v298_v48  ;;  %v2088_v30 = vshrl.u32 %v7179_v10, 16  ;;  %v834_v60 = vrot.slane %v8614_v37, 7  ;;  %v1798_v15 = vrot.slane %v1671_v38, 1  ;;  %v7217_v58 = vld [vmem:[%s11848_s1 + $0x8] sm:$0xff]  }
  0x93   :  { %3063 = vrot.lane.b32.xlu0 %v2754_v22, %s7391_s23  ;;  %v1083_v11 = vsel %vm991_vm0, %v1007_v47, %v426_v63  ;;  %v2172_v1 = vsel %vm7499_vm5, %v1671_v38, %v422_v0  ;;  %v7182_v10 = vld [vmem:[%s11847_s0 + $0xa4] ss:$0 sps:$4 sm:$0x11]   ;;  %v1920_v6 = vrot.slane %v1918_v41, 6  ;;  %v2036_v19 = vrot.slane %v1918_v41, 7  ;;  %7068 = vmatprep.subr.bf16.mxu0 %v7217_v58 }
  0x94   :  { %v1181_v49 = vsel %vm7517_vm9, %v1083_v11, %v460_v46  ;;  %v2090_v42 = vrot.slane %v2088_v30, 4  ;;  %v2235_v29 = vsel %vm991_vm0, %v2172_v1, %v1798_v15  ;;  %v1679_v0 = vshrl.u32 %v8604_v23, 16  ;;  %7069 = vmatpush3.bf16.msra.mxu0 %v7217_v58  ;;  %v87_v22 = vld [vmem:[%s11847_s0 + $0xc0] sm:$0xf] }
  0x95   :  { %v1257_v33 = vsel %vm11891_vm2, %v1181_v49, %v630_v59  ;;  %v1836_v39 = vrot.slane %v8604_v23, 2  ;;  %v2342_v12 = vsel %vm7517_vm9, %v2235_v29, %v1832_v4  ;;  %v1930_v35 = vshrl.u32 %v8614_v37, 16  ;;  %v7218_v23 = vld [vmem:[%s11848_s1 + $0x10] ss:$0 sps:$4 sm:$0x33]  }
  0x96   :  { %v1355_v45 = vsel %vm7534_vm10, %v1257_v33, %v706_v31  ;;  %v2100_v52 = vshrl.u32 %v7182_v10, 16  ;;  %v2405_v51 = vsel %vm11891_vm2, %v2342_v12, %v1920_v6  ;;  %v1802_v56 = vrot.slane %v1679_v0, 1  ;;  %7110 = vmatprep.subr.msk.bf16.mxu0 %vm11891_vm2, %v7218_v23 }
  0x97   :  { %v1431_v13 = vsel %vm11890_vm4, %v1355_v45, %v834_v60  ;;  %v2176_v44 = vsel %vm7499_vm5, %v1679_v0, %v426_v63  ;;  %v3105_v21 = vshrl.u32 %v8609_v28, 16  ;;  %v2512_v37 = vsel %vm7534_vm10, %v2405_v51, %v830_v7  ;;  %v7185_v51 = vld [vmem:[%s11847_s0 + $0xc8] ss:$0 sps:$4 sm:$0x11]  }
  0x98   :  { %v1529_v48 = vsel %vm7557_vm11, %v1431_v13, %v704_v9  ;;  %v1932_v46 = vrot.slane %v1930_v35, 6  ;;  %v2575_v59 = vsel %vm11890_vm4, %v2512_v37, %v2036_v19  ;;  %v2040_v31 = vrot.slane %v1930_v35, 7  ;;  %v8699_v9 = vpop.permute.xlu0 %2827 }
  0x99   :  { %v8690_v63 = vsel %vm1513_vm7, %v1529_v48, %v7182_v10  ;;  %v2251_v28 = vsel %vm991_vm0, %v2176_v44, %v1802_v56  ;;  %v3109_v7 = vrot.slane %v3107_v24, 1  ;;  %v2682_v38 = vsel %vm7557_vm11, %v2575_v59, %v8483_v25 }
  0x9a   :  { %3013 = vrot.lane.b32.xlu0 %v8690_v63, %s7392_s26  ;;  %v3128_v47 = vor.u32 %v8626_v54, %v3123_v34  ;;  %v2346_v4 = vsel %vm7517_vm9, %v2251_v28, %v1836_v39  ;;  %v2736_v41 = vsel %vm1513_vm7, %v2682_v38, %v2090_v42  ;;  %v2102_v30 = vrot.slane %v2100_v52, 4  ;;  %v8732_v52 = vld [vmem:[%s11847_s0 + $0xf0] sm:$0xf] }
  0x9b   :  { %v2421_v11 = vsel %vm11891_vm2, %v2346_v4, %v1932_v46  ;;  %v6800_v24 = vcombine.low %v87_v22, %v87_v22  ;;  %3057 = vrot.lane.b32.xlu1 %v2736_v41, %s7391_s23  ;;  %v6834_v25 = vcombine.low %v8697_v61, %v8697_v61  ;;  %v3117_v34 = vshrl.u32 %v8690_v63, 16  ;;  %v8747_v46 = vld [vmem:[%s11847_s0 + $0xf4] sm:$0xf]  ;;  %v8765_v4 = vld [vmem:[%s11847_s0 + $0xf8] ss:$0 sps:$4 sm:$0x11]  }
  0x9c   :  { %v2516_v15 = vsel %vm7534_vm10, %v2421_v11, %v834_v60  ;;  %v3119_v10 = vshll.u32 %v8690_v63, 16  ;;  %v3110_v42 = vor.u32 %v3109_v7, %v3105_v21  ;;  %v2832_v0 = vpop.permute.xlu0 %2831  ;;  %v8749_v63 = vpop.permute.xlu1 %3051  ;;  %vm3335_vm12 = vcmask 31744  }
  0x9d   :  { %v2591_v54 = vsel %vm11890_vm4, %v2516_v15, %v2040_v31  ;;  %v308_v1 = vshll.u32 %v6800_v24, 16  ;;  %v1685_v58 = vshrl.u32 %v6800_v24, 16  ;;  %v429_v6 = vrot.slane %v6800_v24, 1 }
  0x9e   :  { %3191 = vrot.lane.b32.xlu0 %v3128_v47, %s7394_s20  ;;  %v2686_v49 = vsel %vm7557_vm11, %v2591_v54, %v8594_v27  ;;  %v716_v60 = vshll.u32 %v6834_v25, 16  ;;  %v633_v39 = vrot.slane %v6834_v25, 6  ;;  %v1839_v12 = vrot.slane %v6800_v24, 2 }
  0x9f   :  { %v2748_v19 = vsel %vm1513_vm7, %v2686_v49, %v2102_v30  ;;  %v310_v33 = vrot.slane %v308_v1, 1  ;;  %v463_v29 = vrot.slane %v308_v1, 2  ;;  %3235 = vrot.lane.b32.xlu1 %v8570_v18, %s7395_s17  ;;  %v1805_v45 = vrot.slane %v1685_v58, 1 }
  0xa0   :  { %v1939_v35 = vshrl.u32 %v6834_v25, 16  ;;  %v718_v27 = vrot.slane %v716_v60, 7  ;;  %v837_v13 = vrot.slane %v6834_v25, 7  ;;  %v2179_v44 = vsel %vm7499_vm5, %v1685_v58, %v429_v6  ;;  %v8775_v24 = vpop.permute.xlu0 %2829 }
  0xa1   :  { %v1010_v56 = vsel %vm7499_vm5, %v87_v22, %v310_v33  ;;  %v2263_v37 = vsel %vm991_vm0, %v2179_v44, %v1805_v45  ;;  %v3121_v59 = vrot.slane %v3119_v10, 1  ;;  %v2109_v31 = vshrl.u32 %v7185_v51, 16  ;;  %v8819_v33 = vld [vmem:[%s11847_s0 + $0x124] sm:$0xf] }
  0xa2   :  { %3061 = vrot.lane.b32.xlu0 %v2748_v19, %s7391_s23  ;;  %v1095_v23 = vsel %vm991_vm0, %v1010_v56, %v429_v6  ;;  %v1941_v21 = vrot.slane %v1939_v35, 6  ;;  %v2043_v48 = vrot.slane %v1939_v35, 7  ;;  %v2349_v28 = vsel %vm7517_vm9, %v2263_v37, %v1839_v12 }
  0xa3   :  { %v1184_v22 = vsel %vm7517_vm9, %v1095_v23, %v463_v29  ;;  %3185 = vrot.lane.b32.xlu1 %v3110_v42, %s7394_s20  ;;  %v8760_v47 = vcombine.low %v8732_v52, %v8732_v52  ;;  %v8773_v11 = vcombine.low %v8747_v46, %v8747_v46  ;;  %v3122_v58 = vor.u32 %v3121_v59, %v3117_v34  ;;  %v8846_v23 = vld [vmem:[%s11847_s0 + $0x128] ss:$0 sps:$4 sm:$0x11]  }
  0xa4   :  { %v1269_v7 = vsel %vm11891_vm2, %v1184_v22, %v633_v39  ;;  %v2433_v38 = vsel %vm11891_vm2, %v2349_v28, %v1941_v21  ;;  %v2111_v10 = vrot.slane %v2109_v31, 4  ;;  %v8785_v49 = vsel %vm3335_vm12, %v7907_v55, %v8699_v9  ;;  %v8803_v55 = vld [vmem:[%s11847_s0 + $0x120] sm:$0xf] }
  0xa5   :  { %v1358_v41 = vsel %vm7534_vm10, %v1269_v7, %v718_v27  ;;  %v2519_v30 = vsel %vm7534_vm10, %v2433_v38, %v837_v13  ;;  %v432_v54 = vrot.slane %v8760_v47, 1  ;;  %v8794_v19 = vsel %vm3335_vm12, %v8025_v43, %v2826_v20  ;;  %v8833_v27 = vpop.permute.xlu0 %3007 }
  0xa6   :  { %v1443_v15 = vsel %vm11890_vm4, %v1358_v41, %v837_v13  ;;  %v2603_v25 = vsel %vm11890_vm4, %v2519_v30, %v2043_v48  ;;  %v1691_v42 = vshrl.u32 %v8760_v47, 16  ;;  %v2118_v34 = vshrl.u32 %v8765_v4, 16 }
  0xa7   :  { %v1532_v1 = vsel %vm7557_vm11, %v1443_v15, %v716_v60  ;;  %3269 = vrot.lane.b32.xlu1 %v8488_v62, %s7396_s28  ;;  %v8798_v60 = vpop.permute.xlu1 %3003  ;;  %v2689_v62 = vsel %vm7557_vm11, %v2603_v25, %v8697_v61  ;;  %v1842_v43 = vrot.slane %v8760_v47, 2  ;;  %v1948_v9 = vshrl.u32 %v8773_v11, 16 }
  0xa8   :  { %v8788_v6 = vsel %vm1513_vm7, %v1532_v1, %v7185_v51  ;;  %v8814_v20 = vsel %vm3335_vm12, %v7942_v14, %v2832_v0  ;;  %v636_v39 = vrot.slane %v8773_v11, 6  ;;  %v1808_v45 = vrot.slane %v1691_v42, 1 }
  0xa9   :  { %3239 = vrot.lane.b32.xlu0 %v8788_v6, %s7395_s17  ;;  %v3293_v29 = vshll.u32 %v8788_v6, 16  ;;  %v2182_v61 = vsel %vm7499_vm5, %v1691_v42, %v432_v54  ;;  %v728_v12 = vshll.u32 %v8773_v11, 16  ;;  %v840_v14 = vrot.slane %v8773_v11, 7  ;;  %v8876_v42 = vld [vmem:[%s11847_s0 + $0xd8] sm:$0xf] }
  0xaa   :  { %v1950_v0 = vrot.slane %v1948_v9, 6  ;;  %v8831_v35 = vcombine.low %v8803_v55, %v8803_v55  ;;  %v2757_v13 = vsel %vm1513_vm7, %v2689_v62, %v2111_v10  ;;  %v2046_v51 = vrot.slane %v1948_v9, 7 }
  0xab   :  { %3233 = vrot.lane.b32.xlu1 %v8345_v40, %s7395_s17  ;;  %v2275_v56 = vsel %vm991_vm0, %v2182_v61, %v1808_v45  ;;  %v8841_v44 = vcombine.low %v8819_v33, %v8819_v33  ;;  %v3291_v21 = vshrl.u32 %v8788_v6, 16  ;;  %v3295_v22 = vrot.slane %v3293_v29, 1  ;;  %v8856_v38 = vpop.permute.xlu1 %3001 }
  0xac   :  { %v2352_v48 = vsel %vm7517_vm9, %v2275_v56, %v1842_v43  ;;  %v436_v37 = vrot.slane %v8831_v35, 1  ;;  %v1699_v59 = vshrl.u32 %v8831_v35, 16  ;;  %v2120_v31 = vrot.slane %v2118_v34, 4  ;;  %v8897_v56 = vld [vmem:[%s11847_s0 + $0xdc] sm:$0xf] }
  0xad   :  { %3189 = vrot.lane.b32.xlu0 %v3122_v58, %s7394_s20  ;;  %v2445_v28 = vsel %vm11891_vm2, %v2352_v48, %v1950_v0  ;;  %v320_v7 = vshll.u32 %v8760_v47, 16  ;;  %v1846_v15 = vrot.slane %v8831_v35, 2  ;;  %v1960_v25 = vshrl.u32 %v8841_v44, 16 }
  0xae   :  { %v2522_v41 = vsel %vm7534_vm10, %v2445_v28, %v840_v14  ;;  %v1812_v30 = vrot.slane %v1699_v59, 1  ;;  %v844_v58 = vrot.slane %v8841_v44, 7  ;;  %v2130_v10 = vshrl.u32 %v8846_v23, 16  ;;  %v8883_v9 = vpop.permute.xlu0 %2959 }
  0xaf   :  { %3313 = vrot.lane.b32.xlu1 %v8606_v57, %s7397_s16  ;;  %v2615_v1 = vsel %vm11890_vm4, %v2522_v41, %v2046_v51  ;;  %v2186_v6 = vsel %vm7499_vm5, %v1699_v59, %v436_v37  ;;  %v1962_v34 = vrot.slane %v1960_v25, 6  ;;  %v2050_v62 = vrot.slane %v1960_v25, 7  ;;  %v2956_v41 = vpop.permute.xlu1 %2955 }
  0xb0   :  { %v2692_v57 = vsel %vm7557_vm11, %v2615_v1, %v8747_v46  ;;  %v2291_v43 = vsel %vm991_vm0, %v2186_v6, %v1812_v30  ;;  %v322_v61 = vrot.slane %v320_v7, 1  ;;  %v466_v0 = vrot.slane %v320_v7, 2 }
  0xb1   :  { %3273 = vrot.lane.b32.xlu0 %v2757_v13, %s7396_s28  ;;  %v8886_v29 = vsel %vm1513_vm7, %v2692_v57, %v2120_v31  ;;  %v2356_v45 = vsel %vm7517_vm9, %v2291_v43, %v1846_v15  ;;  %v730_v13 = vrot.slane %v728_v12, 7  ;;  %v744_v51 = vshll.u32 %v8841_v44, 16 }
  0xb2   :  { %v2461_v46 = vsel %vm11891_vm2, %v2356_v45, %v1962_v34  ;;  %v8901_v48 = vcombine.low %v8876_v42, %v8876_v42  ;;  %v3296_v59 = vor.u32 %v3295_v22, %v3291_v21  ;;  %v2132_v31 = vrot.slane %v2130_v10, 4 }
  0xb3   :  { %3237 = vrot.lane.b32.xlu1 %v8363_v53, %s7395_s17  ;;  %v2526_v28 = vsel %vm7534_vm10, %v2461_v46, %v844_v58  ;;  %v1013_v7 = vsel %vm7499_vm5, %v8732_v52, %v322_v61  ;;  %v8917_v30 = vsel %vm3335_vm12, %v7976_v3, %v8775_v24  ;;  %v8927_v52 = vld [vmem:[%s11847_s0 + $0xe0] ss:$0 sps:$4 sm:$0x11]   ;;  %v8929_v25 = vpop.permute.xlu0 %2957  ;;  %v8938_v47 = vcombine.low %v8897_v56, %v8897_v56 }
  0xb4   :  { %v2631_v21 = vsel %vm11890_vm4, %v2526_v28, %v2050_v62  ;;  %v1107_v22 = vsel %vm991_vm0, %v1013_v7, %v432_v54  ;;  %v430_v15 = vrot.slane %v8901_v48, 1  ;;  %v1687_v54 = vshrl.u32 %v8901_v48, 16 }
  0xb5   :  { %2843 = vrot.lane.b32.xlu0 %v8886_v29, %s7390_s21  ;;  %v2696_v3 = vsel %vm7557_vm11, %v2631_v21, %v8819_v33  ;;  %v1187_v24 = vsel %vm7517_vm9, %v1107_v22, %v466_v0  ;;  %v640_v1 = vrot.slane %v8841_v44, 6  ;;  %v8944_v10 = vrot.slane %v744_v51, 7  ;;  %v8990_v21 = vld [vmem:[%s11847_s0 + $0x100] sm:$0xf] }
  0xb6   :  { %v1281_v6 = vsel %vm11891_vm2, %v1187_v24, %v636_v39  ;;  %v1840_v33 = vrot.slane %v8901_v48, 2  ;;  %v8952_v57 = vsel %vm1513_vm7, %v2696_v3, %v2132_v31  ;;  %vm3368_vm13 = vcmask 64512  }
  0xb7   :  { %3317 = vrot.lane.b32.xlu1 %v3296_v59, %s7397_s16  ;;  %11908 = vst [vmem:[#allocation13_spill] sm:$0xff] %v8952_v57  ;;  %v1361_v34 = vsel %vm7534_vm10, %v1281_v6, %v730_v13  ;;  %v1806_v62 = vrot.slane %v1687_v54, 1  ;;  %v1942_v39 = vshrl.u32 %v8938_v47, 16  ;;  %v2112_v45 = vshrl.u32 %v8927_v52, 16  ;;  %v99_v59 = vld [vmem:[%s11847_s0 + $0xfc] sm:$0xf] }
  0xb8   :  { %v1455_v43 = vsel %vm11890_vm4, %v1361_v34, %v840_v14  ;;  %v2180_v61 = vsel %vm7499_vm5, %v1687_v54, %v430_v15  ;;  %v336_v14 = vshll.u32 %v8831_v35, 16  ;;  %v8979_v31 = vpop.permute.xlu0 %3055  ;;  %vm11889_vm14 = vcmask 97280  }
  0xb9   :  { %3267 = vrot.lane.b32.xlu0 %v8252_v50, %s7396_s28  ;;  %v1535_v0 = vsel %vm7557_vm11, %v1455_v43, %v728_v12  ;;  %v11868_v50 = vrot.slane %v8938_v47, 7  ;;  %v2267_v13 = vsel %vm991_vm0, %v2180_v61, %v1806_v62  ;;  %v1944_v28 = vrot.slane %v1942_v39, 6 }
  0xba   :  { %v8974_v46 = vpop.permute.xlu1 %2953  ;;  %v8983_v11 = vsel %vm1513_vm7, %v1535_v0, %v8765_v4  ;;  %v2044_v12 = vrot.slane %v1942_v39, 7  ;;  %v2350_v7 = vsel %vm7517_vm9, %v2267_v13, %v1840_v33  ;;  %v338_v24 = vrot.slane %v336_v14, 1 }
  0xbb   :  { %11909 = vst [vmem:[#allocation14_spill] sm:$0xff] %v8983_v11  ;;  %v2911_v22 = vshrl.u32 %v8983_v11, 16  ;;  %v2913_v3 = vshll.u32 %v8983_v11, 16  ;;  %v470_v54 = vrot.slane %v336_v14, 2  ;;  %v2114_v4 = vrot.slane %v2112_v45, 4 }
  0xbc   :  { %v2437_v6 = vsel %vm11891_vm2, %v2350_v7, %v1944_v28  ;;  %v8997_v34 = vcombine.low %v99_v59, %v99_v59  ;;  %v1017_v43 = vsel %vm7499_vm5, %v8803_v55, %v338_v24  ;;  %v9008_v39 = vcombine.low %v8990_v21, %v8990_v21 }
  0xbd   :  { %2847 = vrot.lane.b32.xlu0 %v8952_v57, %s7390_s21  ;;  %v2915_v33 = vrot.slane %v2913_v3, 1  ;;  %v2520_v62 = vsel %vm7534_vm10, %v2437_v6, %v11868_v50  ;;  %v3372_v45 = vsel %vm3368_vm13, %v8785_v49, %v2956_v41  ;;  %v1123_v13 = vsel %vm991_vm0, %v1017_v43, %v436_v37  ;;  %v9061_v6 = vld [vmem:[%s11847_s0 + $0x10c] sm:$0xf] }
  0xbe   :  { %v9010_v61 = vpop.permute.xlu1 %3179  ;;  %v2607_v0 = vsel %vm11890_vm4, %v2520_v62, %v2044_v12  ;;  %v324_v14 = vshll.u32 %v8997_v34, 16  ;;  %v1191_v7 = vsel %vm7517_vm9, %v1123_v13, %v470_v54  ;;  %v11867_v3 = vrot.slane %v8997_v34, 1  ;;  %v9096_v13 = vld [vmem:[%s11847_s0 + $0x104] ss:$0 sps:$4 sm:$0x11]  }
  0xbf   :  { %v9019_v28 = vor.u32 %v2915_v33, %v2911_v22  ;;  %v2690_v55 = vsel %vm7557_vm11, %v2607_v0, %v8897_v56  ;;  %v9027_v49 = vpop.permute.xlu0 %3005  ;;  %v3376_v35 = vsel %vm3368_vm13, %v8814_v20, %v8883_v9  ;;  %v1297_v37 = vsel %vm11891_vm2, %v1191_v7, %v640_v1  ;;  %v9046_v20 = vld [vmem:[%s11847_s0 + $0x108] sm:$0xf] }
  0xc0   :  { %v326_v41 = vrot.slane %v324_v14, 1  ;;  %v467_v12 = vrot.slane %v324_v14, 2  ;;  %v2760_v56 = vsel %vm1513_vm7, %v2690_v55, %v2114_v4  ;;  %v1365_v22 = vsel %vm7534_vm10, %v1297_v37, %v8944_v10  ;;  %v9117_v37 = vld [vmem:[%s11847_s0 + $0x110] ss:$0 sps:$4 sm:$0x11]  }
  0xc1   :  { %11910 = vst [vmem:[#allocation15_spill] sm:$0xff] %v9019_v28  ;;  %3271 = vrot.lane.b32.xlu0 %v8325_v2, %s7396_s28  ;;  %2971 = vrot.lane.b32.xlu1 %v9019_v28, %s7393_s13  ;;  %v637_v24 = vrot.slane %v9008_v39, 6  ;;  %v732_v2 = vshll.u32 %v9008_v39, 16  ;;  %v3405_v1 = vsel %vm11889_vm14, %v3372_v45, %v8798_v60  ;;  %v1471_v10 = vsel %vm11890_vm4, %v1365_v22, %v844_v58 }
  0xc2   :  { %v9048_v9 = vpop.permute.xlu1 %3049  ;;  %v1014_v4 = vsel %vm7499_vm5, %v99_v59, %v326_v41  ;;  %v1539_v33 = vsel %vm7557_vm11, %v1471_v10, %v744_v51  ;;  %v11866_v62 = vrot.slane %v9008_v39, 7  ;;  %v9081_v44 = vsel %vm3368_vm13, %v8917_v30, %v8929_v25 }
  0xc3   :  { %v734_v60 = vrot.slane %v732_v2, 7  ;;  %v1111_v58 = vsel %vm991_vm0, %v1014_v4, %v11867_v3  ;;  %v9071_v43 = vpop.permute.xlu0 %3183  ;;  %v9076_v59 = vsel %vm1513_vm7, %v1539_v33, %v8846_v23  ;;  %v9087_v45 = vcombine.low %v9046_v20, %v9046_v20 }
  0xc4   :  { %11911 = vst [vmem:[#allocation16_spill] sm:$0xff] %v9076_v59  ;;  %v1188_v51 = vsel %vm7517_vm9, %v1111_v58, %v467_v12  ;;  %v2923_v0 = vshrl.u32 %v9076_v59, 16  ;;  %v2925_v23 = vshll.u32 %v9076_v59, 16  ;;  %v9101_v25 = vcombine.low %v9061_v6, %v9061_v6 }
  0xc5   :  { %2841 = vrot.lane.b32.xlu0 %v2760_v56, %s7390_s21  ;;  %3311 = vrot.lane.b32.xlu1 %v8387_v16, %s7397_s16  ;;  %v1285_v30 = vsel %vm11891_vm2, %v1188_v51, %v637_v24  ;;  %v9108_v16 = vsel %vm3368_vm13, %v8794_v19, %v8974_v46  ;;  %v3409_v7 = vsel %vm11889_vm14, %v3376_v35, %v8833_v27  ;;  %v1695_v41 = vshrl.u32 %v9087_v45, 16 }
  0xc6   :  { %v9103_v14 = vpop.permute.xlu1 %3227  ;;  %v1362_v55 = vsel %vm7534_vm10, %v1285_v30, %v734_v60  ;;  %v2927_v12 = vrot.slane %v2925_v23, 1  ;;  %vm3434_vm15 = vcmask 130048   ;;  %v11865_v19 = vrot.slane %v9087_v45, 1  ;;  %v111_v23 = vld [vmem:[%s11847_s0 + $0x12c] sm:$0xf] }
  0xc7   :  { %v1459_v56 = vsel %vm11890_vm4, %v1362_v55, %v11866_v62  ;;  %vm3467_vm3 = vcmask 162816   ;;  %v1810_v27 = vrot.slane %v1695_v41, 1  ;;  %v1954_v35 = vshrl.u32 %v9101_v25, 16  ;;  %v9127_v22 = vpop.permute.xlu0 %3053 }
  0xc8   :  { %v1536_v46 = vsel %vm7557_vm11, %v1459_v56, %v732_v2  ;;  %v9129_v24 = vor.u32 %v2927_v12, %v2923_v0  ;;  %v11869_v4 = vshll.u32 %v9101_v25, 16  ;;  %v1844_v33 = vrot.slane %v9087_v45, 2 }
  0xc9   :  { %v9133_v10 = vsel %vm1513_vm7, %v1536_v46, %v9096_v13  ;;  %v9143_v2 = vsel %vm3434_vm15, %v3409_v7, %v8979_v31  ;;  %v3438_v58 = vsel %vm3434_vm15, %v3405_v1, %v8749_v63  ;;  %v1956_v51 = vrot.slane %v1954_v35, 6  ;;  %v9163_v1 = vld [vmem:[%s11847_s0 + $0x130] sm:$0xf] }
  0xca   :  { %11912 = vst [vmem:[#allocation17_spill] sm:$0xff] %v9129_v24  ;;  %v9137_v60 = vpop.permute.xlu1 %3177  ;;  %3019 = vrot.lane.b32.xlu0 %v9133_v10, %s7392_s26  ;;  %v2124_v0 = vshrl.u32 %v9117_v37, 16  ;;  %2975 = vrot.lane.b32.xlu1 %v9129_v24, %s7393_s13  ;;  %v11870_v30 = vrot.slane %v9101_v25, 7  ;;  %v2184_v31 = vsel %vm7499_vm5, %v1695_v41, %v11865_v19  ;;  %v312_v55 = vshll.u32 %v8901_v48, 16 }
  0xcb   :  { %v720_v63 = vshll.u32 %v8938_v47, 16  ;;  %v9167_v7 = vsel %vm3467_vm3, %v3438_v58, %v9010_v61  ;;  %v2048_v56 = vrot.slane %v1954_v35, 7  ;;  %v2283_v46 = vsel %vm991_vm0, %v2184_v31, %v1810_v27 }
  0xcc   :  { %v9173_v41 = vrot.slane %v11869_v4, 7  ;;  %v2354_v19 = vsel %vm7517_vm9, %v2283_v46, %v1844_v33  ;;  %v314_v62 = vrot.slane %v312_v55, 1  ;;  %v464_v3 = vrot.slane %v312_v55, 2 }
  0xcd   :  { %v2126_v54 = vrot.slane %v2124_v0, 4  ;;  %v2453_v61 = vsel %vm11891_vm2, %v2354_v19, %v1956_v51  ;;  %v9180_v58 = vcombine.low %v111_v23, %v111_v23  ;;  %v9184_v35 = vcombine.low %v9163_v1, %v9163_v1 }
  0xce   :  { %v9177_v50 = vpop.permute.xlu1 %3261  ;;  %v9186_v27 = vpop.permute.xlu0 %3231  ;;  %3315 = vrot.lane.b32.xlu1 %v8427_v5, %s7397_s16  ;;  %v2524_v33 = vsel %vm7534_vm10, %v2453_v61, %v11870_v30  ;;  %v722_v31 = vrot.slane %v720_v63, 7  ;;  %v1011_v19 = vsel %vm7499_vm5, %v8876_v42, %v314_v62  ;;  %v1693_v51 = vshrl.u32 %v8997_v34, 16 }
  0xcf   :  { %v2623_v0 = vsel %vm11890_vm4, %v2524_v33, %v2048_v56  ;;  %v1099_v55 = vsel %vm991_vm0, %v1011_v19, %v430_v15  ;;  %v340_v5 = vshll.u32 %v9180_v58, 16  ;;  %v1843_v46 = vrot.slane %v8997_v34, 2 }
  0xd0   :  { %v2694_v61 = vsel %vm7557_vm11, %v2623_v0, %v9061_v6  ;;  %v1185_v4 = vsel %vm7517_vm9, %v1099_v55, %v464_v3  ;;  %v748_v62 = vshll.u32 %v9184_v35, 16  ;;  %v11913_v15 = vrot.slane %v8938_v47, 6 }
  0xd1   :  { %v9214_v48 = vsel %vm1513_vm7, %v2694_v61, %v2126_v54  ;;  %v342_v19 = vrot.slane %v340_v5, 1  ;;  %v471_v30 = vrot.slane %v340_v5, 2  ;;  %v641_v6 = vrot.slane %v9184_v35, 6 }
  0xd2   :  { %v9211_v56 = vpop.permute.xlu1 %3225  ;;  %v1273_v33 = vsel %vm11891_vm2, %v1185_v4, %v11913_v15  ;;  %v9219_v12 = vpop.permute.xlu0 %3181  ;;  %2845 = vrot.lane.b32.xlu0 %v9214_v48, %s7390_s21  ;;  %v750_v0 = vrot.slane %v748_v62, 7  ;;  %v11914_v55 = vrot.slane %v8938_v47, 7  ;;  %v1809_v5 = vrot.slane %v1693_v51, 1 }
  0xd3   :  { %v1359_v3 = vsel %vm7534_vm10, %v1273_v33, %v722_v31  ;;  %v1018_v4 = vsel %vm7499_vm5, %v111_v23, %v342_v19  ;;  %v1951_v15 = vshrl.u32 %v9008_v39, 16  ;;  %v11915_v31 = vrot.slane %v9180_v58, 1 }
  0xd4   :  { %v1447_v61 = vsel %vm11890_vm4, %v1359_v3, %v11914_v55  ;;  %v2121_v24 = vshrl.u32 %v9096_v13, 16  ;;  %v11916_v54 = vrot.slane %v8997_v34, 1  ;;  %v3137_v13 = vshll.u32 %v9133_v10, 16 }
  0xd5   :  { %v1533_v42 = vsel %vm7557_vm11, %v1447_v61, %v720_v63  ;;  %v1127_v33 = vsel %vm991_vm0, %v1018_v4, %v11915_v31  ;;  %v1953_v55 = vrot.slane %v1951_v15, 6  ;;  %v328_v31 = vshll.u32 %v9087_v45, 16 }
  0xd6   :  { %v2183_v47 = vsel %vm7499_vm5, %v1693_v51, %v11916_v54  ;;  %v9243_v3 = vpop.permute.xlu1 %3305  ;;  %v9248_v19 = vsel %vm1513_vm7, %v1533_v42, %v8927_v52  ;;  %v1192_v63 = vsel %vm7517_vm9, %v1127_v33, %v471_v30  ;;  %v9252_v61 = vpop.permute.xlu0 %3265  ;;  %v9260_v54 = vld [vmem:[%s11847_s0 + $0x134] ss:$0 sps:$4 sm:$0x11]   ;;  %v2047_v30 = vrot.slane %v1951_v15, 7  ;;  %v93_v33 = vld [vmem:[%s11847_s0 + $0xe4] sm:$0xf] }
  0xd7   :  { %11917 = vst [vmem:[#allocation18_spill] sm:$0xff] %v9248_v19  ;;  %v2905_v34 = vshrl.u32 %v9248_v19, 16  ;;  %v2907_v51 = vshll.u32 %v9248_v19, 16  ;;  %v1301_v52 = vsel %vm11891_vm2, %v1192_v63, %v641_v6  ;;  %v2279_v4 = vsel %vm991_vm0, %v2183_v47, %v1809_v5 }
  0xd8   :  { %v1366_v42 = vsel %vm7534_vm10, %v1301_v52, %v750_v0  ;;  %v11918_v19 = vrot.slane %v9184_v35, 7  ;;  %v2123_v57 = vrot.slane %v2121_v24, 4  ;;  %v2353_v6 = vsel %vm7517_vm9, %v2279_v4, %v1843_v46 }
  0xd9   :  { %v2909_v23 = vrot.slane %v2907_v51, 1  ;;  %v2449_v5 = vsel %vm11891_vm2, %v2353_v6, %v1953_v55  ;;  %v330_v15 = vrot.slane %v328_v31, 1  ;;  %v468_v47 = vrot.slane %v328_v31, 2 }
  0xda   :  { %v1475_v28 = vsel %vm11890_vm4, %v1366_v42, %v11918_v19  ;;  %v9275_v63 = vpop.permute.xlu1 %3229  ;;  %v9280_v52 = vpop.permute.xlu0 %2835  ;;  %v11919_v24 = vrot.slane %v9008_v39, 7  ;;  %v9297_v19 = vrot.slane %v3137_v13, 1  ;;  %v3403_v13 = vsel %vm11889_vm14, %v9108_v16, %v8856_v38 }
  0xdb   :  { %v1540_v0 = vsel %vm7557_vm11, %v1475_v28, %v748_v62  ;;  %v2910_v51 = vor.u32 %v2909_v23, %v2905_v34  ;;  %v9293_v28 = vld [vmem:[%s11847_s0 + $0xe8] sm:$0xf]  ;;  %v9295_v62 = vcombine.low %v93_v33, %v93_v33  ;;  %v9302_v23 = vsel %vm11889_vm14, %v9081_v44, %v9027_v49 }
  0xdc   :  { %v9284_v18 = vsel %vm1513_vm7, %v1540_v0, %v9260_v54  ;;  %v2523_v46 = vsel %vm7534_vm10, %v2449_v5, %v11919_v24  ;;  %v1015_v55 = vsel %vm7499_vm5, %v9046_v20, %v330_v15  ;;  %v11920_v44 = vrot.slane %v9087_v45, 1 }
  0xdd   :  { %3023 = vrot.lane.b32.xlu0 %v9284_v18, %s7392_s26  ;;  %v2619_v39 = vsel %vm11890_vm4, %v2523_v46, %v2047_v30  ;;  %2969 = vrot.lane.b32.xlu1 %v2910_v51, %s7393_s13  ;;  %v316_v42 = vshll.u32 %v9295_v62, 16  ;;  %v431_v4 = vrot.slane %v9295_v62, 1  ;;  %v9327_v38 = vcombine.low %v9293_v28, %v9293_v28 }
  0xde   :  { %v2693_v49 = vsel %vm7557_vm11, %v2619_v39, %v8990_v21  ;;  %v1115_v34 = vsel %vm991_vm0, %v1015_v55, %v11920_v44  ;;  %v9329_v16 = vpop.permute.xlu0 %3259  ;;  %v3436_v21 = vsel %vm3434_vm15, %v3403_v13, %v9048_v9  ;;  %v11921_v45 = vrot.slane %v9101_v25, 6  ;;  %v9336_v0 = vpop.permute.xlu1 %3309 }
  0xdf   :  { %v2769_v30 = vsel %vm1513_vm7, %v2693_v49, %v2123_v57  ;;  %v1189_v20 = vsel %vm7517_vm9, %v1115_v34, %v468_v47  ;;  %v318_v6 = vrot.slane %v316_v42, 1  ;;  %v465_v57 = vrot.slane %v316_v42, 2 }
  0xe0   :  { %v1289_v31 = vsel %vm11891_vm2, %v1189_v20, %v11921_v45  ;;  %vm3500_vm6 = vcmask 195584   ;;  %v635_v15 = vrot.slane %v9327_v38, 6  ;;  %v724_v47 = vshll.u32 %v9327_v38, 16 }
  0xe1   :  { %v1363_v5 = vsel %vm7534_vm10, %v1289_v31, %v9173_v41  ;;  %3067 = vrot.lane.b32.xlu1 %v2769_v30, %s7391_s23  ;;  %v11922_v9 = vrot.slane %v9101_v25, 7  ;;  %v11876_v24 = vrot.slane %v9327_v38, 7  ;;  %v1012_v46 = vsel %vm7499_vm5, %v93_v33, %v318_v6  ;;  %v9373_v31 = vld [vmem:[%s11847_s0 + $0xec] ss:$0 sps:$4 sm:$0x11]  }
  0xe2   :  { %v1701_v39 = vshrl.u32 %v9180_v58, 16  ;;  %v11923_v55 = vshll.u32 %v9101_v25, 16  ;;  %v726_v13 = vrot.slane %v724_v47, 7  ;;  %v1103_v49 = vsel %vm991_vm0, %v1012_v46, %v431_v4  ;;  %v9359_v34 = vpop.permute.xlu0 %2839 }
  0xe3   :  { %v1463_v51 = vsel %vm11890_vm4, %v1363_v5, %v11922_v9  ;;  %v1847_v44 = vrot.slane %v9180_v58, 2  ;;  %v1186_v33 = vsel %vm7517_vm9, %v1103_v49, %v465_v57  ;;  %v1963_v30 = vshrl.u32 %v9184_v35, 16 }
  0xe4   :  { %v1537_v41 = vsel %vm7557_vm11, %v1463_v51, %v11923_v55  ;;  %v1813_v25 = vrot.slane %v1701_v39, 1  ;;  %v1277_v6 = vsel %vm11891_vm2, %v1186_v33, %v635_v15  ;;  %v3149_v5 = vshll.u32 %v9284_v18, 16 }
  0xe5   :  { %v9363_v42 = vsel %vm1513_vm7, %v1537_v41, %v9117_v37  ;;  %v2133_v37 = vshrl.u32 %v9260_v54, 16  ;;  %v1360_v57 = vsel %vm7534_vm10, %v1277_v6, %v726_v13  ;;  %v1965_v9 = vrot.slane %v1963_v30, 6 }
  0xe6   :  { %11924 = vst [vmem:[#allocation19_spill] sm:$0xff] %v9363_v42  ;;  %v2917_v20 = vshrl.u32 %v9363_v42, 16  ;;  %v2919_v45 = vshll.u32 %v9363_v42, 16  ;;  %v11925_v51 = vrot.slane %v9180_v58, 1  ;;  %v9384_v55 = vpop.permute.xlu1 %2963  ;;  %v1451_v15 = vsel %vm11890_vm4, %v1360_v57, %v11876_v24  ;;  %v9390_v33 = vpop.permute.xlu0 %3263 }
  0xe7   :  { %v2051_v49 = vrot.slane %v1963_v30, 7  ;;  %v3475_v13 = vsel %vm3467_vm3, %v9143_v2, %v9071_v43  ;;  %v3504_v58 = vsel %vm3500_vm6, %v9167_v7, %v9103_v14  ;;  %v9408_v30 = vld [vmem:[%s11847_s0 + $0x118] sm:$0xf]  ;;  %v2135_v2 = vrot.slane %v2133_v37, 4 }
  0xe8   :  { %v2187_v46 = vsel %vm7499_vm5, %v1701_v39, %v11925_v51  ;;  %v2921_v41 = vrot.slane %v2919_v45, 1  ;;  %v1534_v39 = vsel %vm7557_vm11, %v1451_v15, %v724_v47  ;;  %v11926_v6 = vrot.slane %v9184_v35, 7 }
  0xe9   :  { %v2295_v54 = vsel %vm991_vm0, %v2187_v46, %v1813_v25  ;;  %v105_v25 = vld [vmem:[%s11847_s0 + $0x114] sm:$0xf]  ;;  %v9414_v14 = vsel %vm1513_vm7, %v1534_v39, %v9373_v31  ;;  %v11927_v57 = vshrl.u32 %v9133_v10, 16  ;;  %v1689_v35 = vshrl.u32 %v9295_v62, 16 }
  0xea   :  { %v2357_v45 = vsel %vm7517_vm9, %v2295_v54, %v1847_v44  ;;  %v9410_v43 = vor.u32 %v2921_v41, %v2917_v20  ;;  %v9418_v44 = vrot.slane %v3149_v5, 1  ;;  %3017 = vrot.lane.b32.xlu1 %v9414_v14, %s7392_s26  ;;  %v9429_v46 = vpop.permute.xlu1 %3303  ;;  %v9434_v5 = vcombine.low %v105_v25, %v105_v25  ;;  %v9441_v41 = vpop.permute.xlu0 %2833 }
  0xeb   :  { %v2465_v7 = vsel %vm11891_vm2, %v2357_v45, %v1965_v9  ;;  %v3140_v51 = vor.u32 %v9297_v19, %v11927_v57  ;;  %v9438_v9 = vcombine.low %v9408_v30, %v9408_v30  ;;  %v9446_v10 = vsel %vm3434_vm15, %v9302_v23, %v9127_v22 }
  0xec   :  { %v2527_v20 = vsel %vm7534_vm10, %v2465_v7, %v11926_v6  ;;  %2973 = vrot.lane.b32.xlu0 %v9410_v43, %s7393_s13  ;;  %v9450_v19 = vsel %vm3467_vm3, %v3436_v21, %v9137_v60  ;;  %v9459_v39 = vsel %vm3500_vm6, %v3475_v13, %v9186_v27  ;;  %vm11878_vm8 = vcmask 228352  }
  0xed   :  { %v2635_v37 = vsel %vm11890_vm4, %v2527_v20, %v2051_v49  ;;  %v1945_v49 = vshrl.u32 %v9327_v38, 16  ;;  %v332_v22 = vshll.u32 %v9434_v5, 16  ;;  %v435_v60 = vrot.slane %v9434_v5, 1 }
  0xee   :  { %v2697_v15 = vsel %vm7557_vm11, %v2635_v37, %v9163_v1  ;;  %3195 = vrot.lane.b32.xlu1 %v3140_v51, %s7394_s20  ;;  %v740_v23 = vshll.u32 %v9438_v9, 16  ;;  %v1807_v21 = vrot.slane %v1689_v35, 1  ;;  %v1841_v1 = vrot.slane %v9295_v62, 2  ;;  %v9466_v45 = vpop.permute.xlu1 %2967  ;;  %v9470_v6 = vpop.permute.xlu0 %3011 }
  0xef   :  { %v2781_v54 = vsel %vm1513_vm7, %v2697_v15, %v2135_v2  ;;  %v334_v2 = vrot.slane %v332_v22, 1  ;;  %v469_v7 = vrot.slane %v332_v22, 2  ;;  %v1947_v27 = vrot.slane %v1945_v49, 6  ;;  %11928 = vst [vmem:[#allocation20_spill] sm:$0xff] %v9470_v6 }
  0xf0   :  { %3071 = vrot.lane.b32.xlu0 %v2781_v54, %s7391_s23  ;;  %v2115_v13 = vshrl.u32 %v9373_v31, 16  ;;  %v3129_v20 = vshrl.u32 %v9414_v14, 16  ;;  %v3131_v57 = vshll.u32 %v9414_v14, 16  ;;  %v639_v51 = vrot.slane %v9438_v9, 6 }
  0xf1   :  { %v2181_v37 = vsel %vm7499_vm5, %v1689_v35, %v431_v4  ;;  %v742_v15 = vrot.slane %v740_v23, 7  ;;  %v1016_v54 = vsel %vm7499_vm5, %v105_v25, %v334_v2  ;;  %v2045_v22 = vrot.slane %v1945_v49, 7 }
  0xf2   :  { %v2271_v31 = vsel %vm991_vm0, %v2181_v37, %v1807_v21  ;;  %v3537_v47 = vsel %vm11878_vm8, %v3504_v58, %v9177_v50  ;;  %v843_v24 = vrot.slane %v9438_v9, 7  ;;  %v1119_v14 = vsel %vm991_vm0, %v1016_v54, %v435_v60  ;;  %v9488_v6 = vpop.permute.xlu1 %3307  ;;  %v7209_v50 = vld [vmem:[%s11847_s0 + $0x11c] ss:$0 sps:$4 sm:$0x11]   ;;  %v9507_v54 = vpop.permute.xlu0 %2837 }
  0xf3   :  { %v2351_v62 = vsel %vm7517_vm9, %v2271_v31, %v1841_v1  ;;  %v1190_v4 = vsel %vm7517_vm9, %v1119_v14, %v469_v7  ;;  %v2117_v35 = vrot.slane %v2115_v13, 4  ;;  %v1697_v49 = vshrl.u32 %v9434_v5, 16 }
  0xf4   :  { %v2441_v25 = vsel %vm11891_vm2, %v2351_v62, %v1947_v27  ;;  %v1293_v58 = vsel %vm11891_vm2, %v1190_v4, %v639_v51  ;;  %v11929_v21 = vrot.slane %v9327_v38, 7  ;;  %vm3566_vm1 = vcmask 261120   ;;  %v114_v4 = vld [vmem:[%s11847_s0 + $0x138] sm:$0xf] }
  0xf5   :  { %v1845_v2 = vrot.slane %v9434_v5, 2  ;;  %v1364_v7 = vsel %vm7534_vm10, %v1293_v58, %v742_v15  ;;  %v1811_v13 = vrot.slane %v1697_v49, 1  ;;  %v1957_v37 = vshrl.u32 %v9438_v9, 16 }
  0xf6   :  { %v2521_v1 = vsel %vm7534_vm10, %v2441_v25, %v11929_v21  ;;  %v1467_v51 = vsel %vm11890_vm4, %v1364_v7, %v843_v24  ;;  %v2127_v31 = vshrl.u32 %v7209_v50, 16  ;;  %v2185_v5 = vsel %vm7499_vm5, %v1697_v49, %v435_v60  ;;  %v9515_v14 = vpop.permute.xlu1 %2961 }
  0xf7   :  { %v2611_v27 = vsel %vm11890_vm4, %v2521_v1, %v2045_v22  ;;  %v3133_v15 = vrot.slane %v3131_v57, 1  ;;  %v1538_v22 = vsel %vm7557_vm11, %v1467_v51, %v740_v23  ;;  %v1959_v62 = vrot.slane %v1957_v37, 6 }
  0xf8   :  { %v2691_v38 = vsel %vm7557_vm11, %v2611_v27, %v9293_v28  ;;  %v9526_v28 = vld [vmem:[%s11847_s0 + $0x13c] sm:$0xf]  ;;  %v1619_v60 = vsel %vm1513_vm7, %v1538_v22, %v7209_v50  ;;  %v9532_v57 = vsel %vm3566_vm1, %v3537_v47, %v9243_v3  ;;  %v2049_v23 = vrot.slane %v1957_v37, 7 }
  0xf9   :  { %v2763_v9 = vsel %vm1513_vm7, %v2691_v38, %v2117_v35  ;;  %v2287_v35 = vsel %vm991_vm0, %v2185_v5, %v1811_v13  ;;  %3021 = vrot.lane.b32.xlu0 %v1619_v60, %s7392_s26  ;;  %v3473_v25 = vsel %vm3467_vm3, %v9446_v10, %v9219_v12  ;;  %v11930_v49 = vshrl.u32 %v9284_v18, 16  ;;  %v9556_v10 = vpop.permute.xlu0 %3015 }
  0xfa   :  { %3065 = vrot.lane.b32.xlu1 %v2763_v9, %s7391_s23  ;;  %v2129_v50 = vrot.slane %v2127_v31, 4  ;;  %v2355_v21 = vsel %vm7517_vm9, %v2287_v35, %v1845_v2  ;;  %v3143_v1 = vshll.u32 %v1619_v60, 16  ;;  %v6809_v47 = vcombine.low %v114_v4, %v114_v4 }
  0xfb   :  { %v3152_v58 = vor.u32 %v9418_v44, %v11930_v49  ;;  %v2457_v3 = vsel %vm11891_vm2, %v2355_v21, %v1959_v62  ;;  %v6843_v7 = vcombine.low %v9526_v28, %v9526_v28  ;;  %v3502_v27 = vsel %vm3500_vm6, %v9450_v19, %v9211_v56  ;;  %v9561_v56 = vpop.permute.xlu1 %3059 }
  0xfc   :  { %v3541_v18 = vsel %vm11878_vm8, %v9459_v39, %v9252_v61  ;;  %v3600_v12 = vrot.slane %v9532_v57, 4  ;;  %v2525_v44 = vsel %vm7534_vm10, %v2457_v3, %v843_v24  ;;  %v3141_v2 = vshrl.u32 %v1619_v60, 16 }
  0xfd   :  { %v2627_v13 = vsel %vm11890_vm4, %v2525_v44, %v2049_v23  ;;  %v3134_v37 = vor.u32 %v3133_v15, %v3129_v20  ;;  %v344_v51 = vshll.u32 %v6809_v47, 16  ;;  %3199 = vrot.lane.b32.xlu0 %v3152_v58, %s7394_s20  ;;  %v3506_v24 = vsel %vm3500_vm6, %v3473_v25, %v9275_v63  ;;  %v7212_v63 = vld [vmem:[%s11847_s0 + $0x140] ss:$0 sps:$4 sm:$0x11]  }
  0xfe   :  { %3243 = vrot.lane.b32.xlu1 %v9363_v42, %s7395_s17  ;;  %v2695_v61 = vsel %vm7557_vm11, %v2627_v13, %v9408_v30  ;;  %v438_v19 = vrot.slane %v6809_v47, 1  ;;  %v752_v39 = vshll.u32 %v6843_v7, 16  ;;  %v3145_v38 = vrot.slane %v3143_v1, 1 }
  0xff   :  { %v2775_v31 = vsel %vm1513_vm7, %v2695_v61, %v2129_v50  ;;  %v346_v5 = vrot.slane %v344_v51, 1  ;;  %v472_v22 = vrot.slane %v344_v51, 2  ;;  %v642_v20 = vrot.slane %v6843_v7, 6 }
 0x100   :  { %v3535_v15 = vsel %vm11878_vm8, %v3502_v27, %v9329_v16  ;;  %v9574_v9 = vsel %vm3566_vm1, %v3541_v18, %v9336_v0  ;;  %v1703_v62 = vshrl.u32 %v6809_v47, 16  ;;  %v754_v30 = vrot.slane %v752_v39, 7  ;;  %v9585_v16 = vld [vmem:[%s11847_s0 + $0x150] sm:$0xf]  ;;  %v9606_v27 = vpop.permute.xlu1 %3009 }
 0x101   :  { %v1019_v60 = vsel %vm7499_vm5, %v114_v4, %v346_v5  ;;  %v1848_v23 = vrot.slane %v6809_v47, 2  ;;  %v1966_v35 = vshrl.u32 %v6843_v7, 16  ;;  %3069 = vrot.lane.b32.xlu0 %v2775_v31, %s7391_s23  ;;  %v846_v0 = vrot.slane %v6843_v7, 7  ;;  %v9594_v4 = vld [vmem:[%s11847_s0 + $0x154] sm:$0xf]  ;;  %v9596_v50 = vpop.permute.xlu0 %2965 }
 0x102   :  { %3193 = vrot.lane.b32.xlu1 %v3134_v37, %s7394_s20  ;;  %v1131_v25 = vsel %vm991_vm0, %v1019_v60, %v438_v19  ;;  %v1814_v49 = vrot.slane %v1703_v62, 1  ;;  %v2188_v58 = vsel %vm7499_vm5, %v1703_v62, %v438_v19  ;;  %v3146_v3 = vor.u32 %v3145_v38, %v3141_v2  ;;  %v9604_v7 = vld [vmem:[%s11847_s0 + $0x158] ss:$0 sps:$4 sm:$0x11]  }
 0x103   :  { %v1193_v21 = vsel %vm7517_vm9, %v1131_v25, %v472_v22  ;;  %v1968_v47 = vrot.slane %v1966_v35, 6  ;;  %v2052_v44 = vrot.slane %v1966_v35, 7  ;;  %v9612_v37 = vcombine.low %v9585_v16, %v9585_v16 }
 0x104   :  { %v1305_v18 = vsel %vm11891_vm2, %v1193_v21, %v642_v20  ;;  %v2299_v13 = vsel %vm991_vm0, %v2188_v58, %v1814_v49  ;;  %v2136_v51 = vshrl.u32 %v7212_v63, 16  ;;  %v9622_v19 = vcombine.low %v9594_v4, %v9594_v4 }
 0x105   :  { %v1367_v2 = vsel %vm7534_vm10, %v1305_v18, %v754_v30  ;;  %v2358_v61 = vsel %vm7517_vm9, %v2299_v13, %v1848_v23  ;;  %v440_v5 = vrot.slane %v9612_v37, 1  ;;  %v1707_v22 = vshrl.u32 %v9612_v37, 16  ;;  %v9635_v60 = vpop.permute.xlu0 %3063 }
 0x106   :  { %3277 = vrot.lane.b32.xlu1 %v9214_v48, %s7396_s28  ;;  %v1479_v38 = vsel %vm11890_vm4, %v1367_v2, %v846_v0  ;;  %v2469_v31 = vsel %vm11891_vm2, %v2358_v61, %v1968_v47  ;;  %v3568_v62 = vsel %vm3566_vm1, %v3535_v15, %v9429_v46  ;;  %v2142_v30 = vshrl.u32 %v9604_v7, 16  ;;  %v9683_v61 = vld [vmem:[%s11847_s0 + $0x188] ss:$0 sps:$4 sm:$0x11]  }
 0x107   :  { %v1541_v20 = vsel %vm7557_vm11, %v1479_v38, %v752_v39  ;;  %v2528_v48 = vsel %vm7534_vm10, %v2469_v31, %v846_v0  ;;  %v11879_v25 = vshll.u32 %v9622_v19, 16  ;;  %v1816_v49 = vrot.slane %v1707_v22, 1  ;;  %v9650_v0 = vpop.permute.xlu1 %3187 }
 0x108   :  { %v9638_v23 = vsel %vm1513_vm7, %v1541_v20, %v7212_v63  ;;  %v2639_v35 = vsel %vm11890_vm4, %v2528_v48, %v2052_v44  ;;  %v2138_v39 = vrot.slane %v2136_v51, 4  ;;  %v3539_v46 = vsel %vm11878_vm8, %v3506_v24, %v9390_v33  ;;  %v132_v24 = vld [vmem:[%s11847_s0 + $0x180] sm:$0xf]  ;;  %v7318_v20 = vld [vmem:[%s11848_s1 + $0x10] ss:$0 sps:$4 sm:$0x33]  }
 0x109   :  { %11931 = vst [vmem:[#allocation21_spill] sm:$0xff] %v9638_v23  ;;  %3247 = vrot.lane.b32.xlu0 %v9638_v23, %s7395_s17  ;;  %v1850_v15 = vrot.slane %v9612_v37, 2  ;;  %v1972_v63 = vshrl.u32 %v9622_v19, 16  ;;  %v2698_v58 = vsel %vm7557_vm11, %v2639_v35, %v9526_v28  ;;  %v11880_v21 = vrot.slane %v9622_v19, 7  ;;  %v9670_v28 = vld [vmem:[%s11847_s0 + $0x184] sm:$0xf] }
 0x10a   :  { %3241 = vrot.lane.b32.xlu1 %v8983_v11, %s7395_s17  ;;  %v2190_v47 = vsel %vm7499_vm5, %v1707_v22, %v440_v5  ;;  %v3616_v33 = vsel %vm1513_vm7, %v3568_v62, %v3600_v12  ;;  %vm3658_vm8 = vcmask 293888   ;;  %v9675_v57 = vrot.slane %v11879_v25, 7 }
 0x10b   :  { %v1974_v18 = vrot.slane %v1972_v63, 6  ;;  %v2054_v44 = vrot.slane %v1972_v63, 7  ;;  %v2307_v13 = vsel %vm991_vm0, %v2190_v47, %v1816_v49  ;;  %v2144_v12 = vrot.slane %v2142_v30, 4  ;;  %7072 = vmatprep.mubr.msk.bf16.mxu0 %vm3658_vm8, %v3616_v33 }
 0x10c   :  { %v2360_v51 = vsel %vm7517_vm9, %v2307_v13, %v1850_v15  ;;  %v2929_v31 = vshrl.u32 %v9638_v23, 16  ;;  %v2931_v22 = vshll.u32 %v9638_v23, 16  ;;  %v3676_v48 = vsel %vm11891_vm2, %v7318_v20, 0  ;;  %v9695_v62 = vpop.permute.xlu0 %3013 }
 0x10d   :  { %3197 = vrot.lane.b32.xlu0 %v3146_v3, %s7394_s20  ;;  %v2477_v38 = vsel %vm11891_vm2, %v2360_v51, %v1974_v18  ;;  %v9698_v30 = vsel %vm1513_vm7, %v2698_v58, %v2138_v39  ;;  %7071 = vmatpush3.bf16.msra.mxu0 %v3676_v48  ;;  %v3572_v3 = vsel %vm3566_vm1, %v3539_v46, %v9488_v6  ;;  %v352_v47 = vshll.u32 %v9612_v37, 16  ;;  %v9710_v39 = vpop.permute.xlu1 %3057 }
 0x10e   :  { %3321 = vrot.lane.b32.xlu1 %v9410_v43, %s7397_s16  ;;  %v2530_v43 = vsel %vm7534_vm10, %v2477_v38, %v11880_v21  ;;  %v6815_v35 = vcombine.low %v132_v24, %v132_v24  ;;  %v2933_v15 = vrot.slane %v2931_v22, 1  ;;  %v6849_v63 = vcombine.low %v9670_v28, %v9670_v28 }
 0x10f   :  { %v2647_v49 = vsel %vm11890_vm4, %v2530_v43, %v2054_v44  ;;  %v2154_v13 = vshrl.u32 %v9683_v61, 16  ;;  %v354_v21 = vrot.slane %v352_v47, 1 }
 0x110   :  { %v2700_v58 = vsel %vm7557_vm11, %v2647_v49, %v9594_v4  ;;  %v368_v33 = vshll.u32 %v6815_v35, 16  ;;  %v444_v18 = vrot.slane %v6815_v35, 1  ;;  %v9723_v46 = vor.u32 %v2933_v15, %v2929_v31  ;;  %v9725_v48 = vpop.permute.xlu0 %3191 }
 0x111   :  { %3281 = vrot.lane.b32.xlu0 %v9698_v30, %s7396_s28  ;;  %v9719_v6 = vsel %vm1513_vm7, %v2700_v58, %v2144_v12  ;;  %v648_v44 = vrot.slane %v6849_v63, 6  ;;  %v776_v51 = vshll.u32 %v6849_v63, 16  ;;  %v852_v4 = vrot.slane %v6849_v63, 7  ;;  %v9727_v2 = vpop.permute.xlu1 %3235 }
 0x112   :  { %3245 = vrot.lane.b32.xlu1 %v9076_v59, %s7395_s17  ;;  %v370_v38 = vrot.slane %v368_v33, 1  ;;  %v478_v22 = vrot.slane %v368_v33, 2  ;;  %v1715_v20 = vshrl.u32 %v6815_v35, 16  ;;  %v1854_v49 = vrot.slane %v6815_v35, 2 }
 0x113   :  { %v778_v43 = vrot.slane %v776_v51, 7  ;;  %v1984_v25 = vshrl.u32 %v6849_v63, 16  ;;  %v474_v15 = vrot.slane %v352_v47, 2  ;;  %v1021_v1 = vsel %vm7499_vm5, %v9585_v16, %v354_v21 }
 0x114   :  { %v1025_v12 = vsel %vm7499_vm5, %v132_v24, %v370_v38  ;;  %v1820_v58 = vrot.slane %v1715_v20, 1  ;;  %v2194_v31 = vsel %vm7499_vm5, %v1715_v20, %v444_v18  ;;  %v1139_v47 = vsel %vm991_vm0, %v1021_v1, %v440_v5 }
 0x115   :  { %2851 = vrot.lane.b32.xlu0 %v9719_v6, %s7390_s21  ;;  %v1155_v35 = vsel %vm991_vm0, %v1025_v12, %v444_v18  ;;  %v1986_v63 = vrot.slane %v1984_v25, 6  ;;  %v2058_v33 = vrot.slane %v1984_v25, 7  ;;  %v11932_v20 = vrot.slane %v9574_v9, 4  ;;  %v9756_v21 = vpop.permute.xlu1 %3185 }
 0x116   :  { %3325 = vrot.lane.b32.xlu1 %v9723_v46, %s7397_s16  ;;  %v1199_v24 = vsel %vm7517_vm9, %v1155_v35, %v478_v22  ;;  %v2323_v38 = vsel %vm991_vm0, %v2194_v31, %v1820_v58  ;;  %v1195_v16 = vsel %vm7517_vm9, %v1139_v47, %v474_v15  ;;  %v2156_v1 = vrot.slane %v2154_v13, 4  ;;  %v9803_v15 = vld [vmem:[%s11847_s0 + $0x160] sm:$0xf] }
 0x117   :  { %v3618_v23 = vsel %vm1513_vm7, %v3572_v3, %v11932_v20  ;;  %v1329_v18 = vsel %vm11891_vm2, %v1199_v24, %v648_v44  ;;  %v2364_v25 = vsel %vm7517_vm9, %v2323_v38, %v1854_v49  ;;  %v11933_v5 = vrot.slane %v9622_v19, 6  ;;  %v9764_v44 = vpop.permute.xlu0 %3061  ;;  %v11937_v24 = vld [vmem:[#allocation12_spill] sm:$0xff] }
 0x118   :  { %7073 = vmatmul.mubr.msk.bf16.vlgmr.msra.gmra.mrb[0].mxu0 %vm3658_vm8, %v3618_v23  ;;  %v1373_v37 = vsel %vm7534_vm10, %v1329_v18, %v778_v43  ;;  %v2493_v9 = vsel %vm11891_vm2, %v2364_v25, %v1986_v63  ;;  %v3347_v43 = vsel %vm3335_vm12, %v8345_v40, %v9280_v52  ;;  %v9835_v38 = vsel %vm3335_vm12, %v11937_v24, %v9507_v54  ;;  %v9852_v54 = vld [vmem:[%s11847_s0 + $0x16c] sm:$0xf] }
 0x119   :  { %v1313_v3 = vsel %vm11891_vm2, %v1195_v16, %v11933_v5  ;;  %3275 = vrot.lane.b32.xlu0 %v8886_v29, %s7396_s28  ;;  %v1503_v22 = vsel %vm11890_vm4, %v1373_v37, %v852_v4  ;;  %v2534_v23 = vsel %vm7534_vm10, %v2493_v9, %v852_v4  ;;  %v11934_v29 = vrot.slane %v9622_v19, 7  ;;  %v123_v4 = vld [vmem:[%s11847_s0 + $0x15c] sm:$0xf]  ;;  %v9828_v63 = vpop.permute.xlu1 %3269 }
 0x11a   :  { %v1369_v13 = vsel %vm7534_vm10, %v1313_v3, %v9675_v57  ;;  %v1547_v49 = vsel %vm7557_vm11, %v1503_v22, %v776_v51  ;;  %v2663_v12 = vsel %vm11890_vm4, %v2534_v23, %v2058_v33  ;;  %v3351_v57 = vsel %vm3335_vm12, %v8363_v53, %v9359_v34  ;;  %v11939_v22 = vld [vmem:[#allocation13_spill] sm:$0xff] }
 0x11b   :  { %v1487_v58 = vsel %vm11890_vm4, %v1369_v13, %v11934_v29  ;;  %v9791_v40 = vsel %vm1513_vm7, %v1547_v49, %v9683_v61  ;;  %v2704_v52 = vsel %vm7557_vm11, %v2663_v12, %v9670_v28  ;;  %v11935_v51 = vshll.u32 %v9622_v19, 16  ;;  %v126_v28 = vld [vmem:[%s11847_s0 + $0x168] sm:$0xf]  ;;  %v9842_v20 = vpop.permute.xlu0 %3239 }
 0x11c   :  { %v3380_v53 = vsel %vm3368_vm13, %v3347_v43, %v9384_v55  ;;  %v3345_v34 = vsel %vm3335_vm12, %v8193_v32, %v9441_v41  ;;  %v9811_v61 = vsel %vm1513_vm7, %v2704_v52, %v2156_v1  ;;  %v3384_v35 = vsel %vm3368_vm13, %v3351_v57, %v9466_v45 }
 0x11d   :  { %v1543_v31 = vsel %vm7557_vm11, %v1487_v58, %v11935_v51  ;;  %2855 = vrot.lane.b32.xlu0 %v9811_v61, %s7390_s21  ;;  %v9826_v41 = vcombine.low %v123_v4, %v123_v4  ;;  %v2949_v45 = vshll.u32 %v9791_v40, 16  ;;  %v9840_v47 = vcombine.low %v9803_v15, %v9803_v15 }
 0x11e   :  { %v9815_v19 = vsel %vm1513_vm7, %v1543_v31, %v9604_v7  ;;  %v11936_v7 = vld [vmem:[#allocation20_spill] sm:$0xff]  ;;  %v9846_v25 = vsel %vm3368_vm13, %v3345_v34, %v9515_v14  ;;  %v6813_v37 = vcombine.low %v126_v28, %v126_v28  ;;  %v9856_v1 = vsel %vm11889_vm14, %v3384_v35, %v9556_v10 }
 0x11f   :  { %v2935_v55 = vshrl.u32 %v9815_v19, 16  ;;  %v2937_v32 = vshll.u32 %v9815_v19, 16  ;;  %v3413_v33 = vsel %vm11889_vm14, %v3380_v53, %v11936_v7  ;;  %v356_v16 = vshll.u32 %v9826_v41, 16  ;;  %v9881_v31 = vld [vmem:[%s11847_s0 + $0x170] ss:$0 sps:$4 sm:$0x11]   ;;  %v9883_v53 = vpop.permute.xlu1 %3233 }
 0x120   :  { %v2947_v9 = vshrl.u32 %v9791_v40, 16  ;;  %v11883_v5 = vrot.slane %v9826_v41, 1  ;;  %v764_v3 = vshll.u32 %v9840_v47, 16  ;;  %v360_v43 = vshll.u32 %v6813_v37, 16 }
 0x121   :  { %v2939_v18 = vrot.slane %v2937_v32, 1  ;;  %3279 = vrot.lane.b32.xlu0 %v11939_v22, %s7396_s28  ;;  %v358_v23 = vrot.slane %v356_v16, 1  ;;  %v475_v13 = vrot.slane %v356_v16, 2  ;;  %v2951_v49 = vrot.slane %v2949_v45, 1  ;;  %v9889_v32 = vpop.permute.xlu0 %3189 }
 0x122   :  { %v645_v12 = vrot.slane %v9840_v47, 6  ;;  %v9868_v10 = vcombine.low %v9852_v54, %v9852_v54  ;;  %v1711_v29 = vshrl.u32 %v6813_v37, 16  ;;  %v9874_v58 = vsel %vm3434_vm15, %v3413_v33, %v9561_v56 }
 0x123   :  { %v9861_v14 = vor.u32 %v2939_v18, %v2935_v55  ;;  %v766_v57 = vrot.slane %v764_v3, 7  ;;  %v1022_v52 = vsel %vm7499_vm5, %v123_v4, %v358_v23  ;;  %v362_v51 = vrot.slane %v360_v43, 1  ;;  %v9903_v18 = vld [vmem:[%s11847_s0 + $0x164] ss:$0 sps:$4 sm:$0x11]  }
 0x124   :  { %v11882_v34 = vrot.slane %v9840_v47, 7  ;;  %v1143_v35 = vsel %vm991_vm0, %v1022_v52, %v11883_v5  ;;  %v442_v56 = vrot.slane %v6813_v37, 1  ;;  %v476_v55 = vrot.slane %v360_v43, 2  ;;  %v135_v23 = vld [vmem:[%s11847_s0 + $0x18c] sm:$0xf] }
 0x125   :  { %11938 = vst [vmem:[#allocation20_spill] sm:$0xff] %v9861_v14  ;;  %2979 = vrot.lane.b32.xlu1 %v9861_v14, %s7393_s13  ;;  %2849 = vrot.lane.b32.xlu0 %v9698_v30, %s7390_s21  ;;  %v1196_v4 = vsel %vm7517_vm9, %v1143_v35, %v475_v13  ;;  %v1023_v7 = vsel %vm7499_vm5, %v126_v28, %v362_v51  ;;  %v1818_v33 = vrot.slane %v1711_v29, 1  ;;  %v1978_v24 = vshrl.u32 %v9868_v10, 16  ;;  %v11940_v28 = vld [vmem:[#allocation15_spill] sm:$0xff] }
 0x126   :  { %v9898_v45 = vor.u32 %v2951_v49, %v2947_v9  ;;  %v1317_v16 = vsel %vm11891_vm2, %v1196_v4, %v645_v12  ;;  %v1147_v30 = vsel %vm991_vm0, %v1023_v7, %v442_v56  ;;  %v1852_v22 = vrot.slane %v6813_v37, 2  ;;  %v9919_v12 = vld [vmem:[%s11847_s0 + $0x190] sm:$0xf] }
 0x127   :  { %v1370_v9 = vsel %vm7534_vm10, %v1317_v16, %v766_v57  ;;  %v646_v13 = vrot.slane %v9868_v10, 6  ;;  %v1980_v43 = vrot.slane %v1978_v24, 6  ;;  %v2148_v49 = vshrl.u32 %v9881_v31, 16 }
 0x128   :  { %v1491_v37 = vsel %vm11890_vm4, %v1370_v9, %v11882_v34  ;;  %v11884_v52 = vshll.u32 %v9868_v10, 16  ;;  %v850_v51 = vrot.slane %v9868_v10, 7  ;;  %v2192_v57 = vsel %vm7499_vm5, %v1711_v29, %v442_v56  ;;  %v9947_v29 = vpop.permute.xlu0 %3273 }
 0x129   :  { %3319 = vrot.lane.b32.xlu1 %v11940_v28, %s7397_s16  ;;  %v1544_v35 = vsel %vm7557_vm11, %v1491_v37, %v764_v3  ;;  %v1197_v4 = vsel %vm7517_vm9, %v1147_v30, %v476_v55  ;;  %v2056_v7 = vrot.slane %v1978_v24, 7  ;;  %v2315_v16 = vsel %vm991_vm0, %v2192_v57, %v1818_v33  ;;  %v9933_v28 = vpop.permute.xlu1 %3313 }
 0x12a   :  { %v9937_v9 = vsel %vm1513_vm7, %v1544_v35, %v9903_v18  ;;  %v2362_v34 = vsel %vm7517_vm9, %v2315_v16, %v1852_v22  ;;  %v9941_v5 = vcombine.low %v135_v23, %v135_v23  ;;  %v9945_v3 = vcombine.low %v9919_v12, %v9919_v12 }
 0x12b   :  { %v9954_v56 = vsel %vm3368_vm13, %v9835_v38, %v9596_v50  ;;  %3027 = vrot.lane.b32.xlu0 %v9937_v9, %s7392_s26  ;;  %v2150_v55 = vrot.slane %v2148_v49, 4  ;;  %v2485_v33 = vsel %vm11891_vm2, %v2362_v34, %v1980_v43  ;;  %v1709_v24 = vshrl.u32 %v9826_v41, 16 }
 0x12c   :  { %v770_v30 = vrot.slane %v11884_v52, 7  ;;  %v1321_v22 = vsel %vm11891_vm2, %v1197_v4, %v646_v13  ;;  %v2532_v37 = vsel %vm7534_vm10, %v2485_v33, %v850_v51  ;;  %v372_v57 = vshll.u32 %v9941_v5, 16  ;;  %v11941_v4 = vld [vmem:[#allocation17_spill] sm:$0xff] }
 0x12d   :  { %2983 = vrot.lane.b32.xlu1 %v9898_v45, %s7393_s13  ;;  %v2655_v50 = vsel %vm11890_vm4, %v2532_v37, %v2056_v7  ;;  %v649_v49 = vrot.slane %v9945_v3, 6  ;;  %v780_v34 = vshll.u32 %v9945_v3, 16  ;;  %v1817_v13 = vrot.slane %v1709_v24, 1  ;;  %v9981_v38 = vpop.permute.xlu1 %3237  ;;  %v9995_v7 = vpop.permute.xlu0 %2843 }
 0x12e   :  { %v2702_v43 = vsel %vm7557_vm11, %v2655_v50, %v9852_v54  ;;  %v374_v35 = vrot.slane %v372_v57, 1  ;;  %v479_v16 = vrot.slane %v372_v57, 2  ;;  %v1851_v37 = vrot.slane %v9826_v41, 2 }
 0x12f   :  { %v9976_v33 = vsel %vm1513_vm7, %v2702_v43, %v2150_v55  ;;  %v1975_v52 = vshrl.u32 %v9840_v47, 16  ;;  %v782_v54 = vrot.slane %v780_v34, 7  ;;  %v2145_v50 = vshrl.u32 %v9903_v18, 16 }
 0x130   :  { %2853 = vrot.lane.b32.xlu0 %v9976_v33, %s7390_s21  ;;  %v1026_v57 = vsel %vm7499_vm5, %v135_v23, %v374_v35  ;;  %v11942_v55 = vrot.slane %v9826_v41, 1  ;;  %v11943_v42 = vrot.slane %v9941_v5, 1  ;;  %v10004_v41 = vld [vmem:[%s11847_s0 + $0x148] sm:$0xf]  ;;  %v3411_v18 = vsel %vm11889_vm14, %v9846_v25, %v9606_v27  ;;  %s7399_s21 = smov 56  }
 0x131   :  { %3323 = vrot.lane.b32.xlu1 %v11941_v4, %s7397_s16  ;;  %v117_v4 = vld [vmem:[%s11847_s0 + $0x144] sm:$0xf]  ;;  %v1977_v11 = vrot.slane %v1975_v52, 6  ;;  %v2055_v14 = vrot.slane %v1975_v52, 7  ;;  %v2147_v35 = vrot.slane %v2145_v50, 4  ;;  %v1371_v27 = vsel %vm7534_vm10, %v1321_v22, %v770_v30 }
 0x132   :  { %v2191_v43 = vsel %vm7499_vm5, %v1709_v24, %v11942_v55  ;;  %v1159_v59 = vsel %vm991_vm0, %v1026_v57, %v11943_v42  ;;  %v10018_v52 = vld [vmem:[%s11847_s0 + $0x194] ss:$0 sps:$4 sm:$0x11]   ;;  %v11946_v50 = vshll.u32 %v9868_v10, 16  ;;  %v10046_v55 = vpop.permute.xlu1 %3317  ;;  %v10058_v10 = vpop.permute.xlu0 %3267 }
 0x133   :  { %v2311_v23 = vsel %vm991_vm0, %v2191_v43, %v1817_v13  ;;  %v1200_v24 = vsel %vm7517_vm9, %v1159_v59, %v479_v16  ;;  %v10024_v59 = vcombine.low %v117_v4, %v117_v4  ;;  %v11944_v16 = vrot.slane %v9840_v47, 7 }
 0x134   :  { %v2361_v42 = vsel %vm7517_vm9, %v2311_v23, %v1851_v37  ;;  %v1333_v13 = vsel %vm11891_vm2, %v1200_v24, %v649_v49  ;;  %v1495_v37 = vsel %vm11890_vm4, %v1371_v27, %v850_v51  ;;  %v10035_v49 = vcombine.low %v10004_v41, %v10004_v41 }
 0x135   :  { %2977 = vrot.lane.b32.xlu1 %v9723_v46, %s7393_s13  ;;  %v2481_v57 = vsel %vm11891_vm2, %v2361_v42, %v1977_v11  ;;  %v1374_v25 = vsel %vm7534_vm10, %v1333_v13, %v782_v54  ;;  %v11945_v11 = vrot.slane %v9945_v3, 7  ;;  %v1545_v47 = vsel %vm7557_vm11, %v1495_v37, %v11946_v50 }
 0x136   :  { %v2531_v46 = vsel %vm7534_vm10, %v2481_v57, %v11944_v16  ;;  %v348_v54 = vshll.u32 %v10024_v59, 16  ;;  %v10055_v23 = vsel %vm1513_vm7, %v1545_v47, %v9881_v31  ;;  %v3479_v31 = vsel %vm3467_vm3, %v9874_v58, %v9650_v0  ;;  %v10109_v47 = vpop.permute.xlu0 %2847 }
 0x137   :  { %v1507_v30 = vsel %vm11890_vm4, %v1374_v25, %v11945_v11  ;;  %v2651_v22 = vsel %vm11890_vm4, %v2531_v46, %v2055_v14  ;;  %v439_v14 = vrot.slane %v10024_v59, 1  ;;  %v2943_v13 = vshll.u32 %v10055_v23, 16 }
 0x138   :  { %v1548_v51 = vsel %vm7557_vm11, %v1507_v30, %v780_v34  ;;  %v2701_v43 = vsel %vm7557_vm11, %v2651_v22, %v9803_v15  ;;  %v2941_v34 = vshrl.u32 %v10055_v23, 16  ;;  %v3450_v15 = vsel %vm3434_vm15, %v9856_v1, %v9635_v60  ;;  %v10097_v30 = vpop.permute.xlu1 %2971 }
 0x139   :  { %v10062_v24 = vsel %vm1513_vm7, %v1548_v51, %v10018_v52  ;;  %v2793_v42 = vsel %vm1513_vm7, %v2701_v43, %v2147_v35  ;;  %v350_v57 = vrot.slane %v348_v54, 1  ;;  %v473_v27 = vrot.slane %v348_v54, 2 }
 0x13a   :  { %3031 = vrot.lane.b32.xlu0 %v10062_v24, %s7392_s26  ;;  %3075 = vrot.lane.b32.xlu1 %v2793_v42, %s7391_s23  ;;  %v10079_v35 = vsel %vm11889_vm14, %v9954_v56, %v9695_v62  ;;  %v2945_v25 = vrot.slane %v2943_v13, 1  ;;  %v643_v16 = vrot.slane %v10035_v49, 6  ;;  %v756_v60 = vshll.u32 %v10035_v49, 16  ;;  %v10125_v13 = vld [vmem:[%s11847_s0 + $0x178] sm:$0xf] }
 0x13b   :  { %v3161_v1 = vshll.u32 %v9937_v9, 16  ;;  %v10086_v0 = vsel %vm3434_vm15, %v3411_v18, %v9710_v39  ;;  %v847_v58 = vrot.slane %v10035_v49, 7  ;;  %v1020_v46 = vsel %vm7499_vm5, %v117_v4, %v350_v57  ;;  %v10103_v39 = vld [vmem:[%s11847_s0 + $0x14c] ss:$0 sps:$4 sm:$0x11]  }
 0x13c   :  { %v10091_v37 = vor.u32 %v2945_v25, %v2941_v34  ;;  %v758_v62 = vrot.slane %v756_v60, 7  ;;  %v1135_v56 = vsel %vm991_vm0, %v1020_v46, %v439_v14  ;;  %v1717_v11 = vshrl.u32 %v9941_v5, 16  ;;  %v129_v34 = vld [vmem:[%s11847_s0 + $0x174] sm:$0xf] }
 0x13d   :  { %v3159_v22 = vshrl.u32 %v9937_v9, 16  ;;  %v1194_v4 = vsel %vm7517_vm9, %v1135_v56, %v473_v27  ;;  %v1855_v18 = vrot.slane %v9941_v5, 2  ;;  %v1987_v50 = vshrl.u32 %v9945_v3, 16 }
 0x13e   :  { %2981 = vrot.lane.b32.xlu0 %v10091_v37, %s7393_s13  ;;  %v1309_v54 = vsel %vm11891_vm2, %v1194_v4, %v643_v16  ;;  %v1821_v9 = vrot.slane %v1717_v11, 1  ;;  %v2157_v51 = vshrl.u32 %v10018_v52, 16  ;;  %v11947_v43 = vrot.slane %v9941_v5, 1 }
 0x13f   :  { %v3163_v57 = vrot.slane %v3161_v1, 1  ;;  %v10129_v27 = vsel %vm3467_vm3, %v3450_v15, %v9725_v48  ;;  %v1368_v5 = vsel %vm7534_vm10, %v1309_v54, %v758_v62  ;;  %v1989_v52 = vrot.slane %v1987_v50, 6 }
 0x140   :  { %v2195_v42 = vsel %vm7499_vm5, %v1717_v11, %v11947_v43  ;;  %v3512_v25 = vsel %vm3500_vm6, %v3479_v31, %v9727_v2  ;;  %v1483_v16 = vsel %vm11890_vm4, %v1368_v5, %v847_v58  ;;  %v2059_v46 = vrot.slane %v1987_v50, 7  ;;  %v10155_v50 = vpop.permute.xlu1 %3311 }
 0x141   :  { %v2327_v56 = vsel %vm991_vm0, %v2195_v42, %v1821_v9  ;;  %v1542_v1 = vsel %vm7557_vm11, %v1483_v16, %v756_v60  ;;  %v10143_v15 = vcombine.low %v129_v34, %v129_v34  ;;  %v10147_v62 = vcombine.low %v10125_v13, %v10125_v13 }
 0x142   :  { %v2365_v48 = vsel %vm7517_vm9, %v2327_v56, %v1855_v18  ;;  %v10151_v2 = vsel %vm1513_vm7, %v1542_v1, %v10103_v39  ;;  %v2159_v31 = vrot.slane %v2157_v51, 4  ;;  %v1705_v4 = vshrl.u32 %v10024_v59, 16  ;;  %v10165_v51 = vpop.permute.xlu0 %3271 }
 0x143   :  { %v2497_v11 = vsel %vm11891_vm2, %v2365_v48, %v1989_v52  ;;  %v3171_v60 = vshrl.u32 %v10062_v24, 16  ;;  %3025 = vrot.lane.b32.xlu1 %v10151_v2, %s7392_s26  ;;  %v11948_v18 = vrot.slane %v9945_v3, 7  ;;  %v3164_v9 = vor.u32 %v3163_v57, %v3159_v22 }
 0x144   :  { %v364_v43 = vshll.u32 %v10143_v15, 16  ;;  %v3173_v42 = vshll.u32 %v10062_v24, 16  ;;  %v443_v52 = vrot.slane %v10143_v15, 1  ;;  %v772_v16 = vshll.u32 %v10147_v62, 16 }
 0x145   :  { %v2535_v54 = vsel %vm7534_vm10, %v2497_v11, %v11948_v18  ;;  %v1849_v22 = vrot.slane %v10024_v59, 2  ;;  %v647_v48 = vrot.slane %v10147_v62, 6  ;;  %v1815_v24 = vrot.slane %v1705_v4, 1 }
 0x146   :  { %v2667_v5 = vsel %vm11890_vm4, %v2535_v54, %v2059_v46  ;;  %v366_v56 = vrot.slane %v364_v43, 1  ;;  %v477_v1 = vrot.slane %v364_v43, 2  ;;  %v774_v11 = vrot.slane %v772_v16, 7 }
 0x147   :  { %v2705_v3 = vsel %vm7557_vm11, %v2667_v5, %v9919_v12  ;;  %3203 = vrot.lane.b32.xlu1 %v3164_v9, %s7394_s20  ;;  %v1969_v18 = vshrl.u32 %v10035_v49, 16  ;;  %v2139_v12 = vshrl.u32 %v10103_v39, 16  ;;  %v3175_v54 = vrot.slane %v3173_v42, 1  ;;  %v10190_v9 = vpop.permute.xlu1 %2975  ;;  %v7236_v42 = vld [vmem:[%s11847_s0 + $0x17c] ss:$0 sps:$4 sm:$0x11]  }
 0x148   :  { %v2805_v57 = vsel %vm1513_vm7, %v2705_v3, %v2159_v31  ;;  %v1024_v46 = vsel %vm7499_vm5, %v129_v34, %v366_v56  ;;  %v2189_v31 = vsel %vm7499_vm5, %v1705_v4, %v439_v14  ;;  %v851_v43 = vrot.slane %v10147_v62, 7 }
 0x149   :  { %3079 = vrot.lane.b32.xlu0 %v2805_v57, %s7391_s23  ;;  %v1151_v5 = vsel %vm991_vm0, %v1024_v46, %v443_v52  ;;  %v2303_v3 = vsel %vm991_vm0, %v2189_v31, %v1815_v24  ;;  %v3448_v34 = vsel %vm3434_vm15, %v10079_v35, %v9764_v44  ;;  %v1971_v59 = vrot.slane %v1969_v18, 6  ;;  %v10197_v57 = vpop.permute.xlu0 %2841 }
 0x14a   :  { %v1198_v39 = vsel %vm7517_vm9, %v1151_v5, %v477_v1  ;;  %v2053_v56 = vrot.slane %v1969_v18, 7  ;;  %v3477_v14 = vsel %vm3467_vm3, %v10086_v0, %v9756_v21  ;;  %vm11949_vm14 = vcmask 228352  }
 0x14b   :  { %v3545_v4 = vsel %vm11949_vm14, %v3512_v25, %v9828_v63  ;;  %v1325_v44 = vsel %vm11891_vm2, %v1198_v39, %v647_v48  ;;  %v2359_v35 = vsel %vm7517_vm9, %v2303_v3, %v1849_v22  ;;  %v2141_v24 = vrot.slane %v2139_v12, 4 }
 0x14c   :  { %v1372_v1 = vsel %vm7534_vm10, %v1325_v44, %v774_v11  ;;  %v2473_v46 = vsel %vm11891_vm2, %v2359_v35, %v1971_v59  ;;  %v1713_v21 = vshrl.u32 %v10143_v15, 16  ;;  %v3155_v0 = vshll.u32 %v10151_v2, 16  ;;  %v138_v59 = vld [vmem:[%s11847_s0 + $0x198] sm:$0xf] }
 0x14d   :  { %v1499_v63 = vsel %vm11890_vm4, %v1372_v1, %v851_v43  ;;  %v2529_v25 = vsel %vm7534_vm10, %v2473_v46, %v847_v58  ;;  %v1853_v48 = vrot.slane %v10143_v15, 2  ;;  %v1981_v12 = vshrl.u32 %v10147_v62, 16  ;;  %v10233_v15 = vpop.permute.xlu1 %3315 }
 0x14e   :  { %v1546_v22 = vsel %vm7557_vm11, %v1499_v63, %v772_v16  ;;  %v2643_v11 = vsel %vm11890_vm4, %v2529_v25, %v2053_v56  ;;  %v1819_v18 = vrot.slane %v1713_v21, 1  ;;  %v2151_v5 = vshrl.u32 %v7236_v42, 16 }
 0x14f   :  { %v10226_v31 = vsel %vm1513_vm7, %v1546_v22, %v7236_v42  ;;  %v2699_v49 = vsel %vm7557_vm11, %v2643_v11, %v10004_v41  ;;  %v2193_v58 = vsel %vm7499_vm5, %v1713_v21, %v443_v52  ;;  %v3153_v16 = vshrl.u32 %v10151_v2, 16  ;;  %v10245_v41 = vld [vmem:[%s11847_s0 + $0x19c] sm:$0xf]  ;;  %v10247_v52 = vpop.permute.xlu0 %3019 }
 0x150   :  { %3029 = vrot.lane.b32.xlu0 %v10226_v31, %s7392_s26  ;;  %v2787_v62 = vsel %vm1513_vm7, %v2699_v49, %v2141_v24  ;;  %v3176_v3 = vor.u32 %v3175_v54, %v3171_v60  ;;  %v1983_v39 = vrot.slane %v1981_v12, 6  ;;  %v3157_v56 = vrot.slane %v3155_v0, 1 }
 0x151   :  { %3073 = vrot.lane.b32.xlu1 %v2787_v62, %s7391_s23  ;;  %v3578_v2 = vsel %vm3566_vm1, %v3545_v4, %v9933_v28  ;;  %v2057_v42 = vrot.slane %v1981_v12, 7  ;;  %v2319_v60 = vsel %vm991_vm0, %v2193_v58, %v1819_v18  ;;  %v3516_v54 = vsel %vm3500_vm6, %v10129_v27, %v9842_v20  ;;  %v10275_v63 = vpop.permute.xlu1 %2969 }
 0x152   :  { %v3481_v44 = vsel %vm3467_vm3, %v3448_v34, %v9889_v32  ;;  %v3510_v35 = vsel %vm3500_vm6, %v3477_v14, %v9883_v53  ;;  %v2363_v1 = vsel %vm7517_vm9, %v2319_v60, %v1853_v48  ;;  %v2153_v24 = vrot.slane %v2151_v5, 4 }
 0x153   :  { %v2489_v46 = vsel %vm11891_vm2, %v2363_v1, %v1983_v39  ;;  %v6817_v28 = vcombine.low %v138_v59, %v138_v59  ;;  %v6851_v4 = vcombine.low %v10245_v41, %v10245_v41  ;;  %v3165_v21 = vshrl.u32 %v10226_v31, 16  ;;  %v10282_v22 = vpop.permute.xlu0 %2845 }
 0x154   :  { %3207 = vrot.lane.b32.xlu0 %v3176_v3, %s7394_s20  ;;  %v3549_v20 = vsel %vm11949_vm14, %v3516_v54, %v9947_v29  ;;  %v3604_v32 = vrot.slane %v3578_v2, 4  ;;  %v2533_v53 = vsel %vm7534_vm10, %v2489_v46, %v851_v43  ;;  %v3167_v27 = vshll.u32 %v10226_v31, 16 }
 0x155   :  { %3251 = vrot.lane.b32.xlu1 %v10055_v23, %s7395_s17  ;;  %v2659_v34 = vsel %vm11890_vm4, %v2533_v53, %v2057_v42  ;;  %v3158_v14 = vor.u32 %v3157_v56, %v3153_v16  ;;  %v376_v0 = vshll.u32 %v6817_v28, 16  ;;  %v3514_v29 = vsel %vm3500_vm6, %v3481_v44, %v9981_v38  ;;  %v10301_v44 = vpop.permute.xlu1 %3067 }
 0x156   :  { %v2703_v25 = vsel %vm7557_vm11, %v2659_v34, %v10125_v13  ;;  %v446_v48 = vrot.slane %v6817_v28, 1  ;;  %v784_v43 = vshll.u32 %v6851_v4, 16  ;;  %v3543_v31 = vsel %vm11949_vm14, %v3510_v35, %v10058_v10 }
 0x157   :  { %v2799_v11 = vsel %vm1513_vm7, %v2703_v25, %v2153_v24  ;;  %v378_v18 = vrot.slane %v376_v0, 1  ;;  %v480_v12 = vrot.slane %v376_v0, 2  ;;  %v650_v49 = vrot.slane %v6851_v4, 6  ;;  %v10311_v46 = vpop.permute.xlu0 %3023 }
 0x158   :  { %3077 = vrot.lane.b32.xlu0 %v2799_v11, %s7391_s23  ;;  %v3582_v13 = vsel %vm3566_vm1, %v3549_v20, %v10046_v55  ;;  %v1719_v5 = vshrl.u32 %v6817_v28, 16  ;;  %v1990_v58 = vshrl.u32 %v6851_v4, 16  ;;  %v786_v38 = vrot.slane %v784_v43, 7 }
 0x159   :  { %3201 = vrot.lane.b32.xlu1 %v3158_v14, %s7394_s20  ;;  %v1027_v16 = vsel %vm7499_vm5, %v138_v59, %v378_v18  ;;  %v1856_v62 = vrot.slane %v6817_v28, 2  ;;  %v3576_v3 = vsel %vm3566_vm1, %v3543_v31, %v10155_v50  ;;  %v854_v39 = vrot.slane %v6851_v4, 7  ;;  %v7239_v50 = vld [vmem:[%s11847_s0 + $0x1a0] ss:$0 sps:$4 sm:$0x11]   ;;  %s7405_s0 = smov 80  }
 0x15a   :  { %v1163_v10 = vsel %vm991_vm0, %v1027_v16, %v446_v48  ;;  %v1822_v56 = vrot.slane %v1719_v5, 1  ;;  %v1992_v2 = vrot.slane %v1990_v58, 6  ;;  %v3606_v42 = vrot.slane %v3582_v13, 4 }
 0x15b   :  { %v1201_v55 = vsel %vm7517_vm9, %v1163_v10, %v480_v12  ;;  %v2196_v60 = vsel %vm7499_vm5, %v1719_v5, %v446_v48  ;;  %v3620_v54 = vsel %vm1513_vm7, %v3576_v3, %v3604_v32  ;;  %v2060_v35 = vrot.slane %v1990_v58, 7 }
 0x15c   :  { %v1337_v59 = vsel %vm11891_vm2, %v1201_v55, %v650_v49  ;;  %v2331_v1 = vsel %vm991_vm0, %v2196_v60, %v1822_v56  ;;  %v3547_v24 = vsel %vm11949_vm14, %v3514_v29, %v10165_v51  ;;  %7076 = vmatprep.mubr.msk.bf16.mxu0 %vm3658_vm8, %v3620_v54  ;;  %v3169_v28 = vrot.slane %v3167_v27, 1  ;;  %v10334_v29 = vpop.permute.xlu1 %3017 }
 0x15d   :  { %v1375_v4 = vsel %vm7534_vm10, %v1337_v59, %v786_v38  ;;  %3285 = vrot.lane.b32.xlu1 %v9976_v33, %s7396_s28  ;;  %v2366_v20 = vsel %vm7517_vm9, %v2331_v1, %v1856_v62  ;;  %v3580_v32 = vsel %vm3566_vm1, %v3547_v24, %v10233_v15  ;;  %v2160_v51 = vshrl.u32 %v7239_v50, 16 }
 0x15e   :  { %v1511_v53 = vsel %vm11890_vm4, %v1375_v4, %v854_v39  ;;  %v2501_v34 = vsel %vm11891_vm2, %v2366_v20, %v1992_v2  ;;  %v3622_v14 = vsel %vm1513_vm7, %v3580_v32, %v3606_v42  ;;  %v3170_v15 = vor.u32 %v3169_v28, %v3165_v21  ;;  %v10336_v11 = vpop.permute.xlu0 %2973 }
 0x15f   :  { %v1549_v27 = vsel %vm7557_vm11, %v1511_v53, %v784_v43  ;;  %v2536_v0 = vsel %vm7534_vm10, %v2501_v34, %v854_v39  ;;  %7077 = vmatmul.mubr.msk.bf16.gmra.mrb[4].mxu0 %vm3658_vm8, %v3622_v14  ;;  %v2162_v48 = vrot.slane %v2160_v51, 4  ;;  %vm3807_vm10 = vcmask 60416  }
 0x160   :  { %v1652_v33 = vsel %vm1513_vm7, %v1549_v27, %v7239_v50  ;;  %v2671_v25 = vsel %vm11890_vm4, %v2536_v0, %v2060_v35  ;;  %v10345_v18 = vpop.permute.xlu1 %3195  ;;  %v7398_v5 = vmov 0   ;;  %vm11952_vm14 = vcmask 97280  }
 0x161   :  { %3255 = vrot.lane.b32.xlu0 %v1652_v33, %s7395_s17  ;;  %3249 = vrot.lane.b32.xlu1 %v9815_v19, %s7395_s17  ;;  %v2706_v26 = vsel %vm7557_vm11, %v2671_v25, %v10245_v41  ;;  %v3299_v43 = vshll.u32 %v1652_v33, 16  ;;  %v3297_v31 = vshrl.u32 %v1652_v33, 16  ;;  %vm3809_vm11 = vcmask 57344   ;;  %3815 = vst.msk [vmem:[#allocation2 + $0x18] sm:$0xf] %vm3807_vm10, %v7398_v5 }
 0x162   :  { %v2808_v21 = vsel %vm1513_vm7, %v2706_v26, %v2162_v48  ;;  %v10347_v12 = vpop.permute.xlu0 %3071  ;;  %3816 = vst.msk [vmem:[#allocation2 + $0x1c] sm:$0x1] %vm3809_vm11, %v7398_v5  ;;  %3810 = vst.msk [vmem:[#allocation2 + $0x4] sm:$0x1] %vm3809_vm11, %v7398_v5  ;;  %6176 = vmatprep.subr.bf16.mxu0 %v7398_v5  ;;  %vm11954_vm4 = vcmask 228352  }
 0x163   :  { %v3301_v49 = vrot.slane %v3299_v43, 1  ;;  %3808 = vst.msk [vmem:[#allocation2] sm:$0xf] %vm3807_vm10, %v7398_v5  ;;  %3811 = vst.msk [vmem:[#allocation2 + $0x8] sm:$0xf] %vm3807_vm10, %v7398_v5 }
 0x164   :  { %3812 = vst.msk [vmem:[#allocation2 + $0xc] sm:$0x1] %vm3809_vm11, %v7398_v5  ;;  %3814 = vst.msk [vmem:[#allocation2 + $0x14] sm:$0x1] %vm3809_vm11, %v7398_v5 }
 0x165   :  { %3205 = vrot.lane.b32.xlu0 %v3170_v15, %s7394_s20  ;;  %3329 = vrot.lane.b32.xlu1 %v10091_v37, %s7397_s16  ;;  %v3302_v36 = vor.u32 %v3301_v49, %v3297_v31  ;;  %3813 = vst.msk [vmem:[#allocation2 + $0x10] sm:$0xf] %vm3807_vm10, %v7398_v5  ;;  %3817 = vst.msk [vmem:[#allocation2 + $0x20] sm:$0xf] %vm3807_vm10, %v7398_v5 }
 0x166   :  { %3818 = vst.msk [vmem:[#allocation2 + $0x24] sm:$0x1] %vm3809_vm11, %v7398_v5  ;;  %3820 = vst.msk [vmem:[#allocation2 + $0x2c] sm:$0x1] %vm3809_vm11, %v7398_v5 }
 0x167   :  { %3819 = vst.msk [vmem:[#allocation2 + $0x28] sm:$0xf] %vm3807_vm10, %v7398_v5  ;;  %3821 = vst.msk [vmem:[#allocation2 + $0x30] sm:$0xf] %vm3807_vm10, %v7398_v5 }
 0x168   :  { %3822 = vst.msk [vmem:[#allocation2 + $0x34] sm:$0x1] %vm3809_vm11, %v7398_v5  ;;  %3824 = vst.msk [vmem:[#allocation2 + $0x3c] sm:$0x1] %vm3809_vm11, %v7398_v5 }
 0x169   :  { %3289 = vrot.lane.b32.xlu0 %v2808_v21, %s7396_s28  ;;  %3283 = vrot.lane.b32.xlu1 %v9719_v6, %s7396_s28  ;;  %3823 = vst.msk [vmem:[#allocation2 + $0x38] sm:$0xf] %vm3807_vm10, %v7398_v5  ;;  %3825 = vst.msk [vmem:[#allocation2 + $0x40] sm:$0xf] %vm3807_vm10, %v7398_v5 }
 0x16a   :  { %3826 = vst.msk [vmem:[#allocation2 + $0x44] sm:$0x1] %vm3809_vm11, %v7398_v5  ;;  %3830 = vst.msk [vmem:[#allocation2 + $0x54] sm:$0x1] %vm3809_vm11, %v7398_v5  ;;  %v4174_v62 = vld [vmem:[#allocation2] sm:$0xf] }
 0x16b   :  { %v10358_v41 = vpop.permute.xlu0 %3021  ;;  %3829 = vst.msk [vmem:[#allocation2 + $0x50] sm:$0xf] %vm3807_vm10, %v7398_v5  ;;  %3831 = vst.msk [vmem:[#allocation2 + $0x58] sm:$0xf] %vm3807_vm10, %v7398_v5  ;;  %v6914_v39 = vcombine.low %v4174_v62, %v4174_v62 }
 0x16c   :  { %v10356_v37 = vpop.permute.xlu1 %3065  ;;  %3832 = vst.msk [vmem:[#allocation2 + $0x5c] sm:$0x1] %vm3809_vm11, %v7398_v5  ;;  %3834 = vst.msk [vmem:[#allocation2 + $0x64] sm:$0x1] %vm3809_vm11, %v7398_v5 }
 0x16d   :  { %3253 = vrot.lane.b32.xlu0 %v9791_v40, %s7395_s17  ;;  %3287 = vrot.lane.b32.xlu1 %v9811_v61, %s7396_s28  ;;  %3833 = vst.msk [vmem:[#allocation2 + $0x60] sm:$0xf] %vm3807_vm10, %v7398_v5  ;;  %3835 = vst.msk [vmem:[#allocation2 + $0x68] sm:$0xf] %vm3807_vm10, %v7398_v5  ;;  %v11950_v61 = vld [vmem:[#allocation20_spill] sm:$0xff]  ;;  %v4354_v55 = vrot.slane %v6914_v39, 1 }
 0x16e   :  { %3836 = vst.msk [vmem:[#allocation2 + $0x6c] sm:$0x1] %vm3809_vm11, %v7398_v5  ;;  %3838 = vst.msk [vmem:[#allocation2 + $0x74] sm:$0x1] %vm3809_vm11, %v7398_v5  ;;  %v4642_v42 = vshrl.u32 %v6914_v39, 16  ;;  %v4732_v50 = vrot.slane %v6914_v39, 2 }
 0x16f   :  { %v10365_v6 = vpop.permute.xlu0 %3199  ;;  %3837 = vst.msk [vmem:[#allocation2 + $0x70] sm:$0xf] %vm3807_vm10, %v7398_v5  ;;  %3839 = vst.msk [vmem:[#allocation2 + $0x78] sm:$0xf] %vm3807_vm10, %v7398_v5  ;;  %v4265_v14 = vshll.u32 %v6914_v39, 16 }
 0x170   :  { %v10363_v13 = vpop.permute.xlu1 %3243  ;;  %3840 = vst.msk [vmem:[#allocation2 + $0x7c] sm:$0x1] %vm3809_vm11, %v7398_v5  ;;  %3842 = vst.msk [vmem:[#allocation2 + $0x84] sm:$0x1] %vm3809_vm11, %v7398_v5  ;;  %v4714_v24 = vrot.slane %v4642_v42, 1  ;;  %v4840_v28 = vsel %vm7499_vm5, %v4642_v42, %v4354_v55 }
 0x171   :  { %3333 = vrot.lane.b32.xlu0 %v3302_v36, %s7397_s16  ;;  %3331 = vrot.lane.b32.xlu1 %v9898_v45, %s7397_s16  ;;  %3841 = vst.msk [vmem:[#allocation2 + $0x80] sm:$0xf] %vm3807_vm10, %v7398_v5  ;;  %3843 = vst.msk [vmem:[#allocation2 + $0x88] sm:$0xf] %vm3807_vm10, %v7398_v5  ;;  %v4267_v21 = vrot.slane %v4265_v14, 1  ;;  %v4372_v31 = vrot.slane %v4265_v14, 2 }
 0x172   :  { %3844 = vst.msk [vmem:[#allocation2 + $0x8c] sm:$0x1] %vm3809_vm11, %v7398_v5  ;;  %3846 = vst.msk [vmem:[#allocation2 + $0x94] sm:$0x1] %vm3809_vm11, %v7398_v5  ;;  %v4192_v3 = vld [vmem:[#allocation2 + $0x50] sm:$0xf]  ;;  %v4860_v53 = vsel %vm991_vm0, %v4840_v28, %v4714_v24 }
 0x173   :  { %3845 = vst.msk [vmem:[#allocation2 + $0x90] sm:$0xf] %vm3807_vm10, %v7398_v5  ;;  %v10444_v58 = vpop.permute.xlu0 %3069  ;;  %v7241_v10 = vld [vmem:[#allocation2 + $0x4] ss:$0 sps:$4 sm:$0x11]   ;;  %v6923_v56 = vcombine.low %v4192_v3, %v4192_v3  ;;  %v4930_v33 = vsel %vm7517_vm9, %v4860_v53, %v4732_v50 }
 0x174   :  { %v10442_v45 = vpop.permute.xlu1 %3193  ;;  %v7243_v60 = vld [vmem:[#allocation2 + $0x54] ss:$0 sps:$4 sm:$0x11]   ;;  %v4769_v59 = vshrl.u32 %v7241_v10, 16  ;;  %v4462_v36 = vrot.slane %v7241_v10, 6 }
 0x175   :  { %3327 = vrot.lane.b32.xlu0 %v11950_v61, %s7397_s16  ;;  %v4363_v35 = vrot.slane %v6923_v56, 1  ;;  %v4660_v1 = vshrl.u32 %v6923_v56, 16  ;;  %v4741_v32 = vrot.slane %v6923_v56, 2  ;;  %v4805_v51 = vshrl.u32 %v7243_v60, 16 }
 0x176   :  { %v4771_v4 = vrot.slane %v4769_v59, 6  ;;  %v4301_v15 = vshll.u32 %v6923_v56, 16  ;;  %v4471_v61 = vrot.slane %v7243_v60, 6  ;;  %v4480_v56 = vsel %vm7499_vm5, %v4174_v62, %v4267_v21 }
 0x177   :  { %v4723_v20 = vrot.slane %v4660_v1, 1  ;;  %v4849_v34 = vsel %vm7499_vm5, %v4660_v1, %v4363_v35  ;;  %v4807_v26 = vrot.slane %v4805_v51, 6  ;;  %v4500_v1 = vsel %vm991_vm0, %v4480_v56, %v4354_v55 }
 0x178   :  { %v10446_v38 = vpop.permute.xlu1 %3277  ;;  %v4950_v48 = vsel %vm11891_vm2, %v4930_v33, %v4771_v4  ;;  %v4303_v49 = vrot.slane %v4301_v15, 1  ;;  %v4381_v42 = vrot.slane %v4301_v15, 2  ;;  %v4570_v10 = vsel %vm7517_vm9, %v4500_v1, %v4372_v31  ;;  %v11953_v31 = vld [vmem:[#allocation18_spill] sm:$0xff] }
 0x179   :  { %v4896_v25 = vsel %vm991_vm0, %v4849_v34, %v4723_v20  ;;  %5010 = vrot.lane.b32.xlu0 %v4950_v48, %s7393_s13  ;;  %v10483_v4 = vsel %vm11891_vm2, %v4570_v10, %v4462_v36  ;;  %v11951_v34 = vld [vmem:[#allocation14_spill] sm:$0xff] }
 0x17a   :  { %v4939_v43 = vsel %vm7517_vm9, %v4896_v25, %v4741_v32  ;;  %v4489_v59 = vsel %vm7499_vm5, %v4192_v3, %v4303_v49  ;;  %v5026_v55 = vshrl.u32 %v10483_v4, 16  ;;  %v3355_v14 = vsel %vm3335_vm12, %v11951_v34, %v9995_v7 }
 0x17b   :  { %v10448_v16 = vpop.permute.xlu0 %3247  ;;  %v4977_v39 = vsel %vm11891_vm2, %v4939_v43, %v4807_v26  ;;  %v4536_v24 = vsel %vm991_vm0, %v4489_v59, %v4363_v35  ;;  %v5028_v35 = vshll.u32 %v10483_v4, 16  ;;  %v3388_v15 = vsel %vm3368_vm13, %v3355_v14, %v10097_v30 }
 0x17c   :  { %v10450_v2 = vpop.permute.xlu1 %3241  ;;  %v4579_v60 = vsel %vm7517_vm9, %v4536_v24, %v4381_v42  ;;  %v3421_v26 = vsel %vm11952_vm14, %v3388_v15, %v10247_v52  ;;  %v3353_v7 = vsel %vm3335_vm12, %v11953_v31, %v10197_v57 }
 0x17d   :  { %5018 = vrot.lane.b32.xlu0 %v4977_v39, %s7393_s13  ;;  %v10486_v62 = vsel %vm11891_vm2, %v4579_v60, %v4471_v61  ;;  %v5030_v32 = vrot.slane %v5028_v35, 1  ;;  %v3454_v21 = vsel %vm3434_vm15, %v3421_v26, %v10301_v44  ;;  %v3386_v30 = vsel %vm3368_vm13, %v3353_v7, %v10275_v63  ;;  %v11955_v63 = vld [vmem:[#allocation16_spill] sm:$0xff] }
 0x17e   :  { %v5052_v20 = vshll.u32 %v10486_v62, 16  ;;  %v5050_v53 = vshrl.u32 %v10486_v62, 16  ;;  %v3487_v49 = vsel %vm3467_vm3, %v3454_v21, %v10345_v18  ;;  %v3419_v52 = vsel %vm11952_vm14, %v3386_v30, %v10334_v29 }
 0x17f   :  { %v10452_v54 = vpop.permute.xlu0 %3197  ;;  %v5031_v25 = vor.u32 %v5030_v32, %v5026_v55  ;;  %v3520_v36 = vsel %vm3500_vm6, %v3487_v49, %v10363_v13  ;;  %v3452_v57 = vsel %vm3434_vm15, %v3419_v52, %v10356_v37  ;;  %v3359_v42 = vsel %vm3335_vm12, %v11955_v63, %v10109_v47 }
 0x180   :  { %v3322_v0 = vpop.permute.xlu1 %3321  ;;  %v5054_v51 = vrot.slane %v5052_v20, 1  ;;  %v3553_v61 = vsel %vm11954_vm4, %v3520_v36, %v10446_v38  ;;  %v3485_v13 = vsel %vm3467_vm3, %v3452_v57, %v10442_v45  ;;  %v3392_v29 = vsel %vm3368_vm13, %v3359_v42, %v10190_v9  ;;  %vm11956_vm4 = vmmov %vm11952_vm14  ;;  %v11958_v45 = vld [vmem:[#allocation19_spill] sm:$0xff] }
 0x181   :  { %5074 = vrot.lane.b32.xlu0 %v5031_v25, %s7391_s23  ;;  %v3586_v18 = vsel %vm3566_vm1, %v3553_v61, %v3322_v0  ;;  %v3518_v38 = vsel %vm3500_vm6, %v3485_v13, %v10450_v2  ;;  %v3425_v56 = vsel %vm11956_vm4, %v3392_v29, %v10311_v46  ;;  %vm11957_vm14 = vcmask 228352  }
 0x182   :  { %v5055_v43 = vor.u32 %v5054_v51, %v5050_v53  ;;  %v3608_v37 = vrot.slane %v3586_v18, 4  ;;  %v3458_v1 = vsel %vm3434_vm15, %v3425_v56, %v10347_v12  ;;  %v3357_v24 = vsel %vm3335_vm12, %v11958_v45, %v10282_v22  ;;  %vm11959_vm2 = vmmov %vm11957_vm14 }
 0x183   :  { %v10459_v27 = vpop.permute.xlu0 %3281  ;;  %v3491_v9 = vsel %vm3467_vm3, %v3458_v1, %v10365_v6  ;;  %v3390_v46 = vsel %vm3368_vm13, %v3357_v24, %v10336_v11 }
 0x184   :  { %v3246_v28 = vpop.permute.xlu1 %3245  ;;  %v3524_v10 = vsel %vm3500_vm6, %v3491_v9, %v10448_v16  ;;  %v3423_v60 = vsel %vm11956_vm4, %v3390_v46, %v10358_v41 }
 0x185   :  { %5082 = vrot.lane.b32.xlu0 %v5055_v43, %s7391_s23  ;;  %v3557_v22 = vsel %vm11957_vm14, %v3524_v10, %v10459_v27  ;;  %v3456_v6 = vsel %vm3434_vm15, %v3423_v60, %v10444_v58 }
 0x186   :  { %v3489_v11 = vsel %vm3467_vm3, %v3456_v6, %v10452_v54 }
 0x187   :  { %v10469_v50 = vpop.permute.xlu0 %2851  ;;  %v3522_v16 = vsel %vm3500_vm6, %v3489_v11, %v3246_v28 }
 0x188   :  { %v3326_v33 = vpop.permute.xlu1 %3325 }
 0x189   :  { %v3590_v55 = vsel %vm3566_vm1, %v3557_v22, %v3326_v33 }
 0x18a   :  { %v3610_v35 = vrot.slane %v3590_v55, 4 }
 0x18b   :  { %v3276_v3 = vpop.permute.xlu0 %3275 }
 0x18c   :  { %v3551_v0 = vsel %vm11957_vm14, %v3518_v38, %v3276_v3 }
 0x18f   :  { %v10497_v48 = vpop.permute.xlu0 %2855 }
 0x190   :  { %v3367_v63 = vsel %vm3335_vm12, %v9791_v40, %v10497_v48  ;;  %v11963_v48 = vld [vmem:[#allocation21_spill] sm:$0xff] }
 0x193   :  { %v3280_v39 = vpop.permute.xlu0 %3279 }
 0x194   :  { %v3555_v20 = vsel %vm11959_vm2, %v3522_v16, %v3280_v39  ;;  %v3363_v39 = vsel %vm3335_vm12, %v9815_v19, %v10469_v50  ;;  %vm11960_vm2 = vmmov %vm11956_vm4 }
 0x195   :  { %vm11961_vm4 = vmmov %vm11960_vm2 }
 0x196   :  { %vm11962_vm14 = vmmov %vm11960_vm2 }
 0x197   :  { %v2980_v44 = vpop.permute.xlu1 %2979  ;;  %v2850_v12 = vpop.permute.xlu0 %2849 }
 0x198   :  { %v3396_v42 = vsel %vm3368_vm13, %v3363_v39, %v2980_v44  ;;  %v3361_v44 = vsel %vm3335_vm12, %v11963_v48, %v2850_v12  ;;  %v3915_v39 = vld [vmem:[#allocation2 + $0x18] sm:$0xf] }
 0x19b   :  { %v3320_v59 = vpop.permute.xlu1 %3319 }
 0x19c   :  { %v3584_v47 = vsel %vm3566_vm1, %v3551_v0, %v3320_v59 }
 0x19d   :  { %v3624_v2 = vsel %vm1513_vm7, %v3584_v47, %v3608_v37  ;;  %v3028_v53 = vpop.permute.xlu0 %3027 }
 0x19e   :  { %7080 = vmatprep.mubr.msk.bf16.mxu0 %vm3658_vm8, %v3624_v2  ;;  %v3429_v38 = vsel %vm11960_vm2, %v3396_v42, %v3028_v53 }
 0x19f   :  { %v2984_v3 = vpop.permute.xlu1 %2983 }
 0x1a0   :  { %v3400_v13 = vsel %vm3368_vm13, %v3367_v63, %v2984_v3  ;;  %v3918_v63 = vld [vmem:[#allocation2 + $0x1c] sm:$0x1] }
 0x1a2   :  { %v2854_v51 = vpop.permute.xlu0 %2853 }
 0x1a3   :  { %v3324_v32 = vpop.permute.xlu1 %3323  ;;  %v3365_v29 = vsel %vm3335_vm12, %v10055_v23, %v2854_v51 }
 0x1a4   :  { %v3588_v41 = vsel %vm3566_vm1, %v3555_v20, %v3324_v32 }
 0x1a5   :  { %v3626_v27 = vsel %vm1513_vm7, %v3588_v41, %v3610_v35 }
 0x1a6   :  { %7081 = vmatmul.mubr.msk.bf16.gmra.mrb[8].mxu0 %vm3658_vm8, %v3626_v27 }
 0x1a7   :  { %v2978_v58 = vpop.permute.xlu1 %2977 }
 0x1a8   :  { %v3394_v45 = vsel %vm3368_vm13, %v3361_v44, %v2978_v58 }
 0x1ac   :  { %v3032_v34 = vpop.permute.xlu0 %3031  ;;  %v3076_v14 = vpop.permute.xlu1 %3075 }
 0x1ad   :  { %v3433_v56 = vsel %vm11961_vm4, %v3400_v13, %v3032_v34  ;;  %v3462_v19 = vsel %vm3434_vm15, %v3429_v38, %v3076_v14  ;;  %vm11964_vm4 = vcmask 228352  }
 0x1ae   :  { %vm11966_vm12 = vmmov %vm11964_vm4 }
 0x1b0   :  { %v2982_v33 = vpop.permute.xlu0 %2981 }
 0x1b1   :  { %v3398_v37 = vsel %vm3368_vm13, %v3365_v29, %v2982_v33  ;;  %v10605_v33 = vld [vmem:[%s11849_s2] ss:$0 sm:$0xff] }
 0x1b5   :  { %v3026_v25 = vpop.permute.xlu1 %3025 }
 0x1b6   :  { %v3427_v46 = vsel %vm11960_vm2, %v3394_v45, %v3026_v25  ;;  %vm11967_vm2 = vmmov %vm11964_vm4  ;;  %v3934_v45 = vld [vmem:[#allocation2 + $0x20] sm:$0xf] }
 0x1b9   :  { %v3204_v15 = vpop.permute.xlu1 %3203 }
 0x1ba   :  { %v3495_v1 = vsel %vm3467_vm3, %v3462_v19, %v3204_v15 }
 0x1bb   :  { %v3080_v54 = vpop.permute.xlu0 %3079 }
 0x1bc   :  { %v3466_v50 = vsel %vm3434_vm15, %v3433_v56, %v3080_v54 }
 0x1c2   :  { %v3030_v28 = vpop.permute.xlu0 %3029 }
 0x1c3   :  { %v3074_v26 = vpop.permute.xlu1 %3073  ;;  %v3431_v40 = vsel %vm11962_vm14, %v3398_v37, %v3030_v28  ;;  %vm11965_vm14 = vmmov %vm11964_vm4  ;;  %v3874_v37 = vld [vmem:[#allocation2 + $0x8] sm:$0xf] }
 0x1c4   :  { %v3460_v6 = vsel %vm3434_vm15, %v3427_v46, %v3074_v26 }
 0x1c6   :  { %v3208_v43 = vpop.permute.xlu0 %3207 }
 0x1c7   :  { %v3252_v21 = vpop.permute.xlu1 %3251  ;;  %v3499_v23 = vsel %vm3467_vm3, %v3466_v50, %v3208_v43 }
 0x1c8   :  { %v3528_v24 = vsel %vm3500_vm6, %v3495_v1, %v3252_v21 }
 0x1ca   :  { %v3078_v7 = vpop.permute.xlu0 %3077 }
 0x1cb   :  { %v3202_v31 = vpop.permute.xlu1 %3201  ;;  %v3464_v47 = vsel %vm3434_vm15, %v3431_v40, %v3078_v7  ;;  %v3879_v40 = vld [vmem:[#allocation2 + $0xc] sm:$0x1] }
 0x1cc   :  { %v3493_v35 = vsel %vm3467_vm3, %v3460_v6, %v3202_v31  ;;  %v3895_v6 = vld [vmem:[#allocation2 + $0x10] sm:$0xf] }
 0x1cf   :  { %v3286_v49 = vpop.permute.xlu1 %3285 }
 0x1d0   :  { %v3561_v10 = vsel %vm11964_vm4, %v3528_v24, %v3286_v49  ;;  %vm11970_vm4 = vsmask.f32 256 }
 0x1d3   :  { %v3256_v30 = vpop.permute.xlu0 %3255  ;;  %v3250_v36 = vpop.permute.xlu1 %3249 }
 0x1d4   :  { %v3532_v9 = vsel %vm3500_vm6, %v3499_v23, %v3256_v30  ;;  %v3526_v32 = vsel %vm3500_vm6, %v3493_v35, %v3250_v36 }
 0x1d7   :  { %v3206_v52 = vpop.permute.xlu0 %3205  ;;  %v3330_v61 = vpop.permute.xlu1 %3329 }
 0x1d8   :  { %v3497_v2 = vsel %vm3467_vm3, %v3464_v47, %v3206_v52  ;;  %v3594_v55 = vsel %vm3566_vm1, %v3561_v10, %v3330_v61  ;;  %vm3872_vm3 = vsmask.f32 7938 }
 0x1d9   :  { %v3612_v41 = vrot.slane %v3594_v55, 4  ;;  %v3898_v55 = vld [vmem:[#allocation2 + $0x14] sm:$0x1] }
 0x1db   :  { %v3290_v57 = vpop.permute.xlu0 %3289  ;;  %v3284_v18 = vpop.permute.xlu1 %3283 }
 0x1dc   :  { %v3565_v12 = vsel %vm11965_vm14, %v3532_v9, %v3290_v57  ;;  %v3559_v27 = vsel %vm11967_vm2, %v3526_v32, %v3284_v18  ;;  %vm10635_vm14 = vmand %vm3809_vm11, %vm11970_vm4 }
 0x1df   :  { %v3254_v0 = vpop.permute.xlu0 %3253  ;;  %v3288_v59 = vpop.permute.xlu1 %3287 }
 0x1e0   :  { %v3530_v60 = vsel %vm3500_vm6, %v3497_v2, %v3254_v0  ;;  %v3937_v2 = vld [vmem:[#allocation2 + $0x24] sm:$0x1] }
 0x1e1   :  { %v3563_v16 = vsel %vm11966_vm12, %v3530_v60, %v3288_v59 }
 0x1e3   :  { %v3334_v22 = vpop.permute.xlu0 %3333  ;;  %v3332_v3 = vpop.permute.xlu1 %3331 }
 0x1e4   :  { %v3598_v11 = vsel %vm3566_vm1, %v3565_v12, %v3334_v22  ;;  %v3596_v20 = vsel %vm3566_vm1, %v3563_v16, %v3332_v3 }
 0x1e5   :  { %v3614_v53 = vrot.slane %v3598_v11, 4 }
 0x1e7   :  { %v3328_v51 = vpop.permute.xlu0 %3327  ;;  %v3630_v34 = vsel %vm1513_vm7, %v3596_v20, %v3614_v53 }
 0x1e8   :  { %v3592_v58 = vsel %vm3566_vm1, %v3559_v27, %v3328_v51 }
 0x1e9   :  { %v3628_v14 = vsel %vm1513_vm7, %v3592_v58, %v3612_v41 }
 0x1ea   :  { %7084 = vmatprep.mubr.msk.bf16.mxu0 %vm3658_vm8, %v3628_v14 }
 0x1eb   :  { %7085 = vmatmul.mubr.msk.bf16.gmra.mrb[12].mxu0 %vm3658_vm8, %v3630_v34  ;;  %v7074_v25 = vpop.f32.mrb[0].mxu0  ;;  %vm10629_vm8 = vmand %vm3807_vm10, %vm3872_vm3  ;;  %vm11973_vm10 = vcmask 1041408  }
 0x1ec   :  { %v3721_v54 = vadd.f32 %v7074_v25, %v10605_v33  ;;  %v3712_v15 = vpop.f32.mrb[1].mxu0  ;;  %vm11974_vm11 = vmmov %vm11973_vm10 }
 0x1ed   :  { %v3713_v28 = vadd.f32 %v10605_v33, %v3712_v15  ;;  %v7075_v26 = vpop.f32.mrb[2].mxu0  ;;  %vm11975_vm12 = vmmov %vm11973_vm10 }
 0x1ee   :  { %v3777_v43 = vmax.f32 %v3721_v54, 0.0  ;;  %v3724_v21 = vadd.f32 %v7075_v26, %v10605_v33  ;;  %v3715_v31 = vpop.f32.mrb[3].mxu0  ;;  %vm11976_vm2 = vmmov %vm11973_vm10 }
 0x1ef   :  { %v3775_v7 = vmax.f32 %v3713_v28, 0.0  ;;  %v3716_v49 = vadd.f32 %v10605_v33, %v3715_v31  ;;  %vm11977_vm3 = vmmov %vm11976_vm2 }
 0x1f0   :  { %3793 = vst.msk [vmem:[%s11856_s9 + $0x10] sm:$0xff] %vm3368_vm13, %v3777_v43  ;;  %v7005_v30 = vpack.c.bf16 %v3777_v43, %v3777_v43  ;;  %v3778_v36 = vmax.f32 %v3724_v21, 0.0  ;;  %vm11978_vm4 = vmmov %vm11976_vm2 }
 0x1f1   :  { %3791 = vst.msk [vmem:[%s11856_s9] sm:$0xff] %vm3368_vm13, %v3775_v7  ;;  %v7003_v52 = vpack.c.bf16 %v3775_v7, %v3775_v7  ;;  %v3776_v61 = vmax.f32 %v3716_v49, 0.0 }
 0x1f2   :  { %v3905_v57 = vshrl.u32 %v7005_v30, 16  ;;  %3794 = vst.msk [vmem:[%s11856_s9 + $0x18] sm:$0xff] %vm3368_vm13, %v3778_v36  ;;  %v7006_v18 = vpack.c.bf16 %v3778_v36, %v3778_v36  ;;  %v3908_v56 = vshll.u32 %v7005_v30, 16 }
 0x1f3   :  { %v3861_v42 = vshrl.u32 %v7003_v52, 16  ;;  %3792 = vst.msk [vmem:[%s11856_s9 + $0x8] sm:$0xff] %vm3368_vm13, %v3776_v61  ;;  %v7004_v13 = vpack.c.bf16 %v3776_v61, %v3776_v61  ;;  %v3864_v50 = vshll.u32 %v7003_v52, 16 }
 0x1f4   :  { %v3907_v38 = vrot.slane %v3905_v57, 7  ;;  %v3924_v0 = vshrl.u32 %v7006_v18, 16  ;;  %v3927_v47 = vshll.u32 %v7006_v18, 16 }
 0x1f5   :  { %v3863_v19 = vrot.slane %v3861_v42, 7  ;;  %v3885_v48 = vshrl.u32 %v7004_v13, 16  ;;  %v3888_v10 = vshll.u32 %v7004_v13, 16 }
 0x1f6   :  { %v3910_v44 = vor.u32 %v3908_v56, %v3907_v38  ;;  %v3911_v1 = vrot.slane %v3907_v38, 4  ;;  %v3926_v23 = vrot.slane %v3924_v0, 7 }
 0x1f7   :  { %v3866_v24 = vor.u32 %v3864_v50, %v3863_v19  ;;  %v3867_v9 = vrot.slane %v3863_v19, 4  ;;  %v3887_v46 = vrot.slane %v3885_v48, 7 }
 0x1f8   :  { %v3916_v12 = vsel %vm10629_vm8, %v3910_v44, %v3915_v39  ;;  %v3919_v60 = vsel %vm10635_vm14, %v3911_v1, %v3918_v63  ;;  %v3929_v22 = vor.u32 %v3927_v47, %v3926_v23  ;;  %v3930_v3 = vrot.slane %v3926_v23, 4 }
 0x1f9   :  { %3917 = vst [vmem:[#allocation2 + $0x18] sm:$0xf] %v3916_v12  ;;  %3920 = vst [vmem:[#allocation2 + $0x1c] sm:$0x1] %v3919_v60  ;;  %v3875_v11 = vsel %vm10629_vm8, %v3866_v24, %v3874_v37  ;;  %v3880_v16 = vsel %vm10635_vm14, %v3867_v9, %v3879_v40  ;;  %v3890_v35 = vor.u32 %v3888_v10, %v3887_v46  ;;  %v3891_v20 = vrot.slane %v3887_v46, 4 }
 0x1fa   :  { %3876 = vst [vmem:[#allocation2 + $0x8] sm:$0xf] %v3875_v11  ;;  %3881 = vst [vmem:[#allocation2 + $0xc] sm:$0x1] %v3880_v16  ;;  %v3935_v32 = vsel %vm10629_vm8, %v3929_v22, %v3934_v45  ;;  %v3938_v53 = vsel %vm10635_vm14, %v3930_v3, %v3937_v2 }
 0x1fb   :  { %3936 = vst [vmem:[#allocation2 + $0x20] sm:$0xf] %v3935_v32  ;;  %3939 = vst [vmem:[#allocation2 + $0x24] sm:$0x1] %v3938_v53  ;;  %v3896_v41 = vsel %vm10629_vm8, %v3890_v35, %v3895_v6  ;;  %v3899_v27 = vsel %vm10635_vm14, %v3891_v20, %v3898_v55 }
 0x1fc   :  { %3897 = vst [vmem:[#allocation2 + $0x10] sm:$0xf] %v3896_v41  ;;  %3900 = vst [vmem:[#allocation2 + $0x14] sm:$0x1] %v3899_v27 }
 0x200   :  { %v4180_v51 = vld [vmem:[#allocation2 + $0x18] sm:$0xf]  ;;  %v7245_v34 = vld [vmem:[#allocation2 + $0x1c] ss:$0 sps:$4 sm:$0x11]  }
 0x201   :  { %v6917_v58 = vcombine.low %v4180_v51, %v4180_v51  ;;  %v4176_v14 = vld [vmem:[#allocation2 + $0x8] sm:$0xf]  ;;  %v7247_v54 = vld [vmem:[#allocation2 + $0xc] ss:$0 sps:$4 sm:$0x11]   ;;  %v4781_v26 = vshrl.u32 %v7245_v34, 16 }
 0x202   :  { %v6915_v25 = vcombine.low %v4176_v14, %v4176_v14  ;;  %v4773_v31 = vshrl.u32 %v7247_v54, 16  ;;  %v10657_v52 = vld [vmem:[#allocation2 + $0x20] sm:$0xf]  ;;  %v10667_v50 = vld [vmem:[#allocation2 + $0x24] ss:$0 sps:$4 sm:$0x11]  }
 0x203   :  { %v4357_v15 = vrot.slane %v6917_v58, 1  ;;  %v4648_v28 = vshrl.u32 %v6917_v58, 16  ;;  %v4735_v49 = vrot.slane %v6917_v58, 2  ;;  %v4277_v36 = vshll.u32 %v6917_v58, 16  ;;  %v4178_v23 = vld [vmem:[#allocation2 + $0x10] sm:$0xf] }
 0x204   :  { %v4355_v43 = vrot.slane %v6915_v25, 1  ;;  %v4644_v21 = vshrl.u32 %v6915_v25, 16  ;;  %v4783_v61 = vrot.slane %v4781_v26, 6  ;;  %v4733_v18 = vrot.slane %v6915_v25, 2 }
 0x205   :  { %v4717_v7 = vrot.slane %v4648_v28, 1  ;;  %v4843_v30 = vsel %vm7499_vm5, %v4648_v28, %v4357_v15  ;;  %v4775_v42 = vrot.slane %v4773_v31, 6  ;;  %v4279_v13 = vrot.slane %v4277_v36, 1  ;;  %v7251_v55 = vld [vmem:[#allocation2 + $0x14] ss:$0 sps:$4 sm:$0x11]  }
 0x206   :  { %v4715_v57 = vrot.slane %v4644_v21, 1  ;;  %v4841_v39 = vsel %vm7499_vm5, %v4644_v21, %v4355_v43  ;;  %v4269_v38 = vshll.u32 %v6915_v25, 16  ;;  %v4375_v0 = vrot.slane %v4277_v36, 2 }
 0x207   :  { %v4872_v63 = vsel %vm991_vm0, %v4843_v30, %v4717_v7  ;;  %v6918_v19 = vcombine.low %v10657_v52, %v10657_v52  ;;  %v4483_v44 = vsel %vm7499_vm5, %v4180_v51, %v4279_v13  ;;  %v4465_v45 = vrot.slane %v7245_v34, 6 }
 0x208   :  { %v4933_v56 = vsel %vm7517_vm9, %v4872_v63, %v4735_v49  ;;  %v4864_v37 = vsel %vm991_vm0, %v4841_v39, %v4715_v57  ;;  %v4271_v1 = vrot.slane %v4269_v38, 1  ;;  %v4512_v24 = vsel %vm991_vm0, %v4483_v44, %v4357_v15 }
 0x209   :  { %v4959_v40 = vsel %vm11973_vm10, %v4933_v56, %v4783_v61  ;;  %v4931_v48 = vsel %vm7517_vm9, %v4864_v37, %v4733_v18  ;;  %v4358_v9 = vrot.slane %v6918_v19, 1  ;;  %v4573_v2 = vsel %vm7517_vm9, %v4512_v24, %v4375_v0  ;;  %vm11979_vm10 = vmmov %vm11976_vm2 }
 0x20a   :  { %5124 = vrot.lane.b32.xlu1 %v4959_v40, %s7397_s16  ;;  %v4953_v47 = vsel %vm11974_vm11, %v4931_v48, %v4775_v42  ;;  %v4373_v46 = vrot.slane %v4269_v38, 2  ;;  %v4481_v10 = vsel %vm7499_vm5, %v4176_v14, %v4271_v1  ;;  %v4650_v12 = vshrl.u32 %v6918_v19, 16  ;;  %vm11980_vm11 = vmmov %vm11976_vm2 }
 0x20b   :  { %5122 = vrot.lane.b32.xlu0 %v4953_v47, %s7397_s16  ;;  %v4463_v60 = vrot.slane %v7247_v54, 6  ;;  %v4504_v22 = vsel %vm991_vm0, %v4481_v10, %v4355_v43  ;;  %v4785_v3 = vshrl.u32 %v10667_v50, 16  ;;  %v6916_v6 = vcombine.low %v4178_v23, %v4178_v23 }
 0x20c   :  { %v4599_v11 = vsel %vm11975_vm12, %v4573_v2, %v4465_v45  ;;  %v4571_v16 = vsel %vm7517_vm9, %v4504_v22, %v4373_v46  ;;  %v4718_v35 = vrot.slane %v4650_v12, 1  ;;  %v4736_v32 = vrot.slane %v6918_v19, 2  ;;  %vm11981_vm12 = vmmov %vm11976_vm2 }
 0x20d   :  { %v4593_v20 = vsel %vm11976_vm2, %v4571_v16, %v4463_v60  ;;  %v4844_v53 = vsel %vm7499_vm5, %v4650_v12, %v4358_v9  ;;  %v4356_v41 = vrot.slane %v6916_v6, 1  ;;  %v4787_v27 = vrot.slane %v4785_v3, 6 }
 0x20e   :  { %5100 = vrot.lane.b32.xlu1 %v4599_v11, %s7395_s17  ;;  %v4876_v51 = vsel %vm991_vm0, %v4844_v53, %v4718_v35  ;;  %v4646_v34 = vshrl.u32 %v6916_v6, 16  ;;  %v4777_v14 = vshrl.u32 %v7251_v55, 16  ;;  %v4281_v54 = vshll.u32 %v6918_v19, 16  ;;  %v3996_v53 = vld [vmem:[#allocation2 + $0x3c] sm:$0x1] }
 0x20f   :  { %5098 = vrot.lane.b32.xlu0 %v4593_v20, %s7395_s17  ;;  %v4934_v58 = vsel %vm7517_vm9, %v4876_v51, %v4736_v32  ;;  %v4273_v26 = vshll.u32 %v6916_v6, 16  ;;  %v4734_v43 = vrot.slane %v6916_v6, 2  ;;  %v5146_v31 = vshll.u32 %v4599_v11, 16  ;;  %v3993_v32 = vld [vmem:[#allocation2 + $0x38] sm:$0xf] }
 0x210   :  { %v4962_v25 = vsel %vm11977_vm3, %v4934_v58, %v4787_v27  ;;  %v4716_v15 = vrot.slane %v4646_v34, 1  ;;  %v4842_v28 = vsel %vm7499_vm5, %v4646_v34, %v4356_v41  ;;  %v4283_v21 = vrot.slane %v4281_v54, 1  ;;  %v3954_v34 = vld [vmem:[#allocation2 + $0x28] sm:$0xf]  ;;  %vm11982_vm3 = vmmov %vm11976_vm2 }
 0x211   :  { %v4779_v7 = vrot.slane %v4777_v14, 6  ;;  %v4275_v30 = vrot.slane %v4273_v26, 1  ;;  %v4376_v61 = vrot.slane %v4281_v54, 2  ;;  %v4466_v42 = vrot.slane %v10667_v50, 6 }
 0x212   :  { %5014 = vrot.lane.b32.xlu1 %v4962_v25, %s7393_s13  ;;  %v4868_v49 = vsel %vm991_vm0, %v4842_v28, %v4716_v15  ;;  %v4484_v57 = vsel %vm7499_vm5, %v10657_v52, %v4283_v21  ;;  %v5148_v38 = vrot.slane %v5146_v31, 1  ;;  %v5140_v56 = vshll.u32 %v4593_v20, 16  ;;  %v3957_v15 = vld [vmem:[#allocation2 + $0x2c] sm:$0x1] }
 0x213   :  { %v4932_v36 = vsel %vm7517_vm9, %v4868_v49, %v4734_v43  ;;  %v4516_v39 = vsel %vm991_vm0, %v4484_v57, %v4358_v9  ;;  %v4482_v63 = vsel %vm7499_vm5, %v4178_v23, %v4275_v30  ;;  %v4374_v0 = vrot.slane %v4273_v26, 2 }
 0x214   :  { %v4956_v18 = vsel %vm11978_vm4, %v4932_v36, %v4779_v7  ;;  %v4574_v13 = vsel %vm7517_vm9, %v4516_v39, %v4376_v61  ;;  %v4508_v52 = vsel %vm991_vm0, %v4482_v63, %v4356_v41  ;;  %v5144_v19 = vshrl.u32 %v4599_v11, 16  ;;  %v4012_v7 = vld [vmem:[#allocation2 + $0x40] sm:$0xf]  ;;  %v4015_v36 = vld [vmem:[#allocation2 + $0x44] sm:$0x1]  ;;  %vm11983_vm4 = vmmov %vm11976_vm2 }
 0x215   :  { %5012 = vrot.lane.b32.xlu0 %v4956_v18, %s7393_s13  ;;  %v10716_v37 = vsel %vm11979_vm10, %v4574_v13, %v4466_v42  ;;  %v4572_v50 = vsel %vm7517_vm9, %v4508_v52, %v4374_v0  ;;  %v4464_v40 = vrot.slane %v7251_v55, 6  ;;  %v5142_v44 = vrot.slane %v5140_v56, 1  ;;  %v3973_v13 = vld [vmem:[#allocation2 + $0x30] sm:$0xf]  ;;  %vm11984_vm10 = vmmov %vm11976_vm2 }
 0x216   :  { %5230 = vrot.lane.b32.xlu1 %v4962_v25, %s7399_s21  ;;  %v5149_v48 = vor.u32 %v5148_v38, %v5144_v19  ;;  %v5138_v23 = vshrl.u32 %v4593_v20, 16  ;;  %v3976_v38 = vld [vmem:[#allocation2 + $0x34] sm:$0x1] }
 0x217   :  { %v10724_v1 = vsel %vm11980_vm11, %v4572_v50, %v4464_v40  ;;  %vm11985_vm11 = vmmov %vm11976_vm2 }
 0x218   :  { %v5143_v47 = vor.u32 %v5142_v44, %v5138_v23 }
 0x219   :  { %5228 = vrot.lane.b32.xlu0 %v4956_v18, %s7399_s21 }
 0x21a   :  { %5212 = vrot.lane.b32.xlu1 %v10716_v37, %s7400_s25 }
 0x21d   :  { %5210 = vrot.lane.b32.xlu0 %v10724_v1, %s7400_s25 }
 0x21e   :  { %5188 = vrot.lane.b32.xlu1 %v5149_v48, %s7401_s27 }
 0x221   :  { %5186 = vrot.lane.b32.xlu0 %v5143_v47, %s7401_s27 }
 0x232   :  { %v7078_v45 = vpop.f32.mrb[4].mxu0 }
 0x233   :  { %v3737_v24 = vadd.f32 %v7078_v45, %v10605_v33  ;;  %v3728_v9 = vpop.f32.mrb[5].mxu0 }
 0x234   :  { %v3729_v2 = vadd.f32 %v10605_v33, %v3728_v9  ;;  %v7079_v46 = vpop.f32.mrb[6].mxu0 }
 0x235   :  { %v3781_v10 = vmax.f32 %v3737_v24, 0.0  ;;  %v3740_v12 = vadd.f32 %v7079_v46, %v10605_v33  ;;  %v3731_v60 = vpop.f32.mrb[7].mxu0 }
 0x236   :  { %v3779_v22 = vmax.f32 %v3729_v2, 0.0  ;;  %v3732_v3 = vadd.f32 %v10605_v33, %v3731_v60 }
 0x237   :  { %3797 = vst.msk [vmem:[%s11856_s9 + $0x30] sm:$0xff] %vm3368_vm13, %v3781_v10  ;;  %v7009_v6 = vpack.c.bf16 %v3781_v10, %v3781_v10  ;;  %v3782_v55 = vmax.f32 %v3740_v12, 0.0  ;;  %v5040_v12 = vshll.u32 %v10716_v37, 16 }
 0x238   :  { %3795 = vst.msk [vmem:[%s11856_s9 + $0x20] sm:$0xff] %vm3368_vm13, %v3779_v22  ;;  %v7007_v11 = vpack.c.bf16 %v3779_v22, %v3779_v22  ;;  %v3780_v16 = vmax.f32 %v3732_v3, 0.0 }
 0x239   :  { %v3983_v35 = vshrl.u32 %v7009_v6, 16  ;;  %3798 = vst.msk [vmem:[%s11856_s9 + $0x38] sm:$0xff] %vm3368_vm13, %v3782_v55  ;;  %v7010_v20 = vpack.c.bf16 %v3782_v55, %v3782_v55  ;;  %v3986_v58 = vshll.u32 %v7009_v6, 16 }
 0x23a   :  { %v3944_v41 = vshrl.u32 %v7007_v11, 16  ;;  %3796 = vst.msk [vmem:[%s11856_s9 + $0x28] sm:$0xff] %vm3368_vm13, %v3780_v16  ;;  %v7008_v27 = vpack.c.bf16 %v3780_v16, %v3780_v16  ;;  %v3947_v54 = vshll.u32 %v7007_v11, 16 }
 0x23b   :  { %v3985_v51 = vrot.slane %v3983_v35, 7  ;;  %v4002_v14 = vshrl.u32 %v7010_v20, 16  ;;  %v4005_v31 = vshll.u32 %v7010_v20, 16  ;;  %v5042_v20 = vrot.slane %v5040_v12, 1 }
 0x23c   :  { %v3946_v25 = vrot.slane %v3944_v41, 7  ;;  %v3963_v28 = vshrl.u32 %v7008_v27, 16  ;;  %v3966_v57 = vshll.u32 %v7008_v27, 16 }
 0x23d   :  { %v3988_v26 = vor.u32 %v3986_v58, %v3985_v51  ;;  %v3989_v43 = vrot.slane %v3985_v51, 4  ;;  %v4004_v21 = vrot.slane %v4002_v14, 7  ;;  %v5038_v51 = vshrl.u32 %v10716_v37, 16 }
 0x23e   :  { %v3949_v49 = vor.u32 %v3947_v54, %v3946_v25  ;;  %v3950_v30 = vrot.slane %v3946_v25, 4  ;;  %v3965_v61 = vrot.slane %v3963_v28, 7 }
 0x23f   :  { %v3994_v18 = vsel %vm10629_vm8, %v3988_v26, %v3993_v32  ;;  %v3997_v39 = vsel %vm10635_vm14, %v3989_v43, %v3996_v53  ;;  %v4007_v63 = vor.u32 %v4005_v31, %v4004_v21  ;;  %v4008_v42 = vrot.slane %v4004_v21, 4 }
 0x240   :  { %3995 = vst [vmem:[#allocation2 + $0x38] sm:$0xf] %v3994_v18  ;;  %3998 = vst [vmem:[#allocation2 + $0x3c] sm:$0x1] %v3997_v39  ;;  %v3955_v52 = vsel %vm10629_vm8, %v3949_v49, %v3954_v34  ;;  %v3958_v56 = vsel %vm10635_vm14, %v3950_v30, %v3957_v15  ;;  %v3968_v0 = vor.u32 %v3966_v57, %v3965_v61  ;;  %v3969_v19 = vrot.slane %v3965_v61, 4 }
 0x241   :  { %3956 = vst [vmem:[#allocation2 + $0x28] sm:$0xf] %v3955_v52  ;;  %3959 = vst [vmem:[#allocation2 + $0x2c] sm:$0x1] %v3958_v56  ;;  %v4013_v50 = vsel %vm10629_vm8, %v4007_v63, %v4012_v7  ;;  %v4016_v40 = vsel %vm10635_vm14, %v4008_v42, %v4015_v36  ;;  %v5043_v25 = vor.u32 %v5042_v20, %v5038_v51  ;;  %v5034_v18 = vshll.u32 %v10724_v1, 16 }
 0x242   :  { %4014 = vst [vmem:[#allocation2 + $0x40] sm:$0xf] %v4013_v50  ;;  %4017 = vst [vmem:[#allocation2 + $0x44] sm:$0x1] %v4016_v40  ;;  %v3974_v48 = vsel %vm10629_vm8, %v3968_v0, %v3973_v13  ;;  %v3977_v44 = vsel %vm10635_vm14, %v3969_v19, %v3976_v38  ;;  %v5032_v0 = vshrl.u32 %v10724_v1, 16 }
 0x243   :  { %3975 = vst [vmem:[#allocation2 + $0x30] sm:$0xf] %v3974_v48  ;;  %3978 = vst [vmem:[#allocation2 + $0x34] sm:$0x1] %v3977_v44  ;;  %v5036_v13 = vrot.slane %v5034_v18, 1 }
 0x245   :  { %v5037_v44 = vor.u32 %v5036_v13, %v5032_v0 }
 0x247   :  { %v4188_v23 = vld [vmem:[#allocation2 + $0x38] sm:$0xf]  ;;  %v7253_v45 = vld [vmem:[#allocation2 + $0x3c] ss:$0 sps:$4 sm:$0x11]  }
 0x248   :  { %v6921_v47 = vcombine.low %v4188_v23, %v4188_v23  ;;  %v4184_v24 = vld [vmem:[#allocation2 + $0x28] sm:$0xf]  ;;  %v4797_v46 = vshrl.u32 %v7253_v45, 16  ;;  %v7255_v34 = vld [vmem:[#allocation2 + $0x2c] ss:$0 sps:$4 sm:$0x11]  }
 0x249   :  { %v6919_v10 = vcombine.low %v4184_v24, %v4184_v24  ;;  %v4469_v26 = vrot.slane %v7253_v45, 6  ;;  %v4789_v43 = vshrl.u32 %v7255_v34, 16  ;;  %v4190_v49 = vld [vmem:[#allocation2 + $0x40] sm:$0xf] }
 0x24a   :  { %v4361_v9 = vrot.slane %v6921_v47, 1  ;;  %v4656_v2 = vshrl.u32 %v6921_v47, 16  ;;  %v4293_v60 = vshll.u32 %v6921_v47, 16  ;;  %v4739_v6 = vrot.slane %v6921_v47, 2  ;;  %v4186_v56 = vld [vmem:[#allocation2 + $0x30] sm:$0xf] }
 0x24b   :  { %v4799_v11 = vrot.slane %v4797_v46, 6  ;;  %v4652_v35 = vshrl.u32 %v6919_v10, 16  ;;  %v4359_v41 = vrot.slane %v6919_v10, 1  ;;  %v4737_v31 = vrot.slane %v6919_v10, 2 }
 0x24c   :  { %v4721_v22 = vrot.slane %v4656_v2, 1  ;;  %v4847_v3 = vsel %vm7499_vm5, %v4656_v2, %v4361_v9  ;;  %v4295_v55 = vrot.slane %v4293_v60, 1  ;;  %v4379_v54 = vrot.slane %v4293_v60, 2  ;;  %v7257_v50 = vld [vmem:[#allocation2 + $0x44] ss:$0 sps:$4 sm:$0x11]  }
 0x24d   :  { %v4719_v14 = vrot.slane %v4652_v35, 1  ;;  %v4845_v15 = vsel %vm7499_vm5, %v4652_v35, %v4359_v41  ;;  %v4285_v7 = vshll.u32 %v6919_v10, 16  ;;  %v4791_v61 = vrot.slane %v4789_v43, 6 }
 0x24e   :  { %v4888_v16 = vsel %vm991_vm0, %v4847_v3, %v4721_v22  ;;  %v4487_v53 = vsel %vm7499_vm5, %v4188_v23, %v4295_v55  ;;  %v6922_v57 = vcombine.low %v4190_v49, %v4190_v49  ;;  %v6920_v48 = vcombine.low %v4186_v56, %v4186_v56  ;;  %v7259_v55 = vld [vmem:[#allocation2 + $0x34] ss:$0 sps:$4 sm:$0x11]  }
 0x24f   :  { %v4937_v32 = vsel %vm7517_vm9, %v4888_v16, %v4739_v6  ;;  %v4528_v58 = vsel %vm991_vm0, %v4487_v53, %v4361_v9  ;;  %v4880_v21 = vsel %vm991_vm0, %v4845_v15, %v4719_v14  ;;  %v4287_v39 = vrot.slane %v4285_v7, 1 }
 0x250   :  { %v4971_v27 = vsel %vm11981_vm12, %v4937_v32, %v4799_v11  ;;  %v4577_v28 = vsel %vm7517_vm9, %v4528_v58, %v4379_v54  ;;  %v4935_v36 = vsel %vm7517_vm9, %v4880_v21, %v4737_v31  ;;  %v4658_v42 = vshrl.u32 %v6922_v57, 16  ;;  %vm11986_vm12 = vmmov %vm11976_vm2 }
 0x251   :  { %5128 = vrot.lane.b32.xlu1 %v4971_v27, %s7397_s16  ;;  %v10785_v30 = vsel %vm11976_vm2, %v4577_v28, %v4469_v26  ;;  %v4965_v63 = vsel %vm11982_vm3, %v4935_v36, %v4791_v61  ;;  %v4485_v38 = vsel %vm7499_vm5, %v4184_v24, %v4287_v39  ;;  %v4362_v52 = vrot.slane %v6922_v57, 1  ;;  %vm11987_vm3 = vmmov %vm11976_vm2 }
 0x252   :  { %v4520_v19 = vsel %vm991_vm0, %v4485_v38, %v4359_v41  ;;  %v4722_v40 = vrot.slane %v4658_v42, 1  ;;  %v4377_v23 = vrot.slane %v4285_v7, 2  ;;  %v4467_v24 = vrot.slane %v7255_v34, 6 }
 0x253   :  { %v4848_v47 = vsel %vm7499_vm5, %v4658_v42, %v4362_v52  ;;  %v4801_v9 = vshrl.u32 %v7257_v50, 16  ;;  %v4654_v46 = vshrl.u32 %v6920_v48, 16  ;;  %v4740_v10 = vrot.slane %v6922_v57, 2 }
 0x254   :  { %v4575_v45 = vsel %vm7517_vm9, %v4520_v19, %v4377_v23  ;;  %v4892_v2 = vsel %vm991_vm0, %v4848_v47, %v4722_v40  ;;  %v4360_v12 = vrot.slane %v6920_v48, 1  ;;  %v4297_v60 = vshll.u32 %v6922_v57, 16 }
 0x255   :  { %5078 = vrot.lane.b32.xlu1 %v5043_v25, %s7391_s23  ;;  %v10806_v22 = vsel %vm11983_vm4, %v4575_v45, %v4467_v24  ;;  %v4938_v3 = vsel %vm7517_vm9, %v4892_v2, %v4740_v10  ;;  %v4803_v6 = vrot.slane %v4801_v9, 6  ;;  %v4720_v11 = vrot.slane %v4654_v46, 1  ;;  %v4071_v10 = vld [vmem:[#allocation2 + $0x68] sm:$0xf]  ;;  %vm11988_vm4 = vmmov %vm11976_vm2 }
 0x256   :  { %v4846_v16 = vsel %vm7499_vm5, %v4654_v46, %v4360_v12  ;;  %v4299_v35 = vrot.slane %v4297_v60, 1  ;;  %v4289_v20 = vshll.u32 %v6920_v48, 16  ;;  %v4793_v53 = vshrl.u32 %v7259_v55, 16 }
 0x257   :  { %v4974_v32 = vsel %vm11984_vm10, %v4938_v3, %v4803_v6  ;;  %v4884_v41 = vsel %vm991_vm0, %v4846_v16, %v4720_v11  ;;  %v4738_v27 = vrot.slane %v6920_v48, 2  ;;  %v4380_v54 = vrot.slane %v4297_v60, 2  ;;  %vm11989_vm10 = vmmov %vm11976_vm2 }
 0x258   :  { %v4488_v51 = vsel %vm7499_vm5, %v4190_v49, %v4299_v35  ;;  %v4291_v58 = vrot.slane %v4289_v20, 1  ;;  %v4795_v14 = vrot.slane %v4793_v53, 6  ;;  %v4470_v43 = vrot.slane %v7257_v50, 6 }
 0x259   :  { %5104 = vrot.lane.b32.xlu1 %v10785_v30, %s7395_s17  ;;  %v4936_v34 = vsel %vm7517_vm9, %v4884_v41, %v4738_v27  ;;  %v4378_v31 = vrot.slane %v4289_v20, 2  ;;  %v5158_v49 = vshll.u32 %v10785_v30, 16  ;;  %v5152_v57 = vshll.u32 %v10806_v22, 16 }
 0x25a   :  { %v4486_v15 = vsel %vm7499_vm5, %v4186_v56, %v4291_v58  ;;  %v4968_v28 = vsel %vm11985_vm11, %v4936_v34, %v4795_v14  ;;  %v5156_v47 = vshrl.u32 %v10785_v30, 16  ;;  %v5150_v9 = vshrl.u32 %v10806_v22, 16  ;;  %v4074_v30 = vld [vmem:[#allocation2 + $0x6c] sm:$0x1]  ;;  %v4090_v14 = vld [vmem:[#allocation2 + $0x70] sm:$0xf]  ;;  %vm11990_vm11 = vmmov %vm11976_vm2 }
 0x25b   :  { %v4524_v21 = vsel %vm991_vm0, %v4486_v15, %v4360_v12  ;;  %v5160_v19 = vrot.slane %v5158_v49, 1  ;;  %v5154_v48 = vrot.slane %v5152_v57, 1  ;;  %v4093_v15 = vld [vmem:[#allocation2 + $0x74] sm:$0x1] }
 0x25c   :  { %v4576_v61 = vsel %vm7517_vm9, %v4524_v21, %v4378_v31 }
 0x25d   :  { %5126 = vrot.lane.b32.xlu1 %v4965_v63, %s7397_s16  ;;  %v4468_v63 = vrot.slane %v7259_v55, 6  ;;  %v4032_v55 = vld [vmem:[#allocation2 + $0x58] sm:$0xf]  ;;  %v5155_v16 = vor.u32 %v5154_v48, %v5150_v9 }
 0x25f   :  { %v10843_v0 = vsel %vm11976_vm2, %v4576_v61, %v4468_v63  ;;  %v4054_v61 = vld [vmem:[#allocation2 + $0x64] sm:$0x1] }
 0x261   :  { %5258 = vrot.lane.b32.xlu1 %v5043_v25, %s7402_s15  ;;  %v4532_v25 = vsel %vm991_vm0, %v4488_v51, %v4362_v52 }
 0x262   :  { %v4578_v26 = vsel %vm7517_vm9, %v4532_v25, %v4380_v54 }
 0x263   :  { %v10831_v7 = vsel %vm11986_vm12, %v4578_v26, %v4470_v43  ;;  %vm11991_vm12 = vmmov %vm11976_vm2 }
 0x265   :  { %5076 = vrot.lane.b32.xlu1 %v5037_v44, %s7391_s23 }
 0x269   :  { %5102 = vrot.lane.b32.xlu1 %v10806_v22, %s7395_s17  ;;  %v5161_v22 = vor.u32 %v5160_v19, %v5156_v47 }
 0x26d   :  { %5234 = vrot.lane.b32.xlu1 %v4974_v32, %s7399_s21  ;;  %v4035_v32 = vld [vmem:[#allocation2 + $0x5c] sm:$0x1] }
 0x271   :  { %5256 = vrot.lane.b32.xlu1 %v5037_v44, %s7402_s15 }
 0x275   :  { %5016 = vrot.lane.b32.xlu1 %v4968_v28, %s7393_s13 }
 0x279   :  { %v7082_v36 = vpop.f32.mrb[8].mxu0  ;;  %5216 = vrot.lane.b32.xlu1 %v10831_v7, %s7400_s25 }
 0x27a   :  { %v3753_v18 = vadd.f32 %v7082_v36, %v10605_v33  ;;  %v3744_v39 = vpop.f32.mrb[9].mxu0  ;;  %v4051_v36 = vld [vmem:[#allocation2 + $0x60] sm:$0xf] }
 0x27b   :  { %v3745_v42 = vadd.f32 %v10605_v33, %v3744_v39  ;;  %v7083_v13 = vpop.f32.mrb[10].mxu0 }
 0x27c   :  { %v3785_v38 = vmax.f32 %v3753_v18, 0.0  ;;  %v3756_v52 = vadd.f32 %v7083_v13, %v10605_v33  ;;  %v3747_v56 = vpop.f32.mrb[11].mxu0 }
 0x27d   :  { %v3783_v50 = vmax.f32 %v3745_v42, 0.0  ;;  %v3748_v40 = vadd.f32 %v10605_v33, %v3747_v56  ;;  %5232 = vrot.lane.b32.xlu1 %v4968_v28, %s7399_s21  ;;  %v5046_v33 = vshll.u32 %v10843_v0, 16  ;;  %v5044_v56 = vshrl.u32 %v10843_v0, 16 }
 0x27e   :  { %3801 = vst.msk [vmem:[%s11856_s9 + $0x50] sm:$0xff] %vm3368_vm13, %v3785_v38  ;;  %v7013_v44 = vpack.c.bf16 %v3785_v38, %v3785_v38  ;;  %v3786_v23 = vmax.f32 %v3756_v52, 0.0 }
 0x27f   :  { %3799 = vst.msk [vmem:[%s11856_s9 + $0x40] sm:$0xff] %vm3368_vm13, %v3783_v50  ;;  %v7011_v45 = vpack.c.bf16 %v3783_v50, %v3783_v50  ;;  %v3784_v24 = vmax.f32 %v3748_v40, 0.0  ;;  %v5048_v41 = vrot.slane %v5046_v33, 1 }
 0x280   :  { %v4061_v2 = vshrl.u32 %v7013_v44, 16  ;;  %3802 = vst.msk [vmem:[%s11856_s9 + $0x58] sm:$0xff] %vm3368_vm13, %v3786_v23  ;;  %v7014_v46 = vpack.c.bf16 %v3786_v23, %v3786_v23  ;;  %v4064_v6 = vshll.u32 %v7013_v44, 16 }
 0x281   :  { %v4022_v12 = vshrl.u32 %v7011_v45, 16  ;;  %3800 = vst.msk [vmem:[%s11856_s9 + $0x48] sm:$0xff] %vm3368_vm13, %v3784_v24  ;;  %v7012_v60 = vpack.c.bf16 %v3784_v24, %v3784_v24  ;;  %5214 = vrot.lane.b32.xlu1 %v10843_v0, %s7400_s25  ;;  %v4025_v20 = vshll.u32 %v7011_v45, 16  ;;  %v5049_v19 = vor.u32 %v5048_v41, %v5044_v56 }
 0x282   :  { %v4063_v3 = vrot.slane %v4061_v2, 7  ;;  %v4080_v11 = vshrl.u32 %v7014_v46, 16  ;;  %v4083_v34 = vshll.u32 %v7014_v46, 16 }
 0x283   :  { %v4024_v35 = vrot.slane %v4022_v12, 7  ;;  %v4041_v53 = vshrl.u32 %v7012_v60, 16  ;;  %v4044_v26 = vshll.u32 %v7012_v60, 16 }
 0x284   :  { %v4066_v27 = vor.u32 %v4064_v6, %v4063_v3  ;;  %v4067_v51 = vrot.slane %v4063_v3, 4  ;;  %v4082_v58 = vrot.slane %v4080_v11, 7 }
 0x285   :  { %v4027_v25 = vor.u32 %v4025_v20, %v4024_v35  ;;  %v4028_v54 = vrot.slane %v4024_v35, 4  ;;  %v4043_v28 = vrot.slane %v4041_v53, 7  ;;  %5192 = vrot.lane.b32.xlu1 %v5161_v22, %s7401_s27 }
 0x286   :  { %v4072_v43 = vsel %vm10629_vm8, %v4066_v27, %v4071_v10  ;;  %v4075_v21 = vsel %vm10635_vm14, %v4067_v51, %v4074_v30  ;;  %v4085_v31 = vor.u32 %v4083_v34, %v4082_v58  ;;  %v4086_v49 = vrot.slane %v4082_v58, 4 }
 0x287   :  { %4073 = vst [vmem:[#allocation2 + $0x68] sm:$0xf] %v4072_v43  ;;  %4076 = vst [vmem:[#allocation2 + $0x6c] sm:$0x1] %v4075_v21  ;;  %v4033_v57 = vsel %vm10629_vm8, %v4027_v25, %v4032_v55  ;;  %v4036_v18 = vsel %vm10635_vm14, %v4028_v54, %v4035_v32  ;;  %v4046_v39 = vor.u32 %v4044_v26, %v4043_v28  ;;  %v4047_v63 = vrot.slane %v4043_v28, 4 }
 0x288   :  { %4034 = vst [vmem:[#allocation2 + $0x58] sm:$0xf] %v4033_v57  ;;  %4037 = vst [vmem:[#allocation2 + $0x5c] sm:$0x1] %v4036_v18  ;;  %v4091_v42 = vsel %vm10629_vm8, %v4085_v31, %v4090_v14  ;;  %v4094_v13 = vsel %vm10635_vm14, %v4086_v49, %v4093_v15 }
 0x289   :  { %4092 = vst [vmem:[#allocation2 + $0x70] sm:$0xf] %v4091_v42  ;;  %4095 = vst [vmem:[#allocation2 + $0x74] sm:$0x1] %v4094_v13  ;;  %v4052_v38 = vsel %vm10629_vm8, %v4046_v39, %v4051_v36  ;;  %v4055_v52 = vsel %vm10635_vm14, %v4047_v63, %v4054_v61  ;;  %5190 = vrot.lane.b32.xlu1 %v5155_v16, %s7401_s27  ;;  %v5246_v36 = vshll.u32 %v10831_v7, 16 }
 0x28a   :  { %4053 = vst [vmem:[#allocation2 + $0x60] sm:$0xf] %v4052_v38  ;;  %4056 = vst [vmem:[#allocation2 + $0x64] sm:$0x1] %v4055_v52 }
 0x28d   :  { %5080 = vrot.lane.b32.xlu1 %v5049_v19, %s7391_s23 }
 0x28e   :  { %v4198_v50 = vld [vmem:[#allocation2 + $0x68] sm:$0xf]  ;;  %v7261_v48 = vld [vmem:[#allocation2 + $0x6c] ss:$0 sps:$4 sm:$0x11]  }
 0x28f   :  { %v6926_v40 = vcombine.low %v4198_v50, %v4198_v50  ;;  %v10888_v44 = vld [vmem:[#allocation2 + $0x58] sm:$0xf]  ;;  %v4817_v24 = vshrl.u32 %v7261_v48, 16  ;;  %v10906_v22 = vld [vmem:[#allocation2 + $0x5c] ss:$0 sps:$4 sm:$0x11]  }
 0x290   :  { %v10892_v23 = vcombine.low %v10888_v44, %v10888_v44  ;;  %v4200_v26 = vld [vmem:[#allocation2 + $0x70] sm:$0xf]  ;;  %v4474_v43 = vrot.slane %v7261_v48, 6  ;;  %v4809_v31 = vshrl.u32 %v10906_v22, 16 }
 0x291   :  { %5260 = vrot.lane.b32.xlu1 %v5049_v19, %s7402_s15  ;;  %v4366_v47 = vrot.slane %v6926_v40, 1  ;;  %v4666_v45 = vshrl.u32 %v6926_v40, 16  ;;  %v10895_v33 = vld [vmem:[#allocation2 + $0x60] sm:$0xf]  ;;  %v4744_v9 = vrot.slane %v6926_v40, 2  ;;  %v4313_v2 = vshll.u32 %v6926_v40, 16 }
 0x292   :  { %v10899_v46 = vcombine.low %v10895_v33, %v10895_v33  ;;  %v10903_v12 = vld [vmem:[#allocation2 + $0x64] ss:$0 sps:$4 sm:$0x11]   ;;  %v4364_v60 = vrot.slane %v10892_v23, 1  ;;  %v4662_v3 = vshrl.u32 %v10892_v23, 16  ;;  %v4819_v6 = vrot.slane %v4817_v24, 6 }
 0x293   :  { %v4726_v10 = vrot.slane %v4666_v45, 1  ;;  %v4852_v30 = vsel %vm7499_vm5, %v4666_v45, %v4366_v47  ;;  %v4315_v55 = vrot.slane %v4313_v2, 1  ;;  %v4384_v20 = vrot.slane %v4313_v2, 2  ;;  %v7267_v56 = vld [vmem:[#allocation2 + $0x74] ss:$0 sps:$4 sm:$0x11]  }
 0x294   :  { %v4365_v11 = vrot.slane %v10899_v46, 1  ;;  %v4664_v16 = vshrl.u32 %v10899_v46, 16  ;;  %v4813_v32 = vshrl.u32 %v10903_v12, 16  ;;  %v4724_v53 = vrot.slane %v4662_v3, 1 }
 0x295   :  { %v4908_v35 = vsel %vm991_vm0, %v4852_v30, %v4726_v10  ;;  %v4492_v27 = vsel %vm7499_vm5, %v4198_v50, %v4315_v55  ;;  %v4743_v25 = vrot.slane %v10899_v46, 2  ;;  %v4850_v49 = vsel %vm7499_vm5, %v4662_v3, %v4364_v60 }
 0x296   :  { %v4942_v41 = vsel %vm7517_vm9, %v4908_v35, %v4744_v9  ;;  %v4725_v51 = vrot.slane %v4664_v16, 1  ;;  %v4851_v58 = vsel %vm7499_vm5, %v4664_v16, %v4365_v11  ;;  %v4548_v14 = vsel %vm991_vm0, %v4492_v27, %v4366_v47  ;;  %v10951_v9 = vpop.permute.xlu1 %5124 }
 0x297   :  { %v4986_v34 = vsel %vm11987_vm3, %v4942_v41, %v4819_v6  ;;  %v4582_v54 = vsel %vm7517_vm9, %v4548_v14, %v4384_v20  ;;  %v4815_v15 = vrot.slane %v4813_v32, 6  ;;  %v4742_v57 = vrot.slane %v10892_v23, 2  ;;  %vm11992_vm3 = vmmov %vm11976_vm2 }
 0x298   :  { %5132 = vrot.lane.b32.xlu0 %v4986_v34, %s7397_s16  ;;  %v4904_v28 = vsel %vm991_vm0, %v4851_v58, %v4725_v51  ;;  %v4900_v18 = vsel %vm991_vm0, %v4850_v49, %v4724_v53  ;;  %v10938_v39 = vsel %vm11989_vm10, %v4582_v54, %v4474_v43  ;;  %v6927_v63 = vcombine.low %v4200_v26, %v4200_v26  ;;  %vm11996_vm10 = vmmov %vm11976_vm2 }
 0x299   :  { %v4941_v21 = vsel %vm7517_vm9, %v4904_v28, %v4743_v25  ;;  %v4940_v42 = vsel %vm7517_vm9, %v4900_v18, %v4742_v57  ;;  %v4305_v13 = vshll.u32 %v10892_v23, 16  ;;  %v4811_v38 = vrot.slane %v4809_v31, 6 }
 0x29a   :  { %v4983_v61 = vsel %vm11988_vm4, %v4941_v21, %v4815_v15  ;;  %v4367_v52 = vrot.slane %v6927_v63, 1  ;;  %v4668_v19 = vshrl.u32 %v6927_v63, 16  ;;  %v5248_v50 = vrot.slane %v5246_v36, 1  ;;  %v10961_v20 = vpop.permute.xlu1 %5100  ;;  %vm11993_vm4 = vmmov %vm11976_vm2 }
 0x29b   :  { %5236 = vrot.lane.b32.xlu1 %v4983_v61, %s7399_s21  ;;  %v4307_v40 = vrot.slane %v4305_v13, 1  ;;  %v4980_v48 = vsel %vm11990_vm11, %v4940_v42, %v4811_v38  ;;  %v5244_v24 = vshrl.u32 %v10831_v7, 16  ;;  %v4821_v2 = vshrl.u32 %v7267_v56, 16  ;;  %vm11997_vm11 = vmmov %vm11976_vm2 }
 0x29c   :  { %5108 = vrot.lane.b32.xlu0 %v10938_v39, %s7395_s17  ;;  %v4727_v47 = vrot.slane %v4668_v19, 1  ;;  %v4853_v45 = vsel %vm7499_vm5, %v4668_v19, %v4367_v52  ;;  %v4745_v30 = vrot.slane %v6927_v63, 2  ;;  %v4382_v16 = vrot.slane %v4305_v13, 2 }
 0x29d   :  { %v5249_v10 = vor.u32 %v5248_v50, %v5244_v24  ;;  %v4490_v3 = vsel %vm7499_vm5, %v10888_v44, %v4307_v40  ;;  %v4823_v55 = vrot.slane %v4821_v2, 6  ;;  %v4317_v35 = vshll.u32 %v6927_v63, 16 }
 0x29e   :  { %v4912_v23 = vsel %vm991_vm0, %v4853_v45, %v4727_v47  ;;  %v4540_v7 = vsel %vm991_vm0, %v4490_v3, %v4364_v60  ;;  %v4472_v44 = vrot.slane %v10906_v22, 6  ;;  %v4309_v27 = vshll.u32 %v10899_v46, 16  ;;  %v10971_v60 = vpop.permute.xlu1 %5014 }
 0x29f   :  { %v4943_v6 = vsel %vm7517_vm9, %v4912_v23, %v4745_v30  ;;  %v4580_v53 = vsel %vm7517_vm9, %v4540_v7, %v4382_v16  ;;  %v4319_v41 = vrot.slane %v4317_v35, 1  ;;  %v4385_v25 = vrot.slane %v4317_v35, 2 }
 0x2a0   :  { %5130 = vrot.lane.b32.xlu0 %v4980_v48, %s7397_s16  ;;  %v4989_v32 = vsel %vm11991_vm12, %v4943_v6, %v4823_v55  ;;  %v4620_v51 = vsel %vm11976_vm2, %v4580_v53, %v4472_v44  ;;  %v4311_v34 = vrot.slane %v4309_v27, 1  ;;  %v4475_v28 = vrot.slane %v7267_v56, 6  ;;  %v4152_v53 = vld [vmem:[#allocation2 + $0x8c] sm:$0x1]  ;;  %vm11998_vm12 = vmmov %vm11976_vm2 }
 0x2a1   :  { %v4493_v58 = vsel %vm7499_vm5, %v4200_v26, %v4319_v41  ;;  %v5170_v43 = vshll.u32 %v10938_v39, 16  ;;  %v4383_v21 = vrot.slane %v4309_v27, 2  ;;  %v4473_v36 = vrot.slane %v10903_v12, 6  ;;  %v7319_v12 = vld [vmem:[%s11849_s2] ss:$0 sm:$0xff] }
 0x2a2   :  { %v4552_v14 = vsel %vm991_vm0, %v4493_v58, %v4367_v52  ;;  %v4491_v22 = vsel %vm7499_vm5, %v10895_v33, %v4311_v34  ;;  %v10980_v54 = vpop.permute.xlu1 %5230  ;;  %v5164_v46 = vshll.u32 %v4620_v51, 16  ;;  %v5168_v57 = vshrl.u32 %v10938_v39, 16  ;;  %v4110_v34 = vld [vmem:[#allocation2 + $0x78] sm:$0xf] }
 0x2a3   :  { %v4583_v15 = vsel %vm7517_vm9, %v4552_v14, %v4385_v25  ;;  %v4544_v26 = vsel %vm991_vm0, %v4491_v22, %v4365_v11  ;;  %v5162_v19 = vshrl.u32 %v4620_v51, 16 }
 0x2a4   :  { %5262 = vrot.lane.b32.xlu0 %v5249_v10, %s7402_s15  ;;  %v10990_v31 = vsel %vm11992_vm3, %v4583_v15, %v4475_v28  ;;  %v4581_v33 = vsel %vm7517_vm9, %v4544_v26, %v4383_v21  ;;  %v5166_v18 = vrot.slane %v5164_v46, 1  ;;  %v4113_v28 = vld [vmem:[#allocation2 + $0x7c] sm:$0x1]  ;;  %vm11999_vm3 = vmmov %vm11976_vm2 }
 0x2a5   :  { %v11000_v11 = vsel %vm11993_vm4, %v4581_v33, %v4473_v36  ;;  %v5064_v42 = vshll.u32 %v10990_v31, 16  ;;  %v5062_v7 = vshrl.u32 %v10990_v31, 16  ;;  %vm12000_vm4 = vmmov %vm11976_vm2 }
 0x2a6   :  { %v10996_v49 = vpop.permute.xlu1 %5212  ;;  %v5167_v23 = vor.u32 %v5166_v18, %v5162_v19  ;;  %v4171_v18 = vld [vmem:[#allocation2 + $0x94] sm:$0x1]  ;;  %v4129_v19 = vld [vmem:[#allocation2 + $0x80] sm:$0xf] }
 0x2a7   :  { %v5066_v2 = vrot.slane %v5064_v42, 1 }
 0x2a8   :  { %5022 = vrot.lane.b32.xlu0 %v4989_v32, %s7393_s13 }
 0x2a9   :  { %v11032_v27 = vor.u32 %v5066_v2, %v5062_v7 }
 0x2aa   :  { %v11006_v38 = vpop.permute.xlu1 %5188 }
 0x2ac   :  { %5106 = vrot.lane.b32.xlu0 %v4620_v51, %s7395_s17 }
 0x2b0   :  { %5238 = vrot.lane.b32.xlu0 %v4989_v32, %s7399_s21  ;;  %v4149_v32 = vld [vmem:[#allocation2 + $0x88] sm:$0xf] }
 0x2b4   :  { %5020 = vrot.lane.b32.xlu0 %v4983_v61, %s7393_s13  ;;  %v5172_v61 = vrot.slane %v5170_v43, 1 }
 0x2b6   :  { %v5173_v13 = vor.u32 %v5172_v61, %v5168_v57  ;;  %v4168_v61 = vld [vmem:[#allocation2 + $0x90] sm:$0xf] }
 0x2b8   :  { %5220 = vrot.lane.b32.xlu0 %v10990_v31, %s7400_s25 }
 0x2bc   :  { %5218 = vrot.lane.b32.xlu0 %v11000_v11, %s7400_s25 }
 0x2be   :  { %v7086_v63 = vpop.f32.mrb[12].mxu0 }
 0x2bf   :  { %v3769_v52 = vadd.f32 %v7319_v12, %v7086_v63  ;;  %v3760_v56 = vpop.f32.mrb[13].mxu0 }
 0x2c0   :  { %v3761_v50 = vadd.f32 %v7319_v12, %v3760_v56  ;;  %v7087_v40 = vpop.f32.mrb[14].mxu0  ;;  %5196 = vrot.lane.b32.xlu0 %v5173_v13, %s7401_s27 }
 0x2c1   :  { %v3789_v39 = vmax.f32 %v3769_v52, 0.0  ;;  %v3772_v48 = vadd.f32 %v7319_v12, %v7087_v40  ;;  %v3763_v47 = vpop.f32.mrb[15].mxu0 }
 0x2c2   :  { %v3787_v45 = vmax.f32 %v3761_v50, 0.0  ;;  %v3764_v24 = vadd.f32 %v7319_v12, %v3763_v47  ;;  %v4132_v50 = vld [vmem:[#allocation2 + $0x84] sm:$0x1] }
 0x2c3   :  { %3805 = vst.msk [vmem:[%s11856_s9 + $0x70] sm:$0xff] %vm3368_vm13, %v3789_v39  ;;  %v7017_v10 = vpack.c.bf16 %v3789_v39, %v3789_v39  ;;  %v3790_v30 = vmax.f32 %v3772_v48, 0.0  ;;  %v11016_v3 = vpop.permute.xlu1 %5128 }
 0x2c4   :  { %3803 = vst.msk [vmem:[%s11856_s9 + $0x60] sm:$0xff] %vm3368_vm13, %v3787_v45  ;;  %v7015_v6 = vpack.c.bf16 %v3787_v45, %v3787_v45  ;;  %v3788_v55 = vmax.f32 %v3764_v24, 0.0  ;;  %5194 = vrot.lane.b32.xlu0 %v5167_v23, %s7401_s27 }
 0x2c5   :  { %v4139_v16 = vshrl.u32 %v7017_v10, 16  ;;  %3806 = vst.msk [vmem:[%s11856_s9 + $0x78] sm:$0xff] %vm3368_vm13, %v3790_v30  ;;  %v7018_v35 = vpack.c.bf16 %v3790_v30, %v3790_v30  ;;  %v4142_v58 = vshll.u32 %v7017_v10, 16 }
 0x2c6   :  { %v4100_v44 = vshrl.u32 %v7015_v6, 16  ;;  %3804 = vst.msk [vmem:[%s11856_s9 + $0x68] sm:$0xff] %vm3368_vm13, %v3788_v55  ;;  %v7016_v41 = vpack.c.bf16 %v3788_v55, %v3788_v55  ;;  %v4103_v15 = vshll.u32 %v7015_v6, 16  ;;  %v11058_v6 = vpop.permute.xlu0 %5010 }
 0x2c7   :  { %v4141_v51 = vrot.slane %v4139_v16, 7  ;;  %v4158_v14 = vshrl.u32 %v7018_v35, 16  ;;  %v11034_v25 = vpop.permute.xlu1 %5078  ;;  %v4161_v36 = vshll.u32 %v7018_v35, 16 }
 0x2c8   :  { %v4102_v22 = vrot.slane %v4100_v44, 7  ;;  %v4119_v26 = vshrl.u32 %v7016_v41, 16  ;;  %5086 = vrot.lane.b32.xlu0 %v11032_v27, %s7391_s23  ;;  %v4122_v42 = vshll.u32 %v7016_v41, 16 }
 0x2c9   :  { %v4144_v43 = vor.u32 %v4142_v58, %v4141_v51  ;;  %v4145_v21 = vrot.slane %v4141_v51, 4  ;;  %v4160_v33 = vrot.slane %v4158_v14, 7 }
 0x2ca   :  { %v4105_v46 = vor.u32 %v4103_v15, %v4102_v22  ;;  %v4106_v57 = vrot.slane %v4102_v22, 4  ;;  %v4121_v63 = vrot.slane %v4119_v26, 7  ;;  %v11070_v59 = vpop.permute.xlu0 %5018 }
 0x2cb   :  { %v4150_v13 = vsel %vm10629_vm8, %v4144_v43, %v4149_v32  ;;  %v4153_v12 = vsel %vm10635_vm14, %v4145_v21, %v4152_v53  ;;  %v4163_v52 = vor.u32 %v4161_v36, %v4160_v33  ;;  %v4164_v56 = vrot.slane %v4160_v33, 4  ;;  %v11042_v40 = vpop.permute.xlu1 %5104 }
 0x2cc   :  { %4151 = vst [vmem:[#allocation2 + $0x88] sm:$0xf] %v4150_v13  ;;  %4154 = vst [vmem:[#allocation2 + $0x8c] sm:$0x1] %v4153_v12  ;;  %v4111_v39 = vsel %vm10629_vm8, %v4105_v46, %v4110_v34  ;;  %v4114_v48 = vsel %vm10635_vm14, %v4106_v57, %v4113_v28  ;;  %v4124_v47 = vor.u32 %v4122_v42, %v4121_v63  ;;  %v4125_v45 = vrot.slane %v4121_v63, 4 }
 0x2cd   :  { %4112 = vst [vmem:[#allocation2 + $0x78] sm:$0xf] %v4111_v39  ;;  %4115 = vst [vmem:[#allocation2 + $0x7c] sm:$0x1] %v4114_v48  ;;  %v4169_v24 = vsel %vm10629_vm8, %v4163_v52, %v4168_v61  ;;  %v4172_v2 = vsel %vm10635_vm14, %v4164_v56, %v4171_v18  ;;  %v5058_v34 = vshll.u32 %v11000_v11, 16 }
 0x2ce   :  { %4170 = vst [vmem:[#allocation2 + $0x90] sm:$0xf] %v4169_v24  ;;  %4173 = vst [vmem:[#allocation2 + $0x94] sm:$0x1] %v4172_v2  ;;  %v4130_v23 = vsel %vm10629_vm8, %v4124_v47, %v4129_v19  ;;  %v4133_v10 = vsel %vm10635_vm14, %v4125_v45, %v4132_v50  ;;  %v11099_v48 = vpop.permute.xlu0 %5074 }
 0x2cf   :  { %4131 = vst [vmem:[#allocation2 + $0x80] sm:$0xf] %v4130_v23  ;;  %4134 = vst [vmem:[#allocation2 + $0x84] sm:$0x1] %v4133_v10  ;;  %v11056_v30 = vpop.permute.xlu1 %5126  ;;  %v5060_v23 = vrot.slane %v5058_v34, 1 }
 0x2d0   :  { %vm11994_vm8 = vmmov %vm11976_vm2 }
 0x2d1   :  { %vm11995_vm14 = vmmov %vm11976_vm2 }
 0x2d3   :  { %v4206_v55 = vld [vmem:[#allocation2 + $0x88] sm:$0xf]  ;;  %v11060_v7 = vpop.permute.xlu1 %5258  ;;  %v7269_v35 = vld [vmem:[#allocation2 + $0x8c] ss:$0 sps:$4 sm:$0x11]  }
 0x2d4   :  { %v6930_v16 = vcombine.low %v4206_v55, %v4206_v55  ;;  %v11062_v32 = vld [vmem:[#allocation2 + $0x78] sm:$0xf]  ;;  %v11068_v53 = vld [vmem:[#allocation2 + $0x7c] ss:$0 sps:$4 sm:$0x11]   ;;  %v4833_v51 = vshrl.u32 %v7269_v35, 16 }
 0x2d5   :  { %v11066_v29 = vcombine.low %v11062_v32, %v11062_v32  ;;  %v4825_v15 = vshrl.u32 %v11068_v53, 16  ;;  %v4208_v50 = vld [vmem:[#allocation2 + $0x90] sm:$0xf] }
 0x2d6   :  { %v4370_v44 = vrot.slane %v6930_v16, 1  ;;  %v4674_v41 = vshrl.u32 %v6930_v16, 16  ;;  %v11072_v58 = vld [vmem:[#allocation2 + $0x80] sm:$0xf]  ;;  %v4748_v43 = vrot.slane %v6930_v16, 2  ;;  %v4329_v33 = vshll.u32 %v6930_v16, 16 }
 0x2d7   :  { %v4368_v14 = vrot.slane %v11066_v29, 1  ;;  %v4670_v22 = vshrl.u32 %v11066_v29, 16  ;;  %v11078_v28 = vpop.permute.xlu1 %5076  ;;  %v4835_v36 = vrot.slane %v4833_v51, 6  ;;  %v4746_v46 = vrot.slane %v11066_v29, 2 }
 0x2d8   :  { %v4730_v26 = vrot.slane %v4674_v41, 1  ;;  %v4856_v21 = vsel %vm7499_vm5, %v4674_v41, %v4370_v44  ;;  %v4331_v63 = vrot.slane %v4329_v33, 1  ;;  %v11090_v42 = vcombine.low %v11072_v58, %v11072_v58  ;;  %v11092_v13 = vld [vmem:[#allocation2 + $0x84] ss:$0 sps:$4 sm:$0x11]  }
 0x2d9   :  { %v4728_v61 = vrot.slane %v4670_v22, 1  ;;  %v4854_v57 = vsel %vm7499_vm5, %v4670_v22, %v4368_v14  ;;  %v4827_v52 = vrot.slane %v4825_v15, 6  ;;  %v4388_v19 = vrot.slane %v4329_v33, 2 }
 0x2da   :  { %v4924_v18 = vsel %vm991_vm0, %v4856_v21, %v4730_v26  ;;  %v4496_v24 = vsel %vm7499_vm5, %v4206_v55, %v4331_v63  ;;  %v4369_v2 = vrot.slane %v11090_v42, 1  ;;  %v4672_v41 = vshrl.u32 %v11090_v42, 16  ;;  %v11130_v63 = vpop.permute.xlu0 %5082 }
 0x2db   :  { %v4946_v12 = vsel %vm7517_vm9, %v4924_v18, %v4748_v43  ;;  %v4916_v56 = vsel %vm991_vm0, %v4854_v57, %v4728_v61  ;;  %v11097_v39 = vpop.permute.xlu1 %5102  ;;  %v4564_v16 = vsel %vm991_vm0, %v4496_v24, %v4370_v44  ;;  %v4478_v51 = vrot.slane %v7269_v35, 6  ;;  %v7276_v61 = vld [vmem:[%s11850_s3] sm:$0xff]  }
 0x2dc   :  { %v4998_v47 = vsel %vm11994_vm8, %v4946_v12, %v4835_v36  ;;  %v4944_v45 = vsel %vm7517_vm9, %v4916_v56, %v4746_v46  ;;  %v4586_v22 = vsel %vm7517_vm9, %v4564_v16, %v4388_v19  ;;  %v4829_v15 = vshrl.u32 %v11092_v13, 16  ;;  %7088 = vmatprep.subr.bf16.mxu1 %v7276_v61 }
 0x2dd   :  { %5136 = vrot.lane.b32.xlu1 %v4998_v47, %s7397_s16  ;;  %v4992_v10 = vsel %vm11995_vm14, %v4944_v45, %v4827_v52  ;;  %v6931_v55 = vcombine.low %v4208_v50, %v4208_v50  ;;  %v4729_v26 = vrot.slane %v4672_v41, 1  ;;  %v4855_v34 = vsel %vm7499_vm5, %v4672_v41, %v4369_v2  ;;  %v7275_v47 = vld [vmem:[#allocation2 + $0x94] ss:$0 sps:$4 sm:$0x11]   ;;  %7089 = vmatpush3.bf16.msra.mxu1 %v7276_v61 }
 0x2de   :  { %5134 = vrot.lane.b32.xlu0 %v4992_v10, %s7397_s16  ;;  %v4321_v43 = vshll.u32 %v11066_v29, 16  ;;  %v5056_v21 = vshrl.u32 %v11000_v11, 16  ;;  %v4638_v35 = vsel %vm11996_vm10, %v4586_v22, %v4478_v51  ;;  %v4747_v33 = vrot.slane %v11090_v42, 2  ;;  %v11163_v61 = vpop.permute.xlu0 %5122 }
 0x2df   :  { %v11120_v44 = vpop.permute.xlu1 %5234  ;;  %v4333_v36 = vshll.u32 %v6931_v55, 16  ;;  %v4920_v46 = vsel %vm991_vm0, %v4855_v34, %v4729_v26  ;;  %v4371_v57 = vrot.slane %v6931_v55, 1  ;;  %v4831_v12 = vrot.slane %v4829_v15, 6 }
 0x2e0   :  { %v4323_v18 = vrot.slane %v4321_v43, 1  ;;  %v4945_v52 = vsel %vm7517_vm9, %v4920_v46, %v4747_v33  ;;  %v11136_v56 = vor.u32 %v5060_v23, %v5056_v21  ;;  %v5182_v45 = vshll.u32 %v4638_v35, 16 }
 0x2e1   :  { %5112 = vrot.lane.b32.xlu1 %v4638_v35, %s7395_s17  ;;  %v4335_v19 = vrot.slane %v4333_v36, 1  ;;  %v4386_v24 = vrot.slane %v4321_v43, 2  ;;  %v4676_v16 = vshrl.u32 %v6931_v55, 16  ;;  %v4389_v51 = vrot.slane %v4333_v36, 2 }
 0x2e2   :  { %5266 = vrot.lane.b32.xlu0 %v11032_v27, %s7402_s15  ;;  %v4494_v10 = vsel %vm7499_vm5, %v11062_v32, %v4323_v18  ;;  %v4995_v27 = vsel %vm11997_vm11, %v4945_v52, %v4831_v12  ;;  %v4479_v34 = vrot.slane %v7275_v47, 6  ;;  %v4837_v21 = vshrl.u32 %v7275_v47, 16 }
 0x2e3   :  { %v11141_v41 = vpop.permute.xlu1 %5256  ;;  %v4497_v23 = vsel %vm7499_vm5, %v4208_v50, %v4335_v19  ;;  %v4556_v22 = vsel %vm991_vm0, %v4494_v10, %v4368_v14  ;;  %v4731_v26 = vrot.slane %v4676_v16, 1  ;;  %v4857_v32 = vsel %vm7499_vm5, %v4676_v16, %v4371_v57 }
 0x2e4   :  { %v4568_v15 = vsel %vm991_vm0, %v4497_v23, %v4371_v57  ;;  %v4584_v29 = vsel %vm7517_vm9, %v4556_v22, %v4386_v24  ;;  %v5184_v50 = vrot.slane %v5182_v45, 1  ;;  %v4476_v14 = vrot.slane %v11068_v53, 6  ;;  %v5099_v23 = vpop.permute.xlu0 %5098 }
 0x2e5   :  { %5024 = vrot.lane.b32.xlu1 %v4995_v27, %s7393_s13  ;;  %v4587_v43 = vsel %vm7517_vm9, %v4568_v15, %v4389_v51  ;;  %v4928_v33 = vsel %vm991_vm0, %v4857_v32, %v4731_v26  ;;  %v4749_v57 = vrot.slane %v6931_v55, 2  ;;  %v5180_v18 = vshrl.u32 %v4638_v35, 16  ;;  %v7277_v55 = vld [vmem:[%s11850_s3 + $0x8] sm:$0xff]   ;;  %v7278_v51 = vld [vmem:[%s11850_s3 + $0x10] sm:$0xff]  }
 0x2e6   :  { %5084 = vrot.lane.b32.xlu0 %v11136_v56, %s7391_s23  ;;  %v4641_v46 = vsel %vm11998_vm12, %v4587_v43, %v4479_v34  ;;  %v4632_v12 = vsel %vm11976_vm2, %v4584_v29, %v4476_v14  ;;  %v4325_v52 = vshll.u32 %v11090_v42, 16  ;;  %v4839_v47 = vrot.slane %v4837_v21, 6  ;;  %7090 = vmatprep.subr.bf16.mxu1 %v7277_v55  ;;  %v7280_v14 = vld [vmem:[%s11850_s3 + $0x20] ss:$0 sps:$4 sm:$0xff]   ;;  %vm12001_vm12 = vmmov %vm11976_vm2 }
 0x2e7   :  { %v11161_v36 = vpop.permute.xlu1 %5016  ;;  %v4947_v53 = vsel %vm7517_vm9, %v4928_v33, %v4749_v57  ;;  %v5185_v19 = vor.u32 %v5184_v50, %v5180_v18  ;;  %v4477_v22 = vrot.slane %v11092_v13, 6  ;;  %7091 = vmatpush3.bf16.msra.mxu1 %v7277_v55  ;;  %v5252_v21 = vshll.u32 %v4641_v46, 16 }
 0x2e8   :  { %v4327_v45 = vrot.slane %v4325_v52, 1  ;;  %v5001_v35 = vsel %vm11999_vm3, %v4947_v53, %v4839_v47  ;;  %v4387_v10 = vrot.slane %v4325_v52, 2  ;;  %7092 = vmatprep.subr.bf16.mxu1 %v7278_v51  ;;  %v5013_v29 = vpop.permute.xlu0 %5012  ;;  %v5174_v57 = vshrl.u32 %v4632_v12, 16 }
 0x2e9   :  { %5224 = vrot.lane.b32.xlu1 %v4641_v46, %s7400_s25  ;;  %v5478_v52 = vsel %vm1513_vm7, %v7280_v14, 0  ;;  %v5254_v53 = vrot.slane %v5252_v21, 1  ;;  %v5250_v47 = vshrl.u32 %v4641_v46, 16  ;;  %v5275_v55 = vsel %vm3368_vm13, %v10724_v1, %v5013_v29 }
 0x2ea   :  { %5110 = vrot.lane.b32.xlu0 %v4632_v12, %s7395_s17  ;;  %v4495_v16 = vsel %vm7499_vm5, %v11072_v58, %v4327_v45  ;;  %v5176_v58 = vshll.u32 %v4632_v12, 16  ;;  %v5273_v46 = vsel %vm3368_vm13, %v10483_v4, %v11058_v6  ;;  %vm5353_vm8 = vcmask 392192  }
 0x2eb   :  { %v11172_v24 = vpop.permute.xlu1 %5216  ;;  %v4560_v15 = vsel %vm991_vm0, %v4495_v16, %v4369_v2  ;;  %7093 = vmatpush3.bf16.msra.mxu1 %v7278_v51  ;;  %v5255_v12 = vor.u32 %v5254_v53, %v5250_v47  ;;  %vm5370_vm14 = vcmask 457728   ;;  %vm5387_vm10 = vcmask 523264  }
 0x2ec   :  { %v4585_v26 = vsel %vm7517_vm9, %v4560_v15, %v4387_v10  ;;  %v5178_v50 = vrot.slane %v5176_v58, 1  ;;  %7094 = vmatprep.subr.bf16.mxu1 %v7279_v17  ;;  %v5291_v10 = vsel %vm3434_vm15, %v5275_v55, %v11078_v28  ;;  %v5279_v28 = vsel %vm3368_vm13, %v10843_v0, %v11161_v36 }
 0x2ed   :  { %5200 = vrot.lane.b32.xlu1 %v5185_v19, %s7401_s27  ;;  %v11195_v34 = vsel %vm12000_vm4, %v4585_v26, %v4477_v22  ;;  %v5229_v19 = vpop.permute.xlu0 %5228  ;;  %v5307_v16 = vsel %vm3500_vm6, %v5291_v10, %v10961_v20  ;;  %v5289_v15 = vsel %vm3434_vm15, %v5273_v46, %v11099_v48  ;;  %vm5336_vm9 = vcmask 326656  }
 0x2ee   :  { %5242 = vrot.lane.b32.xlu0 %v5001_v35, %s7399_s21  ;;  %v5070_v13 = vshll.u32 %v11195_v34, 16  ;;  %v5068_v42 = vshrl.u32 %v11195_v34, 16  ;;  %v5323_v4 = vsel %vm3566_vm1, %v5307_v16, %v10951_v9  ;;  %vm5420_vm11 = vcmask 1045504  }
 0x2ef   :  { %v11192_v32 = vpop.permute.xlu1 %5232  ;;  %7095 = vmatpush3.bf16.msra.mxu1 %v7279_v17  ;;  %vm5472_vm2 = vcmask 588800  }
 0x2f0   :  { %v5072_v43 = vrot.slane %v5070_v13, 1  ;;  %7111 = vmatprep.subr.msk.bf16.mxu1 %vm1513_vm7, %v7280_v14 }
 0x2f1   :  { %v5211_v35 = vpop.permute.xlu0 %5210 }
 0x2f2   :  { %5240 = vrot.lane.b32.xlu0 %v4995_v27, %s7399_s21  ;;  %v5073_v33 = vor.u32 %v5072_v43, %v5068_v42  ;;  %v5179_v27 = vor.u32 %v5178_v50, %v5174_v57 }
 0x2f3   :  { %v5215_v2 = vpop.permute.xlu1 %5214  ;;  %7097 = vmatpush3.bf16.msra.mxu1 %v5478_v52 }
 0x2f4   :  { %5088 = vrot.lane.b32.xlu1 %v5073_v33, %s7391_s23 }
 0x2f5   :  { %v5187_v22 = vpop.permute.xlu0 %5186 }
 0x2f6   :  { %5222 = vrot.lane.b32.xlu0 %v11195_v34, %s7400_s25 }
 0x2f7   :  { %v5193_v18 = vpop.permute.xlu1 %5192 }
 0x2f8   :  { %5268 = vrot.lane.b32.xlu1 %v5073_v33, %s7402_s15 }
 0x2fa   :  { %5198 = vrot.lane.b32.xlu0 %v5179_v27, %s7401_s27 }
 0x2fb   :  { %v5191_v45 = vpop.permute.xlu1 %5190 }
 0x2fc   :  { %5270 = vrot.lane.b32.xlu1 %v5255_v12, %s7402_s15 }
 0x2fe   :  { %5264 = vrot.lane.b32.xlu0 %v11136_v56, %s7402_s15  ;;  %v5277_v56 = vsel %vm3368_vm13, %v10716_v37, %v10971_v60  ;;  %v5305_v37 = vsel %vm3500_vm6, %v5289_v15, %v5099_v23  ;;  %v5340_v60 = vsel %vm5336_vm9, %v5323_v4, %v11006_v38 }
 0x2ff   :  { %v5081_v51 = vpop.permute.xlu1 %5080  ;;  %v5293_v1 = vsel %vm3434_vm15, %v5277_v56, %v11034_v25  ;;  %v5357_v36 = vsel %vm5353_vm8, %v5340_v60, %v10996_v49 }
 0x300   :  { %v5309_v20 = vsel %vm3500_vm6, %v5293_v1, %v11097_v39  ;;  %v5295_v6 = vsel %vm3434_vm15, %v5279_v28, %v5081_v51  ;;  %v5321_v39 = vsel %vm3566_vm1, %v5305_v37, %v11163_v61  ;;  %v5374_v58 = vsel %vm5370_vm14, %v5357_v36, %v10980_v54 }
 0x301   :  { %v5325_v0 = vsel %vm3566_vm1, %v5309_v20, %v11056_v30  ;;  %v5311_v25 = vsel %vm3500_vm6, %v5295_v6, %v11042_v40  ;;  %v5338_v38 = vsel %vm5336_vm9, %v5321_v39, %v5187_v22  ;;  %v5391_v43 = vsel %vm5387_vm10, %v5374_v58, %v11060_v7 }
 0x302   :  { %v5342_v9 = vsel %vm5336_vm9, %v5325_v0, %v5191_v45  ;;  %v5327_v23 = vsel %vm3566_vm1, %v5311_v25, %v11016_v3  ;;  %v5355_v61 = vsel %vm5353_vm8, %v5338_v38, %v5211_v35  ;;  %v5405_v50 = vrot.slane %v5391_v43, 6 }
 0x303   :  { %v5359_v30 = vsel %vm5353_vm8, %v5342_v9, %v5215_v2  ;;  %v5261_v40 = vpop.permute.xlu1 %5260  ;;  %v5344_v13 = vsel %vm5336_vm9, %v5327_v23, %v5193_v18  ;;  %v5372_v17 = vsel %vm5370_vm14, %v5355_v61, %v5229_v19  ;;  %v5281_v6 = vsel %vm3368_vm13, %v10486_v62, %v11070_v59 }
 0x304   :  { %v5376_v49 = vsel %vm5370_vm14, %v5359_v30, %v11192_v32  ;;  %v5361_v2 = vsel %vm5353_vm8, %v5344_v13, %v11172_v24  ;;  %v5389_v54 = vsel %vm5387_vm10, %v5372_v17, %v11141_v41 }
 0x305   :  { %v5393_v3 = vsel %vm5387_vm10, %v5376_v49, %v5261_v40  ;;  %v5378_v32 = vsel %vm5370_vm14, %v5361_v2, %v11120_v44  ;;  %v5417_v33 = vsel %vm12001_vm12, %v5389_v54, %v5405_v50  ;;  %vm6063_vm12 = vcmask 916480  }
 0x306   :  { %v5407_v29 = vrot.slane %v5393_v3, 4 }
 0x308   :  { %v5419_v24 = vsel %vm1513_vm7, %v5417_v33, %v5407_v29 }
 0x30a   :  { %v5133_v48 = vpop.permute.xlu0 %5132 }
 0x30d   :  { %v5237_v12 = vpop.permute.xlu1 %5236 }
 0x30e   :  { %v5109_v26 = vpop.permute.xlu0 %5108 }
 0x312   :  { %v5131_v42 = vpop.permute.xlu0 %5130 }
 0x316   :  { %v5263_v14 = vpop.permute.xlu0 %5262 }
 0x317   :  { %v5395_v21 = vsel %vm5387_vm10, %v5378_v32, %v5263_v14 }
 0x318   :  { %v5409_v7 = vrot.slane %v5395_v21, 2 }
 0x31a   :  { %v5422_v57 = vsel %vm5420_vm11, %v5419_v24, %v5409_v7  ;;  %v5023_v41 = vpop.permute.xlu0 %5022 }
 0x31b   :  { %7098 = vmatprep.mubr.msk.bf16.mxu1 %vm5472_vm2, %v5422_v57  ;;  %v5285_v9 = vsel %vm3368_vm13, %v10990_v31, %v5023_v41 }
 0x31e   :  { %v5107_v27 = vpop.permute.xlu0 %5106 }
 0x322   :  { %v5239_v18 = vpop.permute.xlu0 %5238 }
 0x326   :  { %v5021_v52 = vpop.permute.xlu0 %5020 }
 0x327   :  { %v5283_v56 = vsel %vm3368_vm13, %v11000_v11, %v5021_v52  ;;  %v5297_v11 = vsel %vm3434_vm15, %v5281_v6, %v11130_v63 }
 0x328   :  { %v5313_v25 = vsel %vm3500_vm6, %v5297_v11, %v5107_v27 }
 0x329   :  { %v5329_v23 = vsel %vm3566_vm1, %v5313_v25, %v5131_v42 }
 0x32a   :  { %v5221_v53 = vpop.permute.xlu0 %5220 }
 0x32e   :  { %v5219_v19 = vpop.permute.xlu0 %5218 }
 0x332   :  { %v5197_v44 = vpop.permute.xlu0 %5196 }
 0x336   :  { %v5195_v47 = vpop.permute.xlu0 %5194 }
 0x337   :  { %v5346_v63 = vsel %vm5336_vm9, %v5329_v23, %v5195_v47  ;;  %v6950_v23 = vld [vmem:[%s11851_s4] ss:$0 sm:$0xff] }
 0x338   :  { %v5363_v61 = vsel %vm5353_vm8, %v5346_v63, %v5219_v19 }
 0x339   :  { %v5380_v14 = vsel %vm5370_vm14, %v5363_v61, %v5237_v12 }
 0x33a   :  { %v5087_v45 = vpop.permute.xlu0 %5086 }
 0x34f   :  { %v5137_v55 = vpop.permute.xlu1 %5136 }
 0x350   :  { %v5135_v35 = vpop.permute.xlu0 %5134 }
 0x353   :  { %v5113_v10 = vpop.permute.xlu1 %5112 }
 0x354   :  { %v5267_v46 = vpop.permute.xlu0 %5266 }
 0x357   :  { %v5025_v16 = vpop.permute.xlu1 %5024 }
 0x358   :  { %v5085_v51 = vpop.permute.xlu0 %5084  ;;  %v5287_v62 = vsel %vm3368_vm13, %v11195_v34, %v5025_v16  ;;  %vm12002_vm13 = vmmov %vm11999_vm3 }
 0x359   :  { %v5299_v22 = vsel %vm3434_vm15, %v5283_v56, %v5085_v51 }
 0x35a   :  { %v5315_v15 = vsel %vm3500_vm6, %v5299_v22, %v5109_v26 }
 0x35b   :  { %v5225_v28 = vpop.permute.xlu1 %5224  ;;  %v5331_v20 = vsel %vm3566_vm1, %v5315_v15, %v5133_v48  ;;  %v5301_v48 = vsel %vm3434_vm15, %v5285_v9, %v5087_v45 }
 0x35c   :  { %v5111_v1 = vpop.permute.xlu0 %5110  ;;  %v5348_v60 = vsel %vm5336_vm9, %v5331_v20, %v5197_v44 }
 0x35d   :  { %v5365_v39 = vsel %vm5353_vm8, %v5348_v60, %v5221_v53  ;;  %v5317_v59 = vsel %vm3500_vm6, %v5301_v48, %v5111_v1 }
 0x35e   :  { %v5382_v26 = vsel %vm5370_vm14, %v5365_v39, %v5239_v18  ;;  %v5333_v58 = vsel %vm3566_vm1, %v5317_v59, %v5135_v35 }
 0x35f   :  { %v5201_v37 = vpop.permute.xlu1 %5200  ;;  %v5399_v42 = vsel %vm5387_vm10, %v5382_v26, %v5267_v46 }
 0x360   :  { %v5243_v4 = vpop.permute.xlu0 %5242  ;;  %v5411_v29 = vrot.slane %v5399_v42, 6 }
 0x364   :  { %v5241_v0 = vpop.permute.xlu0 %5240 }
 0x366   :  { %v5089_v38 = vpop.permute.xlu1 %5088 }
 0x367   :  { %v5303_v30 = vsel %vm3434_vm15, %v5287_v62, %v5089_v38 }
 0x368   :  { %v5223_v36 = vpop.permute.xlu0 %5222  ;;  %v5319_v31 = vsel %vm3500_vm6, %v5303_v30, %v5113_v10  ;;  %vm5537_vm6 = vcmask 124928  }
 0x369   :  { %v5335_v40 = vsel %vm3566_vm1, %v5319_v31, %v5137_v55  ;;  %5545 = vst.msk [vmem:[#allocation3 + $0x1c] sm:$0x7] %vm5537_vm6, %v7398_v5  ;;  %5546 = vst.msk [vmem:[#allocation3 + $0x20] sm:$0x7] %vm5537_vm6, %v7398_v5 }
 0x36a   :  { %v5269_v49 = vpop.permute.xlu1 %5268  ;;  %v5352_v34 = vsel %vm5336_vm9, %v5335_v40, %v5201_v37  ;;  %5538 = vst.msk [vmem:[#allocation3] sm:$0x7] %vm5537_vm6, %v7398_v5  ;;  %5539 = vst.msk [vmem:[#allocation3 + $0x4] sm:$0x7] %vm5537_vm6, %v7398_v5 }
 0x36b   :  { %v5369_v43 = vsel %vm5353_vm8, %v5352_v34, %v5225_v28  ;;  %5540 = vst.msk [vmem:[#allocation3 + $0x8] sm:$0x7] %vm5537_vm6, %v7398_v5  ;;  %5541 = vst.msk [vmem:[#allocation3 + $0xc] sm:$0x7] %vm5537_vm6, %v7398_v5 }
 0x36c   :  { %v5199_v13 = vpop.permute.xlu0 %5198  ;;  %v5386_v32 = vsel %vm5370_vm14, %v5369_v43, %v5243_v4  ;;  %5542 = vst.msk [vmem:[#allocation3 + $0x10] sm:$0x7] %vm5537_vm6, %v7398_v5  ;;  %5544 = vst.msk [vmem:[#allocation3 + $0x18] sm:$0x7] %vm5537_vm6, %v7398_v5 }
 0x36d   :  { %v5350_v3 = vsel %vm5336_vm9, %v5333_v58, %v5199_v13  ;;  %5547 = vst.msk [vmem:[#allocation3 + $0x24] sm:$0x7] %vm5537_vm6, %v7398_v5  ;;  %5548 = vst.msk [vmem:[#allocation3 + $0x28] sm:$0x7] %vm5537_vm6, %v7398_v5  ;;  %vm12005_vm9 = vcmask 1042432  }
 0x36e   :  { %v5367_v2 = vsel %vm5353_vm8, %v5350_v3, %v5223_v36  ;;  %v5271_v21 = vpop.permute.xlu1 %5270 }
 0x36f   :  { %v5384_v17 = vsel %vm5370_vm14, %v5367_v2, %v5241_v0  ;;  %v5403_v24 = vsel %vm5387_vm10, %v5386_v32, %v5271_v21  ;;  %vm6045_vm14 = vcmask 654336  }
 0x370   :  { %v5401_v54 = vsel %vm5387_vm10, %v5384_v17, %v5269_v49  ;;  %v5265_v50 = vpop.permute.xlu0 %5264  ;;  %v5415_v41 = vrot.slane %v5403_v24, 2 }
 0x371   :  { %v5413_v33 = vrot.slane %v5401_v54, 4  ;;  %v5397_v7 = vsel %vm5387_vm10, %v5380_v14, %v5265_v50  ;;  %v5649_v19 = vld [vmem:[#allocation3] sm:$0x7] }
 0x372   :  { %v5424_v57 = vsel %vm12002_vm13, %v5397_v7, %v5411_v29  ;;  %v6962_v12 = vcombine.low %v5649_v19, %v5649_v19  ;;  %v5614_v7 = vld [vmem:[#allocation3 + $0x1c] sm:$0x7]  ;;  %vm6246_vm13 = vsmask.f32 1282 }
 0x373   :  { %v5426_v27 = vsel %vm1513_vm7, %v5424_v57, %v5413_v33  ;;  %v5654_v52 = vld [vmem:[#allocation3 + $0x18] sm:$0x7]  ;;  %vm5565_vm7 = vsmask.f32 2306 }
 0x374   :  { %v5428_v18 = vsel %vm5420_vm11, %v5426_v27, %v5415_v41  ;;  %v6967_v53 = vcombine.low %v5654_v52, %v5654_v52  ;;  %v5739_v10 = vrot.slane %v6962_v12, 1  ;;  %v5789_v46 = vshrl.u32 %v6962_v12, 16  ;;  %vm11371_vm3 = vmand %vm5537_vm6, %vm5565_vm7 }
 0x375   :  { %7099 = vmatmul.mubr.msk.bf16.vlgmr.msra.gmra.mrb[0].mxu1 %vm5472_vm2, %v5428_v18  ;;  %v5690_v51 = vshll.u32 %v6962_v12, 16  ;;  %vm6054_vm11 = vcmask 785408   ;;  %vm6218_vm2 = vcmask 254976  }
 0x376   :  { %v5744_v44 = vrot.slane %v6967_v53, 1  ;;  %v5799_v47 = vshrl.u32 %v6967_v53, 16  ;;  %v5710_v45 = vshll.u32 %v6967_v53, 16  ;;  %v5829_v22 = vrot.slane %v5789_v46, 1  ;;  %v5567_v53 = vld [vmem:[#allocation3 + $0x4] sm:$0x7]  ;;  %vm11702_vm6 = vmand %vm6218_vm2, %vm6246_vm13 }
 0x377   :  { %v5839_v1 = vsel %vm7499_vm5, %v5789_v46, %v5739_v10  ;;  %v5692_v15 = vrot.slane %v5690_v51, 1  ;;  %v5576_v51 = vld [vmem:[#allocation3 + $0x8] sm:$0x7]  ;;  %6220 = vst.msk [vmem:[#allocation4 + $0x2] sm:$0x3] %vm6218_vm2, %v7398_v5 }
 0x378   :  { %v5834_v55 = vrot.slane %v5799_v47, 1  ;;  %v5844_v35 = vsel %vm7499_vm5, %v5799_v47, %v5744_v44  ;;  %v5712_v16 = vrot.slane %v5710_v45, 1  ;;  %v5851_v4 = vsel %vm991_vm0, %v5839_v1, %v5829_v22  ;;  %v5623_v47 = vld [vmem:[#allocation3 + $0x20] sm:$0x7]  ;;  %6221 = vst.msk [vmem:[#allocation4 + $0x4] sm:$0x3] %vm6218_vm2, %v7398_v5 }
 0x379   :  { %v5749_v60 = vsel %vm7499_vm5, %v5649_v19, %v5692_v15  ;;  %6224 = vst.msk [vmem:[#allocation4 + $0xa] sm:$0x3] %vm6218_vm2, %v7398_v5  ;;  %6225 = vst.msk [vmem:[#allocation4 + $0xc] sm:$0x3] %vm6218_vm2, %v7398_v5 }
 0x37a   :  { %v5866_v56 = vsel %vm991_vm0, %v5844_v35, %v5834_v55  ;;  %v5754_v28 = vsel %vm7499_vm5, %v5654_v52, %v5712_v16  ;;  %v11356_v0 = vsel %vm991_vm0, %v5749_v60, %v5739_v10  ;;  %v5637_v55 = vld [vmem:[#allocation3 + $0x24] sm:$0x7]  ;;  %v5646_v60 = vld [vmem:[#allocation3 + $0x28] sm:$0x7]  ;;  %6219 = vst.msk [vmem:[#allocation4] sm:$0x3] %vm6218_vm2, %v7398_v5 }
 0x37b   :  { %5887 = vrot.lane.b32.xlu1 %v5866_v56, %s7391_s23  ;;  %v11349_v20 = vsel %vm991_vm0, %v5754_v28, %v5744_v44  ;;  %v5891_v25 = vshrl.u32 %v11356_v0, 16  ;;  %v5893_v9 = vshll.u32 %v11356_v0, 16  ;;  %6223 = vst.msk [vmem:[#allocation4 + $0x8] sm:$0x3] %vm6218_vm2, %v7398_v5 }
 0x37c   :  { %v5903_v6 = vshrl.u32 %v11349_v20, 16  ;;  %v5905_v37 = vshll.u32 %v11349_v20, 16 }
 0x37d   :  { %v5895_v48 = vrot.slane %v5893_v9, 1 }
 0x37e   :  { %v5907_v11 = vrot.slane %v5905_v37, 1 }
 0x37f   :  { %5883 = vrot.lane.b32.xlu1 %v5851_v4, %s7391_s23  ;;  %v5896_v36 = vor.u32 %v5895_v48, %v5891_v25 }
 0x380   :  { %v5908_v39 = vor.u32 %v5907_v11, %v5903_v6  ;;  %v5590_v11 = vld [vmem:[#allocation3 + $0xc] sm:$0x7] }
 0x383   :  { %5919 = vrot.lane.b32.xlu1 %v5908_v39, %s7397_s16 }
 0x387   :  { %5915 = vrot.lane.b32.xlu1 %v5896_v36, %s7397_s16 }
 0x448   :  { %v7100_v62 = vpop.f32.mrb[0].mxu1 }
 0x449   :  { %v5523_v59 = vadd.f32 %v7100_v62, %v6950_v23  ;;  %v5514_v38 = vpop.f32.mrb[1].mxu1 }
 0x44a   :  { %v5515_v63 = vadd.f32 %v6950_v23, %v5514_v38  ;;  %v7101_v30 = vpop.f32.mrb[2].mxu1  ;;  %v5599_v38 = vld [vmem:[#allocation3 + $0x10] sm:$0x7] }
 0x44b   :  { %v5531_v26 = vmax.f32 %v5523_v59, 0.0  ;;  %v5526_v31 = vadd.f32 %v7101_v30, %v6950_v23  ;;  %v5517_v40 = vpop.f32.mrb[3].mxu1 }
 0x44c   :  { %v5529_v58 = vmax.f32 %v5515_v63, 0.0  ;;  %v5518_v13 = vadd.f32 %v6950_v23, %v5517_v40 }
 0x44d   :  { %5535 = vst.msk [vmem:[#allocation5 + $0x10] sm:$0xff] %vm3434_vm15, %v5531_v26  ;;  %v7021_v61 = vpack.c.bf16 %v5531_v26, %v5531_v26  ;;  %v5532_v49 = vmax.f32 %v5526_v31, 0.0 }
 0x44e   :  { %5533 = vst.msk [vmem:[#allocation5] sm:$0xff] %vm3434_vm15, %v5529_v58  ;;  %v7019_v34 = vpack.c.bf16 %v5529_v58, %v5529_v58  ;;  %v5530_v3 = vmax.f32 %v5518_v13, 0.0 }
 0x44f   :  { %v5606_v42 = vshrl.u32 %v7021_v61, 16  ;;  %v5609_v43 = vshll.u32 %v7021_v61, 16  ;;  %5536 = vst.msk [vmem:[#allocation5 + $0x18] sm:$0xff] %vm3434_vm15, %v5532_v49  ;;  %v7022_v2 = vpack.c.bf16 %v5532_v49, %v5532_v49 }
 0x450   :  { %v5556_v17 = vshrl.u32 %v7019_v34, 16  ;;  %v5559_v54 = vshll.u32 %v7019_v34, 16  ;;  %5534 = vst.msk [vmem:[#allocation5 + $0x8] sm:$0xff] %vm3434_vm15, %v5530_v3  ;;  %v7020_v29 = vpack.c.bf16 %v5530_v3, %v5530_v3 }
 0x451   :  { %v5608_v50 = vrot.slane %v5606_v42, 7  ;;  %v5617_v14 = vrot.slane %v5606_v42, 5  ;;  %v5618_v32 = vrot.slane %v5609_v43, 6  ;;  %v5629_v21 = vshrl.u32 %v7022_v2, 16 }
 0x452   :  { %v5558_v24 = vrot.slane %v5556_v17, 7  ;;  %v5570_v57 = vrot.slane %v5556_v17, 5  ;;  %v5571_v41 = vrot.slane %v5559_v54, 6  ;;  %v5632_v27 = vshll.u32 %v7022_v2, 16 }
 0x453   :  { %v5611_v18 = vor.u32 %v5609_v43, %v5608_v50  ;;  %v5619_v52 = vor.u32 %v5618_v32, %v5617_v14  ;;  %v5631_v19 = vrot.slane %v5629_v21, 7  ;;  %v5640_v44 = vrot.slane %v5629_v21, 5 }
 0x454   :  { %v5561_v12 = vor.u32 %v5559_v54, %v5558_v24  ;;  %v5572_v45 = vor.u32 %v5571_v41, %v5570_v57  ;;  %v5641_v35 = vrot.slane %v5632_v27, 6  ;;  %v5582_v10 = vshrl.u32 %v7020_v29, 16 }
 0x455   :  { %v5615_v46 = vsel %vm11371_vm3, %v5611_v18, %v5614_v7  ;;  %v5620_v16 = vrot.slane %v5619_v52, 4  ;;  %v5634_v56 = vor.u32 %v5632_v27, %v5631_v19  ;;  %v5585_v22 = vshll.u32 %v7020_v29, 16 }
 0x456   :  { %5616 = vst [vmem:[#allocation3 + $0x1c] sm:$0x7] %v5615_v46  ;;  %v5568_v1 = vsel %vm11371_vm3, %v5561_v12, %v5567_v53  ;;  %v5573_v28 = vrot.slane %v5572_v45, 4  ;;  %v5642_v15 = vor.u32 %v5641_v35, %v5640_v44  ;;  %v5584_v4 = vrot.slane %v5582_v10, 7 }
 0x457   :  { %v5624_v6 = vsel %vm11371_vm3, %v5620_v16, %v5623_v47  ;;  %5569 = vst [vmem:[#allocation3 + $0x4] sm:$0x7] %v5568_v1  ;;  %v5638_v37 = vsel %vm11371_vm3, %v5634_v56, %v5637_v55  ;;  %v5593_v25 = vrot.slane %v5582_v10, 5  ;;  %v5594_v9 = vrot.slane %v5585_v22, 6 }
 0x458   :  { %5625 = vst [vmem:[#allocation3 + $0x20] sm:$0x7] %v5624_v6  ;;  %v5577_v39 = vsel %vm11371_vm3, %v5573_v28, %v5576_v51  ;;  %5639 = vst [vmem:[#allocation3 + $0x24] sm:$0x7] %v5638_v37  ;;  %v5643_v48 = vrot.slane %v5642_v15, 4  ;;  %v5587_v36 = vor.u32 %v5585_v22, %v5584_v4 }
 0x459   :  { %5578 = vst [vmem:[#allocation3 + $0x8] sm:$0x7] %v5577_v39  ;;  %v5595_v23 = vor.u32 %v5594_v9, %v5593_v25 }
 0x45a   :  { %v5647_v62 = vsel %vm11371_vm3, %v5643_v48, %v5646_v60  ;;  %v5591_v59 = vsel %vm11371_vm3, %v5587_v36, %v5590_v11 }
 0x45b   :  { %5648 = vst [vmem:[#allocation3 + $0x28] sm:$0x7] %v5647_v62  ;;  %5592 = vst [vmem:[#allocation3 + $0xc] sm:$0x7] %v5591_v59  ;;  %v5596_v63 = vrot.slane %v5595_v23, 4 }
 0x45d   :  { %v5600_v30 = vsel %vm11371_vm3, %v5596_v63, %v5599_v38  ;;  %v5655_v26 = vld [vmem:[#allocation3 + $0x1c] sm:$0x7] }
 0x45e   :  { %5601 = vst [vmem:[#allocation3 + $0x10] sm:$0x7] %v5600_v30  ;;  %v6968_v31 = vcombine.low %v5655_v26, %v5655_v26  ;;  %v11391_v40 = vld [vmem:[#allocation3 + $0x4] sm:$0x7] }
 0x45f   :  { %v5656_v58 = vld [vmem:[#allocation3 + $0x20] sm:$0x7]  ;;  %v11393_v13 = vld [vmem:[#allocation3 + $0x24] sm:$0x7]  ;;  %v11397_v61 = vcombine.low %v11391_v40, %v11391_v40 }
 0x460   :  { %v5745_v49 = vrot.slane %v6968_v31, 1  ;;  %v5801_v34 = vshrl.u32 %v6968_v31, 16  ;;  %v6969_v3 = vcombine.low %v5656_v58, %v5656_v58  ;;  %v5714_v42 = vshll.u32 %v6968_v31, 16  ;;  %v5651_v43 = vld [vmem:[#allocation3 + $0x8] sm:$0x7] }
 0x461   :  { %v11401_v2 = vcombine.low %v11393_v13, %v11393_v13  ;;  %v5791_v17 = vshrl.u32 %v11397_v61, 16  ;;  %v6964_v54 = vcombine.low %v5651_v43, %v5651_v43  ;;  %v5740_v18 = vrot.slane %v11397_v61, 1 }
 0x462   :  { %v5835_v29 = vrot.slane %v5801_v34, 1  ;;  %v5845_v50 = vsel %vm7499_vm5, %v5801_v34, %v5745_v49  ;;  %v5746_v14 = vrot.slane %v6969_v3, 1  ;;  %v5803_v32 = vshrl.u32 %v6969_v3, 16  ;;  %v11422_v45 = vld [vmem:[#allocation3 + $0xc] sm:$0x7] }
 0x463   :  { %v5718_v21 = vshll.u32 %v6969_v3, 16  ;;  %v5716_v33 = vrot.slane %v5714_v42, 1  ;;  %v5747_v7 = vrot.slane %v11401_v2, 1  ;;  %v5805_v24 = vshrl.u32 %v11401_v2, 16  ;;  %v5658_v46 = vld [vmem:[#allocation3 + $0x28] sm:$0x7] }
 0x464   :  { %v5869_v57 = vsel %vm991_vm0, %v5845_v50, %v5835_v29  ;;  %v5836_v41 = vrot.slane %v5803_v32, 1  ;;  %v5846_v27 = vsel %vm7499_vm5, %v5803_v32, %v5746_v14  ;;  %v5741_v12 = vrot.slane %v6964_v54, 1 }
 0x465   :  { %5943 = vrot.lane.b32.xlu1 %v5869_v57, %s7402_s15  ;;  %v5720_v52 = vrot.slane %v5718_v21, 1  ;;  %v5755_v53 = vsel %vm7499_vm5, %v5655_v26, %v5716_v33  ;;  %v5837_v19 = vrot.slane %v5805_v24, 1  ;;  %v5847_v47 = vsel %vm7499_vm5, %v5805_v24, %v5747_v7  ;;  %v5653_v55 = vld [vmem:[#allocation3 + $0x10] sm:$0x7] }
 0x466   :  { %v11416_v44 = vsel %vm991_vm0, %v5846_v27, %v5836_v41  ;;  %v11427_v35 = vsel %vm991_vm0, %v5755_v53, %v5745_v49  ;;  %v5830_v10 = vrot.slane %v5791_v17, 1  ;;  %v5840_v51 = vsel %vm7499_vm5, %v5791_v17, %v5740_v18  ;;  %v7292_v27 = vld [vmem:[%s11852_s5 + $0x8] sm:$0xff]  }
 0x467   :  { %5889 = vrot.lane.b32.xlu0 %v11416_v44, %s7391_s23  ;;  %v5756_v16 = vsel %vm7499_vm5, %v5656_v58, %v5720_v52  ;;  %v5793_v56 = vshrl.u32 %v6964_v54, 16  ;;  %v5698_v22 = vshll.u32 %v6964_v54, 16  ;;  %v5875_v1 = vsel %vm991_vm0, %v5847_v47, %v5837_v19 }
 0x468   :  { %v5694_v28 = vshll.u32 %v11397_v61, 16  ;;  %v11439_v15 = vcombine.low %v11422_v45, %v11422_v45  ;;  %v11441_v4 = vcombine.low %v5653_v55, %v5653_v55  ;;  %v11445_v11 = vcombine.low %v5658_v46, %v5658_v46 }
 0x469   :  { %5931 = vrot.lane.b32.xlu1 %v11427_v35, %s7400_s25  ;;  %v5831_v6 = vrot.slane %v5793_v56, 1  ;;  %v5841_v37 = vsel %vm7499_vm5, %v5793_v56, %v5741_v12  ;;  %v5700_v60 = vrot.slane %v5698_v22, 1  ;;  %v5854_v36 = vsel %vm991_vm0, %v5840_v51, %v5830_v10 }
 0x46a   :  { %v5696_v25 = vrot.slane %v5694_v28, 1  ;;  %v5742_v9 = vrot.slane %v11439_v15, 1  ;;  %v5795_v39 = vshrl.u32 %v11439_v15, 16  ;;  %v5706_v48 = vshll.u32 %v11441_v4, 16 }
 0x46b   :  { %5945 = vrot.lane.b32.xlu0 %v5875_v1, %s7402_s15  ;;  %v5751_v23 = vsel %vm7499_vm5, %v5651_v43, %v5700_v60  ;;  %v5726_v62 = vshll.u32 %v11445_v11, 16  ;;  %v11456_v59 = vsel %vm991_vm0, %v5756_v16, %v5746_v14  ;;  %v11466_v30 = vsel %vm991_vm0, %v5841_v37, %v5831_v6 }
 0x46c   :  { %v11460_v38 = vsel %vm991_vm0, %v5751_v23, %v5741_v12  ;;  %v5750_v63 = vsel %vm7499_vm5, %v11391_v40, %v5696_v25  ;;  %v5832_v26 = vrot.slane %v5795_v39, 1  ;;  %v5708_v31 = vrot.slane %v5706_v48, 1  ;;  %v7291_v40 = vld [vmem:[%s11852_s5] sm:$0xff]   ;;  %v7294_v48 = vld [vmem:[%s11852_s5 + $0x18] sm:$0xff]  }
 0x46d   :  { %5939 = vrot.lane.b32.xlu1 %v5854_v36, %s7402_s15  ;;  %v5728_v58 = vrot.slane %v5726_v62, 1  ;;  %v5842_v61 = vsel %vm7499_vm5, %v5795_v39, %v5742_v9  ;;  %v5743_v49 = vrot.slane %v11441_v4, 1  ;;  %v5748_v34 = vrot.slane %v11445_v11, 1  ;;  %6177 = vmatpush1.bf16.msra.mxu0 %v7291_v40  ;;  %v7296_v40 = vld [vmem:[%s11852_s5 + $0x28] sm:$0xff]  }
 0x46e   :  { %v11480_v3 = vsel %vm991_vm0, %v5750_v63, %v5740_v18  ;;  %v5753_v42 = vsel %vm7499_vm5, %v5653_v55, %v5708_v31  ;;  %v5899_v17 = vshll.u32 %v11460_v38, 16  ;;  %v5911_v50 = vshll.u32 %v11456_v59, 16  ;;  %6178 = vmatprep.subr.bf16.mxu0 %v7398_v5 }
 0x46f   :  { %5885 = vrot.lane.b32.xlu0 %v11466_v30, %s7391_s23  ;;  %v5758_v43 = vsel %vm7499_vm5, %v5658_v46, %v5728_v58  ;;  %v11492_v54 = vsel %vm991_vm0, %v5753_v42, %v5743_v49  ;;  %v5860_v14 = vsel %vm991_vm0, %v5842_v61, %v5832_v26  ;;  %v5909_v32 = vshrl.u32 %v11456_v59, 16 }
 0x470   :  { %v11497_v29 = vsel %vm991_vm0, %v5758_v43, %v5748_v34  ;;  %v6003_v21 = vshll.u32 %v11492_v54, 16  ;;  %v5913_v33 = vrot.slane %v5911_v50, 1  ;;  %v5722_v57 = vshll.u32 %v11401_v2, 16 }
 0x471   :  { %5927 = vrot.lane.b32.xlu1 %v11480_v3, %s7400_s25  ;;  %v6009_v24 = vshll.u32 %v11497_v29, 16  ;;  %v5702_v41 = vshll.u32 %v11439_v15, 16  ;;  %v5901_v18 = vrot.slane %v5899_v17, 1  ;;  %v6001_v52 = vshrl.u32 %v11492_v54, 16  ;;  %6179 = vmatpush1.bf16.msra.mxu0 %v7292_v27  ;;  %v7297_v17 = vld [vmem:[%s11852_s5 + $0x30] sm:$0xff]  }
 0x472   :  { %v6005_v53 = vrot.slane %v6003_v21, 1  ;;  %v6007_v19 = vshrl.u32 %v11497_v29, 16  ;;  %v11515_v47 = vor.u32 %v5913_v33, %v5909_v32  ;;  %v5724_v55 = vrot.slane %v5722_v57, 1  ;;  %6180 = vmatprep.subr.bf16.mxu0 %v7398_v5 }
 0x473   :  { %5941 = vrot.lane.b32.xlu0 %v5860_v14, %s7402_s15  ;;  %v6011_v12 = vrot.slane %v6009_v24, 1  ;;  %v5704_v10 = vrot.slane %v5702_v41, 1  ;;  %v5897_v46 = vshrl.u32 %v11460_v38, 16  ;;  %v5961_v51 = vshll.u32 %v11427_v35, 16  ;;  %v7299_v14 = vld [vmem:[%s11852_s5 + $0x40] sm:$0xff]   ;;  %v5888_v24 = vpop.permute.xlu1 %5887 }
 0x474   :  { %v6006_v16 = vor.u32 %v6005_v53, %v6001_v52  ;;  %v5757_v22 = vsel %vm7499_vm5, %v11393_v13, %v5724_v55  ;;  %v5797_v37 = vshrl.u32 %v11441_v4, 16  ;;  %v6077_v60 = vrot.slane %v11515_v47, 6  ;;  %v7295_v4 = vld [vmem:[%s11852_s5 + $0x20] sm:$0xff]  }
 0x475   :  { %5997 = vrot.lane.b32.xlu1 %v11416_v44, %s7403_s19  ;;  %v6012_v56 = vor.u32 %v6011_v12, %v6007_v19  ;;  %v7293_v44 = vld [vmem:[%s11852_s5 + $0x10] sm:$0xff]   ;;  %v11526_v1 = vor.u32 %v5901_v18, %v5897_v46  ;;  %v5785_v6 = vsel %vm991_vm0, %v5757_v22, %v5747_v7  ;;  %v5752_v13 = vsel %vm7499_vm5, %v11422_v45, %v5704_v10 }
 0x476   :  { %v6074_v28 = vrot.slane %v6006_v16, 7  ;;  %6181 = vmatpush1.bf16.msra.mxu0 %v7293_v44  ;;  %v5963_v7 = vrot.slane %v5961_v51, 1  ;;  %v5949_v36 = vshll.u32 %v11480_v3, 16  ;;  %v5770_v45 = vsel %vm991_vm0, %v5752_v13, %v5742_v9 }
 0x477   :  { %5933 = vrot.lane.b32.xlu0 %v5785_v6, %s7400_s25  ;;  %v6080_v25 = vrot.slane %v6012_v56, 5  ;;  %6182 = vmatprep.subr.bf16.mxu0 %v7398_v5  ;;  %v5833_v62 = vrot.slane %v5797_v37, 1  ;;  %v5843_v63 = vsel %vm7499_vm5, %v5797_v37, %v5743_v49  ;;  %v5959_v26 = vshrl.u32 %v11427_v35, 16  ;;  %v5884_v57 = vpop.permute.xlu1 %5883 }
 0x478   :  { %v6085_v2 = vsel %vm991_vm0, %v11526_v1, %v6074_v28  ;;  %v5951_v15 = vrot.slane %v5949_v36, 1  ;;  %v5807_v58 = vshrl.u32 %v11445_v11, 16  ;;  %v5947_v35 = vshrl.u32 %v11480_v3, 16 }
 0x479   :  { %5987 = vrot.lane.b32.xlu1 %v11456_v59, %s7404_s29  ;;  %v6089_v39 = vsel %vm12000_vm4, %v6085_v2, %v6077_v60  ;;  %v5863_v9 = vsel %vm991_vm0, %v5843_v63, %v5833_v62  ;;  %v5964_v31 = vor.u32 %v5963_v7, %v5959_v26  ;;  %v5967_v42 = vshll.u32 %v5785_v6, 16 }
 0x47a   :  { %v6094_v23 = vsel %vm12005_vm9, %v6089_v39, %v6080_v25  ;;  %6183 = vmatpush1.bf16.msra.mxu0 %v7294_v48  ;;  %v5952_v61 = vor.u32 %v5951_v15, %v5947_v35  ;;  %v5838_v49 = vrot.slane %v5807_v58, 1  ;;  %v5848_v3 = vsel %vm7499_vm5, %v5807_v58, %v5748_v34  ;;  %v7298_v34 = vld [vmem:[%s11852_s5 + $0x38] sm:$0xff]  }
 0x47b   :  { %6982 = vmatprep.mubr.msk.bf16.mxu0 %vm3434_vm15, %v6094_v23  ;;  %5929 = vrot.lane.b32.xlu0 %v5770_v45, %s7400_s25  ;;  %v5965_v11 = vshrl.u32 %v5785_v6, 16  ;;  %v5953_v21 = vshrl.u32 %v5770_v45, 16  ;;  %v5920_v41 = vpop.permute.xlu1 %5919  ;;  %v6018_v28 = vsel %vm3434_vm15, %v11349_v20, %v5888_v24  ;;  %v6014_v48 = vsel %vm3434_vm15, %v11356_v0, %v5884_v57 }
 0x47c   :  { %6184 = vmatprep.subr.bf16.mxu0 %v7398_v5  ;;  %v5878_v43 = vsel %vm991_vm0, %v5848_v3, %v5838_v49  ;;  %v6026_v60 = vsel %vm3566_vm1, %v6018_v28, %v5920_v41  ;;  %v7406_v24 = vmov 1983009808   ;;  %v6232_v41 = vlaneseq }
 0x47d   :  { %5983 = vrot.lane.b32.xlu1 %v11460_v38, %s7404_s29  ;;  %v6230_v57 = vunpack.c.l.s4 %v7406_v24 }
 0x47e   :  { %6185 = vmatpush1.bf16.msra.mxu0 %v7295_v4 }
 0x47f   :  { %5995 = vrot.lane.b32.xlu0 %v5863_v9, %s7403_s19  ;;  %6186 = vmatprep.subr.bf16.mxu0 %v7398_v5  ;;  %v5916_v27 = vpop.permute.xlu1 %5915 }
 0x481   :  { %5975 = vrot.lane.b32.xlu1 %v5964_v31, %s7405_s0 }
 0x482   :  { %6187 = vmatpush1.bf16.msra.mxu0 %v7296_v40 }
 0x483   :  { %5989 = vrot.lane.b32.xlu0 %v11497_v29, %s7404_s29  ;;  %6188 = vmatprep.subr.bf16.mxu0 %v7398_v5  ;;  %v5969_v29 = vrot.slane %v5967_v42, 1 }
 0x485   :  { %5971 = vrot.lane.b32.xlu1 %v5952_v61, %s7405_s0  ;;  %v5970_v50 = vor.u32 %v5969_v29, %v5965_v11 }
 0x486   :  { %6189 = vmatpush1.bf16.msra.mxu0 %v7297_v17 }
 0x487   :  { %5985 = vrot.lane.b32.xlu0 %v11492_v54, %s7404_s29  ;;  %6190 = vmatprep.subr.bf16.mxu0 %v7398_v5  ;;  %v5955_v54 = vshll.u32 %v5770_v45, 16 }
 0x489   :  { %5999 = vrot.lane.b32.xlu1 %v5878_v43, %s7403_s19  ;;  %v5957_v32 = vrot.slane %v5955_v54, 1 }
 0x48a   :  { %6191 = vmatpush1.bf16.msra.mxu0 %v7298_v34 }
 0x48b   :  { %5921 = vrot.lane.b32.xlu0 %v11515_v47, %s7397_s16  ;;  %6192 = vmatprep.subr.bf16.mxu0 %v7398_v5  ;;  %v5958_v33 = vor.u32 %v5957_v32, %v5953_v21 }
 0x48e   :  { %6193 = vmatpush1.bf16.msra.mxu0 %v7299_v14 }
 0x48f   :  { %5977 = vrot.lane.b32.xlu0 %v5970_v50, %s7405_s0 }
 0x493   :  { %5917 = vrot.lane.b32.xlu0 %v11526_v1, %s7397_s16 }
 0x497   :  { %5973 = vrot.lane.b32.xlu0 %v5958_v33, %s7405_s0 }
 0x49b   :  { %5993 = vrot.lane.b32.xlu0 %v11466_v30, %s7403_s19 }
 0x4d7   :  { %v5944_v18 = vpop.permute.xlu1 %5943 }
 0x4d9   :  { %v5890_v52 = vpop.permute.xlu0 %5889 }
 0x4da   :  { %v6020_v6 = vsel %vm3434_vm15, %v11456_v59, %v5890_v52  ;;  %v6022_v59 = vsel %vm3566_vm1, %v6014_v48, %v5916_v27  ;;  %v6231_v27 = vunpack.c.0.s8 %v6230_v57  ;;  %v7305_v48 = vld [vmem:[%s11854_s7 + $0x8] sm:$0xff]  }
 0x4db   :  { %v5932_v53 = vpop.permute.xlu1 %5931 }
 0x4dc   :  { %v6034_v7 = vsel %vm5353_vm8, %v6026_v60, %v5932_v53  ;;  %v6285_v53 = vld [vmem:[#allocation4 + $0x8] sm:$0x3] }
 0x4dd   :  { %v5946_v19 = vpop.permute.xlu0 %5945  ;;  %v6042_v36 = vsel %vm5387_vm10, %v6034_v7, %v5944_v18  ;;  %v6233_v18 = vshrl.u32 %v6232_v41, 7  ;;  %v7303_v7 = vld [vmem:[%s11854_s7] sm:$0xff]  }
 0x4df   :  { %v5940_v12 = vpop.permute.xlu1 %5939  ;;  %v11647_v52 = vsub.s32 %v6231_v27, %v6233_v18  ;;  %v6279_v27 = vld [vmem:[#allocation4 + $0xc] sm:$0x3] }
 0x4e1   :  { %v5886_v47 = vpop.permute.xlu0 %5885 }
 0x4e2   :  { %v6016_v23 = vsel %vm3434_vm15, %v11460_v38, %v5886_v47  ;;  %vm12006_vm15 = vmmov %vm12000_vm4  ;;  %v7300_v47 = vld [vmem:[%s11854_s7 + $0x80] sm:$0xff]  }
 0x4e3   :  { %v5928_v10 = vpop.permute.xlu1 %5927 }
 0x4e4   :  { %v6030_v26 = vsel %vm5353_vm8, %v6022_v59, %v5928_v10  ;;  %v7407_v10 = vmov 0.0   ;;  %v7308_v59 = vld [vmem:[%s11854_s7 + $0x58] sm:$0xff]  }
 0x4e5   :  { %v5942_v55 = vpop.permute.xlu0 %5941  ;;  %v6038_v38 = vsel %vm5387_vm10, %v6030_v26, %v5940_v12  ;;  %v6321_v12 = vrot.slane %v6285_v53, %v11647_v52  ;;  %7102 = vmatprep.subr.bf16.mxu0 %v7407_v10 }
 0x4e7   :  { %v5998_v16 = vpop.permute.xlu1 %5997  ;;  %v6378_v5 = vshrl.u32 %v6321_v12, 16 }
 0x4e9   :  { %v5934_v46 = vpop.permute.xlu0 %5933 }
 0x4eb   :  { %v5988_v22 = vpop.permute.xlu1 %5987 }
 0x4ed   :  { %v5930_v51 = vpop.permute.xlu0 %5929 }
 0x4ef   :  { %v5984_v1 = vpop.permute.xlu1 %5983 }
 0x4f1   :  { %v5996_v56 = vpop.permute.xlu0 %5995 }
 0x4f3   :  { %v5976_v25 = vpop.permute.xlu1 %5975 }
 0x4f4   :  { %v6051_v45 = vsel %vm6045_vm14, %v6042_v36, %v5976_v25  ;;  %v7301_v25 = vld [vmem:[%s11854_s7 + $0x88] sm:$0xff]   ;;  %v7307_v36 = vld [vmem:[%s11854_s7 + $0x10] sm:$0xff]  }
 0x4f5   :  { %v5990_v44 = vpop.permute.xlu0 %5989  ;;  %v6060_v31 = vsel %vm6054_vm11, %v6051_v45, %v5988_v22 }
 0x4f6   :  { %v6069_v42 = vsel %vm6063_vm12, %v6060_v31, %v5998_v16  ;;  %v6349_v16 = vshll.u32 %v6321_v12, 16 }
 0x4f7   :  { %v5972_v62 = vpop.permute.xlu1 %5971  ;;  %v6076_v50 = vrot.slane %v6069_v42, 6  ;;  %v6248_v42 = vld [vmem:[#allocation4 + $0x2] sm:$0x3] }
 0x4f8   :  { %v6047_v61 = vsel %vm6045_vm14, %v6038_v38, %v5972_v62 }
 0x4f9   :  { %v5986_v30 = vpop.permute.xlu0 %5985  ;;  %v6056_v34 = vsel %vm6054_vm11, %v6047_v61, %v5984_v1  ;;  %v6351_v1 = vrot.slane %v6349_v16, 1 }
 0x4fb   :  { %v6000_v40 = vpop.permute.xlu1 %5999 }
 0x4fd   :  { %v5922_v37 = vpop.permute.xlu0 %5921 }
 0x4fe   :  { %v6028_v13 = vsel %vm3566_vm1, %v6020_v6, %v5922_v37  ;;  %v11661_v6 = vsel %vm7499_vm5, %v6285_v53, %v6351_v1 }
 0x4ff   :  { %v6036_v2 = vsel %vm5353_vm8, %v6028_v13, %v5934_v46  ;;  %v6393_v46 = vrot.slane %v6321_v12, 1  ;;  %v6418_v37 = vshrl.u32 %v11661_v6, 16 }
 0x500   :  { %v6044_v20 = vsel %vm5387_vm10, %v6036_v2, %v5946_v19  ;;  %v6282_v19 = vld [vmem:[#allocation4] sm:$0x3]  ;;  %v7302_v2 = vld [vmem:[%s11854_s7 + $0x40] sm:$0xff]  }
 0x501   :  { %v5978_v39 = vpop.permute.xlu0 %5977  ;;  %7041 = vmatprep.subr.bf16.mxu1 %v7302_v2 }
 0x502   :  { %v6053_v15 = vsel %vm6045_vm14, %v6044_v20, %v5978_v39  ;;  %v7304_v39 = vld [vmem:[%s11854_s7 + $0x48] sm:$0xff]   ;;  %7042 = vmatpush3.bf16.msra.mxu1 %v7303_v7  ;;  %v7306_v20 = vld [vmem:[%s11854_s7 + $0x50] sm:$0xff]  }
 0x503   :  { %v6062_v4 = vsel %vm6054_vm11, %v6053_v15, %v5990_v44  ;;  %v6405_v44 = vsel %vm7499_vm5, %v6378_v5, %v6393_v46  ;;  %7043 = vmatprep.subr.bf16.mxu1 %v7304_v39 }
 0x504   :  { %v6071_v17 = vsel %vm6063_vm12, %v6062_v4, %v6000_v40  ;;  %6412 = vrot.lane.b32.xlu1 %v6405_v44, %s7397_s16 }
 0x505   :  { %v5918_v63 = vpop.permute.xlu0 %5917  ;;  %v6079_v14 = vrot.slane %v6071_v17, 5 }
 0x506   :  { %v6024_v0 = vsel %vm3566_vm1, %v6016_v23, %v5918_v63  ;;  %7044 = vmatpush3.bf16.msra.mxu1 %v7305_v48  ;;  %v6972_v23 = vld [vmem:[%s11853_s6] ss:$0 sm:$0xff] }
 0x507   :  { %v6032_v9 = vsel %vm5353_vm8, %v6024_v0, %v5930_v51  ;;  %vm12007_vm8 = vmmov %vm12005_vm9  ;;  %7045 = vmatprep.subr.bf16.mxu1 %v7306_v20 }
 0x508   :  { %v6040_v58 = vsel %vm5387_vm10, %v6032_v9, %v5942_v55  ;;  %v6300_v55 = vrot.slane %v6282_v19, %v11647_v52  ;;  %6422 = vrot.lane.b32.xlu1 %v6418_v37, %s7402_s15 }
 0x509   :  { %v5974_v35 = vpop.permute.xlu0 %5973 }
 0x50a   :  { %v6049_v49 = vsel %vm6045_vm14, %v6040_v58, %v5974_v35  ;;  %v6372_v51 = vshrl.u32 %v6300_v55, 16  ;;  %v6337_v22 = vshll.u32 %v6300_v55, 16  ;;  %7046 = vmatpush3.bf16.msra.mxu1 %v7307_v36 }
 0x50b   :  { %v6058_v3 = vsel %vm6054_vm11, %v6049_v49, %v5986_v30  ;;  %7047 = vmatprep.subr.bf16.mxu1 %v7308_v59 }
 0x50c   :  { %v6067_v43 = vsel %vm6063_vm12, %v6058_v3, %v5996_v56  ;;  %v6390_v56 = vrot.slane %v6300_v55, 1  ;;  %v6339_v28 = vrot.slane %v6337_v22, 1  ;;  %v7312_v22 = vld [vmem:[%s11854_s7 + $0x68] sm:$0xff]  }
 0x50d   :  { %v6073_v29 = vrot.slane %v6067_v43, 7  ;;  %v5994_v11 = vpop.permute.xlu0 %5993 }
 0x50e   :  { %v6065_v54 = vsel %vm6063_vm12, %v6056_v34, %v5994_v11  ;;  %v6402_v30 = vsel %vm7499_vm5, %v6372_v51, %v6390_v56  ;;  %v11667_v60 = vsel %vm7499_vm5, %v6282_v19, %v6339_v28  ;;  %v7309_v19 = vld [vmem:[%s11854_s7 + $0x18] sm:$0xff]   ;;  %v7311_v56 = vld [vmem:[%s11854_s7 + $0x20] sm:$0xff]  }
 0x50f   :  { %v6082_v32 = vsel %vm991_vm0, %v6065_v54, %v6073_v29  ;;  %6410 = vrot.lane.b32.xlu0 %v6402_v30, %s7397_s16  ;;  %v6415_v13 = vshrl.u32 %v11667_v60, 16  ;;  %vm7408_vm0 = vmmov 0   ;;  %v6257_v54 = vld [vmem:[#allocation4 + $0x4] sm:$0x3]  ;;  %7048 = vmatpush3.bf16.msra.mxu1 %v7309_v19 }
 0x510   :  { %v6087_v21 = vsel %vm12006_vm15, %v6082_v32, %v6076_v50  ;;  %v6270_v50 = vld [vmem:[#allocation4 + $0xa] sm:$0x3] }
 0x511   :  { %v6091_v33 = vsel %vm12007_vm8, %v6087_v21, %v6079_v14  ;;  %6420 = vrot.lane.b32.xlu1 %v6415_v13, %s7402_s15  ;;  %v7313_v13 = vld [vmem:[%s11854_s7 + $0x28] sm:$0xff]  }
 0x512   :  { %6209 = vmatmul.mubr.bf16.vlgmr.msra.gmra.mrb[16].mxu0 %v6091_v33 }
 0x513   :  { %7103 = vmatpush3.bf16.msra.mxu0 %v7300_v47  ;;  %7106 = vmatprep.mubr.msk.bf16.mxu0 %vm7408_vm0, %v7407_v10  ;;  %v7310_v47 = vld [vmem:[%s11854_s7 + $0x60] sm:$0xff]  }
 0x514   :  { %7104 = vmatprep.subr.bf16.mxu0 %v7407_v10  ;;  %7049 = vmatprep.subr.bf16.mxu1 %v7310_v47 }
 0x515   :  { %7050 = vmatpush3.bf16.msra.mxu1 %v7311_v56 }
 0x516   :  { %7051 = vmatprep.subr.bf16.mxu1 %v7312_v22 }
 0x517   :  { %7105 = vmatpush3.bf16.msra.mxu0 %v7301_v25  ;;  %v7314_v25 = vld [vmem:[%s11854_s7 + $0x70] sm:$0xff]  }
 0x519   :  { %7052 = vmatpush3.bf16.msra.mxu1 %v7313_v13 }
 0x51a   :  { %7053 = vmatprep.subr.bf16.mxu1 %v7314_v25 }
 0x5e5   :  { %v6210_v45 = vpop.f32.mrb[16].mxu0 }
 0x5e6   :  { %v6211_v62 = vadd.f32 %v6972_v23, %v6210_v45  ;;  %v6212_v63 = vpop.f32.mrb[17].mxu0  ;;  %v7315_v45 = vld [vmem:[%s11854_s7 + $0x30] sm:$0xff]  }
 0x5e7   :  { %v6213_v26 = vpop.f32.mrb[18].mxu0  ;;  %7054 = vmatpush3.bf16.msra.mxu1 %v7315_v45 }
 0x5e8   :  { %v6216_v15 = vmax.f32 %v6211_v62, 0.0  ;;  %v6214_v0 = vpop.f32.mrb[19].mxu0  ;;  %v7316_v62 = vld [vmem:[%s11854_s7 + $0x78] sm:$0xff]  }
 0x5e9   :  { %7055 = vmatprep.subr.bf16.mxu1 %v7316_v62 }
 0x5ea   :  { %v6227_v9 = vpack.c.bf16 %v6216_v15, %v6216_v15  ;;  %6217 = vst.msk [vmem:[#allocation7] sm:$0xff] %vm3566_vm1, %v6216_v15 }
 0x5ec   :  { %v6235_v31 = vrot.slane %v6227_v9, %v11647_v52  ;;  %v7317_v9 = vld [vmem:[%s11854_s7 + $0x38] sm:$0xff]   ;;  %s7409_s7 = smov [#allocation7]  }
 0x5ed   :  { %7056 = vmatpush3.bf16.msra.mxu1 %v7317_v9 }
 0x5ee   :  { %v6237_v58 = vshrl.u32 %v6235_v31, 16  ;;  %v6240_v38 = vshll.u32 %v6235_v31, 16  ;;  %v6260_v4 = vcombine.high %v6235_v31, %v6235_v31 }
 0x5f0   :  { %v6239_v35 = vrot.slane %v6237_v58, 7  ;;  %v6251_v61 = vrot.slane %v6237_v58, 6  ;;  %v6252_v49 = vrot.slane %v6240_v38, 7  ;;  %v6262_v40 = vshrl.u32 %v6260_v4, 16 }
 0x5f1   :  { %v6265_v43 = vshll.u32 %v6260_v4, 16 }
 0x5f2   :  { %v6242_v17 = vor.u32 %v6240_v38, %v6239_v35  ;;  %v6253_v29 = vor.u32 %v6252_v49, %v6251_v61  ;;  %v6264_v11 = vrot.slane %v6262_v40, 7  ;;  %v6273_v34 = vrot.slane %v6262_v40, 6  ;;  %v6413_v40 = vpop.permute.xlu1 %6412 }
 0x5f3   :  { %v6274_v14 = vrot.slane %v6265_v43, 7 }
 0x5f4   :  { %v6249_v32 = vsel %vm11702_vm6, %v6242_v17, %v6248_v42  ;;  %v6254_v21 = vrot.slane %v6253_v29, 2  ;;  %v6267_v33 = vor.u32 %v6265_v43, %v6264_v11  ;;  %v6411_v42 = vpop.permute.xlu0 %6410 }
 0x5f5   :  { %6250 = vst [vmem:[#allocation4 + $0x2] sm:$0x3] %v6249_v32  ;;  %v6275_v24 = vor.u32 %v6274_v14, %v6273_v34  ;;  %v6462_v32 = vsel %vm3566_vm1, %v11661_v6, %v6413_v40 }
 0x5f6   :  { %v6258_v57 = vsel %vm11702_vm6, %v6254_v21, %v6257_v54  ;;  %v6271_v41 = vsel %vm11702_vm6, %v6267_v33, %v6270_v50  ;;  %v6423_v3 = vpop.permute.xlu1 %6422 }
 0x5f7   :  { %6259 = vst [vmem:[#allocation4 + $0x4] sm:$0x3] %v6258_v57  ;;  %6272 = vst [vmem:[#allocation4 + $0xa] sm:$0x3] %v6271_v41  ;;  %v6276_v18 = vrot.slane %v6275_v24, 2  ;;  %v6460_v57 = vsel %vm3566_vm1, %v11667_v60, %v6411_v42 }
 0x5f9   :  { %v6280_v53 = vsel %vm11702_vm6, %v6276_v18, %v6279_v27  ;;  %v6466_v18 = vsel %vm5387_vm10, %v6462_v32, %v6423_v3 }
 0x5fa   :  { %6281 = vst [vmem:[#allocation4 + $0xc] sm:$0x3] %v6280_v53  ;;  %v6421_v43 = vpop.permute.xlu1 %6420 }
 0x5fc   :  { %v6283_v12 = vld [vmem:[#allocation4 + $0x2] sm:$0x3] }
 0x5fd   :  { %v11721_v55 = vrot.slane %v6283_v12, %v11647_v52 }
 0x5fe   :  { %v6286_v10 = vld [vmem:[#allocation4 + $0xa] sm:$0x3]  ;;  %v6284_v5 = vld [vmem:[#allocation4 + $0x4] sm:$0x3] }
 0x5ff   :  { %v6341_v46 = vshll.u32 %v11721_v55, 16  ;;  %v11725_v16 = vrot.slane %v6286_v10, %v11647_v52  ;;  %v6314_v51 = vrot.slane %v6284_v5, %v11647_v52  ;;  %v6374_v21 = vshrl.u32 %v11721_v55, 16 }
 0x600   :  { %v6391_v33 = vrot.slane %v11721_v55, 1  ;;  %v6464_v55 = vsel %vm5387_vm10, %v6460_v57, %v6421_v43 }
 0x601   :  { %v6287_v44 = vld [vmem:[#allocation4 + $0xc] sm:$0x3]  ;;  %v6343_v1 = vrot.slane %v6341_v46, 1  ;;  %v6353_v30 = vshll.u32 %v11725_v16, 16  ;;  %v6345_v28 = vshll.u32 %v6314_v51, 16  ;;  %v6376_v35 = vshrl.u32 %v6314_v51, 16 }
 0x602   :  { %v6335_v37 = vrot.slane %v6287_v44, %v11647_v52  ;;  %v6392_v61 = vrot.slane %v6314_v51, 1  ;;  %v6380_v54 = vshrl.u32 %v11725_v16, 16  ;;  %v6394_v50 = vrot.slane %v11725_v16, 1 }
 0x603   :  { %v6367_v2 = vsel %vm7499_vm5, %v6283_v12, %v6343_v1  ;;  %v6347_v7 = vrot.slane %v6345_v28, 1  ;;  %v6355_v59 = vrot.slane %v6353_v30, 1  ;;  %v6403_v6 = vsel %vm7499_vm5, %v6374_v21, %v6391_v33 }
 0x604   :  { %v6382_v39 = vshrl.u32 %v6335_v37, 16  ;;  %v6395_v48 = vrot.slane %v6335_v37, 1  ;;  %v6431_v20 = vshrl.u32 %v6367_v2, 16  ;;  %v6357_v36 = vshll.u32 %v6335_v37, 16 }
 0x605   :  { %v6368_v63 = vsel %vm7499_vm5, %v6284_v5, %v6347_v7  ;;  %v6370_v15 = vsel %vm7499_vm5, %v6286_v10, %v6355_v59  ;;  %v6404_v49 = vsel %vm7499_vm5, %v6376_v35, %v6392_v61  ;;  %v6406_v24 = vsel %vm7499_vm5, %v6380_v54, %v6394_v50 }
 0x606   :  { %v6407_v52 = vsel %vm7499_vm5, %v6382_v39, %v6395_v48  ;;  %6436 = vrot.lane.b32.xlu0 %v6431_v20, %s7397_s16  ;;  %v6359_v23 = vrot.slane %v6357_v36, 1  ;;  %v6453_v31 = vshrl.u32 %v6368_v63, 16  ;;  %v6434_v38 = vshrl.u32 %v6370_v15, 16 }
 0x607   :  { %6450 = vrot.lane.b32.xlu1 %v6407_v52, %s7404_s29 }
 0x608   :  { %v6371_v26 = vsel %vm7499_vm5, %v6287_v44, %v6359_v23 }
 0x609   :  { %v6456_v0 = vshrl.u32 %v6371_v26, 16 }
 0x60a   :  { %6442 = vrot.lane.b32.xlu0 %v6368_v63, %s7402_s15 }
 0x60b   :  { %6428 = vrot.lane.b32.xlu1 %v6370_v15, %s7404_s29  ;;  %v6492_v58 = vshll.u32 %v6456_v0, 16 }
 0x60d   :  { %v6499_v4 = vsel %vm7499_vm5, %v6453_v31, %v6492_v58 }
 0x60e   :  { %7107 = vmatmul.mubr.msk.bf16.vlgmr.msra.gmra.mrb[20].mxu0 %vm3566_vm1, %v6499_v4  ;;  %6438 = vrot.lane.b32.xlu0 %v6434_v38, %s7397_s16  ;;  %s6757_s16 = sshll.u32 %s7409_s7, 4  ;;  %s6758_s16 = int_to_ptr.vmem [resolvable:$true] %s6757_s16 }
 0x60f   :  { %6426 = vrot.lane.b32.xlu1 %v6367_v2, %s7404_s29  ;;  %s7320_s1 = scalar_lea.vmem %s6758_s16, 128  ;;  %p7325_p1 = scmp.lt.s32.totalorder %s6758_s16, %s6758_s16 }
 0x610   :  { %p7321_p0 = scmp.ne.s32.totalorder %s6758_s16, %s7320_s1  ;;  %p7326_p2 = scmp.lt.s32.totalorder %s7320_s1, %s7320_s1 }
 0x612   :  { %6444 = vrot.lane.b32.xlu0 %v6371_v26, %s7402_s15  ;;  %s7410_s15 = smov [#allocation5]   ;;  %p7327_p3 = por %p7326_p2, %p7325_p1 }
 0x614   :  { %p7328_p4 = pnand %p7327_p3, %p7321_p0 }
 0x616   :  { %6448 = vrot.lane.b32.xlu0 %v6404_v49, %s7404_s29  ;;  %s6744_s29 = sshll.u32 %s7410_s15, 4  ;;  %s11800_s29 = int_to_ptr.vmem [resolvable:$true] %s6744_s29 }
 0x678   :  { %v6437_v17 = vpop.permute.xlu0 %6436 }
 0x679   :  { %v6451_v29 = vpop.permute.xlu1 %6450  ;;  %v6474_v10 = vsel %vm3566_vm1, %v6403_v6, %v6437_v17 }
 0x67c   :  { %v6443_v11 = vpop.permute.xlu0 %6442 }
 0x67d   :  { %v6429_v34 = vpop.permute.xlu1 %6428  ;;  %v6479_v5 = vsel %vm5387_vm10, %v6474_v10, %v6443_v11 }
 0x67e   :  { %v6471_v47 = vsel %vm6054_vm11, %v6466_v18, %v6429_v34 }
 0x67f   :  { %v6487_v51 = vshll.u32 %v6471_v47, 16 }
 0x680   :  { %v6439_v14 = vpop.permute.xlu0 %6438 }
 0x681   :  { %v6477_v41 = vsel %vm3566_vm1, %v6406_v24, %v6439_v14  ;;  %v6427_v53 = vpop.permute.xlu1 %6426 }
 0x682   :  { %v6468_v46 = vsel %vm6054_vm11, %v6464_v55, %v6427_v53 }
 0x683   :  { %v6497_v44 = vsel %vm7499_vm5, %v6468_v46, %v6487_v51 }
 0x684   :  { %v6445_v27 = vpop.permute.xlu0 %6444 }
 0x685   :  { %v6481_v19 = vsel %vm5387_vm10, %v6477_v41, %v6445_v27 }
 0x686   :  { %v6486_v12 = vsel %vm6054_vm11, %v6481_v19, %v6451_v29 }
 0x687   :  { %v6489_v60 = vshll.u32 %v6486_v12, 16 }
 0x688   :  { %v6449_v16 = vpop.permute.xlu0 %6448 }
 0x689   :  { %v6483_v56 = vsel %vm6054_vm11, %v6479_v5, %v6449_v16 }
 0x68a   :  { %v6498_v22 = vsel %vm7499_vm5, %v6483_v56, %v6489_v60 }
 0x68b   :  { %6686 = vmatprep.mubr.bf16.mxu1 %v6498_v22 }
 0x68c   :  { %6687 = vmatmul.mubr.bf16.vlgmr.msra.gmra.mrb[4].mxu1 %v6497_v44 }
 0x6e1   :  { %v6728_v1 = vpop.f32.mrb[20].mxu0 }
 0x6e2   :  { %v7108_v30 = vpop.f32.mrb[21].mxu0 }
 0x6e3   :  { %v6731_v28 = vpop.f32.mrb[22].mxu0 }
 0x6e4   :  { %v7109_v37 = vpop.f32.mrb[23].mxu0 }
 0x6e5   :  { %7331 = shalt.err (!%p7328_p4)
}
 0x6e6   :  { %s7332_s3 = scalar_lea.hbm %s11858_s11, 128 }
 0x6e7   :  { %p7333_p5 = scmp.ne.s32.totalorder %s11858_s11, %s7332_s3  ;;  %p7336_p6 = scmp.lt.u32.totalorder %s7332_s3, %s11858_s11 }
 0x6e9   :  { %p7338_p7 = pnand %p7336_p6, %p7333_p5 }
 0x6eb   :  { %7341 = shalt.err (!%p7338_p7)
}
 0x6ec   :  { %6760 = dma.vmem_to_hbm [thread:$0]  %s6758_s16, 128, %s11858_s11, [#allocation8]  }
 0x6ed   :  { %s7342_s18 = scalar_lea.vmem %s11800_s29, 512  ;;  %p7347_p9 = scmp.lt.s32.totalorder %s11800_s29, %s11800_s29 }
 0x6ee   :  { %p7343_p8 = scmp.ne.s32.totalorder %s11800_s29, %s7342_s18  ;;  %p7348_p10 = scmp.lt.s32.totalorder %s7342_s18, %s7342_s18 }
 0x6f0   :  { %p7349_p11 = por %p7348_p10, %p7347_p9 }
 0x6f2   :  { %p7350_p12 = pnand %p7349_p11, %p7343_p8 }
 0x6f4   :  { %7353 = shalt.err (!%p7350_p12)
}
 0x6f5   :  { %s7354_s24 = scalar_lea.hbm %s11857_s10, 512 }
 0x6f6   :  { %p7355_p13 = scmp.ne.s32.totalorder %s11857_s10, %s7354_s24  ;;  %p7358_p0 = scmp.lt.u32.totalorder %s7354_s24, %s11857_s10 }
 0x6f8   :  { %p7360_p1 = pnand %p7358_p0, %p7355_p13 }
 0x6fa   :  { %7363 = shalt.err (!%p7360_p1)
}
 0x6fb   :  { %s7411_s11 = smov 128   ;;  %v6983_v13 = vld [vmem:[%s11855_s8] ss:$0 sm:$0xff]  ;;  %s7412_s7 = smov [#allocation9]   ;;  %vm6735_vm1 = vcmask 517120  }
 0x6fc   :  { %6750 = dma.vmem_to_hbm [thread:$0]  %s11800_s29, 512, %s11857_s10, [#allocation6], %s7411_s11, %s7411_s11, %s7393_s13  }
 0x6fd   :  { %s6767_s16 = sshll.u32 %s7412_s7, 4  ;;  %s6768_s16 = int_to_ptr.vmem [resolvable:$true] %s6767_s16 }
 0x6fe   :  { %s7364_s15 = scalar_lea.vmem %s6768_s16, 32  ;;  %p7369_p3 = scmp.lt.s32.totalorder %s6768_s16, %s6768_s16 }
 0x6ff   :  { %p7365_p2 = scmp.ne.s32.totalorder %s6768_s16, %s7364_s15  ;;  %p7370_p4 = scmp.lt.s32.totalorder %s7364_s15, %s7364_s15 }
 0x701   :  { %p7371_p5 = por %p7370_p4, %p7369_p3 }
 0x703   :  { %p7372_p6 = pnand %p7371_p5, %p7365_p2 }
 0x75f   :  { %v7057_v8 = vpop.f32.mrb[4].mxu1 }
 0x760   :  { %v7058_v25 = vpop.f32.mrb[5].mxu1 }
 0x761   :  { %v7059_v2 = vadd.f32 %v7058_v25, %v7057_v8  ;;  %v7060_v7 = vpop.f32.mrb[6].mxu1 }
 0x762   :  { %v7061_v39 = vpop.f32.mrb[7].mxu1 }
 0x763   :  { %v6689_v48 = vadd.f32 %v7059_v2, %v6983_v13 }
 0x765   :  { %v6729_v20 = vadd.f32 %v6728_v1, %v6689_v48 }
 0x767   :  { %v6734_v36 = vmax.f32 %v6729_v20, 0.0 }
 0x769   :  { %6736 = vst.msk [vmem:[#allocation9] sm:$0x3] %vm6735_vm1, %v6734_v36 }
 0x76a   :  { %7375 = shalt.err (!%p7372_p6)
}
 0x76b   :  { %s7376_s13 = scalar_lea.hbm %s11859_s12, 32 }
 0x76c   :  { %p7377_p7 = scmp.ne.s32.totalorder %s11859_s12, %s7376_s13  ;;  %p7380_p8 = scmp.lt.u32.totalorder %s7376_s13, %s11859_s12 }
 0x76e   :  { %p7382_p9 = pnand %p7380_p8, %p7377_p7 }
 0x770   :  { %7385 = shalt.err (!%p7382_p9)
}
 0x771   :  { %6770 = dma.vmem_to_hbm [thread:$0]  %s6768_s16, 32, %s11859_s12, [#allocation8]  }
 0x772   :  { %7386 = dma.done.wait [#allocation6], 512  }
 0x773   :  { %7387 = vsyncadd [#allocation6], 4294966784 }
 0x774   :  { %7388 = dma.done.wait [#allocation8], 160  }
 0x775   :  { %7389 = vsyncadd [#allocation8], 4294967136 }
 0x776   :  { %6782 = vsyncpa [#allocation6], 1 }
 0x777   :  { %6783 = vsyncpa [#allocation8], 1 }

</bundles_post_ra>
